<compile_context>
chip_gen: v7x
topology: tpu7x:2x2x1
jax: 0.10.0
libtpu: 0.0.40
codegen_flags: <defaults>
</compile_context>

<pallas_src>
import functools
import math

import jax
import jax.numpy as jnp
from jax.experimental import pallas as pl
from jax.experimental.pallas import tpu as pltpu


# --------------------------- helpers ---------------------------

def _cparams(*sem):
    return pltpu.CompilerParams(dimension_semantics=tuple(sem))


def _pick_block_n(n, target=512):
    """Largest multiple-of-8 divisor of n that is <= target, else n (full block)."""
    if n <= target:
        return n
    for b in range(target, 7, -8):
        if n % b == 0:
            return b
    return n


# --------------------------- STN trunk: conv1/2/3 + max over points ---------------------------

def _stn_trunk_kernel(x_ref, w1_ref, b1_ref, w2_ref, b2_ref, w3_ref, b3_ref, o_ref):
    j = pl.program_id(1)
    x = x_ref[0].astype(jnp.bfloat16)                                        # (bn, 3)
    h = jnp.dot(x, w1_ref[...], preferred_element_type=jnp.float32) + b1_ref[...]
    h = jnp.maximum(h, 0.0).astype(jnp.bfloat16)                             # (bn, 64)
    h = jnp.dot(h, w2_ref[...], preferred_element_type=jnp.float32) + b2_ref[...]
    h = jnp.maximum(h, 0.0).astype(jnp.bfloat16)                             # (bn, 128)
    h = jnp.dot(h, w3_ref[...], preferred_element_type=jnp.float32) + b3_ref[...]
    h = jnp.maximum(h, 0.0)                                                  # (bn, 1024) f32
    m = jnp.max(h, axis=0, keepdims=True)                                    # (1, 1024)

    @pl.when(j == 0)
    def _():
        o_ref[0] = m

    @pl.when(j > 0)
    def _():
        o_ref[0] = jnp.maximum(o_ref[0], m)


def stn_trunk(pts, p):
    """Fused STN3d conv1/2/3 (+BN+ReLU) and max over points: (B,N,3) -> (B,1024)."""
    B, N, _ = pts.shape
    bn = _pick_block_n(N)
    n_seg = N // bn
    w1, b1 = p["stn_c1"]
    w2, b2 = p["stn_c2"]
    w3, b3 = p["stn_c3"]
    out = pl.pallas_call(
        _stn_trunk_kernel,
        out_shape=jax.ShapeDtypeStruct((B, 1, 1024), jnp.float32),
        grid=(B, n_seg),
        in_specs=[
            pl.BlockSpec((1, bn, 3), lambda b, j: (b, j, 0)),
            pl.BlockSpec((3, 64), lambda b, j: (0, 0)),
            pl.BlockSpec((1, 64), lambda b, j: (0, 0)),
            pl.BlockSpec((64, 128), lambda b, j: (0, 0)),
            pl.BlockSpec((1, 128), lambda b, j: (0, 0)),
            pl.BlockSpec((128, 1024), lambda b, j: (0, 0)),
            pl.BlockSpec((1, 1024), lambda b, j: (0, 0)),
        ],
        out_specs=pl.BlockSpec((1, 1, 1024), lambda b, j: (b, 0, 0)),
        compiler_params=_cparams("parallel", "arbitrary"),
    )(pts, w1, b1, w2, b2, w3, b3)
    return out.reshape(B, 1024)


# --------------------------- fused 3-layer MLP head ---------------------------

def _mlp3_kernel(x_ref, w1_ref, b1_ref, w2_ref, b2_ref, w3_ref, b3_ref, o_ref,
                 *, log_softmax):
    h = x_ref[...].astype(jnp.bfloat16)
    h = jnp.maximum(jnp.dot(h, w1_ref[...], preferred_element_type=jnp.float32)
                    + b1_ref[...], 0.0)
    h = h.astype(jnp.bfloat16)
    h = jnp.maximum(jnp.dot(h, w2_ref[...], preferred_element_type=jnp.float32)
                    + b2_ref[...], 0.0)
    h = h.astype(jnp.bfloat16)
    y = jnp.dot(h, w3_ref[...], preferred_element_type=jnp.float32) + b3_ref[...]
    if log_softmax:
        m = jnp.max(y, axis=-1, keepdims=True)
        y = y - (m + jnp.log(jnp.sum(jnp.exp(y - m), axis=-1, keepdims=True)))
    o_ref[...] = y


def mlp3(x, l1, l2, l3, log_softmax=False):
    """Fused (Linear+BN+ReLU) x2 + Linear [+log_softmax] on a tiny resident (B,·) tile."""
    B, K = x.shape
    (w1, b1), (w2, b2), (w3, b3) = l1, l2, l3
    N = w3.shape[1]

    def full(shape):
        nd = len(shape)
        return pl.BlockSpec(shape, lambda i, nd=nd: (0,) * nd)

    return pl.pallas_call(
        functools.partial(_mlp3_kernel, log_softmax=log_softmax),
        out_shape=jax.ShapeDtypeStruct((B, N), jnp.float32),
        grid=(1,),
        in_specs=[full((B, K)),
                  full(w1.shape), full(b1.shape),
                  full(w2.shape), full(b2.shape),
                  full(w3.shape), full(b3.shape)],
        out_specs=full((B, N)),
        compiler_params=_cparams("arbitrary"),
    )(x, w1, b1, w2, b2, w3, b3)


# --------------------------- conv1 with folded 3x3 transform ---------------------------

def _feat_c1_kernel(x_ref, tw_ref, b_ref, o_ref):
    x = x_ref[0].astype(jnp.bfloat16)                                        # (bn, 3)
    h = jnp.dot(x, tw_ref[0], preferred_element_type=jnp.float32) + b_ref[...]
    o_ref[0] = jnp.maximum(h, 0.0).astype(o_ref.dtype)                       # bf16 out


def feat_c1(pts, tw, b1):
    """relu(bn1(conv1(bmm(x^T, trans)^T))) with trans folded into the weight."""
    B, N, _ = pts.shape
    bn = _pick_block_n(N)
    n_seg = N // bn
    return pl.pallas_call(
        _feat_c1_kernel,
        out_shape=jax.ShapeDtypeStruct((B, N, 64), jnp.bfloat16),
        grid=(B, n_seg),
        in_specs=[pl.BlockSpec((1, bn, 3), lambda b, j: (b, j, 0)),
                  pl.BlockSpec((1, 3, 64), lambda b, j: (b, 0, 0)),
                  pl.BlockSpec((1, 64), lambda b, j: (0, 0))],
        out_specs=pl.BlockSpec((1, bn, 64), lambda b, j: (b, j, 0)),
        compiler_params=_cparams("parallel", "parallel"),
    )(pts, tw, b1)


# --------------------------- SE squeeze/excite scale ---------------------------

def _se_scale_kernel(x_ref, w1_ref, w2_ref, o_ref):
    x = x_ref[0].astype(jnp.float32)                                         # (N, 64)
    m = jnp.mean(x, axis=0, keepdims=True)                                   # (1, 64)
    h = jnp.maximum(jnp.dot(m, w1_ref[...], preferred_element_type=jnp.float32), 0.0)
    o_ref[0] = jax.nn.sigmoid(jnp.dot(h, w2_ref[...],
                                      preferred_element_type=jnp.float32))   # (1, 64)


def se_scale(h1, w1, w2):
    """Standard squeeze-excite gate (reduction=16, bias-free FCs): (B,N,64) -> (B,1,64)."""
    B, N, C = h1.shape
    Cr = w1.shape[1]
    return pl.pallas_call(
        _se_scale_kernel,
        out_shape=jax.ShapeDtypeStruct((B, 1, C), jnp.float32),
        grid=(B,),
        in_specs=[pl.BlockSpec((1, N, C), lambda b: (b, 0, 0)),
                  pl.BlockSpec((C, Cr), lambda b: (0, 0)),
                  pl.BlockSpec((Cr, C), lambda b: (0, 0))],
        out_specs=pl.BlockSpec((1, 1, C), lambda b: (b, 0, 0)),
        compiler_params=_cparams("parallel"),
    )(h1, w1, w2)


# --------------------------- SE rescale + conv2 + conv3 + finest SPP bins ---------------------------

def _c2_c3_spp_kernel(x_ref, s_ref, w2_ref, b2_ref, w3_ref, b3_ref, o_ref):
    k = pl.program_id(2)
    x = (x_ref[0].astype(jnp.float32) * s_ref[0]).astype(jnp.bfloat16)       # SE rescale
    h = jnp.dot(x, w2_ref[...], preferred_element_type=jnp.float32) + b2_ref[...]
    h = jnp.maximum(h, 0.0).astype(jnp.bfloat16)                             # relu(bn2(conv2))
    h = jnp.dot(h, w3_ref[...], preferred_element_type=jnp.float32) + b3_ref[...]  # bn3(conv3)
    m = jnp.max(h, axis=0, keepdims=True)                                    # (1, 1024)

    @pl.when(k == 0)
    def _():
        o_ref[0, 0] = m

    @pl.when(k > 0)
    def _():
        o_ref[0, 0] = jnp.maximum(o_ref[0, 0], m)


def feat_c2_c3_spp(h1, s, p, n_bins=8):
    """Fused conv2+bn2+relu, conv3+bn3 and level-8 SPP max bins: -> (B, 8, 1024)."""
    B, N, _ = h1.shape
    assert N % (8 * n_bins) == 0, "point count must be divisible by 64 for the SPP tiling"
    seg = N // n_bins
    sub = _pick_block_n(seg)
    n_sub = seg // sub
    w2, b2 = p["feat_c2"]
    w3, b3 = p["feat_c3"]
    out = pl.pallas_call(
        _c2_c3_spp_kernel,
        out_shape=jax.ShapeDtypeStruct((B, n_bins, 1, 1024), jnp.float32),
        grid=(B, n_bins, n_sub),
        in_specs=[
            pl.BlockSpec((1, sub, 64), lambda b, j, k: (b, j * n_sub + k, 0)),
            pl.BlockSpec((1, 1, 64), lambda b, j, k: (b, 0, 0)),
            pl.BlockSpec((64, 128), lambda b, j, k: (0, 0)),
            pl.BlockSpec((1, 128), lambda b, j, k: (0, 0)),
            pl.BlockSpec((128, 1024), lambda b, j, k: (0, 0)),
            pl.BlockSpec((1, 1024), lambda b, j, k: (0, 0)),
        ],
        out_specs=pl.BlockSpec((1, 1, 1, 1024), lambda b, j, k: (b, j, 0, 0)),
        compiler_params=_cparams("parallel", "parallel", "arbitrary"),
    )(h1, s, w2, b2, w3, b3)
    return out.reshape(B, n_bins, 1024)


# --------------------------- SPP pyramid + Linear(15,2048) + max bridge ---------------------------

def _spp_linear_max_kernel(bins_ref, w_ref, b_ref, o_ref, *, n_out, n_chunk):
    b8 = bins_ref[0]                                                         # (8, Cb) f32
    m8 = [b8[i:i + 1, :] for i in range(8)]
    m4 = [jnp.maximum(m8[2 * i], m8[2 * i + 1]) for i in range(4)]
    m2 = [jnp.maximum(m4[2 * i], m4[2 * i + 1]) for i in range(2)]
    m1 = [jnp.maximum(m2[0], m2[1])]
    p15 = jnp.concatenate(m1 + m2 + m4 + m8, axis=0)                          # (15, Cb) pyramid

    acc = jnp.full((1, b8.shape[1]), -jnp.inf, dtype=jnp.float32)
    for k0 in range(0, n_out, n_chunk):                                       # static unroll
        y = jnp.dot(w_ref[k0:k0 + n_chunk, :], p15,
                    preferred_element_type=jnp.float32) + b_ref[k0:k0 + n_chunk, :]
        acc = jnp.maximum(acc, jnp.max(y, axis=0, keepdims=True))             # running max
    o_ref[0] = acc                                                            # (1, Cb) lane-dense


def spp_linear_max(bins, w, b, block_c=128, n_chunk=512):
    """Derive the 15-bin pyramid from the 8 finest bins, apply Linear(15,2048) and the
    max bridge back to one scalar per (batch, channel): (B,8,C) -> (B,C)."""
    B, n_bins, C = bins.shape
    n_out = w.shape[0]
    if n_out % n_chunk != 0:
        n_chunk = n_out
    assert C % block_c == 0
    out = pl.pallas_call(
        functools.partial(_spp_linear_max_kernel, n_out=n_out, n_chunk=n_chunk),
        out_shape=jax.ShapeDtypeStruct((B, 1, C), jnp.float32),
        grid=(B, C // block_c),
        in_specs=[pl.BlockSpec((1, n_bins, block_c), lambda b_, c: (b_, 0, c)),
                  pl.BlockSpec((n_out, 15), lambda b_, c: (0, 0)),
                  pl.BlockSpec((n_out, 1), lambda b_, c: (0, 0))],
        out_specs=pl.BlockSpec((1, 1, block_c), lambda b_, c: (b_, 0, c)),
        compiler_params=_cparams("parallel", "parallel"),
    )(bins, w, b)
    return out.reshape(B, C)


# --------------------------- parameters ---------------------------

def _init_lin(key, out_dim, in_dim):
    kw, kb = jax.random.split(key)
    w = (1.0 / math.sqrt(in_dim)) * jax.random.normal(kw, (out_dim, in_dim), jnp.float32)
    b = 0.01 * jax.random.normal(kb, (out_dim,), jnp.float32)
    return w, b


def _init_bn(key, dim):
    k1, k2, k3, k4 = jax.random.split(key, 4)
    gamma = 1.0 + 0.1 * jax.random.normal(k1, (dim,), jnp.float32)
    beta = 0.1 * jax.random.normal(k2, (dim,), jnp.float32)
    mean = 0.1 * jax.random.normal(k3, (dim,), jnp.float32)
    var = 0.5 + jax.random.uniform(k4, (dim,), jnp.float32)
    return gamma, beta, mean, var


def _fold(key, out_dim, in_dim, eps=1e-5):
    """Conv1d(k=1)/Linear folded with inference-mode BatchNorm1d -> (bf16 (K,N) weight, f32 bias)."""
    kl, kn = jax.random.split(key)
    w, b = _init_lin(kl, out_dim, in_dim)
    gamma, beta, mean, var = _init_bn(kn, out_dim)
    scale = gamma / jnp.sqrt(var + eps)
    w = w * scale[:, None]
    b = (b - mean) * scale + beta
    return w.T.astype(jnp.bfloat16), b.reshape(1, out_dim)


def _plain(key, out_dim, in_dim):
    w, b = _init_lin(key, out_dim, in_dim)
    return w.T.astype(jnp.bfloat16), b.reshape(1, out_dim)


def init_params(key, num_classes=2):
    keys = list(jax.random.split(key, 15))
    p = {}
    # STN3d
    p["stn_c1"] = _fold(keys[0], 64, 3)
    p["stn_c2"] = _fold(keys[1], 128, 64)
    p["stn_c3"] = _fold(keys[2], 1024, 128)
    p["stn_f1"] = _fold(keys[3], 512, 1024)
    p["stn_f2"] = _fold(keys[4], 256, 512)
    p["stn_f3"] = _plain(keys[5], 9, 256)
    # PointNetfeat backbone
    p["feat_c1"] = _fold(keys[6], 64, 3)
    p["feat_c2"] = _fold(keys[7], 128, 64)
    p["feat_c3"] = _fold(keys[8], 1024, 128)
    # SELayer(64): squeeze-excite, reduction=16, bias-free FCs
    p["se_w1"] = (1.0 / math.sqrt(64)) * jax.random.normal(keys[9], (64, 4), jnp.float32)
    p["se_w2"] = (1.0 / math.sqrt(4)) * jax.random.normal(keys[10], (4, 64), jnp.float32)
    # Linear(15, 2048): kept (out, in) = (2048, 15) for the lane-dense fused kernel
    lw, lb = _init_lin(keys[11], 2048, 15)
    p["feat_lin"] = (lw, lb.reshape(2048, 1))
    # Classifier head
    p["cls_f1"] = _fold(keys[12], 512, 1024)
    p["cls_f2"] = _fold(keys[13], 256, 512)
    p["cls_f3"] = _plain(keys[14], num_classes, 256)
    return p


# --------------------------- forward pass ---------------------------

def _stn(pts, p):
    B = pts.shape[0]
    g = stn_trunk(pts, p)                                         # (B, 1024)
    t9 = mlp3(g, p["stn_f1"], p["stn_f2"], p["stn_f3"])           # (B, 9)
    iden = jnp.eye(3, dtype=jnp.float32).reshape(1, 9)
    return (t9 + iden).reshape(B, 3, 3)


def pointnet_cls_forward(x, p):
    """x: (B, 3, N) float32 — PyTorch Conv1d NCW convention."""
    B, _, N = x.shape
    pts = jnp.transpose(x, (0, 2, 1))                             # (B, N, 3)

    # --- STN3d input transform (fused trunk + fused head) ---
    trans = _stn(pts, p)                                          # (B, 3, 3)

    # conv1+bn1+relu with the 3x3 transform folded into the weight:
    # (pts @ trans) @ W1 == pts @ (trans @ W1)  -> no separate bmm kernel.
    w1, b1 = p["feat_c1"]
    tw = jnp.einsum("bij,jk->bik", trans,
                    w1.astype(jnp.float32)).astype(jnp.bfloat16)  # (B, 3, 64)
    h1 = feat_c1(pts, tw, b1)                                     # (B, N, 64) bf16

    # SELayer gate (the x*s rescale itself is fused into the conv2 kernel below).
    s = se_scale(h1, p["se_w1"], p["se_w2"])                      # (B, 1, 64)

    # conv2+bn2+relu, conv3+bn3 and the finest SPP max bins, fused per point segment.
    bins = feat_c2_c3_spp(h1, s, p)                               # (B, 8, 1024)

    # SPP pyramid (1+2+4+8 = 15 bins) + Linear(15, 2048) + max bridge.
    # TODO(synk): the reference shapes do not compose (Linear(15,2048) output feeds
    # fc1=Linear(1024,512)); bridge by max-reducing the 2048 outputs per (batch,
    # channel), restoring the (B, 1024) global feature the classifier head expects.
    gfeat = spp_linear_max(bins, *p["feat_lin"])                  # (B, 1024)

    # Classifier head: fc1+bn1+relu, dropout(=identity at inference), fc2+bn2+relu,
    # fc3 + log_softmax — one fused kernel.
    logp = mlp3(gfeat, p["cls_f1"], p["cls_f2"], p["cls_f3"], log_softmax=True)
    return logp, trans, None                                      # trans_feat is None


if __name__ == "__main__":
    key = jax.random.PRNGKey(0)
    kp, kx = jax.random.split(key)

    B, N, K = 2, 64, 2
    params = init_params(kp, num_classes=K)
    x = jax.random.normal(kx, (B, 3, N), jnp.float32)

    fwd = jax.jit(pointnet_cls_forward)
    logp, trans, trans_feat = fwd(x, params)
    jax.block_until_ready((logp, trans))

    assert logp.shape == (B, K) and trans.shape == (B, 3, 3) and trans_feat is None
    print("KERNEL_OK")
</pallas_src>

<mosaic_0001>
module attributes {stable_mosaic.version = 11 : i64} {
  func.func @_stn_trunk_kernel(%arg0: i32, %arg1: i32, %arg2: memref<1x64x3xf32, #tpu.memory_space<vmem>>, %arg3: memref<3x64xbf16, #tpu.memory_space<vmem>>, %arg4: memref<1x64xf32, #tpu.memory_space<vmem>>, %arg5: memref<64x128xbf16, #tpu.memory_space<vmem>>, %arg6: memref<1x128xf32, #tpu.memory_space<vmem>>, %arg7: memref<128x1024xbf16, #tpu.memory_space<vmem>>, %arg8: memref<1x1024xf32, #tpu.memory_space<vmem>>, %arg9: memref<1x1x1024xf32, #tpu.memory_space<vmem>>) attributes {dimension_semantics = [#tpu.dimension_semantics<parallel>, #tpu.dimension_semantics<arbitrary>], iteration_bounds = array<i64: 2, 1>, scalar_prefetch = 0 : i64, scratch_operands = 0 : i64, tpu.core_type = #tpu.core_type<tc>, window_params = [{transform_indices = @transform_0, window_bounds = array<i64: 1, 64, 3>}, {pipeline_mode = #tpu.pipeline_mode<synchronous>, transform_indices = @transform_1, window_bounds = array<i64: 3, 64>}, {pipeline_mode = #tpu.pipeline_mode<synchronous>, transform_indices = @transform_2, window_bounds = array<i64: 1, 64>}, {pipeline_mode = #tpu.pipeline_mode<synchronous>, transform_indices = @transform_3, window_bounds = array<i64: 64, 128>}, {pipeline_mode = #tpu.pipeline_mode<synchronous>, transform_indices = @transform_4, window_bounds = array<i64: 1, 128>}, {pipeline_mode = #tpu.pipeline_mode<synchronous>, transform_indices = @transform_5, window_bounds = array<i64: 128, 1024>}, {pipeline_mode = #tpu.pipeline_mode<synchronous>, transform_indices = @transform_6, window_bounds = array<i64: 1, 1024>}, {transform_indices = @transform_7, window_bounds = array<i64: 1, 1, 1024>}]} {
    %c0 = arith.constant 0 : index
    %c0_0 = arith.constant 0 : index
    %c0_1 = arith.constant 0 : index
    %0 = vector.load %arg2[%c0, %c0_0, %c0_1] : memref<1x64x3xf32, #tpu.memory_space<vmem>>, vector<1x64x3xf32>
    %1 = vector.shape_cast %0 : vector<1x64x3xf32> to vector<64x3xf32>
    %2 = arith.truncf %1 : vector<64x3xf32> to vector<64x3xbf16>
    %c0_2 = arith.constant 0 : index
    %c0_3 = arith.constant 0 : index
    %3 = vector.load %arg3[%c0_2, %c0_3] : memref<3x64xbf16, #tpu.memory_space<vmem>>, vector<3x64xbf16>
    %cst = arith.constant dense<0.000000e+00> : vector<64x64xf32>
    %4 = tpu.matmul %2, %3, %cst {dimension_numbers = #tpu.dot_dimension_numbers<[1], [0], [0], [1], [0, 0, 1, 1], [], []>} : vector<64x3xbf16>, vector<3x64xbf16>, vector<64x64xf32> -> vector<64x64xf32>
    %c0_4 = arith.constant 0 : index
    %c0_5 = arith.constant 0 : index
    %5 = vector.load %arg4[%c0_4, %c0_5] : memref<1x64xf32, #tpu.memory_space<vmem>>, vector<1x64xf32>
    %6 = vector.broadcast %5 : vector<1x64xf32> to vector<64x64xf32>
    %7 = arith.addf %4, %6 : vector<64x64xf32>
    %cst_6 = arith.constant 0.000000e+00 : f32
    %8 = vector.broadcast %cst_6 : f32 to vector<64x64xf32>
    %9 = arith.maximumf %7, %8 : vector<64x64xf32>
    %10 = arith.truncf %9 : vector<64x64xf32> to vector<64x64xbf16>
    %c0_7 = arith.constant 0 : index
    %c0_8 = arith.constant 0 : index
    %11 = vector.load %arg5[%c0_7, %c0_8] : memref<64x128xbf16, #tpu.memory_space<vmem>>, vector<64x128xbf16>
    %cst_9 = arith.constant dense<0.000000e+00> : vector<64x128xf32>
    %12 = tpu.matmul %10, %11, %cst_9 {dimension_numbers = #tpu.dot_dimension_numbers<[1], [0], [0], [1], [0, 0, 1, 1], [], []>} : vector<64x64xbf16>, vector<64x128xbf16>, vector<64x128xf32> -> vector<64x128xf32>
    %c0_10 = arith.constant 0 : index
    %c0_11 = arith.constant 0 : index
    %13 = vector.load %arg6[%c0_10, %c0_11] : memref<1x128xf32, #tpu.memory_space<vmem>>, vector<1x128xf32>
    %14 = vector.broadcast %13 : vector<1x128xf32> to vector<64x128xf32>
    %15 = arith.addf %12, %14 : vector<64x128xf32>
    %cst_12 = arith.constant 0.000000e+00 : f32
    %16 = vector.broadcast %cst_12 : f32 to vector<64x128xf32>
    %17 = arith.maximumf %15, %16 : vector<64x128xf32>
    %18 = arith.truncf %17 : vector<64x128xf32> to vector<64x128xbf16>
    %c0_13 = arith.constant 0 : index
    %c0_14 = arith.constant 0 : index
    %19 = vector.load %arg7[%c0_13, %c0_14] : memref<128x1024xbf16, #tpu.memory_space<vmem>>, vector<128x1024xbf16>
    %cst_15 = arith.constant dense<0.000000e+00> : vector<64x1024xf32>
    %20 = tpu.matmul %18, %19, %cst_15 {dimension_numbers = #tpu.dot_dimension_numbers<[1], [0], [0], [1], [0, 0, 1, 1], [], []>} : vector<64x128xbf16>, vector<128x1024xbf16>, vector<64x1024xf32> -> vector<64x1024xf32>
    %c0_16 = arith.constant 0 : index
    %c0_17 = arith.constant 0 : index
    %21 = vector.load %arg8[%c0_16, %c0_17] : memref<1x1024xf32, #tpu.memory_space<vmem>>, vector<1x1024xf32>
    %22 = vector.broadcast %21 : vector<1x1024xf32> to vector<64x1024xf32>
    %23 = arith.addf %20, %22 : vector<64x1024xf32>
    %cst_18 = arith.constant 0.000000e+00 : f32
    %24 = vector.broadcast %cst_18 : f32 to vector<64x1024xf32>
    %25 = arith.maximumf %23, %24 : vector<64x1024xf32>
    %cst_19 = arith.constant dense<0xFF800000> : vector<1024xf32>
    %26 = vector.multi_reduction <maximumf>, %25, %cst_19 [0] : vector<64x1024xf32> to vector<1024xf32>
    %27 = vector.shape_cast %26 : vector<1024xf32> to vector<1x1024xf32>
    %c0_i32 = arith.constant 0 : i32
    %28 = arith.cmpi eq, %arg1, %c0_i32 : i32
    %29 = arith.extui %28 : i1 to i32
    %c0_i32_20 = arith.constant 0 : i32
    %30 = arith.cmpi ne, %29, %c0_i32_20 : i32
    scf.if %30 {
      %c0_23 = arith.constant 0 : index
      %c0_24 = arith.constant 0 : index
      %c0_25 = arith.constant 0 : index
      %34 = vector.load %arg9[%c0_23, %c0_24, %c0_25] : memref<1x1x1024xf32, #tpu.memory_space<vmem>>, vector<1x1x1024xf32>
      %35 = vector.shape_cast %34 : vector<1x1x1024xf32> to vector<1x1024xf32>
      %36 = vector.shape_cast %27 : vector<1x1024xf32> to vector<1x1x1024xf32>
      tpu.vector_store %arg9[%c0_23, %c0_24, %c0_25], %36 {strides = array<i32>} : memref<1x1x1024xf32, #tpu.memory_space<vmem>>, vector<1x1x1024xf32>,
    } else {
    }
    %c0_i32_21 = arith.constant 0 : i32
    %31 = arith.cmpi sgt, %arg1, %c0_i32_21 : i32
    %32 = arith.extui %31 : i1 to i32
    %c0_i32_22 = arith.constant 0 : i32
    %33 = arith.cmpi ne, %32, %c0_i32_22 : i32
    scf.if %33 {
      %c0_23 = arith.constant 0 : index
      %c0_24 = arith.constant 0 : index
      %c0_25 = arith.constant 0 : index
      %34 = vector.load %arg9[%c0_23, %c0_24, %c0_25] : memref<1x1x1024xf32, #tpu.memory_space<vmem>>, vector<1x1x1024xf32>
      %35 = vector.shape_cast %34 : vector<1x1x1024xf32> to vector<1x1024xf32>
      %36 = arith.maximumf %35, %27 : vector<1x1024xf32>
      %c0_26 = arith.constant 0 : index
      %c0_27 = arith.constant 0 : index
      %c0_28 = arith.constant 0 : index
      %37 = vector.load %arg9[%c0_26, %c0_27, %c0_28] : memref<1x1x1024xf32, #tpu.memory_space<vmem>>, vector<1x1x1024xf32>
      %38 = vector.shape_cast %37 : vector<1x1x1024xf32> to vector<1x1024xf32>
      %39 = vector.shape_cast %36 : vector<1x1024xf32> to vector<1x1x1024xf32>
      tpu.vector_store %arg9[%c0_26, %c0_27, %c0_28], %39 {strides = array<i32>} : memref<1x1x1024xf32, #tpu.memory_space<vmem>>, vector<1x1x1024xf32>,
    } else {
    }
    return
  }
  func.func @transform_0(%arg0: i32, %arg1: i32) -> (i32, i32, i32) {
    %c0_i32 = arith.constant 0 : i32
    %c0_i32_0 = arith.constant 0 : i32
    return %arg0, %arg1, %c0_i32 : i32, i32, i32
  }
  func.func @transform_1(%arg0: i32, %arg1: i32) -> (i32, i32) {
    %c0_i32 = arith.constant 0 : i32
    %c0_i32_0 = arith.constant 0 : i32
    %c0_i32_1 = arith.constant 0 : i32
    return %c0_i32, %c0_i32_0 : i32, i32
  }
  func.func @transform_2(%arg0: i32, %arg1: i32) -> (i32, i32) {
    %c0_i32 = arith.constant 0 : i32
    %c0_i32_0 = arith.constant 0 : i32
    %c0_i32_1 = arith.constant 0 : i32
    return %c0_i32, %c0_i32_0 : i32, i32
  }
  func.func @transform_3(%arg0: i32, %arg1: i32) -> (i32, i32) {
    %c0_i32 = arith.constant 0 : i32
    %c0_i32_0 = arith.constant 0 : i32
    %c0_i32_1 = arith.constant 0 : i32
    return %c0_i32, %c0_i32_0 : i32, i32
  }
  func.func @transform_4(%arg0: i32, %arg1: i32) -> (i32, i32) {
    %c0_i32 = arith.constant 0 : i32
    %c0_i32_0 = arith.constant 0 : i32
    %c0_i32_1 = arith.constant 0 : i32
    return %c0_i32, %c0_i32_0 : i32, i32
  }
  func.func @transform_5(%arg0: i32, %arg1: i32) -> (i32, i32) {
    %c0_i32 = arith.constant 0 : i32
    %c0_i32_0 = arith.constant 0 : i32
    %c0_i32_1 = arith.constant 0 : i32
    return %c0_i32, %c0_i32_0 : i32, i32
  }
  func.func @transform_6(%arg0: i32, %arg1: i32) -> (i32, i32) {
    %c0_i32 = arith.constant 0 : i32
    %c0_i32_0 = arith.constant 0 : i32
    %c0_i32_1 = arith.constant 0 : i32
    return %c0_i32, %c0_i32_0 : i32, i32
  }
  func.func @transform_7(%arg0: i32, %arg1: i32) -> (i32, i32, i32) {
    %c0_i32 = arith.constant 0 : i32
    %c0_i32_0 = arith.constant 0 : i32
    %c0_i32_1 = arith.constant 0 : i32
    return %arg0, %c0_i32, %c0_i32_0 : i32, i32, i32
  }
}

module attributes {stable_mosaic.version = 11 : i64} {
  func.func @_feat_c1_kernel(%arg0: i32, %arg1: i32, %arg2: memref<1x64x3xf32, #tpu.memory_space<vmem>>, %arg3: memref<1x3x64xbf16, #tpu.memory_space<vmem>>, %arg4: memref<1x64xf32, #tpu.memory_space<vmem>>, %arg5: memref<1x64x64xbf16, #tpu.memory_space<vmem>>) attributes {dimension_semantics = [#tpu.dimension_semantics<parallel>, #tpu.dimension_semantics<parallel>], iteration_bounds = array<i64: 2, 1>, scalar_prefetch = 0 : i64, scratch_operands = 0 : i64, tpu.core_type = #tpu.core_type<tc>, window_params = [{transform_indices = @transform_0, window_bounds = array<i64: 1, 64, 3>}, {transform_indices = @transform_1, window_bounds = array<i64: 1, 3, 64>}, {pipeline_mode = #tpu.pipeline_mode<synchronous>, transform_indices = @transform_2, window_bounds = array<i64: 1, 64>}, {transform_indices = @transform_3, window_bounds = array<i64: 1, 64, 64>}]} {
    %c0 = arith.constant 0 : index
    %c0_0 = arith.constant 0 : index
    %c0_1 = arith.constant 0 : index
    %0 = vector.load %arg2[%c0, %c0_0, %c0_1] : memref<1x64x3xf32, #tpu.memory_space<vmem>>, vector<1x64x3xf32>
    %1 = vector.shape_cast %0 : vector<1x64x3xf32> to vector<64x3xf32>
    %2 = arith.truncf %1 : vector<64x3xf32> to vector<64x3xbf16>
    %c0_2 = arith.constant 0 : index
    %c0_3 = arith.constant 0 : index
    %c0_4 = arith.constant 0 : index
    %3 = vector.load %arg3[%c0_2, %c0_3, %c0_4] : memref<1x3x64xbf16, #tpu.memory_space<vmem>>, vector<1x3x64xbf16>
    %4 = vector.shape_cast %3 : vector<1x3x64xbf16> to vector<3x64xbf16>
    %cst = arith.constant dense<0.000000e+00> : vector<64x64xf32>
    %5 = tpu.matmul %2, %4, %cst {dimension_numbers = #tpu.dot_dimension_numbers<[1], [0], [0], [1], [0, 0, 1, 1], [], []>} : vector<64x3xbf16>, vector<3x64xbf16>, vector<64x64xf32> -> vector<64x64xf32>
    %c0_5 = arith.constant 0 : index
    %c0_6 = arith.constant 0 : index
    %6 = vector.load %arg4[%c0_5, %c0_6] : memref<1x64xf32, #tpu.memory_space<vmem>>, vector<1x64xf32>
    %7 = vector.broadcast %6 : vector<1x64xf32> to vector<64x64xf32>
    %8 = arith.addf %5, %7 : vector<64x64xf32>
    %cst_7 = arith.constant 0.000000e+00 : f32
    %9 = vector.broadcast %cst_7 : f32 to vector<64x64xf32>
    %10 = arith.maximumf %8, %9 : vector<64x64xf32>
    %11 = arith.truncf %10 : vector<64x64xf32> to vector<64x64xbf16>
    %c0_8 = arith.constant 0 : index
    %c0_9 = arith.constant 0 : index
    %c0_10 = arith.constant 0 : index
    %12 = vector.load %arg5[%c0_8, %c0_9, %c0_10] : memref<1x64x64xbf16, #tpu.memory_space<vmem>>, vector<1x64x64xbf16>
    %13 = vector.shape_cast %12 : vector<1x64x64xbf16> to vector<64x64xbf16>
    %14 = vector.shape_cast %11 : vector<64x64xbf16> to vector<1x64x64xbf16>
    tpu.vector_store %arg5[%c0_8, %c0_9, %c0_10], %14 {strides = array<i32>} : memref<1x64x64xbf16, #tpu.memory_space<vmem>>, vector<1x64x64xbf16>,
    return
  }
  func.func @transform_0(%arg0: i32, %arg1: i32) -> (i32, i32, i32) {
    %c0_i32 = arith.constant 0 : i32
    %c0_i32_0 = arith.constant 0 : i32
    return %arg0, %arg1, %c0_i32 : i32, i32, i32
  }
  func.func @transform_1(%arg0: i32, %arg1: i32) -> (i32, i32, i32) {
    %c0_i32 = arith.constant 0 : i32
    %c0_i32_0 = arith.constant 0 : i32
    %c0_i32_1 = arith.constant 0 : i32
    return %arg0, %c0_i32, %c0_i32_0 : i32, i32, i32
  }
  func.func @transform_2(%arg0: i32, %arg1: i32) -> (i32, i32) {
    %c0_i32 = arith.constant 0 : i32
    %c0_i32_0 = arith.constant 0 : i32
    %c0_i32_1 = arith.constant 0 : i32
    return %c0_i32, %c0_i32_0 : i32, i32
  }
  func.func @transform_3(%arg0: i32, %arg1: i32) -> (i32, i32, i32) {
    %c0_i32 = arith.constant 0 : i32
    %c0_i32_0 = arith.constant 0 : i32
    return %arg0, %arg1, %c0_i32 : i32, i32, i32
  }
}

module attributes {stable_mosaic.version = 11 : i64} {
  func.func @_mlp3_kernel(%arg0: i32, %arg1: memref<2x1024xf32, #tpu.memory_space<vmem>>, %arg2: memref<1024x512xbf16, #tpu.memory_space<vmem>>, %arg3: memref<1x512xf32, #tpu.memory_space<vmem>>, %arg4: memref<512x256xbf16, #tpu.memory_space<vmem>>, %arg5: memref<1x256xf32, #tpu.memory_space<vmem>>, %arg6: memref<256x9xbf16, #tpu.memory_space<vmem>>, %arg7: memref<1x9xf32, #tpu.memory_space<vmem>>, %arg8: memref<2x9xf32, #tpu.memory_space<vmem>>) attributes {dimension_semantics = [#tpu.dimension_semantics<arbitrary>], iteration_bounds = array<i64: 1>, scalar_prefetch = 0 : i64, scratch_operands = 0 : i64, tpu.core_type = #tpu.core_type<tc>, window_params = [{pipeline_mode = #tpu.pipeline_mode<synchronous>, transform_indices = @transform_0, window_bounds = array<i64: 2, 1024>}, {pipeline_mode = #tpu.pipeline_mode<synchronous>, transform_indices = @transform_1, window_bounds = array<i64: 1024, 512>}, {pipeline_mode = #tpu.pipeline_mode<synchronous>, transform_indices = @transform_2, window_bounds = array<i64: 1, 512>}, {pipeline_mode = #tpu.pipeline_mode<synchronous>, transform_indices = @transform_3, window_bounds = array<i64: 512, 256>}, {pipeline_mode = #tpu.pipeline_mode<synchronous>, transform_indices = @transform_4, window_bounds = array<i64: 1, 256>}, {pipeline_mode = #tpu.pipeline_mode<synchronous>, transform_indices = @transform_5, window_bounds = array<i64: 256, 9>}, {pipeline_mode = #tpu.pipeline_mode<synchronous>, transform_indices = @transform_6, window_bounds = array<i64: 1, 9>}, {pipeline_mode = #tpu.pipeline_mode<synchronous>, transform_indices = @transform_7, window_bounds = array<i64: 2, 9>}]} {
    %c0 = arith.constant 0 : index
    %c0_0 = arith.constant 0 : index
    %0 = vector.load %arg1[%c0, %c0_0] : memref<2x1024xf32, #tpu.memory_space<vmem>>, vector<2x1024xf32>
    %1 = arith.truncf %0 : vector<2x1024xf32> to vector<2x1024xbf16>
    %c0_1 = arith.constant 0 : index
    %c0_2 = arith.constant 0 : index
    %2 = vector.load %arg2[%c0_1, %c0_2] : memref<1024x512xbf16, #tpu.memory_space<vmem>>, vector<1024x512xbf16>
    %cst = arith.constant dense<0.000000e+00> : vector<2x512xf32>
    %3 = tpu.matmul %1, %2, %cst {dimension_numbers = #tpu.dot_dimension_numbers<[1], [0], [0], [1], [0, 0, 1, 1], [], []>} : vector<2x1024xbf16>, vector<1024x512xbf16>, vector<2x512xf32> -> vector<2x512xf32>
    %c0_3 = arith.constant 0 : index
    %c0_4 = arith.constant 0 : index
    %4 = vector.load %arg3[%c0_3, %c0_4] : memref<1x512xf32, #tpu.memory_space<vmem>>, vector<1x512xf32>
    %5 = vector.broadcast %4 : vector<1x512xf32> to vector<2x512xf32>
    %6 = arith.addf %3, %5 : vector<2x512xf32>
    %cst_5 = arith.constant 0.000000e+00 : f32
    %7 = vector.broadcast %cst_5 : f32 to vector<2x512xf32>
    %8 = arith.maximumf %6, %7 : vector<2x512xf32>
    %9 = arith.truncf %8 : vector<2x512xf32> to vector<2x512xbf16>
    %c0_6 = arith.constant 0 : index
    %c0_7 = arith.constant 0 : index
    %10 = vector.load %arg4[%c0_6, %c0_7] : memref<512x256xbf16, #tpu.memory_space<vmem>>, vector<512x256xbf16>
    %cst_8 = arith.constant dense<0.000000e+00> : vector<2x256xf32>
    %11 = tpu.matmul %9, %10, %cst_8 {dimension_numbers = #tpu.dot_dimension_numbers<[1], [0], [0], [1], [0, 0, 1, 1], [], []>} : vector<2x512xbf16>, vector<512x256xbf16>, vector<2x256xf32> -> vector<2x256xf32>
    %c0_9 = arith.constant 0 : index
    %c0_10 = arith.constant 0 : index
    %12 = vector.load %arg5[%c0_9, %c0_10] : memref<1x256xf32, #tpu.memory_space<vmem>>, vector<1x256xf32>
    %13 = vector.broadcast %12 : vector<1x256xf32> to vector<2x256xf32>
    %14 = arith.addf %11, %13 : vector<2x256xf32>
    %cst_11 = arith.constant 0.000000e+00 : f32
    %15 = vector.broadcast %cst_11 : f32 to vector<2x256xf32>
    %16 = arith.maximumf %14, %15 : vector<2x256xf32>
    %17 = arith.truncf %16 : vector<2x256xf32> to vector<2x256xbf16>
    %c0_12 = arith.constant 0 : index
    %c0_13 = arith.constant 0 : index
    %18 = vector.load %arg6[%c0_12, %c0_13] : memref<256x9xbf16, #tpu.memory_space<vmem>>, vector<256x9xbf16>
    %cst_14 = arith.constant dense<0.000000e+00> : vector<2x9xf32>
    %19 = tpu.matmul %17, %18, %cst_14 {dimension_numbers = #tpu.dot_dimension_numbers<[1], [0], [0], [1], [0, 0, 1, 1], [], []>} : vector<2x256xbf16>, vector<256x9xbf16>, vector<2x9xf32> -> vector<2x9xf32>
    %c0_15 = arith.constant 0 : index
    %c0_16 = arith.constant 0 : index
    %20 = vector.load %arg7[%c0_15, %c0_16] : memref<1x9xf32, #tpu.memory_space<vmem>>, vector<1x9xf32>
    %21 = vector.broadcast %20 : vector<1x9xf32> to vector<2x9xf32>
    %22 = arith.addf %19, %21 : vector<2x9xf32>
    %c0_17 = arith.constant 0 : index
    %c0_18 = arith.constant 0 : index
    %23 = vector.load %arg8[%c0_17, %c0_18] : memref<2x9xf32, #tpu.memory_space<vmem>>, vector<2x9xf32>
    tpu.vector_store %arg8[%c0_17, %c0_18], %22 {strides = array<i32>} : memref<2x9xf32, #tpu.memory_space<vmem>>, vector<2x9xf32>,
    return
  }
  func.func @transform_0(%arg0: i32) -> (i32, i32) {
    %c0_i32 = arith.constant 0 : i32
    %c0_i32_0 = arith.constant 0 : i32
    %c0_i32_1 = arith.constant 0 : i32
    return %c0_i32, %c0_i32_0 : i32, i32
  }
  func.func @transform_1(%arg0: i32) -> (i32, i32) {
    %c0_i32 = arith.constant 0 : i32
    %c0_i32_0 = arith.constant 0 : i32
    %c0_i32_1 = arith.constant 0 : i32
    return %c0_i32, %c0_i32_0 : i32, i32
  }
  func.func @transform_2(%arg0: i32) -> (i32, i32) {
    %c0_i32 = arith.constant 0 : i32
    %c0_i32_0 = arith.constant 0 : i32
    %c0_i32_1 = arith.constant 0 : i32
    return %c0_i32, %c0_i32_0 : i32, i32
  }
  func.func @transform_3(%arg0: i32) -> (i32, i32) {
    %c0_i32 = arith.constant 0 : i32
    %c0_i32_0 = arith.constant 0 : i32
    %c0_i32_1 = arith.constant 0 : i32
    return %c0_i32, %c0_i32_0 : i32, i32
  }
  func.func @transform_4(%arg0: i32) -> (i32, i32) {
    %c0_i32 = arith.constant 0 : i32
    %c0_i32_0 = arith.constant 0 : i32
    %c0_i32_1 = arith.constant 0 : i32
    return %c0_i32, %c0_i32_0 : i32, i32
  }
  func.func @transform_5(%arg0: i32) -> (i32, i32) {
    %c0_i32 = arith.constant 0 : i32
    %c0_i32_0 = arith.constant 0 : i32
    %c0_i32_1 = arith.constant 0 : i32
    return %c0_i32, %c0_i32_0 : i32, i32
  }
  func.func @transform_6(%arg0: i32) -> (i32, i32) {
    %c0_i32 = arith.constant 0 : i32
    %c0_i32_0 = arith.constant 0 : i32
    %c0_i32_1 = arith.constant 0 : i32
    return %c0_i32, %c0_i32_0 : i32, i32
  }
  func.func @transform_7(%arg0: i32) -> (i32, i32) {
    %c0_i32 = arith.constant 0 : i32
    %c0_i32_0 = arith.constant 0 : i32
    %c0_i32_1 = arith.constant 0 : i32
    return %c0_i32, %c0_i32_0 : i32, i32
  }
}

module attributes {stable_mosaic.version = 11 : i64} {
  func.func @_se_scale_kernel(%arg0: i32, %arg1: memref<1x64x64xbf16, #tpu.memory_space<vmem>>, %arg2: memref<64x4xf32, #tpu.memory_space<vmem>>, %arg3: memref<4x64xf32, #tpu.memory_space<vmem>>, %arg4: memref<1x1x64xf32, #tpu.memory_space<vmem>>) attributes {dimension_semantics = [#tpu.dimension_semantics<parallel>], iteration_bounds = array<i64: 2>, scalar_prefetch = 0 : i64, scratch_operands = 0 : i64, tpu.core_type = #tpu.core_type<tc>, window_params = [{transform_indices = @transform_0, window_bounds = array<i64: 1, 64, 64>}, {pipeline_mode = #tpu.pipeline_mode<synchronous>, transform_indices = @transform_1, window_bounds = array<i64: 64, 4>}, {pipeline_mode = #tpu.pipeline_mode<synchronous>, transform_indices = @transform_2, window_bounds = array<i64: 4, 64>}, {transform_indices = @transform_3, window_bounds = array<i64: 1, 1, 64>}]} {
    %c0 = arith.constant 0 : index
    %c0_0 = arith.constant 0 : index
    %c0_1 = arith.constant 0 : index
    %0 = vector.load %arg1[%c0, %c0_0, %c0_1] : memref<1x64x64xbf16, #tpu.memory_space<vmem>>, vector<1x64x64xbf16>
    %1 = vector.shape_cast %0 : vector<1x64x64xbf16> to vector<64x64xbf16>
    %2 = arith.extf %1 : vector<64x64xbf16> to vector<64x64xf32>
    %cst = arith.constant dense<0.000000e+00> : vector<64xf32>
    %3 = vector.multi_reduction <add>, %2, %cst [0] : vector<64x64xf32> to vector<64xf32>
    %4 = vector.shape_cast %3 : vector<64xf32> to vector<1x64xf32>
    %cst_2 = arith.constant 6.400000e+01 : f32
    %5 = vector.broadcast %cst_2 : f32 to vector<1x64xf32>
    %6 = arith.divf %4, %5 : vector<1x64xf32>
    %c0_3 = arith.constant 0 : index
    %c0_4 = arith.constant 0 : index
    %7 = vector.load %arg2[%c0_3, %c0_4] : memref<64x4xf32, #tpu.memory_space<vmem>>, vector<64x4xf32>
    %cst_5 = arith.constant dense<0.000000e+00> : vector<1x4xf32>
    %8 = tpu.matmul %6, %7, %cst_5 {dimension_numbers = #tpu.dot_dimension_numbers<[1], [0], [0], [1], [0, 0, 1, 1], [], []>} : vector<1x64xf32>, vector<64x4xf32>, vector<1x4xf32> -> vector<1x4xf32>
    %cst_6 = arith.constant 0.000000e+00 : f32
    %9 = vector.broadcast %cst_6 : f32 to vector<1x4xf32>
    %10 = arith.maximumf %8, %9 : vector<1x4xf32>
    %c0_7 = arith.constant 0 : index
    %c0_8 = arith.constant 0 : index
    %11 = vector.load %arg3[%c0_7, %c0_8] : memref<4x64xf32, #tpu.memory_space<vmem>>, vector<4x64xf32>
    %cst_9 = arith.constant dense<0.000000e+00> : vector<1x64xf32>
    %12 = tpu.matmul %10, %11, %cst_9 {dimension_numbers = #tpu.dot_dimension_numbers<[1], [0], [0], [1], [0, 0, 1, 1], [], []>} : vector<1x4xf32>, vector<4x64xf32>, vector<1x64xf32> -> vector<1x64xf32>
    %13 = arith.negf %12 : vector<1x64xf32>
    %14 = math.exp %13 : vector<1x64xf32>
    %cst_10 = arith.constant 1.000000e+00 : f32
    %15 = vector.broadcast %cst_10 : f32 to vector<1x64xf32>
    %16 = arith.addf %15, %14 : vector<1x64xf32>
    %17 = arith.divf %15, %16 : vector<1x64xf32>
    %c0_11 = arith.constant 0 : index
    %c0_12 = arith.constant 0 : index
    %c0_13 = arith.constant 0 : index
    %18 = vector.load %arg4[%c0_11, %c0_12, %c0_13] : memref<1x1x64xf32, #tpu.memory_space<vmem>>, vector<1x1x64xf32>
    %19 = vector.shape_cast %18 : vector<1x1x64xf32> to vector<1x64xf32>
    %20 = vector.shape_cast %17 : vector<1x64xf32> to vector<1x1x64xf32>
    tpu.vector_store %arg4[%c0_11, %c0_12, %c0_13], %20 {strides = array<i32>} : memref<1x1x64xf32, #tpu.memory_space<vmem>>, vector<1x1x64xf32>,
    return
  }
  func.func @transform_0(%arg0: i32) -> (i32, i32, i32) {
    %c0_i32 = arith.constant 0 : i32
    %c0_i32_0 = arith.constant 0 : i32
    %c0_i32_1 = arith.constant 0 : i32
    return %arg0, %c0_i32, %c0_i32_0 : i32, i32, i32
  }
  func.func @transform_1(%arg0: i32) -> (i32, i32) {
    %c0_i32 = arith.constant 0 : i32
    %c0_i32_0 = arith.constant 0 : i32
    %c0_i32_1 = arith.constant 0 : i32
    return %c0_i32, %c0_i32_0 : i32, i32
  }
  func.func @transform_2(%arg0: i32) -> (i32, i32) {
    %c0_i32 = arith.constant 0 : i32
    %c0_i32_0 = arith.constant 0 : i32
    %c0_i32_1 = arith.constant 0 : i32
    return %c0_i32, %c0_i32_0 : i32, i32
  }
  func.func @transform_3(%arg0: i32) -> (i32, i32, i32) {
    %c0_i32 = arith.constant 0 : i32
    %c0_i32_0 = arith.constant 0 : i32
    %c0_i32_1 = arith.constant 0 : i32
    return %arg0, %c0_i32, %c0_i32_0 : i32, i32, i32
  }
}

module attributes {stable_mosaic.version = 11 : i64} {
  func.func @_c2_c3_spp_kernel(%arg0: i32, %arg1: i32, %arg2: i32, %arg3: memref<1x8x64xbf16, #tpu.memory_space<vmem>>, %arg4: memref<1x1x64xf32, #tpu.memory_space<vmem>>, %arg5: memref<64x128xbf16, #tpu.memory_space<vmem>>, %arg6: memref<1x128xf32, #tpu.memory_space<vmem>>, %arg7: memref<128x1024xbf16, #tpu.memory_space<vmem>>, %arg8: memref<1x1024xf32, #tpu.memory_space<vmem>>, %arg9: memref<1x1x1x1024xf32, #tpu.memory_space<vmem>>) attributes {dimension_semantics = [#tpu.dimension_semantics<parallel>, #tpu.dimension_semantics<parallel>, #tpu.dimension_semantics<arbitrary>], iteration_bounds = array<i64: 2, 8, 1>, scalar_prefetch = 0 : i64, scratch_operands = 0 : i64, tpu.core_type = #tpu.core_type<tc>, window_params = [{transform_indices = @transform_0, window_bounds = array<i64: 1, 8, 64>}, {transform_indices = @transform_1, window_bounds = array<i64: 1, 1, 64>}, {pipeline_mode = #tpu.pipeline_mode<synchronous>, transform_indices = @transform_2, window_bounds = array<i64: 64, 128>}, {pipeline_mode = #tpu.pipeline_mode<synchronous>, transform_indices = @transform_3, window_bounds = array<i64: 1, 128>}, {pipeline_mode = #tpu.pipeline_mode<synchronous>, transform_indices = @transform_4, window_bounds = array<i64: 128, 1024>}, {pipeline_mode = #tpu.pipeline_mode<synchronous>, transform_indices = @transform_5, window_bounds = array<i64: 1, 1024>}, {transform_indices = @transform_6, window_bounds = array<i64: 1, 1, 1, 1024>}]} {
    %c0 = arith.constant 0 : index
    %c0_0 = arith.constant 0 : index
    %c0_1 = arith.constant 0 : index
    %0 = vector.load %arg3[%c0, %c0_0, %c0_1] : memref<1x8x64xbf16, #tpu.memory_space<vmem>>, vector<1x8x64xbf16>
    %1 = vector.shape_cast %0 : vector<1x8x64xbf16> to vector<8x64xbf16>
    %2 = arith.extf %1 : vector<8x64xbf16> to vector<8x64xf32>
    %c0_2 = arith.constant 0 : index
    %c0_3 = arith.constant 0 : index
    %c0_4 = arith.constant 0 : index
    %3 = vector.load %arg4[%c0_2, %c0_3, %c0_4] : memref<1x1x64xf32, #tpu.memory_space<vmem>>, vector<1x1x64xf32>
    %4 = vector.shape_cast %3 : vector<1x1x64xf32> to vector<1x64xf32>
    %5 = vector.broadcast %4 : vector<1x64xf32> to vector<8x64xf32>
    %6 = arith.mulf %2, %5 : vector<8x64xf32>
    %7 = arith.truncf %6 : vector<8x64xf32> to vector<8x64xbf16>
    %c0_5 = arith.constant 0 : index
    %c0_6 = arith.constant 0 : index
    %8 = vector.load %arg5[%c0_5, %c0_6] : memref<64x128xbf16, #tpu.memory_space<vmem>>, vector<64x128xbf16>
    %cst = arith.constant dense<0.000000e+00> : vector<8x128xf32>
    %9 = tpu.matmul %7, %8, %cst {dimension_numbers = #tpu.dot_dimension_numbers<[1], [0], [0], [1], [0, 0, 1, 1], [], []>} : vector<8x64xbf16>, vector<64x128xbf16>, vector<8x128xf32> -> vector<8x128xf32>
    %c0_7 = arith.constant 0 : index
    %c0_8 = arith.constant 0 : index
    %10 = vector.load %arg6[%c0_7, %c0_8] : memref<1x128xf32, #tpu.memory_space<vmem>>, vector<1x128xf32>
    %11 = vector.broadcast %10 : vector<1x128xf32> to vector<8x128xf32>
    %12 = arith.addf %9, %11 : vector<8x128xf32>
    %cst_9 = arith.constant 0.000000e+00 : f32
    %13 = vector.broadcast %cst_9 : f32 to vector<8x128xf32>
    %14 = arith.maximumf %12, %13 : vector<8x128xf32>
    %15 = arith.truncf %14 : vector<8x128xf32> to vector<8x128xbf16>
    %c0_10 = arith.constant 0 : index
    %c0_11 = arith.constant 0 : index
    %16 = vector.load %arg7[%c0_10, %c0_11] : memref<128x1024xbf16, #tpu.memory_space<vmem>>, vector<128x1024xbf16>
    %cst_12 = arith.constant dense<0.000000e+00> : vector<8x1024xf32>
    %17 = tpu.matmul %15, %16, %cst_12 {dimension_numbers = #tpu.dot_dimension_numbers<[1], [0], [0], [1], [0, 0, 1, 1], [], []>} : vector<8x128xbf16>, vector<128x1024xbf16>, vector<8x1024xf32> -> vector<8x1024xf32>
    %c0_13 = arith.constant 0 : index
    %c0_14 = arith.constant 0 : index
    %18 = vector.load %arg8[%c0_13, %c0_14] : memref<1x1024xf32, #tpu.memory_space<vmem>>, vector<1x1024xf32>
    %19 = vector.broadcast %18 : vector<1x1024xf32> to vector<8x1024xf32>
    %20 = arith.addf %17, %19 : vector<8x1024xf32>
    %cst_15 = arith.constant dense<0xFF800000> : vector<1024xf32>
    %21 = vector.multi_reduction <maximumf>, %20, %cst_15 [0] : vector<8x1024xf32> to vector<1024xf32>
    %22 = vector.shape_cast %21 : vector<1024xf32> to vector<1x1024xf32>
    %c0_i32 = arith.constant 0 : i32
    %23 = arith.cmpi eq, %arg2, %c0_i32 : i32
    %24 = arith.extui %23 : i1 to i32
    %c0_i32_16 = arith.constant 0 : i32
    %25 = arith.cmpi ne, %24, %c0_i32_16 : i32
    scf.if %25 {
      %c0_19 = arith.constant 0 : index
      %c0_20 = arith.constant 0 : index
      %c0_21 = arith.constant 0 : index
      %c0_22 = arith.constant 0 : index
      %29 = vector.load %arg9[%c0_19, %c0_20, %c0_21, %c0_22] : memref<1x1x1x1024xf32, #tpu.memory_space<vmem>>, vector<1x1x1x1024xf32>
      %30 = vector.shape_cast %29 : vector<1x1x1x1024xf32> to vector<1x1024xf32>
      %31 = vector.shape_cast %22 : vector<1x1024xf32> to vector<1x1x1x1024xf32>
      tpu.vector_store %arg9[%c0_19, %c0_20, %c0_21, %c0_22], %31 {strides = array<i32>} : memref<1x1x1x1024xf32, #tpu.memory_space<vmem>>, vector<1x1x1x1024xf32>,
    } else {
    }
    %c0_i32_17 = arith.constant 0 : i32
    %26 = arith.cmpi sgt, %arg2, %c0_i32_17 : i32
    %27 = arith.extui %26 : i1 to i32
    %c0_i32_18 = arith.constant 0 : i32
    %28 = arith.cmpi ne, %27, %c0_i32_18 : i32
    scf.if %28 {
      %c0_19 = arith.constant 0 : index
      %c0_20 = arith.constant 0 : index
      %c0_21 = arith.constant 0 : index
      %c0_22 = arith.constant 0 : index
      %29 = vector.load %arg9[%c0_19, %c0_20, %c0_21, %c0_22] : memref<1x1x1x1024xf32, #tpu.memory_space<vmem>>, vector<1x1x1x1024xf32>
      %30 = vector.shape_cast %29 : vector<1x1x1x1024xf32> to vector<1x1024xf32>
      %31 = arith.maximumf %30, %22 : vector<1x1024xf32>
      %c0_23 = arith.constant 0 : index
      %c0_24 = arith.constant 0 : index
      %c0_25 = arith.constant 0 : index
      %c0_26 = arith.constant 0 : index
      %32 = vector.load %arg9[%c0_23, %c0_24, %c0_25, %c0_26] : memref<1x1x1x1024xf32, #tpu.memory_space<vmem>>, vector<1x1x1x1024xf32>
      %33 = vector.shape_cast %32 : vector<1x1x1x1024xf32> to vector<1x1024xf32>
      %34 = vector.shape_cast %31 : vector<1x1024xf32> to vector<1x1x1x1024xf32>
      tpu.vector_store %arg9[%c0_23, %c0_24, %c0_25, %c0_26], %34 {strides = array<i32>} : memref<1x1x1x1024xf32, #tpu.memory_space<vmem>>, vector<1x1x1x1024xf32>,
    } else {
    }
    return
  }
  func.func @transform_0(%arg0: i32, %arg1: i32, %arg2: i32) -> (i32, i32, i32) {
    %c1_i32 = arith.constant 1 : i32
    %0 = arith.muli %arg1, %c1_i32 : i32
    %1 = arith.addi %0, %arg2 : i32
    %c0_i32 = arith.constant 0 : i32
    %c0_i32_0 = arith.constant 0 : i32
    return %arg0, %1, %c0_i32 : i32, i32, i32
  }
  func.func @transform_1(%arg0: i32, %arg1: i32, %arg2: i32) -> (i32, i32, i32) {
    %c0_i32 = arith.constant 0 : i32
    %c0_i32_0 = arith.constant 0 : i32
    %c0_i32_1 = arith.constant 0 : i32
    return %arg0, %c0_i32, %c0_i32_0 : i32, i32, i32
  }
  func.func @transform_2(%arg0: i32, %arg1: i32, %arg2: i32) -> (i32, i32) {
    %c0_i32 = arith.constant 0 : i32
    %c0_i32_0 = arith.constant 0 : i32
    %c0_i32_1 = arith.constant 0 : i32
    return %c0_i32, %c0_i32_0 : i32, i32
  }
  func.func @transform_3(%arg0: i32, %arg1: i32, %arg2: i32) -> (i32, i32) {
    %c0_i32 = arith.constant 0 : i32
    %c0_i32_0 = arith.constant 0 : i32
    %c0_i32_1 = arith.constant 0 : i32
    return %c0_i32, %c0_i32_0 : i32, i32
  }
  func.func @transform_4(%arg0: i32, %arg1: i32, %arg2: i32) -> (i32, i32) {
    %c0_i32 = arith.constant 0 : i32
    %c0_i32_0 = arith.constant 0 : i32
    %c0_i32_1 = arith.constant 0 : i32
    return %c0_i32, %c0_i32_0 : i32, i32
  }
  func.func @transform_5(%arg0: i32, %arg1: i32, %arg2: i32) -> (i32, i32) {
    %c0_i32 = arith.constant 0 : i32
    %c0_i32_0 = arith.constant 0 : i32
    %c0_i32_1 = arith.constant 0 : i32
    return %c0_i32, %c0_i32_0 : i32, i32
  }
  func.func @transform_6(%arg0: i32, %arg1: i32, %arg2: i32) -> (i32, i32, i32, i32) {
    %c0_i32 = arith.constant 0 : i32
    %c0_i32_0 = arith.constant 0 : i32
    %c0_i32_1 = arith.constant 0 : i32
    return %arg0, %arg1, %c0_i32, %c0_i32_0 : i32, i32, i32, i32
  }
}

module attributes {stable_mosaic.version = 11 : i64} {
  func.func @_spp_linear_max_kernel(%arg0: i32, %arg1: i32, %arg2: memref<1x8x128xf32, #tpu.memory_space<vmem>>, %arg3: memref<2048x15xf32, #tpu.memory_space<vmem>>, %arg4: memref<2048x1xf32, #tpu.memory_space<vmem>>, %arg5: memref<1x1x128xf32, #tpu.memory_space<vmem>>) attributes {dimension_semantics = [#tpu.dimension_semantics<parallel>, #tpu.dimension_semantics<parallel>], iteration_bounds = array<i64: 2, 8>, scalar_prefetch = 0 : i64, scratch_operands = 0 : i64, tpu.core_type = #tpu.core_type<tc>, window_params = [{transform_indices = @transform_0, window_bounds = array<i64: 1, 8, 128>}, {pipeline_mode = #tpu.pipeline_mode<synchronous>, transform_indices = @transform_1, window_bounds = array<i64: 2048, 15>}, {pipeline_mode = #tpu.pipeline_mode<synchronous>, transform_indices = @transform_2, window_bounds = array<i64: 2048, 1>}, {transform_indices = @transform_3, window_bounds = array<i64: 1, 1, 128>}]} {
    %c0 = arith.constant 0 : index
    %c0_0 = arith.constant 0 : index
    %c0_1 = arith.constant 0 : index
    %0 = vector.load %arg2[%c0, %c0_0, %c0_1] : memref<1x8x128xf32, #tpu.memory_space<vmem>>, vector<1x8x128xf32>
    %1 = vector.shape_cast %0 : vector<1x8x128xf32> to vector<8x128xf32>
    %2 = vector.extract_strided_slice %1 {offsets = [0, 0], sizes = [1, 128], strides = [1, 1]} : vector<8x128xf32> to vector<1x128xf32>
    %3 = vector.extract_strided_slice %1 {offsets = [1, 0], sizes = [1, 128], strides = [1, 1]} : vector<8x128xf32> to vector<1x128xf32>
    %4 = vector.extract_strided_slice %1 {offsets = [2, 0], sizes = [1, 128], strides = [1, 1]} : vector<8x128xf32> to vector<1x128xf32>
    %5 = vector.extract_strided_slice %1 {offsets = [3, 0], sizes = [1, 128], strides = [1, 1]} : vector<8x128xf32> to vector<1x128xf32>
    %6 = vector.extract_strided_slice %1 {offsets = [4, 0], sizes = [1, 128], strides = [1, 1]} : vector<8x128xf32> to vector<1x128xf32>
    %7 = vector.extract_strided_slice %1 {offsets = [5, 0], sizes = [1, 128], strides = [1, 1]} : vector<8x128xf32> to vector<1x128xf32>
    %8 = vector.extract_strided_slice %1 {offsets = [6, 0], sizes = [1, 128], strides = [1, 1]} : vector<8x128xf32> to vector<1x128xf32>
    %9 = vector.extract_strided_slice %1 {offsets = [7, 0], sizes = [1, 128], strides = [1, 1]} : vector<8x128xf32> to vector<1x128xf32>
    %10 = arith.maximumf %2, %3 : vector<1x128xf32>
    %11 = arith.maximumf %4, %5 : vector<1x128xf32>
    %12 = arith.maximumf %6, %7 : vector<1x128xf32>
    %13 = arith.maximumf %8, %9 : vector<1x128xf32>
    %14 = arith.maximumf %10, %11 : vector<1x128xf32>
    %15 = arith.maximumf %12, %13 : vector<1x128xf32>
    %16 = arith.maximumf %14, %15 : vector<1x128xf32>
    %17 = tpu.concatenate %16, %14, %15, %10, %11, %12, %13, %2, %3, %4, %5, %6, %7, %8, %9 in 0 : vector<1x128xf32>, vector<1x128xf32>, vector<1x128xf32>, vector<1x128xf32>, vector<1x128xf32>, vector<1x128xf32>, vector<1x128xf32>, vector<1x128xf32>, vector<1x128xf32>, vector<1x128xf32>, vector<1x128xf32>, vector<1x128xf32>, vector<1x128xf32>, vector<1x128xf32>, vector<1x128xf32> -> vector<15x128xf32>
    %cst = arith.constant 0xFF800000 : f32
    %18 = vector.broadcast %cst : f32 to vector<1x128xf32>
    %c0_2 = arith.constant 0 : index
    %c0_3 = arith.constant 0 : index
    %19 = vector.load %arg3[%c0_2, %c0_3] : memref<2048x15xf32, #tpu.memory_space<vmem>>, vector<512x15xf32>
    %cst_4 = arith.constant dense<0.000000e+00> : vector<512x128xf32>
    %20 = tpu.matmul %19, %17, %cst_4 {dimension_numbers = #tpu.dot_dimension_numbers<[1], [0], [0], [1], [0, 0, 1, 1], [], []>} : vector<512x15xf32>, vector<15x128xf32>, vector<512x128xf32> -> vector<512x128xf32>
    %c0_5 = arith.constant 0 : index
    %c0_6 = arith.constant 0 : index
    %21 = vector.load %arg4[%c0_5, %c0_6] : memref<2048x1xf32, #tpu.memory_space<vmem>>, vector<512x1xf32>
    %22 = vector.broadcast %21 : vector<512x1xf32> to vector<512x128xf32>
    %23 = arith.addf %20, %22 : vector<512x128xf32>
    %cst_7 = arith.constant dense<0xFF800000> : vector<128xf32>
    %24 = vector.multi_reduction <maximumf>, %23, %cst_7 [0] : vector<512x128xf32> to vector<128xf32>
    %25 = vector.shape_cast %24 : vector<128xf32> to vector<1x128xf32>
    %26 = arith.maximumf %18, %25 : vector<1x128xf32>
    %c512 = arith.constant 512 : index
    %c0_8 = arith.constant 0 : index
    %27 = vector.load %arg3[%c512, %c0_8] : memref<2048x15xf32, #tpu.memory_space<vmem>>, vector<512x15xf32>
    %cst_9 = arith.constant dense<0.000000e+00> : vector<512x128xf32>
    %28 = tpu.matmul %27, %17, %cst_9 {dimension_numbers = #tpu.dot_dimension_numbers<[1], [0], [0], [1], [0, 0, 1, 1], [], []>} : vector<512x15xf32>, vector<15x128xf32>, vector<512x128xf32> -> vector<512x128xf32>
    %c512_10 = arith.constant 512 : index
    %c0_11 = arith.constant 0 : index
    %29 = vector.load %arg4[%c512_10, %c0_11] : memref<2048x1xf32, #tpu.memory_space<vmem>>, vector<512x1xf32>
    %30 = vector.broadcast %29 : vector<512x1xf32> to vector<512x128xf32>
    %31 = arith.addf %28, %30 : vector<512x128xf32>
    %cst_12 = arith.constant dense<0xFF800000> : vector<128xf32>
    %32 = vector.multi_reduction <maximumf>, %31, %cst_12 [0] : vector<512x128xf32> to vector<128xf32>
    %33 = vector.shape_cast %32 : vector<128xf32> to vector<1x128xf32>
    %34 = arith.maximumf %26, %33 : vector<1x128xf32>
    %c1024 = arith.constant 1024 : index
    %c0_13 = arith.constant 0 : index
    %35 = vector.load %arg3[%c1024, %c0_13] : memref<2048x15xf32, #tpu.memory_space<vmem>>, vector<512x15xf32>
    %cst_14 = arith.constant dense<0.000000e+00> : vector<512x128xf32>
    %36 = tpu.matmul %35, %17, %cst_14 {dimension_numbers = #tpu.dot_dimension_numbers<[1], [0], [0], [1], [0, 0, 1, 1], [], []>} : vector<512x15xf32>, vector<15x128xf32>, vector<512x128xf32> -> vector<512x128xf32>
    %c1024_15 = arith.constant 1024 : index
    %c0_16 = arith.constant 0 : index
    %37 = vector.load %arg4[%c1024_15, %c0_16] : memref<2048x1xf32, #tpu.memory_space<vmem>>, vector<512x1xf32>
    %38 = vector.broadcast %37 : vector<512x1xf32> to vector<512x128xf32>
    %39 = arith.addf %36, %38 : vector<512x128xf32>
    %cst_17 = arith.constant dense<0xFF800000> : vector<128xf32>
    %40 = vector.multi_reduction <maximumf>, %39, %cst_17 [0] : vector<512x128xf32> to vector<128xf32>
    %41 = vector.shape_cast %40 : vector<128xf32> to vector<1x128xf32>
    %42 = arith.maximumf %34, %41 : vector<1x128xf32>
    %c1536 = arith.constant 1536 : index
    %c0_18 = arith.constant 0 : index
    %43 = vector.load %arg3[%c1536, %c0_18] : memref<2048x15xf32, #tpu.memory_space<vmem>>, vector<512x15xf32>
    %cst_19 = arith.constant dense<0.000000e+00> : vector<512x128xf32>
    %44 = tpu.matmul %43, %17, %cst_19 {dimension_numbers = #tpu.dot_dimension_numbers<[1], [0], [0], [1], [0, 0, 1, 1], [], []>} : vector<512x15xf32>, vector<15x128xf32>, vector<512x128xf32> -> vector<512x128xf32>
    %c1536_20 = arith.constant 1536 : index
    %c0_21 = arith.constant 0 : index
    %45 = vector.load %arg4[%c1536_20, %c0_21] : memref<2048x1xf32, #tpu.memory_space<vmem>>, vector<512x1xf32>
    %46 = vector.broadcast %45 : vector<512x1xf32> to vector<512x128xf32>
    %47 = arith.addf %44, %46 : vector<512x128xf32>
    %cst_22 = arith.constant dense<0xFF800000> : vector<128xf32>
    %48 = vector.multi_reduction <maximumf>, %47, %cst_22 [0] : vector<512x128xf32> to vector<128xf32>
    %49 = vector.shape_cast %48 : vector<128xf32> to vector<1x128xf32>
    %50 = arith.maximumf %42, %49 : vector<1x128xf32>
    %c0_23 = arith.constant 0 : index
    %c0_24 = arith.constant 0 : index
    %c0_25 = arith.constant 0 : index
    %51 = vector.load %arg5[%c0_23, %c0_24, %c0_25] : memref<1x1x128xf32, #tpu.memory_space<vmem>>, vector<1x1x128xf32>
    %52 = vector.shape_cast %51 : vector<1x1x128xf32> to vector<1x128xf32>
    %53 = vector.shape_cast %50 : vector<1x128xf32> to vector<1x1x128xf32>
    tpu.vector_store %arg5[%c0_23, %c0_24, %c0_25], %53 {strides = array<i32>} : memref<1x1x128xf32, #tpu.memory_space<vmem>>, vector<1x1x128xf32>,
    return
  }
  func.func @transform_0(%arg0: i32, %arg1: i32) -> (i32, i32, i32) {
    %c0_i32 = arith.constant 0 : i32
    %c0_i32_0 = arith.constant 0 : i32
    return %arg0, %c0_i32, %arg1 : i32, i32, i32
  }
  func.func @transform_1(%arg0: i32, %arg1: i32) -> (i32, i32) {
    %c0_i32 = arith.constant 0 : i32
    %c0_i32_0 = arith.constant 0 : i32
    %c0_i32_1 = arith.constant 0 : i32
    return %c0_i32, %c0_i32_0 : i32, i32
  }
  func.func @transform_2(%arg0: i32, %arg1: i32) -> (i32, i32) {
    %c0_i32 = arith.constant 0 : i32
    %c0_i32_0 = arith.constant 0 : i32
    %c0_i32_1 = arith.constant 0 : i32
    return %c0_i32, %c0_i32_0 : i32, i32
  }
  func.func @transform_3(%arg0: i32, %arg1: i32) -> (i32, i32, i32) {
    %c0_i32 = arith.constant 0 : i32
    %c0_i32_0 = arith.constant 0 : i32
    return %arg0, %c0_i32, %arg1 : i32, i32, i32
  }
}

module attributes {stable_mosaic.version = 11 : i64} {
  func.func @_mlp3_kernel(%arg0: i32, %arg1: memref<2x1024xf32, #tpu.memory_space<vmem>>, %arg2: memref<1024x512xbf16, #tpu.memory_space<vmem>>, %arg3: memref<1x512xf32, #tpu.memory_space<vmem>>, %arg4: memref<512x256xbf16, #tpu.memory_space<vmem>>, %arg5: memref<1x256xf32, #tpu.memory_space<vmem>>, %arg6: memref<256x2xbf16, #tpu.memory_space<vmem>>, %arg7: memref<1x2xf32, #tpu.memory_space<vmem>>, %arg8: memref<2x2xf32, #tpu.memory_space<vmem>>) attributes {dimension_semantics = [#tpu.dimension_semantics<arbitrary>], iteration_bounds = array<i64: 1>, scalar_prefetch = 0 : i64, scratch_operands = 0 : i64, tpu.core_type = #tpu.core_type<tc>, window_params = [{pipeline_mode = #tpu.pipeline_mode<synchronous>, transform_indices = @transform_0, window_bounds = array<i64: 2, 1024>}, {pipeline_mode = #tpu.pipeline_mode<synchronous>, transform_indices = @transform_1, window_bounds = array<i64: 1024, 512>}, {pipeline_mode = #tpu.pipeline_mode<synchronous>, transform_indices = @transform_2, window_bounds = array<i64: 1, 512>}, {pipeline_mode = #tpu.pipeline_mode<synchronous>, transform_indices = @transform_3, window_bounds = array<i64: 512, 256>}, {pipeline_mode = #tpu.pipeline_mode<synchronous>, transform_indices = @transform_4, window_bounds = array<i64: 1, 256>}, {pipeline_mode = #tpu.pipeline_mode<synchronous>, transform_indices = @transform_5, window_bounds = array<i64: 256, 2>}, {pipeline_mode = #tpu.pipeline_mode<synchronous>, transform_indices = @transform_6, window_bounds = array<i64: 1, 2>}, {pipeline_mode = #tpu.pipeline_mode<synchronous>, transform_indices = @transform_7, window_bounds = array<i64: 2, 2>}]} {
    %c0 = arith.constant 0 : index
    %c0_0 = arith.constant 0 : index
    %0 = vector.load %arg1[%c0, %c0_0] : memref<2x1024xf32, #tpu.memory_space<vmem>>, vector<2x1024xf32>
    %1 = arith.truncf %0 : vector<2x1024xf32> to vector<2x1024xbf16>
    %c0_1 = arith.constant 0 : index
    %c0_2 = arith.constant 0 : index
    %2 = vector.load %arg2[%c0_1, %c0_2] : memref<1024x512xbf16, #tpu.memory_space<vmem>>, vector<1024x512xbf16>
    %cst = arith.constant dense<0.000000e+00> : vector<2x512xf32>
    %3 = tpu.matmul %1, %2, %cst {dimension_numbers = #tpu.dot_dimension_numbers<[1], [0], [0], [1], [0, 0, 1, 1], [], []>} : vector<2x1024xbf16>, vector<1024x512xbf16>, vector<2x512xf32> -> vector<2x512xf32>
    %c0_3 = arith.constant 0 : index
    %c0_4 = arith.constant 0 : index
    %4 = vector.load %arg3[%c0_3, %c0_4] : memref<1x512xf32, #tpu.memory_space<vmem>>, vector<1x512xf32>
    %5 = vector.broadcast %4 : vector<1x512xf32> to vector<2x512xf32>
    %6 = arith.addf %3, %5 : vector<2x512xf32>
    %cst_5 = arith.constant 0.000000e+00 : f32
    %7 = vector.broadcast %cst_5 : f32 to vector<2x512xf32>
    %8 = arith.maximumf %6, %7 : vector<2x512xf32>
    %9 = arith.truncf %8 : vector<2x512xf32> to vector<2x512xbf16>
    %c0_6 = arith.constant 0 : index
    %c0_7 = arith.constant 0 : index
    %10 = vector.load %arg4[%c0_6, %c0_7] : memref<512x256xbf16, #tpu.memory_space<vmem>>, vector<512x256xbf16>
    %cst_8 = arith.constant dense<0.000000e+00> : vector<2x256xf32>
    %11 = tpu.matmul %9, %10, %cst_8 {dimension_numbers = #tpu.dot_dimension_numbers<[1], [0], [0], [1], [0, 0, 1, 1], [], []>} : vector<2x512xbf16>, vector<512x256xbf16>, vector<2x256xf32> -> vector<2x256xf32>
    %c0_9 = arith.constant 0 : index
    %c0_10 = arith.constant 0 : index
    %12 = vector.load %arg5[%c0_9, %c0_10] : memref<1x256xf32, #tpu.memory_space<vmem>>, vector<1x256xf32>
    %13 = vector.broadcast %12 : vector<1x256xf32> to vector<2x256xf32>
    %14 = arith.addf %11, %13 : vector<2x256xf32>
    %cst_11 = arith.constant 0.000000e+00 : f32
    %15 = vector.broadcast %cst_11 : f32 to vector<2x256xf32>
    %16 = arith.maximumf %14, %15 : vector<2x256xf32>
    %17 = arith.truncf %16 : vector<2x256xf32> to vector<2x256xbf16>
    %c0_12 = arith.constant 0 : index
    %c0_13 = arith.constant 0 : index
    %18 = vector.load %arg6[%c0_12, %c0_13] : memref<256x2xbf16, #tpu.memory_space<vmem>>, vector<256x2xbf16>
    %cst_14 = arith.constant dense<0.000000e+00> : vector<2x2xf32>
    %19 = tpu.matmul %17, %18, %cst_14 {dimension_numbers = #tpu.dot_dimension_numbers<[1], [0], [0], [1], [0, 0, 1, 1], [], []>} : vector<2x256xbf16>, vector<256x2xbf16>, vector<2x2xf32> -> vector<2x2xf32>
    %c0_15 = arith.constant 0 : index
    %c0_16 = arith.constant 0 : index
    %20 = vector.load %arg7[%c0_15, %c0_16] : memref<1x2xf32, #tpu.memory_space<vmem>>, vector<1x2xf32>
    %21 = vector.broadcast %20 : vector<1x2xf32> to vector<2x2xf32>
    %22 = arith.addf %19, %21 : vector<2x2xf32>
    %cst_17 = arith.constant dense<0xFF800000> : vector<2xf32>
    %23 = vector.multi_reduction <maximumf>, %22, %cst_17 [1] : vector<2x2xf32> to vector<2xf32>
    %24 = vector.shape_cast %23 : vector<2xf32> to vector<2x1xf32>
    %25 = vector.broadcast %24 : vector<2x1xf32> to vector<2x2xf32>
    %26 = arith.subf %22, %25 : vector<2x2xf32>
    %27 = math.exp %26 : vector<2x2xf32>
    %cst_18 = arith.constant dense<0.000000e+00> : vector<2xf32>
    %28 = vector.multi_reduction <add>, %27, %cst_18 [1] : vector<2x2xf32> to vector<2xf32>
    %29 = vector.shape_cast %28 : vector<2xf32> to vector<2x1xf32>
    %30 = math.log %29 : vector<2x1xf32>
    %31 = arith.addf %24, %30 : vector<2x1xf32>
    %32 = vector.broadcast %31 : vector<2x1xf32> to vector<2x2xf32>
    %33 = arith.subf %22, %32 : vector<2x2xf32>
    %c0_19 = arith.constant 0 : index
    %c0_20 = arith.constant 0 : index
    %34 = vector.load %arg8[%c0_19, %c0_20] : memref<2x2xf32, #tpu.memory_space<vmem>>, vector<2x2xf32>
    tpu.vector_store %arg8[%c0_19, %c0_20], %33 {strides = array<i32>} : memref<2x2xf32, #tpu.memory_space<vmem>>, vector<2x2xf32>,
    return
  }
  func.func @transform_0(%arg0: i32) -> (i32, i32) {
    %c0_i32 = arith.constant 0 : i32
    %c0_i32_0 = arith.constant 0 : i32
    %c0_i32_1 = arith.constant 0 : i32
    return %c0_i32, %c0_i32_0 : i32, i32
  }
  func.func @transform_1(%arg0: i32) -> (i32, i32) {
    %c0_i32 = arith.constant 0 : i32
    %c0_i32_0 = arith.constant 0 : i32
    %c0_i32_1 = arith.constant 0 : i32
    return %c0_i32, %c0_i32_0 : i32, i32
  }
  func.func @transform_2(%arg0: i32) -> (i32, i32) {
    %c0_i32 = arith.constant 0 : i32
    %c0_i32_0 = arith.constant 0 : i32
    %c0_i32_1 = arith.constant 0 : i32
    return %c0_i32, %c0_i32_0 : i32, i32
  }
  func.func @transform_3(%arg0: i32) -> (i32, i32) {
    %c0_i32 = arith.constant 0 : i32
    %c0_i32_0 = arith.constant 0 : i32
    %c0_i32_1 = arith.constant 0 : i32
    return %c0_i32, %c0_i32_0 : i32, i32
  }
  func.func @transform_4(%arg0: i32) -> (i32, i32) {
    %c0_i32 = arith.constant 0 : i32
    %c0_i32_0 = arith.constant 0 : i32
    %c0_i32_1 = arith.constant 0 : i32
    return %c0_i32, %c0_i32_0 : i32, i32
  }
  func.func @transform_5(%arg0: i32) -> (i32, i32) {
    %c0_i32 = arith.constant 0 : i32
    %c0_i32_0 = arith.constant 0 : i32
    %c0_i32_1 = arith.constant 0 : i32
    return %c0_i32, %c0_i32_0 : i32, i32
  }
  func.func @transform_6(%arg0: i32) -> (i32, i32) {
    %c0_i32 = arith.constant 0 : i32
    %c0_i32_0 = arith.constant 0 : i32
    %c0_i32_1 = arith.constant 0 : i32
    return %c0_i32, %c0_i32_0 : i32, i32
  }
  func.func @transform_7(%arg0: i32) -> (i32, i32) {
    %c0_i32 = arith.constant 0 : i32
    %c0_i32_0 = arith.constant 0 : i32
    %c0_i32_1 = arith.constant 0 : i32
    return %c0_i32, %c0_i32_0 : i32, i32
  }
}

</mosaic_0001>

<bundles_post_ra>
// kernel: pointnet_cls_forward.9
= control target key start
LH: loop header
LB: loop body
LE: loop exit
PB: predicated region body
PF: predicated region fallthrough
CT: control target
= control target key end

     0   :  { %s603_s12 = smov 0   ;;  %s605_s13 = smov 0   ;;  %s655_s0 = inlined_call_operand.vmem [shape: f32[2,64,3], index: 0, kind: input, shape index: {}]   ;;  %s656_s1 = inlined_call_operand.vmem [shape: bf16[2,3,64], index: 1, kind: input, shape index: {}]   ;;  %s657_s2 = inlined_call_operand.vmem [shape: f32[1,64], index: 2, kind: input, shape index: {}]   ;;  %s658_s3 = inlined_call_operand.vmem [shape: bf16[2,64,64], index: 3, kind: output, shape index: {}]  }
   0x1   :  { %s607_s14 = smov 0  }
   0x2 LB: > { %s25_s15 = sadd.s32 1, %s576_s13  ;;  %p485_p0 = scmp.ge.s32.totalorder %s580_s14, 1  ;;  %s580_s14 = sphi %s607_s14, %s13_s14   ;;  %s576_s13 = sphi %s605_s13, %s660_s13   ;;  %s572_s12 = sphi %s603_s12, %s659_s12  }
   0x3   : > { %p27_p1 = scmp.ge.s32.totalorder %s25_s15, 2  ;;  %p167_p2 = scmp.lt.s32.totalorder %s580_s14, 3 }
   0x5   : > { %s662_s15 = smov (%p27_p1, %s25_s15), 0  ;;  %p168_p3 = pnand %p485_p0, %p167_p2 }
   0x6   : > { %p204_p4 = scmp.lt.s32.totalorder (!%p168_p3), %s572_s12, 1  ;;  %vm261_vm0 = vcmask (!%p168_p3), 1040384   ;;  %vm262_vm1 = vcmask (!%p168_p3), 1041408   ;;  %v582_v0 = vmov (!%p168_p3), 65535   ;;  %vm248_vm2 = vcmask (!%p168_p3), 23552  }
   0x7   : > { %171 = sbr.rel (%p168_p3) target bundleno = 246 (0xf6), region = 32  ;;  %v263_v1 = vsel (!%p168_p3), %vm261_vm0, 4294967295, %v582_v0  ;;  %v491_v17 = vld [vmem:[%s657_s2] ss:$0 sm:$0xff] (!%p168_p3)  ;;  %vm373_vm3 = vcmask (!%p168_p3), 519168  }
   0x8   : > { %v264_v2 = vsel (!%p168_p3), %vm262_vm1, %v263_v1, 0 }
   0xe   : > { %s664_s12 = smov (!%p204_p4, %s572_s12), 1 }
   0xf   : > { %s506_s16 = sshll.u32 %s664_s12, 6  ;;  %s488_s17 = sshll.u32 %s664_s12, 1 }
  0x10   : > { %s211_s20 = scalar_lea.vmem %s655_s0, %s506_s16  ;;  %s216_s23 = scalar_lea.vmem %s656_s1, %s488_s17 }
  0x11   : > { %v240_v3 = vld [vmem:[%s216_s23] sm:$0x3]  ;;  %v229_v5 = vld [vmem:[%s211_s20 + $0x8] sm:$0xff]  ;;  %v230_v10 = vld [vmem:[%s211_s20 + $0x10] sm:$0xff]  ;;  %s507_s26 = sshll.u32 %s664_s12, 5 }
  0x12   : > { %v228_v4 = vld [vmem:[%s211_s20] sm:$0xff]  ;;  %v266_v6 = vand.u32 %v264_v2, %v240_v3  ;;  %v233_v9 = vld [vmem:[%s211_s20 + $0x28] sm:$0xff]  ;;  %v231_v12 = vld [vmem:[%s211_s20 + $0x18] sm:$0xff]  ;;  %s225_s29 = scalar_lea.vmem %s658_s3, %s507_s26 }
  0x13   : > { %v236_v7 = vpack.c.bf16 %v229_v5, %v228_v4  ;;  %v232_v8 = vld [vmem:[%s211_s20 + $0x20] sm:$0xff]  ;;  %v234_v13 = vld [vmem:[%s211_s20 + $0x30] sm:$0xff]  ;;  %v235_v14 = vld [vmem:[%s211_s20 + $0x38] sm:$0xff]  ;;  %v237_v15 = vpack.c.bf16 %v231_v12, %v230_v10 }
  0x14   : > { %v238_v11 = vpack.c.bf16 %v233_v9, %v232_v8  ;;  %521 = vmatprep.subr.bf16.mxu0 %v266_v6  ;;  %531 = vmatprep.subr.bf16.mxu1 %v266_v6  ;;  %v239_v16 = vpack.c.bf16 %v235_v14, %v234_v13 }
  0x15   : > { %522 = vmatpush3.bf16.msra.mxu0 %v266_v6  ;;  %532 = vmatpush3.bf16.msra.mxu1 %v266_v6 }
  0x16   : > { %523 = vmatprep.mubr.msk.bf16.mxu0 %vm248_vm2, %v236_v7  ;;  %527 = vmatprep.mubr.msk.bf16.mxu1 %vm248_vm2, %v238_v11 }
  0x18   : > { %524 = vmatmul.mubr.msk.bf16.vlgmr.msra.gmra.mrb[0].mxu0 %vm248_vm2, %v237_v15  ;;  %528 = vmatmul.mubr.msk.bf16.vlgmr.msra.gmra.mrb[0].mxu1 %vm248_vm2, %v239_v16 }
  0xeb   : > { %v525_v18 = vpop.f32.mrb[0].mxu0  ;;  %v529_v19 = vpop.f32.mrb[0].mxu1 }
  0xec   : > { %v311_v20 = vadd.f32 %v525_v18, %v491_v17  ;;  %v327_v21 = vadd.f32 %v529_v19, %v491_v17  ;;  %v302_v22 = vpop.f32.mrb[1].mxu0  ;;  %v318_v23 = vpop.f32.mrb[1].mxu1 }
  0xed   : > { %v303_v24 = vadd.f32 %v491_v17, %v302_v22  ;;  %v319_v25 = vadd.f32 %v491_v17, %v318_v23  ;;  %v526_v26 = vpop.f32.mrb[2].mxu0  ;;  %v530_v27 = vpop.f32.mrb[2].mxu1 }
  0xee   : > { %v335_v28 = vmax.f32 %v311_v20, 0.0  ;;  %v339_v29 = vmax.f32 %v327_v21, 0.0  ;;  %v314_v30 = vadd.f32 %v526_v26, %v491_v17  ;;  %v330_v31 = vadd.f32 %v530_v27, %v491_v17  ;;  %v305_v32 = vpop.f32.mrb[3].mxu0  ;;  %v321_v33 = vpop.f32.mrb[3].mxu1 }
  0xef   : > { %v333_v34 = vmax.f32 %v303_v24, 0.0  ;;  %v337_v35 = vmax.f32 %v319_v25, 0.0  ;;  %v306_v36 = vadd.f32 %v491_v17, %v305_v32  ;;  %v322_v37 = vadd.f32 %v491_v17, %v321_v33 }
  0xf0   : > { %v510_v38 = vpack.c.bf16 %v335_v28, %v335_v28  ;;  %v514_v39 = vpack.c.bf16 %v339_v29, %v339_v29  ;;  %v336_v40 = vmax.f32 %v314_v30, 0.0  ;;  %v340_v41 = vmax.f32 %v330_v31, 0.0 }
  0xf1   : > { %v508_v42 = vpack.c.bf16 %v333_v34, %v333_v34  ;;  %v512_v43 = vpack.c.bf16 %v337_v35, %v337_v35  ;;  %v334_v44 = vmax.f32 %v306_v36, 0.0  ;;  %v338_v45 = vmax.f32 %v322_v37, 0.0 }
  0xf2   : > { %376 = vst.msk [vmem:[%s225_s29 + $0x8] sm:$0xf] %vm373_vm3, %v510_v38  ;;  %380 = vst.msk [vmem:[%s225_s29 + $0x18] sm:$0xf] %vm373_vm3, %v514_v39  ;;  %v511_v46 = vpack.c.bf16 %v336_v40, %v336_v40  ;;  %v515_v47 = vpack.c.bf16 %v340_v41, %v340_v41 }
  0xf3   : > { %374 = vst.msk [vmem:[%s225_s29] sm:$0xf] %vm373_vm3, %v508_v42  ;;  %378 = vst.msk [vmem:[%s225_s29 + $0x10] sm:$0xf] %vm373_vm3, %v512_v43  ;;  %v509_v48 = vpack.c.bf16 %v334_v44, %v334_v44  ;;  %v513_v49 = vpack.c.bf16 %v338_v45, %v338_v45 }
  0xf4   : > { %377 = vst.msk [vmem:[%s225_s29 + $0xc] sm:$0xf] %vm373_vm3, %v511_v46  ;;  %381 = vst.msk [vmem:[%s225_s29 + $0x1c] sm:$0xf] %vm373_vm3, %v515_v47 }
  0xf5   : > { %375 = vst.msk [vmem:[%s225_s29 + $0x4] sm:$0xf] %vm373_vm3, %v509_v48  ;;  %379 = vst.msk [vmem:[%s225_s29 + $0x14] sm:$0xf] %vm373_vm3, %v513_v49 }
  0xf6 PF: > { %s13_s14 = sadd.s32 1, %s580_s14   ;;  %s659_s12 = smov %s576_s13 }
  0xf7   : > { %p10_p5 = scmp.ge.s32.totalorder %s13_s14, 4   ;;  %s660_s13 = smov %s662_s15 }
  0xf9   :  { %12 = sbr.rel (!%p10_p5) target bundleno = 2 (0x2), region = 65 }

// kernel: pointnet_cls_forward.7
= control target key start
LH: loop header
LB: loop body
LE: loop exit
PB: predicated region body
PF: predicated region fallthrough
CT: control target
= control target key end

     0   :  { %12 = vsyncpa [#allocation3], 0  ;;  %s1937_s24 = smov 0   ;;  %s1939_s25 = smov 0   ;;  %s2218_s0 = inlined_call_operand.vmem [shape: f32[2,64,3], index: 0, kind: input, shape index: {}]   ;;  %s2219_s1 = inlined_call_operand.vmem [shape: bf16[3,64], index: 1, kind: input, shape index: {}]   ;;  %s2220_s2 = inlined_call_operand.vmem [shape: f32[1,64], index: 2, kind: input, shape index: {}]   ;;  %s2221_s3 = inlined_call_operand.vmem [shape: bf16[64,128], index: 3, kind: input, shape index: {}]   ;;  %s2222_s4 = inlined_call_operand.vmem [shape: f32[1,128], index: 4, kind: input, shape index: {}]   ;;  %s2223_s5 = inlined_call_operand.hbm [shape: bf16[128,1024], index: 5, kind: input, shape index: {}]   ;;  %s2224_s6 = inlined_call_operand.vmem [shape: f32[1,1024], index: 6, kind: input, shape index: {}]   ;;  %s2225_s7 = inlined_call_operand.vmem [shape: f32[2,1,1024], index: 7, kind: output, shape index: {}]  }
   0x1   :  { %s1941_s26 = smov 0  }
   0x2 LB: > { %s1661_s27 = sadd.s32 4294967295, %s1889_s26   ;;  %s30_s28 = sadd.s32 1, %s1885_s25  ;;  %s1889_s26 = sphi %s1941_s26, %s18_s26   ;;  %s1885_s25 = sphi %s1939_s25, %s2235_s25   ;;  %s1881_s24 = sphi %s1937_s24, %s2234_s24  }
   0x3   : > { %p32_p0 = scmp.ge.s32.totalorder %s30_s28, 2  ;;  %p1663_p1 = scmp.ge.s32.totalorder %s1889_s26, 1 }
   0x4   : > { %p215_p2 = scmp.lt.s32.totalorder %s1889_s26, 3  ;;  %p1962_p4 = scmp.eq.s32.totalorder %s1661_s27, 0 }
   0x5   : > { %s2237_s28 = smov (%p32_p0, %s30_s28), 0  ;;  %s1891_s8 = smov [#allocation2]  }
   0x6   : > { %p1958_p3 = pnand %p1663_p1, %p215_p2  ;;  %s239_s9 = sshll.u32 %s1891_s8, 4  ;;  %s240_s9 = int_to_ptr.vmem [resolvable:$true] %s239_s9 }
   0x7   : > { %s2230_s30 = scalar_select %p1962_p4, 1, 0 }
   0x8   : > { %s2229_s29 = scalar_select %p1958_p3, 1, 0 }
   0x9   : > { %p1795_p5 = pneg %p1958_p3  ;;  %s1835_s13 = scalar_lea.hbm %s2223_s5, 8192 }
   0xa   : > { %p1836_p7 = scmp.ne.s32.totalorder %s2223_s5, %s1835_s13  ;;  %p1842_p11 = scmp.lt.u32.totalorder %s1835_s13, %s2223_s5 }
   0xb   : > { %p1970_p6 = pnand %p1962_p4, %p1795_p5 }
   0xd   : > { %p1837_p8 = pneg %p1970_p6 }
   0xf   : > { %p1838_p9 = pnand %p1837_p8, %p1836_p7 }
  0x11   : > { %p1839_p10 = pneg %p1838_p9 }
  0x13   : > { %p1844_p12 = pnand %p1842_p11, %p1839_p10 }
  0x15   : > { %1847 = shalt.err (!%p1844_p12)
}
  0x16   : > { %s1848_s18 = scalar_lea.vmem %s240_s9, 8192  ;;  %p1856_p2 = scmp.lt.s32.totalorder %s240_s9, %s240_s9 }
  0x17   : > { %p1849_p13 = scmp.ne.s32.totalorder %s240_s9, %s1848_s18  ;;  %p1857_p5 = scmp.lt.s32.totalorder %s1848_s18, %s1848_s18 }
  0x19   : > { %p1851_p0 = pnand %p1849_p13, %p1837_p8  ;;  %p1858_p4 = por %p1857_p5, %p1856_p2 }
  0x1b   : > { %p1852_p1 = pneg %p1851_p0 }
  0x1d   : > { %p1859_p3 = pnand %p1858_p4, %p1852_p1 }
  0x1f   : > { %1862 = shalt.err (!%p1859_p3)
}
  0x20   : > { %s1892_s19 = smov 512   ;;  %s1893_s20 = smov 32  }
  0x21   : > { %1798 = dma.hbm_to_vmem [thread:$0]  (!%p1970_p6), %s2223_s5, 8192, %s240_s9, [#allocation3], %s1892_s19, %s1892_s19, %s1893_s20  }
  0x22   : > { %p2232_p7 = scmp.ne.s32.totalorder %s2229_s29, 0 }
  0x23   : > { %p2233_p9 = scmp.ne.s32.totalorder (!%p2232_p7), %s2230_s30, 0 }
  0x24   : > { %271 = sbr.rel (%p2232_p7) target bundleno = 796 (0x31c), region = 48 }
  0x2b   : > { %1876 = dma.done.wait (%p2233_p9), [#allocation3], 8192  }
  0x2c   : > { %1878 = vsyncadd (%p2233_p9), [#allocation3], 4294959104  ;;  %vm354_vm0 = vcmask 1040384   ;;  %p307_p3 = scmp.lt.s32.totalorder %s1881_s24, 1  ;;  %vm355_vm1 = vcmask 1041408   ;;  %v1894_v0 = vmov 65535  }
  0x2d   : > { %v356_v1 = vsel %vm354_vm0, 4294967295, %v1894_v0  ;;  %v333_v3 = vld [vmem:[%s2219_s1] sm:$0x3]  ;;  %vm341_vm2 = vcmask 23552   ;;  %v1832_v15 = vld [vmem:[%s2221_s3 + $0x8] sm:$0xff]   ;;  %v1833_v19 = vld [vmem:[%s2221_s3 + $0x10] sm:$0xff]  }
  0x2e   : > { %s2239_s24 = smov (!%p307_p3, %s1881_s24), 1  ;;  %v357_v2 = vsel %vm355_vm1, %v356_v1, 0  ;;  %v1831_v13 = vld [vmem:[%s2221_s3] sm:$0xff]   ;;  %v1834_v20 = vld [vmem:[%s2221_s3 + $0x18] sm:$0xff]   ;;  %v2023_v23 = vld [vmem:[#allocation2 + $0x8] sm:$0xff]  ;;  %vm477_vm3 = vcmask 523264  }
  0x2f   : > { %s1751_s23 = sshll.u32 %s2239_s24, 6  ;;  %v359_v6 = vand.u32 %v357_v2, %v333_v3  ;;  %1775 = vmatprep.subr.bf16.mxu1 %v1831_v13  ;;  %v567_v21 = vld [vmem:[#allocation2] sm:$0xff]  ;;  %v2025_v26 = vld [vmem:[#allocation2 + $0x28] sm:$0xff]  ;;  %s1670_s27 = sshll.u32 %s2239_s24, 3 }
  0x30   : > { %s314_s8 = scalar_lea.vmem %s2218_s0, %s1751_s23  ;;  %1776 = vmatpush3.bf16.msra.mxu1 %v1831_v13  ;;  %v571_v22 = vld [vmem:[#allocation2 + $0x20] sm:$0xff]  ;;  %v1687_v29 = vcombine.low %v2023_v23, %v2025_v26  ;;  %v1688_v30 = vcombine.high %v2023_v23, %v2025_v26  ;;  %v576_v62 = vld [vmem:[#allocation2 + $0x48] sm:$0xff]  ;;  %s319_s9 = scalar_lea.vmem %s2225_s7, %s1670_s27 }
  0x31   : > { %v321_v4 = vld [vmem:[%s314_s8] sm:$0xff]  ;;  %v322_v5 = vld [vmem:[%s314_s8 + $0x8] sm:$0xff]  ;;  %v323_v8 = vld [vmem:[%s314_s8 + $0x10] sm:$0xff]  ;;  %1765 = vmatprep.subr.bf16.mxu0 %v359_v6  ;;  %1777 = vmatprep.subr.bf16.mxu1 %v1832_v15  ;;  %v1685_v24 = vcombine.low %v567_v21, %v571_v22  ;;  %v1686_v25 = vcombine.high %v567_v21, %v571_v22 }
  0x32   : > { %v329_v7 = vpack.c.bf16 %v322_v5, %v321_v4  ;;  %v324_v9 = vld [vmem:[%s314_s8 + $0x18] sm:$0xff]  ;;  %v325_v10 = vld [vmem:[%s314_s8 + $0x20] sm:$0xff]  ;;  %v326_v11 = vld [vmem:[%s314_s8 + $0x28] sm:$0xff]  ;;  %1766 = vmatpush3.bf16.msra.mxu0 %v359_v6 }
  0x33   : > { %v330_v12 = vpack.c.bf16 %v324_v9, %v323_v8  ;;  %v331_v14 = vpack.c.bf16 %v326_v11, %v325_v10  ;;  %v327_v16 = vld [vmem:[%s314_s8 + $0x30] sm:$0xff]  ;;  %v328_v17 = vld [vmem:[%s314_s8 + $0x38] sm:$0xff]  ;;  %v575_v27 = vld [vmem:[#allocation2 + $0x40] sm:$0xff]  ;;  %993 = vmatprep.subr.bf16.mxu0 %v1686_v25 }
  0x34   : > { %1767 = vmatprep.mubr.msk.bf16.mxu0 %vm341_vm2, %v329_v7  ;;  %1778 = vmatpush3.bf16.msra.mxu1 %v1832_v15  ;;  %v332_v18 = vpack.c.bf16 %v328_v17, %v327_v16  ;;  %v579_v28 = vld [vmem:[#allocation2 + $0x60] sm:$0xff]  ;;  %v580_v63 = vld [vmem:[#allocation2 + $0x68] sm:$0xff] }
  0x35   : > { %1768 = vmatmul.mubr.msk.bf16.vlgmr.msra.gmra.mrb[0].mxu0 %vm341_vm2, %v330_v12  ;;  %1779 = vmatprep.subr.bf16.mxu1 %v1833_v19  ;;  %v1694_v31 = vcombine.high %v575_v27, %v579_v28  ;;  %v583_v32 = vld [vmem:[#allocation2 + $0x80] sm:$0xff]  ;;  %v1693_v34 = vcombine.low %v575_v27, %v579_v28  ;;  %v1696_v5 = vcombine.high %v576_v62, %v580_v63  ;;  %v584_v8 = vld [vmem:[#allocation2 + $0x88] sm:$0xff] }
  0x36   : > { %1771 = vmatprep.mubr.msk.bf16.mxu0 %vm341_vm2, %v331_v14  ;;  %v587_v33 = vld [vmem:[#allocation2 + $0xa0] sm:$0xff]  ;;  %994 = vmatpush1.bf16.msra.mxu0 %v1685_v24  ;;  %v588_v9 = vld [vmem:[#allocation2 + $0xa8] sm:$0xff]  ;;  %v1695_v15 = vcombine.low %v576_v62, %v580_v63 }
  0x37   : > { %995 = vmatprep.subr.bf16.mxu0 %v1694_v31  ;;  %v1702_v35 = vcombine.high %v583_v32, %v587_v33  ;;  %v591_v36 = vld [vmem:[#allocation2 + $0xc0] sm:$0xff]  ;;  %v1701_v38 = vcombine.low %v583_v32, %v587_v33  ;;  %v1704_v17 = vcombine.high %v584_v8, %v588_v9  ;;  %v1703_v24 = vcombine.low %v584_v8, %v588_v9  ;;  %v600_v27 = vld [vmem:[#allocation2 + $0x108] sm:$0xff]  ;;  %v578_v8 = vld [vmem:[#allocation2 + $0x58] sm:$0xff] }
  0x38   : > { %1780 = vmatpush3.bf16.msra.mxu1 %v1833_v19  ;;  %v595_v37 = vld [vmem:[#allocation2 + $0xe0] sm:$0xff]  ;;  %v592_v19 = vld [vmem:[#allocation2 + $0xc8] sm:$0xff]  ;;  %v582_v9 = vld [vmem:[#allocation2 + $0x78] sm:$0xff] }
  0x39   : > { %1781 = vmatprep.subr.bf16.mxu1 %v1834_v20  ;;  %v1710_v39 = vcombine.high %v591_v36, %v595_v37  ;;  %v599_v40 = vld [vmem:[#allocation2 + $0x100] sm:$0xff]  ;;  %v1709_v42 = vcombine.low %v591_v36, %v595_v37  ;;  %v604_v28 = vld [vmem:[#allocation2 + $0x128] sm:$0xff] }
  0x3a   : > { %996 = vmatpush1.bf16.msra.mxu0 %v1693_v34  ;;  %v603_v41 = vld [vmem:[#allocation2 + $0x120] sm:$0xff]  ;;  %v1720_v26 = vcombine.high %v600_v27, %v604_v28  ;;  %v1719_v31 = vcombine.low %v600_v27, %v604_v28  ;;  %v616_v36 = vld [vmem:[#allocation2 + $0x188] sm:$0xff] }
  0x3b   : > { %997 = vmatprep.subr.bf16.mxu0 %v1702_v35  ;;  %v1718_v43 = vcombine.high %v599_v40, %v603_v41  ;;  %v607_v44 = vld [vmem:[#allocation2 + $0x140] sm:$0xff]  ;;  %v1717_v46 = vcombine.low %v599_v40, %v603_v41 }
  0x3c   : > { %1782 = vmatpush3.bf16.msra.mxu1 %v1834_v20  ;;  %v611_v45 = vld [vmem:[#allocation2 + $0x160] sm:$0xff]  ;;  %v596_v20 = vld [vmem:[#allocation2 + $0xe8] sm:$0xff] }
  0x3d   : > { %1772 = vmatmul.mubr.msk.bf16.gmra.mrb[4].mxu0 %vm341_vm2, %v332_v18  ;;  %1066 = vmatprep.subr.bf16.mxu1 %v1688_v30  ;;  %v1726_v47 = vcombine.high %v607_v44, %v611_v45  ;;  %v1725_v48 = vcombine.low %v607_v44, %v611_v45  ;;  %v1671_v49 = vld [vmem:[%s2220_s2] ss:$0 sm:$0xff]  ;;  %v1712_v25 = vcombine.high %v592_v19, %v596_v20  ;;  %v612_v30 = vld [vmem:[#allocation2 + $0x168] sm:$0xff] }
  0x3e   : > { %998 = vmatpush1.bf16.msra.mxu0 %v1701_v38  ;;  %v1711_v23 = vcombine.low %v592_v19, %v596_v20  ;;  %v615_v34 = vld [vmem:[#allocation2 + $0x180] sm:$0xff]  ;;  %v620_v38 = vld [vmem:[#allocation2 + $0x1a8] sm:$0xff]  ;;  %v589_v20 = vld [vmem:[#allocation2 + $0xb0] sm:$0xff] }
  0x3f   : > { %999 = vmatprep.subr.bf16.mxu0 %v1710_v39  ;;  %v619_v35 = vld [vmem:[#allocation2 + $0x1a0] sm:$0xff]  ;;  %v1735_v40 = vcombine.low %v616_v36, %v620_v38  ;;  %v1736_v41 = vcombine.high %v616_v36, %v620_v38  ;;  %v624_v44 = vld [vmem:[#allocation2 + $0x1c8] sm:$0xff]  ;;  %v597_v36 = vld [vmem:[#allocation2 + $0xf0] sm:$0xff] }
  0x40   : > { %v1734_v37 = vcombine.high %v615_v34, %v619_v35  ;;  %v1733_v39 = vcombine.low %v615_v34, %v619_v35  ;;  %v593_v34 = vld [vmem:[#allocation2 + $0xd0] sm:$0xff]  ;;  %v598_v38 = vld [vmem:[#allocation2 + $0xf8] sm:$0xff] }
  0x42   : > { %1000 = vmatpush1.bf16.msra.mxu0 %v1709_v42  ;;  %v623_v42 = vld [vmem:[#allocation2 + $0x1c0] sm:$0xff] }
  0x43   : > { %1001 = vmatprep.subr.bf16.mxu0 %v1718_v43  ;;  %v627_v43 = vld [vmem:[#allocation2 + $0x1e0] sm:$0xff] }
  0x44   : > { %v1742_v45 = vcombine.high %v623_v42, %v627_v43 }
  0x46   : > { %1002 = vmatpush1.bf16.msra.mxu0 %v1717_v46  ;;  %v628_v46 = vld [vmem:[#allocation2 + $0x1e8] sm:$0xff] }
  0x47   : > { %1003 = vmatprep.subr.bf16.mxu0 %v1726_v47  ;;  %v1741_v47 = vcombine.low %v623_v42, %v627_v43 }
  0x4a   : > { %1004 = vmatpush1.bf16.msra.mxu0 %v1725_v48  ;;  %v1743_v48 = vcombine.low %v624_v44, %v628_v46 }
  0x4b   : > { %1005 = vmatprep.subr.bf16.mxu0 %v1734_v37  ;;  %v594_v37 = vld [vmem:[#allocation2 + $0xd8] sm:$0xff] }
  0x4e   : > { %1006 = vmatpush1.bf16.msra.mxu0 %v1733_v39 }
  0x4f   : > { %1007 = vmatprep.subr.bf16.mxu0 %v1742_v45  ;;  %v1716_v45 = vcombine.high %v594_v37, %v598_v38 }
  0x52   : > { %1008 = vmatpush1.bf16.msra.mxu0 %v1741_v47  ;;  %v605_v47 = vld [vmem:[#allocation2 + $0x130] sm:$0xff] }
 0x108   : > { %v1769_v50 = vpop.f32.mrb[0].mxu0 }
 0x109   : > { %v404_v51 = vadd.f32 %v1769_v50, %v1671_v49  ;;  %v395_v52 = vpop.f32.mrb[1].mxu0  ;;  %v569_v50 = vld [vmem:[#allocation2 + $0x10] sm:$0xff] }
 0x10a   : > { %v396_v53 = vadd.f32 %v1671_v49, %v395_v52  ;;  %v1770_v54 = vpop.f32.mrb[2].mxu0  ;;  %v570_v52 = vld [vmem:[#allocation2 + $0x18] sm:$0xff] }
 0x10b   : > { %v407_v55 = vadd.f32 %v1770_v54, %v1671_v49  ;;  %v398_v56 = vpop.f32.mrb[3].mxu0  ;;  %v428_v58 = vmax.f32 %v404_v51, 0.0  ;;  %v573_v51 = vld [vmem:[#allocation2 + $0x30] sm:$0xff]  ;;  %v574_v54 = vld [vmem:[#allocation2 + $0x38] sm:$0xff] }
 0x10c   : > { %v399_v57 = vadd.f32 %v1671_v49, %v398_v56  ;;  %v426_v60 = vmax.f32 %v396_v53, 0.0  ;;  %v1690_v53 = vcombine.high %v569_v50, %v573_v51  ;;  %v1689_v56 = vcombine.low %v569_v50, %v573_v51 }
 0x10d   : > { %v429_v59 = vmax.f32 %v407_v55, 0.0  ;;  %v1895_v55 = vmov 0   ;;  %v1713_v50 = vcombine.low %v593_v34, %v597_v36  ;;  %v1715_v51 = vcombine.low %v594_v37, %v598_v38 }
 0x10e   : > { %v427_v61 = vmax.f32 %v399_v57, 0.0  ;;  %1025 = vmatprep.mubr.bf16.mxu0 %v1895_v55  ;;  %v1691_v57 = vcombine.low %v570_v52, %v574_v54  ;;  %1139 = vmatprep.subr.bf16.mxu0 %v1690_v53 }
 0x10f   : > { %v435_v0 = vpack.c.bf16 %v429_v59, %v428_v58  ;;  %v1692_v58 = vcombine.high %v570_v52, %v574_v54  ;;  %v1676_v59 = vld [vmem:[%s2222_s4] ss:$0 sm:$0xff]  ;;  %v609_v54 = vld [vmem:[#allocation2 + $0x150] sm:$0xff] }
 0x110   : > { %v1773_v1 = vpop.f32.mrb[4].mxu0  ;;  %v434_v2 = vpack.c.bf16 %v427_v61, %v426_v60 }
 0x111   : > { %v420_v3 = vadd.f32 %v1773_v1, %v1671_v49  ;;  %v411_v4 = vpop.f32.mrb[5].mxu0 }
 0x112   : > { %v412_v6 = vadd.f32 %v1671_v49, %v411_v4  ;;  %1783 = vmatprep.mubr.msk.bf16.mxu1 %vm477_vm3, %v434_v2  ;;  %v1774_v7 = vpop.f32.mrb[6].mxu0  ;;  %v577_v4 = vld [vmem:[#allocation2 + $0x50] sm:$0xff] }
 0x113   : > { %v432_v10 = vmax.f32 %v420_v3, 0.0  ;;  %v423_v11 = vadd.f32 %v1774_v7, %v1671_v49  ;;  %1784 = vmatmul.mubr.msk.bf16.vlgmr.msra.gmra.mrb[0].mxu1 %vm477_vm3, %v435_v0  ;;  %v414_v12 = vpop.f32.mrb[7].mxu0  ;;  %v581_v7 = vld [vmem:[#allocation2 + $0x70] sm:$0xff] }
 0x114   : > { %v430_v13 = vmax.f32 %v412_v6, 0.0  ;;  %v415_v14 = vadd.f32 %v1671_v49, %v414_v12  ;;  %1067 = vmatpush1.bf16.msra.mxu1 %v1687_v29  ;;  %v608_v29 = vld [vmem:[#allocation2 + $0x148] sm:$0xff]  ;;  %v1744_v49 = vcombine.high %v624_v44, %v628_v46  ;;  %v1714_v44 = vcombine.high %v593_v34, %v597_v36  ;;  %v601_v46 = vld [vmem:[#allocation2 + $0x110] sm:$0xff] }
 0x115   : > { %v433_v16 = vmax.f32 %v423_v11, 0.0  ;;  %1068 = vmatprep.subr.bf16.mxu1 %v1696_v5  ;;  %v1728_v32 = vcombine.high %v608_v29, %v612_v30  ;;  %v1727_v33 = vcombine.low %v608_v29, %v612_v30  ;;  %v1699_v29 = vcombine.low %v578_v8, %v582_v9 }
 0x116   : > { %v431_v18 = vmax.f32 %v415_v14, 0.0  ;;  %v1722_v52 = vcombine.high %v601_v46, %v605_v47 }
 0x117   : > { %v437_v21 = vpack.c.bf16 %v433_v16, %v432_v10  ;;  %v1700_v16 = vcombine.high %v578_v8, %v582_v9  ;;  %v629_v8 = vld [vmem:[#allocation2 + $0x1f0] sm:$0xff]  ;;  %v626_v9 = vld [vmem:[#allocation2 + $0x1d8] sm:$0xff] }
 0x118   : > { %v436_v22 = vpack.c.bf16 %v431_v18, %v430_v13  ;;  %1069 = vmatpush1.bf16.msra.mxu1 %v1695_v15  ;;  %v1698_v15 = vcombine.high %v577_v4, %v581_v7 }
 0x119   : > { %1070 = vmatprep.subr.bf16.mxu1 %v1704_v17  ;;  %v585_v17 = vld [vmem:[#allocation2 + $0x90] sm:$0xff] }
 0x11a   : > { %1787 = vmatprep.mubr.msk.bf16.mxu1 %vm477_vm3, %v436_v22  ;;  %v590_v22 = vld [vmem:[#allocation2 + $0xb8] sm:$0xff] }
 0x11b   : > { %1788 = vmatmul.mubr.msk.bf16.gmra.mrb[4].mxu1 %vm477_vm3, %v437_v21  ;;  %v586_v21 = vld [vmem:[#allocation2 + $0x98] sm:$0xff] }
 0x11c   : > { %1071 = vmatpush1.bf16.msra.mxu1 %v1703_v24  ;;  %1098 = vmatprep.mubr.bf16.mxu1 %v1895_v55  ;;  %v1707_v42 = vcombine.low %v586_v21, %v590_v22 }
 0x11d   : > { %1072 = vmatprep.subr.bf16.mxu1 %v1712_v25 }
 0x120   : > { %1073 = vmatpush1.bf16.msra.mxu1 %v1711_v23 }
 0x121   : > { %1074 = vmatprep.subr.bf16.mxu1 %v1720_v26  ;;  %v1697_v26 = vcombine.low %v577_v4, %v581_v7  ;;  %v625_v7 = vld [vmem:[#allocation2 + $0x1d0] sm:$0xff] }
 0x124   : > { %1075 = vmatpush1.bf16.msra.mxu1 %v1719_v31 }
 0x125   : > { %1076 = vmatprep.subr.bf16.mxu1 %v1728_v32  ;;  %v1706_v32 = vcombine.high %v585_v17, %v589_v20 }
 0x128   : > { %1077 = vmatpush1.bf16.msra.mxu1 %v1727_v33  ;;  %v1708_v33 = vcombine.high %v586_v21, %v590_v22  ;;  %v2091_v21 = vld [vmem:[%s2224_s6] sm:$0xff] }
 0x129   : > { %1078 = vmatprep.subr.bf16.mxu1 %v1736_v41  ;;  %v1705_v41 = vcombine.low %v585_v17, %v589_v20  ;;  %v1745_v17 = vcombine.low %v625_v7, %v629_v8 }
 0x12c   : > { %1079 = vmatpush1.bf16.msra.mxu1 %v1735_v40 }
 0x12d   : > { %1080 = vmatprep.subr.bf16.mxu1 %v1744_v49  ;;  %v606_v49 = vld [vmem:[#allocation2 + $0x138] sm:$0xff] }
 0x130   : > { %1081 = vmatpush1.bf16.msra.mxu1 %v1743_v48  ;;  %v602_v48 = vld [vmem:[#allocation2 + $0x118] sm:$0xff] }
 0x131   : > { %1212 = vmatprep.subr.bf16.mxu1 %v1692_v58  ;;  %v1724_v53 = vcombine.high %v602_v48, %v606_v49  ;;  %v614_v58 = vld [vmem:[#allocation2 + $0x178] sm:$0xff] }
 0x1e6   : > { %v1785_v60 = vpop.f32.mrb[0].mxu1 }
 0x1e7   : > { %v533_v61 = vadd.f32 %v1785_v60, %v1676_v59  ;;  %v524_v62 = vpop.f32.mrb[1].mxu1  ;;  %v1723_v60 = vcombine.low %v602_v48, %v606_v49 }
 0x1e8   : > { %v525_v63 = vadd.f32 %v1676_v59, %v524_v62  ;;  %v1786_v0 = vpop.f32.mrb[2].mxu1 }
 0x1e9   : > { %v536_v1 = vadd.f32 %v1786_v0, %v1676_v59  ;;  %v527_v2 = vpop.f32.mrb[3].mxu1  ;;  %v557_v5 = vmax.f32 %v533_v61, 0.0  ;;  %v621_v0 = vld [vmem:[#allocation2 + $0x1b0] sm:$0xff] }
 0x1ea   : > { %v528_v3 = vadd.f32 %v1676_v59, %v527_v2  ;;  %v555_v10 = vmax.f32 %v525_v63, 0.0  ;;  %v617_v63 = vld [vmem:[#allocation2 + $0x190] sm:$0xff]  ;;  %v622_v2 = vld [vmem:[#allocation2 + $0x1b8] sm:$0xff] }
 0x1eb   : > { %v558_v6 = vmax.f32 %v536_v1, 0.0  ;;  %v618_v1 = vld [vmem:[#allocation2 + $0x198] sm:$0xff] }
 0x1ec   : > { %v556_v11 = vmax.f32 %v528_v3, 0.0 }
 0x1ed   : > { %v2046_v12 = vpack.c.bf16 %v558_v6, %v557_v5  ;;  %v1738_v5 = vcombine.high %v617_v63, %v621_v0  ;;  %v1740_v6 = vcombine.high %v618_v1, %v622_v2 }
 0x1ee   : > { %v2048_v13 = vpack.c.bf16 %v556_v11, %v555_v10  ;;  %v1789_v14 = vpop.f32.mrb[4].mxu1  ;;  %v630_v10 = vld [vmem:[#allocation2 + $0x1f8] sm:$0xff]  ;;  %v1737_v11 = vcombine.low %v617_v63, %v621_v0 }
 0x1ef   : > { %v549_v18 = vadd.f32 %v1789_v14, %v1676_v59  ;;  %v540_v19 = vpop.f32.mrb[5].mxu1  ;;  %v1739_v14 = vcombine.low %v618_v1, %v622_v2 }
 0x1f0   : > { %v541_v24 = vadd.f32 %v1676_v59, %v540_v19  ;;  %1026 = vmatmul.mubr.bf16.vlgmr.msra.gmra.mrb[8].mxu0 %v2048_v13  ;;  %1099 = vmatmul.mubr.bf16.vlgmr.msra.gmra.mrb[8].mxu1 %v2048_v13  ;;  %v1790_v25 = vpop.f32.mrb[6].mxu1 }
 0x1f1   : > { %v561_v27 = vmax.f32 %v549_v18, 0.0  ;;  %1140 = vmatpush1.bf16.msra.mxu0 %v1689_v56  ;;  %1213 = vmatpush1.bf16.msra.mxu1 %v1691_v57  ;;  %v552_v28 = vadd.f32 %v1790_v25, %v1676_v59  ;;  %v543_v23 = vpop.f32.mrb[7].mxu1  ;;  %v613_v56 = vld [vmem:[#allocation2 + $0x170] sm:$0xff]  ;;  %v610_v57 = vld [vmem:[#allocation2 + $0x158] sm:$0xff]  ;;  %v1747_v18 = vcombine.low %v626_v9, %v630_v10 }
 0x1f2   : > { %v559_v30 = vmax.f32 %v541_v24, 0.0  ;;  %v544_v31 = vadd.f32 %v1676_v59, %v543_v23  ;;  %1141 = vmatprep.subr.bf16.mxu0 %v1698_v15  ;;  %1214 = vmatprep.subr.bf16.mxu1 %v1700_v16  ;;  %v1721_v59 = vcombine.low %v601_v46, %v605_v47  ;;  %v1730_v61 = vcombine.high %v609_v54, %v613_v56 }
 0x1f3   : > { %v562_v35 = vmax.f32 %v552_v28, 0.0  ;;  %1035 = vmatprep.mubr.bf16.mxu0 %v1895_v55  ;;  %1108 = vmatprep.mubr.bf16.mxu1 %v1895_v55  ;;  %v1732_v62 = vcombine.high %v610_v57, %v614_v58  ;;  %v1729_v3 = vcombine.low %v609_v54, %v613_v56  ;;  %v1731_v4 = vcombine.low %v610_v57, %v614_v58 }
 0x1f4   : > { %v560_v39 = vmax.f32 %v544_v31, 0.0  ;;  %v1746_v15 = vcombine.high %v625_v7, %v629_v8  ;;  %v1748_v16 = vcombine.high %v626_v9, %v630_v10 }
 0x1f5   : > { %v2054_v40 = vpack.c.bf16 %v562_v35, %v561_v27  ;;  %1142 = vmatpush1.bf16.msra.mxu0 %v1697_v26  ;;  %1215 = vmatpush1.bf16.msra.mxu1 %v1699_v29 }
 0x1f6   : > { %v2056_v43 = vpack.c.bf16 %v560_v39, %v559_v30  ;;  %1143 = vmatprep.subr.bf16.mxu0 %v1706_v32  ;;  %1216 = vmatprep.subr.bf16.mxu1 %v1708_v33 }
 0x1f8   : > { %1036 = vmatmul.mubr.bf16.gmra.mrb[12].mxu0 %v2046_v12  ;;  %1109 = vmatmul.mubr.bf16.gmra.mrb[12].mxu1 %v2046_v12 }
 0x1f9   : > { %1144 = vmatpush1.bf16.msra.mxu0 %v1705_v41  ;;  %1217 = vmatpush1.bf16.msra.mxu1 %v1707_v42 }
 0x1fa   : > { %1145 = vmatprep.subr.bf16.mxu0 %v1714_v44  ;;  %1218 = vmatprep.subr.bf16.mxu1 %v1716_v45 }
 0x1fb   : > { %1045 = vmatprep.mubr.bf16.mxu0 %v1895_v55  ;;  %1118 = vmatprep.mubr.bf16.mxu1 %v1895_v55 }
 0x1fd   : > { %1146 = vmatpush1.bf16.msra.mxu0 %v1713_v50  ;;  %1219 = vmatpush1.bf16.msra.mxu1 %v1715_v51 }
 0x1fe   : > { %1147 = vmatprep.subr.bf16.mxu0 %v1722_v52  ;;  %1220 = vmatprep.subr.bf16.mxu1 %v1724_v53 }
 0x200   : > { %1046 = vmatmul.mubr.bf16.gmra.mrb[16].mxu0 %v2056_v43  ;;  %1119 = vmatmul.mubr.bf16.gmra.mrb[16].mxu1 %v2056_v43 }
 0x201   : > { %1148 = vmatpush1.bf16.msra.mxu0 %v1721_v59  ;;  %1221 = vmatpush1.bf16.msra.mxu1 %v1723_v60 }
 0x202   : > { %1149 = vmatprep.subr.bf16.mxu0 %v1730_v61  ;;  %1222 = vmatprep.subr.bf16.mxu1 %v1732_v62 }
 0x203   : > { %1055 = vmatprep.mubr.bf16.mxu0 %v1895_v55  ;;  %1128 = vmatprep.mubr.bf16.mxu1 %v1895_v55 }
 0x205   : > { %1150 = vmatpush1.bf16.msra.mxu0 %v1729_v3  ;;  %1223 = vmatpush1.bf16.msra.mxu1 %v1731_v4 }
 0x206   : > { %1151 = vmatprep.subr.bf16.mxu0 %v1738_v5  ;;  %1224 = vmatprep.subr.bf16.mxu1 %v1740_v6 }
 0x208   : > { %1056 = vmatmul.mubr.bf16.gmra.mrb[20].mxu0 %v2054_v40  ;;  %1129 = vmatmul.mubr.bf16.gmra.mrb[20].mxu1 %v2054_v40 }
 0x209   : > { %1152 = vmatpush1.bf16.msra.mxu0 %v1737_v11  ;;  %1225 = vmatpush1.bf16.msra.mxu1 %v1739_v14 }
 0x20a   : > { %1153 = vmatprep.subr.bf16.mxu0 %v1746_v15  ;;  %1226 = vmatprep.subr.bf16.mxu1 %v1748_v16 }
 0x20b   : > { %1171 = vmatprep.mubr.bf16.mxu0 %v1895_v55  ;;  %1244 = vmatprep.mubr.bf16.mxu1 %v1895_v55 }
 0x20d   : > { %1154 = vmatpush1.bf16.msra.mxu0 %v1745_v17  ;;  %1227 = vmatpush1.bf16.msra.mxu1 %v1747_v18 }
 0x210   : > { %1172 = vmatmul.mubr.bf16.vlgmr.msra.gmra.mrb[24].mxu0 %v2048_v13  ;;  %1245 = vmatmul.mubr.bf16.vlgmr.msra.gmra.mrb[24].mxu1 %v2048_v13  ;;  %v633_v13 = vlaneseq }
 0x211   : > { %1181 = vmatprep.mubr.bf16.mxu0 %v1895_v55  ;;  %1254 = vmatprep.mubr.bf16.mxu1 %v1895_v55 }
 0x212   : > { %v2084_v19 = vshrl.u32 %v633_v13, 7 }
 0x214   : > { %v643_v20 = vsub.s32 2, %v2084_v19  ;;  %v639_v22 = vsub.s32 1, %v2084_v19 }
 0x216   : > { %v2099_v25 = vrot.slane %v2091_v21, %v643_v20  ;;  %v2102_v27 = vrot.slane %v2091_v21, %v639_v22 }
 0x218   : > { %1182 = vmatmul.mubr.bf16.gmra.mrb[28].mxu0 %v2046_v12  ;;  %1255 = vmatmul.mubr.bf16.gmra.mrb[28].mxu1 %v2046_v12  ;;  %v635_v12 = vsub.s32 0, %v2084_v19 }
 0x219   : > { %1191 = vmatprep.mubr.bf16.mxu0 %v1895_v55  ;;  %1264 = vmatprep.mubr.bf16.mxu1 %v1895_v55 }
 0x21a   : > { %v2096_v24 = vrot.slane %v2091_v21, %v635_v12 }
 0x220   : > { %1192 = vmatmul.mubr.bf16.gmra.mrb[32].mxu0 %v2056_v43  ;;  %1265 = vmatmul.mubr.bf16.gmra.mrb[32].mxu1 %v2056_v43 }
 0x221   : > { %1201 = vmatprep.mubr.bf16.mxu0 %v1895_v55  ;;  %1274 = vmatprep.mubr.bf16.mxu1 %v1895_v55  ;;  %v647_v55 = vsub.s32 3, %v2084_v19 }
 0x223   : > { %v2105_v28 = vrot.slane %v2091_v21, %v647_v55 }
 0x228   : > { %1202 = vmatmul.mubr.bf16.gmra.mrb[36].mxu0 %v2054_v40  ;;  %1275 = vmatmul.mubr.bf16.gmra.mrb[36].mxu1 %v2054_v40 }
 0x2c3   : > { %v1027_v23 = vpop.f32.mrb[8].mxu0  ;;  %v1100_v26 = vpop.f32.mrb[8].mxu1 }
 0x2c4   : > { %v1028_v29 = vadd.f32 %v1027_v23, %v2096_v24  ;;  %v1101_v30 = vadd.f32 %v1100_v26, %v2099_v25  ;;  %v1029_v31 = vpop.f32.mrb[9].mxu0  ;;  %v1102_v32 = vpop.f32.mrb[9].mxu1 }
 0x2c5   : > { %v1030_v33 = vadd.f32 %v1029_v31, %v2102_v27  ;;  %v1103_v34 = vadd.f32 %v1102_v32, %v2105_v28  ;;  %v1031_v35 = vpop.f32.mrb[10].mxu0  ;;  %v1104_v36 = vpop.f32.mrb[10].mxu1  ;;  %v651_v31 = vsub.s32 4, %v2084_v19 }
 0x2c6   : > { %v1032_v37 = vadd.f32 %v1031_v35, %v2096_v24  ;;  %v1105_v38 = vadd.f32 %v1104_v36, %v2099_v25  ;;  %v1033_v39 = vpop.f32.mrb[11].mxu0  ;;  %v1106_v40 = vpop.f32.mrb[11].mxu1  ;;  %v1285_v43 = vmax.f32 %v1028_v29, 0.0  ;;  %v1287_v44 = vmax.f32 %v1101_v30, 0.0 }
 0x2c7   : > { %v1034_v41 = vadd.f32 %v1033_v39, %v2102_v27  ;;  %v1107_v42 = vadd.f32 %v1106_v40, %v2105_v28  ;;  %v1286_v47 = vmax.f32 %v1030_v33, 0.0  ;;  %v1288_v48 = vmax.f32 %v1103_v34, 0.0 }
 0x2c8   : > { %v1293_v45 = vmax.f32 %v1032_v37, 0.0  ;;  %v1295_v46 = vmax.f32 %v1105_v38, 0.0  ;;  %v659_v36 = vsub.s32 6, %v2084_v19  ;;  %v655_v37 = vsub.s32 5, %v2084_v19 }
 0x2c9   : > { %v1294_v49 = vmax.f32 %v1034_v41, 0.0  ;;  %v1296_v50 = vmax.f32 %v1107_v42, 0.0  ;;  %v1896_v42 = vmov 1966171168  }
 0x2ca   : > { %v1349_v51 = vmax.f32 %v1285_v43, %v1293_v45  ;;  %v1375_v52 = vmax.f32 %v1287_v44, %v1295_v46  ;;  %v1470_v43 = vunpack.c.l.s4 %v1896_v42  ;;  %v663_v44 = vsub.s32 7, %v2084_v19 }
 0x2cb   : > { %v1362_v53 = vmax.f32 %v1286_v47, %v1294_v49  ;;  %v1388_v54 = vmax.f32 %v1288_v48, %v1296_v50  ;;  %v1037_v56 = vpop.f32.mrb[12].mxu0  ;;  %v1110_v57 = vpop.f32.mrb[12].mxu1 }
 0x2cc   : > { %v1038_v58 = vadd.f32 %v1037_v56, %v2096_v24  ;;  %v1111_v59 = vadd.f32 %v1110_v57, %v2099_v25  ;;  %v1039_v60 = vpop.f32.mrb[13].mxu0  ;;  %v1112_v61 = vpop.f32.mrb[13].mxu1 }
 0x2cd   : > { %v1040_v62 = vadd.f32 %v1039_v60, %v2102_v27  ;;  %v1113_v63 = vadd.f32 %v1112_v61, %v2105_v28  ;;  %v1041_v0 = vpop.f32.mrb[14].mxu0  ;;  %v1114_v1 = vpop.f32.mrb[14].mxu1 }
 0x2ce   : > { %v1301_v2 = vmax.f32 %v1038_v58, 0.0  ;;  %v1303_v3 = vmax.f32 %v1111_v59, 0.0  ;;  %v1042_v4 = vadd.f32 %v1041_v0, %v2096_v24  ;;  %v1115_v5 = vadd.f32 %v1114_v1, %v2099_v25  ;;  %v1043_v6 = vpop.f32.mrb[15].mxu0  ;;  %v1116_v7 = vpop.f32.mrb[15].mxu1 }
 0x2cf   : > { %v1302_v8 = vmax.f32 %v1040_v62, 0.0  ;;  %v1304_v9 = vmax.f32 %v1113_v63, 0.0  ;;  %v1044_v10 = vadd.f32 %v1043_v6, %v2102_v27  ;;  %v1117_v11 = vadd.f32 %v1116_v7, %v2105_v28 }
 0x2d0   : > { %v1350_v14 = vmax.f32 %v1349_v51, %v1301_v2  ;;  %v1376_v15 = vmax.f32 %v1375_v52, %v1303_v3  ;;  %v1309_v16 = vmax.f32 %v1042_v4, 0.0  ;;  %v1311_v17 = vmax.f32 %v1115_v5, 0.0 }
 0x2d1   : > { %v1363_v18 = vmax.f32 %v1362_v53, %v1302_v8  ;;  %v1389_v13 = vmax.f32 %v1388_v54, %v1304_v9  ;;  %v1310_v12 = vmax.f32 %v1044_v10, 0.0  ;;  %v1312_v20 = vmax.f32 %v1117_v11, 0.0 }
 0x2d2   : > { %v1351_v22 = vmax.f32 %v1350_v14, %v1309_v16  ;;  %v1377_v55 = vmax.f32 %v1376_v15, %v1311_v17  ;;  %v2136_v6 = vrot.slane %v2091_v21, %v651_v31  ;;  %v2141_v11 = vrot.slane %v2091_v21, %v659_v36 }
 0x2d3   : > { %v1364_v23 = vmax.f32 %v1363_v18, %v1310_v12  ;;  %v1390_v26 = vmax.f32 %v1389_v13, %v1312_v20  ;;  %v1047_v29 = vpop.f32.mrb[16].mxu0  ;;  %v1120_v30 = vpop.f32.mrb[16].mxu1  ;;  %v2144_v14 = vrot.slane %v2091_v21, %v655_v37  ;;  %v1471_v13 = vunpack.c.0.s8 %v1470_v43 }
 0x2d4   : > { %v1048_v32 = vadd.f32 %v1047_v29, %v2096_v24  ;;  %v1121_v33 = vadd.f32 %v1120_v30, %v2099_v25  ;;  %v1049_v34 = vpop.f32.mrb[17].mxu0  ;;  %v1122_v35 = vpop.f32.mrb[17].mxu1  ;;  %v2149_v12 = vrot.slane %v2091_v21, %v663_v44 }
 0x2d5   : > { %v1050_v38 = vadd.f32 %v1049_v34, %v2102_v27  ;;  %v1123_v39 = vadd.f32 %v1122_v35, %v2105_v28  ;;  %v1051_v40 = vpop.f32.mrb[18].mxu0  ;;  %v1124_v41 = vpop.f32.mrb[18].mxu1 }
 0x2d6   : > { %v1317_v45 = vmax.f32 %v1048_v32, 0.0  ;;  %v1319_v46 = vmax.f32 %v1121_v33, 0.0  ;;  %v1052_v47 = vadd.f32 %v1051_v40, %v2096_v24  ;;  %v1125_v48 = vadd.f32 %v1124_v41, %v2099_v25  ;;  %v1053_v49 = vpop.f32.mrb[19].mxu0  ;;  %v1126_v50 = vpop.f32.mrb[19].mxu1 }
 0x2d7   : > { %v1318_v51 = vmax.f32 %v1050_v38, 0.0  ;;  %v1320_v52 = vmax.f32 %v1123_v39, 0.0  ;;  %v1054_v53 = vadd.f32 %v1053_v49, %v2102_v27  ;;  %v1127_v54 = vadd.f32 %v1126_v50, %v2105_v28 }
 0x2d8   : > { %v1352_v56 = vmax.f32 %v1351_v22, %v1317_v45  ;;  %v1378_v57 = vmax.f32 %v1377_v55, %v1319_v46  ;;  %v1325_v58 = vmax.f32 %v1052_v47, 0.0  ;;  %v1327_v59 = vmax.f32 %v1125_v48, 0.0 }
 0x2d9   : > { %v1365_v60 = vmax.f32 %v1364_v23, %v1318_v51  ;;  %v1391_v61 = vmax.f32 %v1390_v26, %v1320_v52  ;;  %v1326_v62 = vmax.f32 %v1054_v53, 0.0  ;;  %v1328_v63 = vmax.f32 %v1127_v54, 0.0 }
 0x2da   : > { %v1353_v0 = vmax.f32 %v1352_v56, %v1325_v58  ;;  %v1379_v1 = vmax.f32 %v1378_v57, %v1327_v59 }
 0x2db   : > { %v1366_v2 = vmax.f32 %v1365_v60, %v1326_v62  ;;  %v1392_v3 = vmax.f32 %v1391_v61, %v1328_v63  ;;  %v1057_v4 = vpop.f32.mrb[20].mxu0  ;;  %v1130_v5 = vpop.f32.mrb[20].mxu1 }
 0x2dc   : > { %v1058_v7 = vadd.f32 %v1057_v4, %v2096_v24  ;;  %v1131_v8 = vadd.f32 %v1130_v5, %v2099_v25  ;;  %v1059_v9 = vpop.f32.mrb[21].mxu0  ;;  %v1132_v10 = vpop.f32.mrb[21].mxu1 }
 0x2dd   : > { %v1060_v15 = vadd.f32 %v1059_v9, %v2102_v27  ;;  %v1133_v16 = vadd.f32 %v1132_v10, %v2105_v28  ;;  %v1061_v17 = vpop.f32.mrb[22].mxu0  ;;  %v1134_v18 = vpop.f32.mrb[22].mxu1 }
 0x2de   : > { %v1333_v20 = vmax.f32 %v1058_v7, 0.0  ;;  %v1335_v22 = vmax.f32 %v1131_v8, 0.0  ;;  %v1062_v55 = vadd.f32 %v1061_v17, %v2096_v24  ;;  %v1135_v23 = vadd.f32 %v1134_v18, %v2099_v25  ;;  %v1063_v26 = vpop.f32.mrb[23].mxu0  ;;  %v1136_v29 = vpop.f32.mrb[23].mxu1 }
 0x2df   : > { %v1334_v30 = vmax.f32 %v1060_v15, 0.0  ;;  %v1336_v31 = vmax.f32 %v1133_v16, 0.0  ;;  %v1064_v32 = vadd.f32 %v1063_v26, %v2102_v27  ;;  %v1137_v33 = vadd.f32 %v1136_v29, %v2105_v28 }
 0x2e0   : > { %v1354_v34 = vmax.f32 %v1353_v0, %v1333_v20  ;;  %v1380_v35 = vmax.f32 %v1379_v1, %v1335_v22  ;;  %v1341_v36 = vmax.f32 %v1062_v55, 0.0  ;;  %v1343_v37 = vmax.f32 %v1135_v23, 0.0 }
 0x2e1   : > { %v1367_v21 = vmax.f32 %v1366_v2, %v1334_v30  ;;  %v1393_v38 = vmax.f32 %v1392_v3, %v1336_v31  ;;  %v1342_v39 = vmax.f32 %v1064_v32, 0.0  ;;  %v1344_v40 = vmax.f32 %v1137_v33, 0.0 }
 0x2e2   : > { %v1355_v41 = vmax.f32 %v1354_v34, %v1341_v36  ;;  %v1381_v24 = vmax.f32 %v1380_v35, %v1343_v37  ;;  %v2156_v25 = vsub.s32 %v1471_v13, %v2084_v19 }
 0x2e3   : > { %v1368_v42 = vmax.f32 %v1367_v21, %v1342_v39  ;;  %v1394_v43 = vmax.f32 %v1393_v38, %v1344_v40  ;;  %v1173_v44 = vpop.f32.mrb[24].mxu0  ;;  %v1246_v45 = vpop.f32.mrb[24].mxu1 }
 0x2e4   : > { %v1356_v27 = vrot.slane %v1355_v41, 4  ;;  %v1382_v46 = vrot.slane %v1381_v24, 4  ;;  %v1174_v28 = vadd.f32 %v1173_v44, %v2136_v6  ;;  %v1247_v47 = vadd.f32 %v1246_v45, %v2141_v11  ;;  %v1175_v48 = vpop.f32.mrb[25].mxu0  ;;  %v1248_v49 = vpop.f32.mrb[25].mxu1 }
 0x2e5   : > { %v1369_v50 = vrot.slane %v1368_v42, 4  ;;  %v1395_v51 = vrot.slane %v1394_v43, 4  ;;  %v1176_v52 = vadd.f32 %v1175_v48, %v2144_v14  ;;  %v1249_v53 = vadd.f32 %v1248_v49, %v2149_v12  ;;  %v1177_v54 = vpop.f32.mrb[26].mxu0  ;;  %v1250_v19 = vpop.f32.mrb[26].mxu1 }
 0x2e6   : > { %v1357_v56 = vmax.f32 %v1355_v41, %v1356_v27  ;;  %v1383_v57 = vmax.f32 %v1381_v24, %v1382_v46  ;;  %v1289_v58 = vmax.f32 %v1174_v28, 0.0  ;;  %v1291_v59 = vmax.f32 %v1247_v47, 0.0  ;;  %v1179_v60 = vpop.f32.mrb[27].mxu0  ;;  %v1252_v61 = vpop.f32.mrb[27].mxu1 }
 0x2e7   : > { %v1370_v62 = vmax.f32 %v1368_v42, %v1369_v50  ;;  %v1396_v63 = vmax.f32 %v1394_v43, %v1395_v51  ;;  %v1290_v0 = vmax.f32 %v1176_v52, 0.0  ;;  %v1292_v1 = vmax.f32 %v1249_v53, 0.0 }
 0x2e8   : > { %v1358_v2 = vrot.slane %v1357_v56, 2  ;;  %v1384_v3 = vrot.slane %v1383_v57, 2  ;;  %v1178_v4 = vadd.f32 %v1177_v54, %v2136_v6  ;;  %v1251_v5 = vadd.f32 %v1250_v19, %v2141_v11 }
 0x2e9   : > { %v1371_v7 = vrot.slane %v1370_v62, 2  ;;  %v1397_v8 = vrot.slane %v1396_v63, 2  ;;  %v1180_v9 = vadd.f32 %v1179_v60, %v2144_v14  ;;  %v1253_v10 = vadd.f32 %v1252_v61, %v2149_v12 }
 0x2ea   : > { %v1359_v15 = vmax.f32 %v1357_v56, %v1358_v2  ;;  %v1385_v16 = vmax.f32 %v1383_v57, %v1384_v3  ;;  %v1297_v17 = vmax.f32 %v1178_v4, 0.0  ;;  %v1299_v18 = vmax.f32 %v1251_v5, 0.0 }
 0x2eb   : > { %v1372_v13 = vmax.f32 %v1370_v62, %v1371_v7  ;;  %v1398_v20 = vmax.f32 %v1396_v63, %v1397_v8  ;;  %v1298_v22 = vmax.f32 %v1180_v9, 0.0  ;;  %v1300_v55 = vmax.f32 %v1253_v10, 0.0  ;;  %v1183_v23 = vpop.f32.mrb[28].mxu0  ;;  %v1256_v26 = vpop.f32.mrb[28].mxu1 }
 0x2ec   : > { %v1360_v29 = vrot.slane %v1359_v15, 1  ;;  %v1386_v30 = vrot.slane %v1385_v16, 1  ;;  %v1401_v31 = vmax.f32 %v1289_v58, %v1297_v17  ;;  %v1427_v32 = vmax.f32 %v1291_v59, %v1299_v18  ;;  %v1185_v33 = vpop.f32.mrb[29].mxu0  ;;  %v1258_v34 = vpop.f32.mrb[29].mxu1 }
 0x2ed   : > { %v1373_v35 = vrot.slane %v1372_v13, 1  ;;  %v1399_v36 = vrot.slane %v1398_v20, 1  ;;  %v1414_v37 = vmax.f32 %v1290_v0, %v1298_v22  ;;  %v1440_v21 = vmax.f32 %v1292_v1, %v1300_v55  ;;  %v1187_v38 = vpop.f32.mrb[30].mxu0  ;;  %v1260_v39 = vpop.f32.mrb[30].mxu1 }
 0x2ee   : > { %v1361_v40 = vmax.f32 %v1359_v15, %v1360_v29  ;;  %v1387_v41 = vmax.f32 %v1385_v16, %v1386_v30  ;;  %v1184_v24 = vadd.f32 %v1183_v23, %v2136_v6  ;;  %v1257_v42 = vadd.f32 %v1256_v26, %v2141_v11  ;;  %v1189_v43 = vpop.f32.mrb[31].mxu0  ;;  %v1262_v44 = vpop.f32.mrb[31].mxu1 }
 0x2ef   : > { %v1374_v45 = vmax.f32 %v1372_v13, %v1373_v35  ;;  %v1400_v27 = vmax.f32 %v1398_v20, %v1399_v36  ;;  %v1186_v46 = vadd.f32 %v1185_v33, %v2144_v14  ;;  %v1259_v28 = vadd.f32 %v1258_v34, %v2149_v12 }
 0x2f0   : > { %v1305_v47 = vmax.f32 %v1184_v24, 0.0  ;;  %v1307_v48 = vmax.f32 %v1257_v42, 0.0  ;;  %v1188_v49 = vadd.f32 %v1187_v38, %v2136_v6  ;;  %v1261_v50 = vadd.f32 %v1260_v39, %v2141_v11 }
 0x2f1   : > { %v1465_v51 = vcombine.low %v1361_v40, %v1374_v45  ;;  %v1466_v52 = vcombine.low %v1387_v41, %v1400_v27  ;;  %v1306_v53 = vmax.f32 %v1186_v46, 0.0  ;;  %v1308_v54 = vmax.f32 %v1259_v28, 0.0 }
 0x2f2   : > { %v1402_v19 = vmax.f32 %v1401_v31, %v1305_v47  ;;  %v1428_v56 = vmax.f32 %v1427_v32, %v1307_v48  ;;  %v1313_v57 = vmax.f32 %v1188_v49, 0.0  ;;  %v1315_v58 = vmax.f32 %v1261_v50, 0.0 }
 0x2f3   : > { %v2173_v59 = vrot.slane %v1465_v51, %v2156_v25  ;;  %v2176_v60 = vrot.slane %v1466_v52, %v2156_v25  ;;  %v1415_v61 = vmax.f32 %v1414_v37, %v1306_v53  ;;  %v1441_v62 = vmax.f32 %v1440_v21, %v1308_v54  ;;  %v1193_v63 = vpop.f32.mrb[32].mxu0  ;;  %v1266_v0 = vpop.f32.mrb[32].mxu1 }
 0x2f4   : > { %v1403_v1 = vmax.f32 %v1402_v19, %v1313_v57  ;;  %v1429_v2 = vmax.f32 %v1428_v56, %v1315_v58  ;;  %v1190_v3 = vadd.f32 %v1189_v43, %v2144_v14  ;;  %v1263_v4 = vadd.f32 %v1262_v44, %v2149_v12  ;;  %v1195_v5 = vpop.f32.mrb[33].mxu0  ;;  %v1268_v7 = vpop.f32.mrb[33].mxu1 }
 0x2f5   : > { %v1497_v8 = vcombine.low %v2173_v59, %v2176_v60  ;;  %v1194_v9 = vadd.f32 %v1193_v63, %v2136_v6  ;;  %v1267_v10 = vadd.f32 %v1266_v0, %v2141_v11  ;;  %v1196_v15 = vadd.f32 %v1195_v5, %v2144_v14  ;;  %v1197_v16 = vpop.f32.mrb[34].mxu0  ;;  %v1270_v17 = vpop.f32.mrb[34].mxu1 }
 0x2f6   : > { %v1314_v18 = vmax.f32 %v1190_v3, 0.0  ;;  %v1316_v13 = vmax.f32 %v1263_v4, 0.0  ;;  %v1269_v20 = vadd.f32 %v1268_v7, %v2149_v12  ;;  %v1198_v22 = vadd.f32 %v1197_v16, %v2136_v6  ;;  %v1199_v55 = vpop.f32.mrb[35].mxu0  ;;  %v1272_v23 = vpop.f32.mrb[35].mxu1 }
 0x2f7   : > { %v1321_v26 = vmax.f32 %v1194_v9, 0.0  ;;  %v1323_v29 = vmax.f32 %v1267_v10, 0.0  ;;  %v1322_v30 = vmax.f32 %v1196_v15, 0.0  ;;  %v1271_v37 = vadd.f32 %v1270_v17, %v2141_v11 }
 0x2f8   : > { %v1416_v31 = vmax.f32 %v1415_v61, %v1314_v18  ;;  %v1442_v32 = vmax.f32 %v1441_v62, %v1316_v13  ;;  %v1324_v33 = vmax.f32 %v1269_v20, 0.0  ;;  %v1329_v34 = vmax.f32 %v1198_v22, 0.0 }
 0x2f9   : > { %v1404_v35 = vmax.f32 %v1403_v1, %v1321_v26  ;;  %v1430_v36 = vmax.f32 %v1429_v2, %v1323_v29  ;;  %v1200_v21 = vadd.f32 %v1199_v55, %v2144_v14  ;;  %v1273_v40 = vadd.f32 %v1272_v23, %v2149_v12 }
 0x2fa   : > { %v1417_v38 = vmax.f32 %v1416_v31, %v1322_v30  ;;  %v1443_v39 = vmax.f32 %v1442_v32, %v1324_v33  ;;  %v1331_v24 = vmax.f32 %v1271_v37, 0.0 }
 0x2fb   : > { %v1405_v41 = vmax.f32 %v1404_v35, %v1329_v34  ;;  %v1330_v42 = vmax.f32 %v1200_v21, 0.0  ;;  %v1203_v43 = vpop.f32.mrb[36].mxu0  ;;  %v1276_v44 = vpop.f32.mrb[36].mxu1  ;;  %v1332_v45 = vmax.f32 %v1273_v40, 0.0 }
 0x2fc   : > { %v1204_v27 = vadd.f32 %v1203_v43, %v2136_v6  ;;  %v1277_v46 = vadd.f32 %v1276_v44, %v2141_v11  ;;  %v1205_v28 = vpop.f32.mrb[37].mxu0  ;;  %v1278_v47 = vpop.f32.mrb[37].mxu1  ;;  %v1431_v48 = vmax.f32 %v1430_v36, %v1331_v24 }
 0x2fd   : > { %v1418_v49 = vmax.f32 %v1417_v38, %v1330_v42  ;;  %v1206_v50 = vadd.f32 %v1205_v28, %v2144_v14  ;;  %v1279_v51 = vadd.f32 %v1278_v47, %v2149_v12  ;;  %v1207_v52 = vpop.f32.mrb[38].mxu0  ;;  %v1280_v53 = vpop.f32.mrb[38].mxu1  ;;  %v1444_v54 = vmax.f32 %v1443_v39, %v1332_v45 }
 0x2fe   : > { %v1337_v19 = vmax.f32 %v1204_v27, 0.0  ;;  %v1339_v56 = vmax.f32 %v1277_v46, 0.0  ;;  %v1208_v57 = vadd.f32 %v1207_v52, %v2136_v6  ;;  %v1209_v58 = vpop.f32.mrb[39].mxu0  ;;  %v1282_v61 = vpop.f32.mrb[39].mxu1  ;;  %v1281_v0 = vadd.f32 %v1280_v53, %v2141_v11 }
 0x2ff   : > { %v1338_v62 = vmax.f32 %v1206_v50, 0.0  ;;  %v1340_v63 = vmax.f32 %v1279_v51, 0.0  ;;  %v1210_v1 = vadd.f32 %v1209_v58, %v2144_v14  ;;  %v1283_v5 = vadd.f32 %v1282_v61, %v2149_v12 }
 0x300   : > { %v1406_v2 = vmax.f32 %v1405_v41, %v1337_v19  ;;  %v1432_v3 = vmax.f32 %v1431_v48, %v1339_v56  ;;  %v1345_v4 = vmax.f32 %v1208_v57, 0.0  ;;  %v1347_v10 = vmax.f32 %v1281_v0, 0.0 }
 0x301   : > { %v1419_v7 = vmax.f32 %v1418_v49, %v1338_v62  ;;  %v1445_v9 = vmax.f32 %v1444_v54, %v1340_v63  ;;  %v1346_v15 = vmax.f32 %v1210_v1, 0.0  ;;  %v1348_v17 = vmax.f32 %v1283_v5, 0.0 }
 0x302   : > { %v1407_v16 = vmax.f32 %v1406_v2, %v1345_v4  ;;  %v1433_v6 = vmax.f32 %v1432_v3, %v1347_v10  ;;  %v1505_v28 = vrot.slane %v1497_v8, %v2156_v25 }
 0x303   : > { %v1420_v18 = vmax.f32 %v1419_v7, %v1346_v15  ;;  %v1446_v20 = vmax.f32 %v1445_v9, %v1348_v17 }
 0x304   : > { %v1408_v13 = vrot.slane %v1407_v16, 4  ;;  %v1434_v22 = vrot.slane %v1433_v6, 4 }
 0x305   : > { %v1421_v55 = vrot.slane %v1420_v18, 4  ;;  %v1447_v23 = vrot.slane %v1446_v20, 4 }
 0x306   : > { %v1409_v11 = vmax.f32 %v1407_v16, %v1408_v13  ;;  %v1435_v14 = vmax.f32 %v1433_v6, %v1434_v22 }
 0x307   : > { %v1422_v26 = vmax.f32 %v1420_v18, %v1421_v55  ;;  %v1448_v30 = vmax.f32 %v1446_v20, %v1447_v23 }
 0x308   : > { %v1410_v29 = vrot.slane %v1409_v11, 2  ;;  %v1436_v31 = vrot.slane %v1435_v14, 2 }
 0x309   : > { %v1423_v12 = vrot.slane %v1422_v26, 2  ;;  %v1449_v33 = vrot.slane %v1448_v30, 2 }
 0x30a   : > { %v1411_v32 = vmax.f32 %v1409_v11, %v1410_v29  ;;  %v1437_v34 = vmax.f32 %v1435_v14, %v1436_v31 }
 0x30b   : > { %v1424_v35 = vmax.f32 %v1422_v26, %v1423_v12  ;;  %v1450_v37 = vmax.f32 %v1448_v30, %v1449_v33 }
 0x30c   : > { %v1412_v36 = vrot.slane %v1411_v32, 1  ;;  %v1438_v21 = vrot.slane %v1437_v34, 1 }
 0x30d   : > { %v1425_v38 = vrot.slane %v1424_v35, 1  ;;  %v1451_v40 = vrot.slane %v1450_v37, 1 }
 0x30e   : > { %v1413_v39 = vmax.f32 %v1411_v32, %v1412_v36  ;;  %v1439_v41 = vmax.f32 %v1437_v34, %v1438_v21 }
 0x30f   : > { %v1426_v24 = vmax.f32 %v1424_v35, %v1425_v38  ;;  %v1452_v42 = vmax.f32 %v1450_v37, %v1451_v40 }
 0x311   : > { %v1467_v43 = vcombine.low %v1413_v39, %v1426_v24  ;;  %v1468_v44 = vcombine.low %v1439_v41, %v1452_v42 }
 0x313   : > { %v1489_v45 = vrot.slane %v1467_v43, %v2156_v25  ;;  %v1496_v27 = vrot.slane %v1468_v44, %v2156_v25 }
 0x315   : > { %v1498_v46 = vcombine.low %v1489_v45, %v1496_v27 }
 0x317   : > { %v1512_v47 = vrot.slane %v1498_v46, %v2156_v25 }
 0x319   : > { %v1513_v48 = vcombine.low %v1505_v28, %v1512_v47 }
 0x31b   : > { %1515 = vst [vmem:[%s319_s9] sm:$0xff] %v1513_v48 }
 0x31c PF: > { %s18_s26 = sadd.s32 1, %s1889_s26   ;;  %s2234_s24 = smov %s1885_s25 }
 0x31d   : > { %p15_p4 = scmp.ge.s32.totalorder %s18_s26, 4   ;;  %s2235_s25 = smov %s2237_s28 }
 0x31f   :  { %17 = sbr.rel (!%p15_p4) target bundleno = 2 (0x2), region = 91 }
 0x326   :  { %1600 = vsyncpa [#allocation3], 1 }
 0x327   :  { %1602 = vsyncpa [#allocation3 + $0x1], 1 }

// kernel: pointnet_cls_forward.10
= control target key start
LH: loop header
LB: loop body
LE: loop exit
PB: predicated region body
PF: predicated region fallthrough
CT: control target
= control target key end

     0   :  { %s549_s12 = smov 0   ;;  %s606_s0 = inlined_call_operand.vmem [shape: bf16[2,64,64], index: 0, kind: input, shape index: {}]   ;;  %s607_s1 = inlined_call_operand.vmem [shape: f32[64,4], index: 1, kind: input, shape index: {}]   ;;  %s608_s2 = inlined_call_operand.vmem [shape: f32[4,64], index: 2, kind: input, shape index: {}]   ;;  %s609_s3 = inlined_call_operand.vmem [shape: f32[2,1,64], index: 3, kind: output, shape index: {}]  }
   0x1 LB: > { %s423_s13 = sadd.s32 4294967295, %s524_s12   ;;  %p427_p0 = scmp.ge.s32.totalorder %s524_s12, 1  ;;  %s524_s12 = sphi %s549_s12, %s13_s12  }
   0x2   : > { %p137_p1 = scmp.lt.s32.totalorder %s524_s12, 3 }
   0x4   : > { %p138_p2 = pnand %p427_p0, %p137_p1 }
   0x5   : > { %v207_v0 = vld [vmem:[%s607_s1] sm:$0xff] (!%p138_p2)  ;;  %v208_v1 = vld [vmem:[%s607_s1 + $0x8] sm:$0xff] (!%p138_p2)  ;;  %v209_v2 = vld [vmem:[%s607_s1 + $0x10] sm:$0xff] (!%p138_p2)  ;;  %v526_v3 = vmov (!%p138_p2), 0.0|0.0   ;;  %vm527_vm0 = vmmov (!%p138_p2), 0   ;;  %v528_v6 = vmov (!%p138_p2), 0.0  }
   0x6   : > { %141 = sbr.rel (%p138_p2) target bundleno = 501 (0x1f5), region = 32  ;;  %491 = vmatprep.subr.bf16.mxu0 (!%p138_p2), %v526_v3  ;;  %v492_v4 = vpack.c.bf16 (!%p138_p2), %v208_v1, %v207_v0  ;;  %v210_v5 = vld [vmem:[%s607_s1 + $0x18] sm:$0xff] (!%p138_p2)  ;;  %483 = vmatprep.mubr.msk.f32.mxu0 (!%p138_p2), %vm527_vm0, %v528_v6  ;;  %p159_p3 = scmp.lt.s32.totalorder (!%p138_p2), %s423_s13, 1  ;;  %v211_v8 = vld [vmem:[%s607_s1 + $0x20] sm:$0xff] (!%p138_p2)  ;;  %v212_v9 = vld [vmem:[%s607_s1 + $0x28] sm:$0xff] (!%p138_p2)  ;;  %vm183_vm1 = vcmask (!%p138_p2), 523264  }
   0x7   : > { %486 = vmatprep.subr.mxu1 (!%p138_p2), %v528_v6  ;;  %488 = vmatprep.mubr.msk.f32.mxu1 (!%p138_p2), %vm527_vm0, %v528_v6  ;;  %v495_v7 = vpack.c.bf16 (!%p138_p2), %v210_v5, %v209_v2  ;;  %v498_v10 = vpack.c.bf16 (!%p138_p2), %v212_v9, %v211_v8  ;;  %v213_v14 = vld [vmem:[%s607_s1 + $0x30] sm:$0xff] (!%p138_p2)  ;;  %v214_v15 = vld [vmem:[%s607_s1 + $0x38] sm:$0xff] (!%p138_p2)  ;;  %v289_v48 = vld [vmem:[%s608_s2] sm:$0xf] (!%p138_p2)  ;;  %vm294_vm2 = vcmask (!%p138_p2), 1043456   ;;  %vm290_vm3 = vcmask (!%p138_p2), 31744  }
   0x8   : > { %493 = vmatpush3.bf16.msra.mxu0 (!%p138_p2), %v492_v4  ;;  %v501_v24 = vpack.c.bf16 (!%p138_p2), %v214_v15, %v213_v14  ;;  %487 = vmatpush3.msk.msra.mxu1 (!%p138_p2), %vm294_vm2, %v289_v48  ;;  %vm374_vm4 = vcmask (!%p138_p2), 516096  }
   0x9   : > { %494 = vmatprep.subr.bf16.mxu0 (!%p138_p2), %v526_v3 }
   0xc   : > { %496 = vmatpush3.bf16.msra.mxu0 (!%p138_p2), %v495_v7 }
   0xd   : > { %s611_s13 = smov (!%p159_p3, %s423_s13), 1  ;;  %497 = vmatprep.subr.bf16.mxu0 %v526_v3 }
   0xe   : > { %s436_s26 = sshll.u32 %s611_s13, 5  ;;  %s166_s11 = scalar_lea.vmem %s609_s3, %s611_s13 }
   0xf   : > { %s163_s29 = scalar_lea.vmem %s606_s0, %s436_s26 }
  0x10   : > { %v438_v11 = vld [vmem:[%s163_s29] sm:$0xff]   ;;  %v453_v12 = vld [vmem:[%s163_s29 + $0x8] sm:$0xff]   ;;  %v454_v13 = vld [vmem:[%s163_s29 + $0x10] sm:$0xff]   ;;  %499 = vmatpush3.bf16.msra.mxu0 %v498_v10 }
  0x11   : > { %v439_v16 = vunpack.c.l.bf16 %v438_v11  ;;  %v440_v17 = vunpack.c.h.bf16 %v438_v11  ;;  %v443_v18 = vunpack.c.l.bf16 %v453_v12  ;;  %v444_v19 = vunpack.c.h.bf16 %v453_v12  ;;  %v455_v25 = vld [vmem:[%s163_s29 + $0x18] sm:$0xff]   ;;  %500 = vmatprep.subr.bf16.mxu0 %v526_v3 }
  0x12   : > { %v447_v20 = vunpack.c.l.bf16 %v454_v13  ;;  %v448_v27 = vunpack.c.h.bf16 %v454_v13  ;;  %v451_v30 = vunpack.c.l.bf16 %v455_v25  ;;  %v452_v33 = vunpack.c.h.bf16 %v455_v25 }
  0x13   : > { %v184_v21 = vsel %vm183_vm1, %v439_v16, 0.0  ;;  %v185_v22 = vsel %vm183_vm1, %v440_v17, 0.0  ;;  %v187_v23 = vsel %vm183_vm1, %v443_v18, 0.0  ;;  %v189_v28 = vsel %vm183_vm1, %v444_v19, 0.0 }
  0x14   : > { %v186_v26 = vadd.f32 %v185_v22, %v184_v21  ;;  %v191_v31 = vsel %vm183_vm1, %v447_v20, 0.0  ;;  %502 = vmatpush3.bf16.msra.mxu0 %v501_v24  ;;  %v193_v34 = vsel %vm183_vm1, %v448_v27, 0.0  ;;  %v195_v36 = vsel %vm183_vm1, %v451_v30, 0.0 }
  0x15   : > { %v197_v38 = vsel %vm183_vm1, %v452_v33, 0.0 }
  0x16   : > { %v188_v29 = vadd.f32 %v187_v23, %v186_v26 }
  0x18   : > { %v190_v32 = vadd.f32 %v189_v28, %v188_v29 }
  0x1a   : > { %v192_v35 = vadd.f32 %v191_v31, %v190_v32 }
  0x1c   : > { %v194_v37 = vadd.f32 %v193_v34, %v192_v35 }
  0x1e   : > { %v196_v39 = vadd.f32 %v195_v36, %v194_v37 }
  0x20   : > { %v198_v40 = vadd.f32 %v197_v38, %v196_v39 }
  0x22   : > { %v199_v41 = vrot.slane %v198_v40, 4 }
  0x24   : > { %v200_v42 = vadd.f32 %v199_v41, %v198_v40 }
  0x26   : > { %v201_v43 = vrot.slane %v200_v42, 2 }
  0x28   : > { %v202_v44 = vadd.f32 %v201_v43, %v200_v42 }
  0x2a   : > { %v203_v45 = vrot.slane %v202_v44, 1 }
  0x2c   : > { %v204_v46 = vadd.f32 %v203_v45, %v202_v44 }
  0x2e   : > { %v206_v47 = vmul.f32 0.015625, %v204_v46 }
  0x30   : > { %484 = vmatmul.mubr.msk.f32.vlgmr.msra.gmra.mrb[0].mxu0 %vm183_vm1, %v206_v47 }
 0x103   : > { %v284_v49 = vpop.f32.mrb[0].mxu0 }
 0x104   : > { %v288_v50 = vmax.f32 %v284_v49, 0.0  ;;  %v485_v51 = vpop.f32.mrb[1].mxu0 }
 0x106   : > { %489 = vmatmul.mubr.msk.f32.vlgmr.msra.gmra.mrb[0].mxu1 %vm290_vm3, %v288_v50 }
 0x1d9   : > { %v364_v52 = vpop.f32.mrb[0].mxu1 }
 0x1da   : > { %v433_v53 = vmul.f32 -1.442695, %v364_v52  ;;  %v490_v54 = vpop.f32.mrb[1].mxu1 }
 0x1dc   : > { %514 = vpow2.f32 %v433_v53 }
 0x1e6   : > { %v515_v55 = vpop.eup %514 }
 0x1e7   : > { %v371_v56 = vadd.f32 1.0, %v515_v55 }
 0x1e9   : > { %516 = vrcp.f32 %v371_v56 }
 0x1f3   : > { %v517_v57 = vpop.eup %516 }
 0x1f4   : > { %375 = vst.msk [vmem:[%s166_s11] sm:$0x1] %vm374_vm4, %v517_v57 }
 0x1f5 PF: > { %s13_s12 = sadd.s32 1, %s524_s12  }
 0x1f6   : > { %p10_p4 = scmp.ge.s32.totalorder %s13_s12, 4  }
 0x1f8   :  { %12 = sbr.rel (!%p10_p4) target bundleno = 1 (0x1), region = 62 }

// kernel: pointnet_cls_forward.11
= control target key start
LH: loop header
LB: loop body
LE: loop exit
PB: predicated region body
PF: predicated region fallthrough
CT: control target
= control target key end

     0   :  { %s1498_s21 = smov 0   ;;  %s1500_s22 = smov 0   ;;  %s1782_s0 = inlined_call_operand.vmem [shape: bf16[2,64,64], index: 0, kind: input, shape index: {}]   ;;  %s1783_s1 = inlined_call_operand.vmem [shape: f32[2,1,64], index: 1, kind: input, shape index: {}]   ;;  %s1784_s2 = inlined_call_operand.vmem [shape: bf16[64,128], index: 2, kind: input, shape index: {}]   ;;  %s1785_s3 = inlined_call_operand.vmem [shape: f32[1,128], index: 3, kind: input, shape index: {}]   ;;  %s1786_s4 = inlined_call_operand.vmem [shape: bf16[128,1024], index: 4, kind: input, shape index: {}]   ;;  %s1787_s5 = inlined_call_operand.vmem [shape: f32[1,1024], index: 5, kind: input, shape index: {}]   ;;  %s1788_s6 = inlined_call_operand.vmem [shape: f32[2,8,1,1024], index: 6, kind: output, shape index: {}]  }
   0x1   :  { %s1502_s23 = smov 0   ;;  %s1504_s24 = smov 0  }
   0x2   :  { %s1506_s25 = smov 0  }
   0x3 LB: > { %s31_s26 = sadd.s32 1, %s1449_s23  ;;  %s35_s27 = sadd.s32 1, %s1453_s24  ;;  %s1457_s25 = sphi %s1506_s25, %s16_s25   ;;  %s1453_s24 = sphi %s1504_s24, %s1792_s24   ;;  %s1449_s23 = sphi %s1502_s23, %s1791_s23   ;;  %s1445_s22 = sphi %s1500_s22, %s1790_s22   ;;  %s1441_s21 = sphi %s1498_s21, %s1789_s21  }
   0x4   : > { %p33_p0 = scmp.ge.s32.totalorder %s31_s26, 8  ;;  %p1276_p1 = scmp.ge.s32.totalorder %s1457_s25, 1 }
   0x5   : > { %p250_p2 = scmp.lt.s32.totalorder %s1457_s25, 17 }
   0x6   : > { %s1794_s26 = smov (%p33_p0, %s31_s26), 0  ;;  %s1796_s27 = smov (!%p33_p0, %s35_s27), %s1453_s24 }
   0x7   : > { %p251_p3 = pnand %p1276_p1, %p250_p2  ;;  %p37_p4 = scmp.ge.s32.totalorder %s1796_s27, 2 }
   0x8   : > { %v1415_v0 = vld [vmem:[%s1784_s2] sm:$0xff] (!%p251_p3)   ;;  %v1459_v1 = vmov (!%p251_p3), 0.0   ;;  %v1416_v2 = vld [vmem:[%s1784_s2 + $0x8] sm:$0xff] (!%p251_p3)   ;;  %vm1460_vm0 = vmmov (!%p251_p3), 0   ;;  %p291_p5 = scmp.lt.s32.totalorder (!%p251_p3), %s1445_s22, 1  ;;  %p293_p6 = scmp.lt.s32.totalorder (!%p251_p3), %s1441_s21, 7 }
   0x9   : > { %s1798_s27 = smov (%p37_p4, %s1796_s27), 0  ;;  %254 = sbr.rel (%p251_p3) target bundleno = 516 (0x204), region = 44 }
   0xa   : > { %1359 = vmatprep.subr.bf16.mxu0 (!%p251_p3), %v1459_v1  ;;  %1367 = vmatprep.mubr.msk.bf16.mxu0 (!%p251_p3), %vm1460_vm0, %v1459_v1  ;;  %v408_v3 = vld [vmem:[%s1786_s4] sm:$0xff] (!%p251_p3)  ;;  %v1417_v9 = vld [vmem:[%s1784_s2 + $0x10] sm:$0xff] (!%p251_p3)   ;;  %v409_v13 = vld [vmem:[%s1786_s4 + $0x8] sm:$0xff] (!%p251_p3)  ;;  %vm362_vm1 = vcmask (!%p251_p3), 523264  }
   0xb   : > { %1360 = vmatpush3.bf16.msra.mxu0 (!%p251_p3), %v1415_v0  ;;  %v412_v4 = vld [vmem:[%s1786_s4 + $0x20] sm:$0xff] (!%p251_p3)  ;;  %v413_v14 = vld [vmem:[%s1786_s4 + $0x28] sm:$0xff] (!%p251_p3)  ;;  %v1418_v16 = vld [vmem:[%s1784_s2 + $0x18] sm:$0xff] (!%p251_p3)  }
   0xc   : > { %1361 = vmatprep.subr.bf16.mxu0 (!%p251_p3), %v1459_v1  ;;  %v1289_v5 = vcombine.high (!%p251_p3), %v408_v3, %v412_v4  ;;  %v1288_v6 = vcombine.low (!%p251_p3), %v408_v3, %v412_v4  ;;  %v416_v7 = vld [vmem:[%s1786_s4 + $0x40] sm:$0xff] (!%p251_p3)  ;;  %v1291_v23 = vcombine.high (!%p251_p3), %v409_v13, %v413_v14  ;;  %v417_v24 = vld [vmem:[%s1786_s4 + $0x48] sm:$0xff] (!%p251_p3)  ;;  %v1290_v29 = vcombine.low (!%p251_p3), %v409_v13, %v413_v14  ;;  %v415_v14 = vld [vmem:[%s1786_s4 + $0x38] sm:$0xff] (!%p251_p3) }
   0xd   : > { %v420_v8 = vld [vmem:[%s1786_s4 + $0x60] sm:$0xff] (!%p251_p3)  ;;  %v421_v25 = vld [vmem:[%s1786_s4 + $0x68] sm:$0xff] (!%p251_p3) }
   0xe   : > { %v1297_v10 = vcombine.high (!%p251_p3), %v416_v7, %v420_v8  ;;  %v424_v11 = vld [vmem:[%s1786_s4 + $0x80] sm:$0xff] (!%p251_p3)  ;;  %834 = vmatprep.subr.bf16.mxu1 (!%p251_p3), %v1289_v5  ;;  %v1296_v15 = vcombine.low (!%p251_p3), %v416_v7, %v420_v8  ;;  %v1299_v33 = vcombine.high (!%p251_p3), %v417_v24, %v421_v25  ;;  %v425_v34 = vld [vmem:[%s1786_s4 + $0x88] sm:$0xff] (!%p251_p3)  ;;  %v1298_v38 = vcombine.low (!%p251_p3), %v417_v24, %v421_v25  ;;  %v422_v25 = vld [vmem:[%s1786_s4 + $0x70] sm:$0xff] (!%p251_p3) }
   0xf   : > { %1362 = vmatpush3.bf16.msra.mxu0 (!%p251_p3), %v1416_v2  ;;  %v428_v12 = vld [vmem:[%s1786_s4 + $0xa0] sm:$0xff] (!%p251_p3)  ;;  %835 = vmatpush1.bf16.msra.mxu1 (!%p251_p3), %v1288_v6  ;;  %v429_v35 = vld [vmem:[%s1786_s4 + $0xa8] sm:$0xff] (!%p251_p3) }
  0x10   : > { %s1800_s22 = smov (!%p291_p5, %s1445_s22), 1  ;;  %s1802_s21 = smov (!%p293_p6, %s1441_s21), 7  ;;  %1363 = vmatprep.subr.bf16.mxu0 %v1459_v1  ;;  %836 = vmatprep.subr.bf16.mxu1 %v1297_v10  ;;  %v1305_v18 = vcombine.high %v424_v11, %v428_v12  ;;  %v432_v20 = vld [vmem:[%s1786_s4 + $0xc0] sm:$0xff]  ;;  %v1304_v26 = vcombine.low %v424_v11, %v428_v12  ;;  %v1307_v41 = vcombine.high %v425_v34, %v429_v35  ;;  %v433_v42 = vld [vmem:[%s1786_s4 + $0xc8] sm:$0xff]  ;;  %v410_v10 = vld [vmem:[%s1786_s4 + $0x10] sm:$0xff] }
  0x11   : > { %s1277_s18 = sshll.u32 %s1800_s22, 3  ;;  %s302_s28 = scalar_lea.vmem %s1783_s1, %s1800_s22  ;;  %v436_v21 = vld [vmem:[%s1786_s4 + $0xe0] sm:$0xff]  ;;  %v437_v43 = vld [vmem:[%s1786_s4 + $0xe8] sm:$0xff]  ;;  %v1306_v46 = vcombine.low %v425_v34, %v429_v35  ;;  %v414_v11 = vld [vmem:[%s1786_s4 + $0x30] sm:$0xff] }
  0x12   : > { %s296_s7 = sadd.s32 %s1277_s18, %s1802_s21  ;;  %s1279_s8 = sshll.u32 %s1802_s21, 3  ;;  %v1281_v17 = vld [vmem:[%s302_s28] ss:$0 sm:$0xff]  ;;  %v1313_v28 = vcombine.high %v432_v20, %v436_v21  ;;  %v1312_v36 = vcombine.low %v432_v20, %v436_v21  ;;  %v1315_v49 = vcombine.high %v433_v42, %v437_v43  ;;  %v441_v50 = vld [vmem:[%s1786_s4 + $0x108] sm:$0xff]  ;;  %v1314_v54 = vcombine.low %v433_v42, %v437_v43  ;;  %v411_v12 = vld [vmem:[%s1786_s4 + $0x18] sm:$0xff] }
  0x13   : > { %s1278_s11 = sshll.u32 %s296_s7, 2  ;;  %s1280_s12 = sshll.u32 %s1800_s22, 6  ;;  %1364 = vmatpush3.bf16.msra.mxu0 %v1417_v9  ;;  %837 = vmatpush1.bf16.msra.mxu1 %v1296_v15  ;;  %v440_v30 = vld [vmem:[%s1786_s4 + $0x100] sm:$0xff]  ;;  %v445_v51 = vld [vmem:[%s1786_s4 + $0x128] sm:$0xff]  ;;  %v1293_v13 = vcombine.high %v410_v10, %v414_v11  ;;  %v1292_v15 = vcombine.low %v410_v10, %v414_v11  ;;  %v430_v34 = vld [vmem:[%s1786_s4 + $0xb0] sm:$0xff] }
  0x14   : > { %s298_s20 = scalar_lea.vmem %s1782_s0, %s1278_s11  ;;  %s1570_s29 = sadd.s32 %s1280_s12, %s1279_s8  ;;  %1365 = vmatprep.subr.bf16.mxu0 %v1459_v1  ;;  %838 = vmatprep.subr.bf16.mxu1 %v1305_v18  ;;  %v444_v31 = vld [vmem:[%s1786_s4 + $0x120] sm:$0xff]  ;;  %v1323_v55 = vcombine.high %v441_v50, %v445_v51  ;;  %v449_v56 = vld [vmem:[%s1786_s4 + $0x148] sm:$0xff]  ;;  %v1322_v59 = vcombine.low %v441_v50, %v445_v51  ;;  %v1461_v18 = vmov 0   ;;  %v427_v35 = vld [vmem:[%s1786_s4 + $0x98] sm:$0xff] }
  0x15   : > { %v312_v19 = vld [vmem:[%s298_s20] sm:$0xf]  ;;  %v1321_v37 = vcombine.high %v440_v30, %v444_v31  ;;  %v1320_v44 = vcombine.low %v440_v30, %v444_v31  ;;  %v453_v57 = vld [vmem:[%s1786_s4 + $0x168] sm:$0xff]  ;;  %866 = vmatprep.mubr.bf16.mxu1 %v1461_v18  ;;  %v438_v42 = vld [vmem:[%s1786_s4 + $0xf0] sm:$0xff]  ;;  %s310_s14 = scalar_lea.vmem %s1788_s6, %s1570_s29 }
  0x16   : > { %v313_v22 = vunpack.c.l.bf16 %v312_v19  ;;  %v448_v39 = vld [vmem:[%s1786_s4 + $0x140] sm:$0xff]  ;;  %v1331_v60 = vcombine.high %v449_v56, %v453_v57  ;;  %v457_v61 = vld [vmem:[%s1786_s4 + $0x188] sm:$0xff]  ;;  %v1330_v63 = vcombine.low %v449_v56, %v453_v57  ;;  %v435_v43 = vld [vmem:[%s1786_s4 + $0xd8] sm:$0xff] }
  0x17   : > { %1366 = vmatpush3.bf16.msra.mxu0 %v1418_v16  ;;  %839 = vmatpush1.bf16.msra.mxu1 %v1304_v26  ;;  %v452_v40 = vld [vmem:[%s1786_s4 + $0x160] sm:$0xff]  ;;  %v461_v62 = vld [vmem:[%s1786_s4 + $0x1a8] sm:$0xff]  ;;  %v1294_v16 = vcombine.low %v411_v12, %v415_v14  ;;  %v419_v26 = vld [vmem:[%s1786_s4 + $0x58] sm:$0xff] }
  0x18   : > { %v321_v27 = vmul.f32 %v1281_v17, %v313_v22  ;;  %875 = vmatprep.subr.bf16.mxu0 %v1291_v23  ;;  %840 = vmatprep.subr.bf16.mxu1 %v1313_v28  ;;  %v1329_v45 = vcombine.high %v448_v39, %v452_v40  ;;  %v456_v47 = vld [vmem:[%s1786_s4 + $0x180] sm:$0xff]  ;;  %v1328_v52 = vcombine.low %v448_v39, %v452_v40  ;;  %v465_v4 = vld [vmem:[%s1786_s4 + $0x1c8] sm:$0xff]  ;;  %v418_v23 = vld [vmem:[%s1786_s4 + $0x50] sm:$0xff] }
  0x19   : > { %v460_v48 = vld [vmem:[%s1786_s4 + $0x1a0] sm:$0xff]  ;;  %v1339_v0 = vcombine.high %v457_v61, %v461_v62  ;;  %v1338_v1 = vcombine.low %v457_v61, %v461_v62  ;;  %v469_v6 = vld [vmem:[%s1786_s4 + $0x1e8] sm:$0xff]  ;;  %v1295_v17 = vcombine.high %v411_v12, %v415_v14  ;;  %v1301_v31 = vcombine.high %v418_v23, %v422_v25  ;;  %v446_v50 = vld [vmem:[%s1786_s4 + $0x130] sm:$0xff] }
  0x1a   : > { %v322_v32 = vpack.c.bf16 %v321_v27, %v321_v27  ;;  %v1337_v53 = vcombine.high %v456_v47, %v460_v48  ;;  %v1336_v58 = vcombine.low %v456_v47, %v460_v48  ;;  %v464_v2 = vld [vmem:[%s1786_s4 + $0x1c0] sm:$0xff]  ;;  %v1346_v7 = vcombine.low %v465_v4, %v469_v6  ;;  %v423_v27 = vld [vmem:[%s1786_s4 + $0x78] sm:$0xff]  ;;  %v450_v57 = vld [vmem:[%s1786_s4 + $0x150] sm:$0xff] }
  0x1b   : > { %841 = vmatpush1.bf16.msra.mxu1 %v1312_v36  ;;  %v468_v3 = vld [vmem:[%s1786_s4 + $0x1e0] sm:$0xff]  ;;  %v1347_v8 = vcombine.high %v465_v4, %v469_v6  ;;  %v431_v36 = vld [vmem:[%s1786_s4 + $0xb8] sm:$0xff]  ;;  %v470_v10 = vld [vmem:[%s1786_s4 + $0x1f0] sm:$0xff] }
  0x1c   : > { %1368 = vmatmul.mubr.msk.bf16.vlgmr.msra.gmra.mrb[0].mxu0 %vm362_vm1, %v322_v32  ;;  %842 = vmatprep.subr.bf16.mxu1 %v1321_v37  ;;  %v1345_v5 = vcombine.high %v464_v2, %v468_v3  ;;  %v1344_v9 = vcombine.low %v464_v2, %v468_v3  ;;  %v1282_v19 = vld [vmem:[%s1785_s3] ss:$0 sm:$0xff]  ;;  %v1303_v32 = vcombine.high %v419_v26, %v423_v27  ;;  %v443_v51 = vld [vmem:[%s1786_s4 + $0x118] sm:$0xff]  ;;  %v462_v2 = vld [vmem:[%s1786_s4 + $0x1b0] sm:$0xff] }
  0x1d   : > { %876 = vmatpush1.bf16.msra.mxu0 %v1290_v29  ;;  %907 = vmatprep.mubr.bf16.mxu0 %v1461_v18  ;;  %v1300_v37 = vcombine.low %v418_v23, %v422_v25  ;;  %v1311_v40 = vcombine.high %v427_v35, %v431_v36  ;;  %v459_v3 = vld [vmem:[%s1786_s4 + $0x198] sm:$0xff]  ;;  %v472_v23 = vld [vmem:[%s1787_s5] sm:$0xff] }
  0x1e   : > { %877 = vmatprep.subr.bf16.mxu0 %v1299_v33  ;;  %v426_v33 = vld [vmem:[%s1786_s4 + $0x90] sm:$0xff]  ;;  %v463_v4 = vld [vmem:[%s1786_s4 + $0x1b8] sm:$0xff] }
  0x1f   : > { %843 = vmatpush1.bf16.msra.mxu1 %v1320_v44  ;;  %v1309_v39 = vcombine.high %v426_v33, %v430_v34  ;;  %v439_v44 = vld [vmem:[%s1786_s4 + $0xf8] sm:$0xff]  ;;  %v1342_v14 = vcombine.low %v459_v3, %v463_v4 }
  0x20   : > { %844 = vmatprep.subr.bf16.mxu1 %v1329_v45  ;;  %v1308_v45 = vcombine.low %v426_v33, %v430_v34  ;;  %v1319_v48 = vcombine.high %v435_v43, %v439_v44  ;;  %v467_v11 = vld [vmem:[%s1786_s4 + $0x1d8] sm:$0xff] }
  0x21   : > { %878 = vmatpush1.bf16.msra.mxu0 %v1298_v38  ;;  %v1302_v38 = vcombine.low %v419_v26, %v423_v27  ;;  %v471_v12 = vld [vmem:[%s1786_s4 + $0x1f8] sm:$0xff] }
  0x22   : > { %879 = vmatprep.subr.bf16.mxu0 %v1307_v41  ;;  %v434_v41 = vld [vmem:[%s1786_s4 + $0xd0] sm:$0xff] }
  0x23   : > { %845 = vmatpush1.bf16.msra.mxu1 %v1328_v52  ;;  %v1317_v47 = vcombine.high %v434_v41, %v438_v42  ;;  %v447_v52 = vld [vmem:[%s1786_s4 + $0x138] sm:$0xff] }
  0x24   : > { %846 = vmatprep.subr.bf16.mxu1 %v1337_v53  ;;  %v1316_v53 = vcombine.low %v434_v41, %v438_v42  ;;  %v1327_v56 = vcombine.high %v443_v51, %v447_v52  ;;  %v1326_v62 = vcombine.low %v443_v51, %v447_v52 }
  0x25   : > { %880 = vmatpush1.bf16.msra.mxu0 %v1306_v46  ;;  %v1310_v46 = vcombine.low %v427_v35, %v431_v36 }
  0x26   : > { %881 = vmatprep.subr.bf16.mxu0 %v1315_v49  ;;  %v442_v49 = vld [vmem:[%s1786_s4 + $0x110] sm:$0xff] }
  0x27   : > { %847 = vmatpush1.bf16.msra.mxu1 %v1336_v58  ;;  %v454_v58 = vld [vmem:[%s1786_s4 + $0x170] sm:$0xff]  ;;  %v1324_v61 = vcombine.low %v442_v49, %v446_v50 }
  0x28   : > { %848 = vmatprep.subr.bf16.mxu1 %v1345_v5  ;;  %v1332_v5 = vcombine.low %v450_v57, %v454_v58 }
  0x29   : > { %882 = vmatpush1.bf16.msra.mxu0 %v1314_v54  ;;  %v1318_v54 = vcombine.low %v435_v43, %v439_v44 }
  0x2a   : > { %883 = vmatprep.subr.bf16.mxu0 %v1323_v55  ;;  %v1325_v55 = vcombine.high %v442_v49, %v446_v50  ;;  %v1462_v49 = vmov 1966171168  }
  0x2b   : > { %849 = vmatpush1.bf16.msra.mxu1 %v1344_v9  ;;  %v466_v9 = vld [vmem:[%s1786_s4 + $0x1d0] sm:$0xff]  ;;  %v1063_v50 = vunpack.c.l.s4 %v1462_v49 }
  0x2c   : > { %916 = vmatprep.subr.bf16.mxu1 %v1293_v13 }
  0x2d   : > { %884 = vmatpush1.bf16.msra.mxu0 %v1322_v59  ;;  %v451_v59 = vld [vmem:[%s1786_s4 + $0x158] sm:$0xff] }
  0x2e   : > { %885 = vmatprep.subr.bf16.mxu0 %v1331_v60  ;;  %v455_v60 = vld [vmem:[%s1786_s4 + $0x178] sm:$0xff] }
  0x2f   : > { %v1334_v6 = vcombine.low %v451_v59, %v455_v60 }
  0x31   : > { %886 = vmatpush1.bf16.msra.mxu0 %v1330_v63  ;;  %v1333_v63 = vcombine.high %v450_v57, %v454_v58 }
  0x32   : > { %887 = vmatprep.subr.bf16.mxu0 %v1339_v0  ;;  %v1335_v0 = vcombine.high %v451_v59, %v455_v60  ;;  %v1064_v59 = vunpack.c.0.s8 %v1063_v50 }
  0x35   : > { %888 = vmatpush1.bf16.msra.mxu0 %v1338_v1  ;;  %v458_v1 = vld [vmem:[%s1786_s4 + $0x190] sm:$0xff] }
  0x36   : > { %889 = vmatprep.subr.bf16.mxu0 %v1347_v8  ;;  %v1343_v8 = vcombine.high %v459_v3, %v463_v4  ;;  %v1340_v13 = vcombine.low %v458_v1, %v462_v2 }
  0x39   : > { %890 = vmatpush1.bf16.msra.mxu0 %v1346_v7  ;;  %v1341_v7 = vcombine.high %v458_v1, %v462_v2 }
  0x3a   : > { %957 = vmatprep.subr.bf16.mxu0 %v1295_v17  ;;  %v1348_v17 = vcombine.low %v466_v9, %v470_v10 }
  0xef   : > { %v400_v20 = vpop.f32.mrb[0].mxu0 }
  0xf0   : > { %v401_v21 = vadd.f32 %v1282_v19, %v400_v20  ;;  %v1369_v22 = vpop.f32.mrb[1].mxu0  ;;  %v474_v19 = vlaneseq }
  0xf1   : > { %v403_v24 = vpop.f32.mrb[2].mxu0 }
  0xf2   : > { %v406_v28 = vmax.f32 %v401_v21, 0.0  ;;  %v1370_v29 = vpop.f32.mrb[3].mxu0  ;;  %v1749_v20 = vshrl.u32 %v474_v19, 7 }
  0xf4   : > { %v1671_v30 = vpack.c.bf16 %v406_v28, %v406_v28  ;;  %v476_v21 = vsub.s32 0, %v1749_v20  ;;  %v484_v22 = vsub.s32 2, %v1749_v20  ;;  %v480_v24 = vsub.s32 1, %v1749_v20 }
  0xf5   : > { %v488_v25 = vsub.s32 3, %v1749_v20  ;;  %v1067_v4 = vsub.s32 %v1064_v59, %v1749_v20 }
  0xf6   : > { %867 = vmatmul.mubr.bf16.vlgmr.msra.gmra.mrb[0].mxu1 %v1671_v30  ;;  %908 = vmatmul.mubr.bf16.vlgmr.msra.gmra.mrb[4].mxu0 %v1671_v30  ;;  %v477_v26 = vrot.slane %v472_v23, %v476_v21  ;;  %v485_v27 = vrot.slane %v472_v23, %v484_v22  ;;  %v481_v28 = vrot.slane %v472_v23, %v480_v24 }
  0xf7   : > { %917 = vmatpush1.bf16.msra.mxu1 %v1292_v15  ;;  %958 = vmatpush1.bf16.msra.mxu0 %v1294_v16  ;;  %v1349_v15 = vcombine.high %v466_v9, %v470_v10  ;;  %v1351_v16 = vcombine.high %v467_v11, %v471_v12  ;;  %v489_v29 = vrot.slane %v472_v23, %v488_v25 }
  0xf8   : > { %918 = vmatprep.subr.bf16.mxu1 %v1301_v31  ;;  %959 = vmatprep.subr.bf16.mxu0 %v1303_v32 }
  0xf9   : > { %948 = vmatprep.mubr.bf16.mxu1 %v1461_v18  ;;  %989 = vmatprep.mubr.bf16.mxu0 %v1461_v18  ;;  %v1350_v18 = vcombine.low %v467_v11, %v471_v12  ;;  %v492_v11 = vsub.s32 4, %v1749_v20  ;;  %v500_v12 = vsub.s32 6, %v1749_v20 }
  0xfb   : > { %919 = vmatpush1.bf16.msra.mxu1 %v1300_v37  ;;  %960 = vmatpush1.bf16.msra.mxu0 %v1302_v38 }
  0xfc   : > { %920 = vmatprep.subr.bf16.mxu1 %v1309_v39  ;;  %961 = vmatprep.subr.bf16.mxu0 %v1311_v40 }
  0xff   : > { %921 = vmatpush1.bf16.msra.mxu1 %v1308_v45  ;;  %962 = vmatpush1.bf16.msra.mxu0 %v1310_v46 }
 0x100   : > { %922 = vmatprep.subr.bf16.mxu1 %v1317_v47  ;;  %963 = vmatprep.subr.bf16.mxu0 %v1319_v48 }
 0x103   : > { %923 = vmatpush1.bf16.msra.mxu1 %v1316_v53  ;;  %964 = vmatpush1.bf16.msra.mxu0 %v1318_v54 }
 0x104   : > { %924 = vmatprep.subr.bf16.mxu1 %v1325_v55  ;;  %965 = vmatprep.subr.bf16.mxu0 %v1327_v56 }
 0x107   : > { %925 = vmatpush1.bf16.msra.mxu1 %v1324_v61  ;;  %966 = vmatpush1.bf16.msra.mxu0 %v1326_v62 }
 0x108   : > { %926 = vmatprep.subr.bf16.mxu1 %v1333_v63  ;;  %967 = vmatprep.subr.bf16.mxu0 %v1335_v0 }
 0x10b   : > { %927 = vmatpush1.bf16.msra.mxu1 %v1332_v5  ;;  %968 = vmatpush1.bf16.msra.mxu0 %v1334_v6 }
 0x10c   : > { %928 = vmatprep.subr.bf16.mxu1 %v1341_v7  ;;  %969 = vmatprep.subr.bf16.mxu0 %v1343_v8 }
 0x10f   : > { %929 = vmatpush1.bf16.msra.mxu1 %v1340_v13  ;;  %970 = vmatpush1.bf16.msra.mxu0 %v1342_v14  ;;  %v496_v13 = vsub.s32 5, %v1749_v20  ;;  %v504_v14 = vsub.s32 7, %v1749_v20 }
 0x110   : > { %930 = vmatprep.subr.bf16.mxu1 %v1349_v15  ;;  %971 = vmatprep.subr.bf16.mxu0 %v1351_v16  ;;  %v493_v15 = vrot.slane %v472_v23, %v492_v11  ;;  %v501_v16 = vrot.slane %v472_v23, %v500_v12 }
 0x113   : > { %931 = vmatpush1.bf16.msra.mxu1 %v1348_v17  ;;  %972 = vmatpush1.bf16.msra.mxu0 %v1350_v18  ;;  %v497_v17 = vrot.slane %v472_v23, %v496_v13  ;;  %v505_v18 = vrot.slane %v472_v23, %v504_v14 }
 0x116   : > { %949 = vmatmul.mubr.bf16.vlgmr.msra.gmra.mrb[4].mxu1 %v1671_v30  ;;  %990 = vmatmul.mubr.bf16.vlgmr.msra.gmra.mrb[8].mxu0 %v1671_v30 }
 0x1c9   : > { %v868_v30 = vpop.f32.mrb[0].mxu1  ;;  %v909_v31 = vpop.f32.mrb[4].mxu0 }
 0x1ca   : > { %v869_v32 = vadd.f32 %v868_v30, %v477_v26  ;;  %v910_v33 = vadd.f32 %v909_v31, %v485_v27  ;;  %v870_v34 = vpop.f32.mrb[1].mxu1  ;;  %v911_v35 = vpop.f32.mrb[5].mxu0 }
 0x1cb   : > { %v871_v36 = vadd.f32 %v870_v34, %v481_v28  ;;  %v912_v37 = vadd.f32 %v911_v35, %v489_v29  ;;  %v872_v38 = vpop.f32.mrb[2].mxu1  ;;  %v913_v39 = vpop.f32.mrb[6].mxu0 }
 0x1cc   : > { %v998_v40 = vrot.slane %v869_v32, 4  ;;  %v1010_v41 = vrot.slane %v910_v33, 4  ;;  %v873_v42 = vpop.f32.mrb[3].mxu1  ;;  %v914_v43 = vpop.f32.mrb[7].mxu0 }
 0x1cd   : > { %v1004_v44 = vrot.slane %v871_v36, 4  ;;  %v1016_v45 = vrot.slane %v912_v37, 4 }
 0x1ce   : > { %v999_v46 = vmax.f32 %v869_v32, %v998_v40  ;;  %v1011_v47 = vmax.f32 %v910_v33, %v1010_v41 }
 0x1cf   : > { %v1005_v48 = vmax.f32 %v871_v36, %v1004_v44  ;;  %v1017_v51 = vmax.f32 %v912_v37, %v1016_v45 }
 0x1d0   : > { %v1000_v52 = vrot.slane %v999_v46, 2  ;;  %v1012_v53 = vrot.slane %v1011_v47, 2 }
 0x1d1   : > { %v1006_v54 = vrot.slane %v1005_v48, 2  ;;  %v1018_v55 = vrot.slane %v1017_v51, 2 }
 0x1d2   : > { %v1001_v56 = vmax.f32 %v999_v46, %v1000_v52  ;;  %v1013_v57 = vmax.f32 %v1011_v47, %v1012_v53 }
 0x1d3   : > { %v1007_v58 = vmax.f32 %v1005_v48, %v1006_v54  ;;  %v1019_v60 = vmax.f32 %v1017_v51, %v1018_v55 }
 0x1d4   : > { %v1002_v61 = vrot.slane %v1001_v56, 1  ;;  %v1014_v62 = vrot.slane %v1013_v57, 1 }
 0x1d5   : > { %v1008_v63 = vrot.slane %v1007_v58, 1  ;;  %v1020_v0 = vrot.slane %v1019_v60, 1 }
 0x1d6   : > { %v1003_v1 = vmax.f32 %v1001_v56, %v1002_v61  ;;  %v1015_v2 = vmax.f32 %v1013_v57, %v1014_v62 }
 0x1d7   : > { %v1009_v3 = vmax.f32 %v1007_v58, %v1008_v63  ;;  %v1021_v5 = vmax.f32 %v1019_v60, %v1020_v0 }
 0x1d9   : > { %v1058_v6 = vcombine.low %v1003_v1, %v1009_v3  ;;  %v1059_v7 = vcombine.low %v1015_v2, %v1021_v5 }
 0x1db   : > { %v1068_v8 = vrot.slane %v1058_v6, %v1067_v4  ;;  %v1075_v9 = vrot.slane %v1059_v7, %v1067_v4 }
 0x1dd   : > { %v1090_v10 = vcombine.low %v1068_v8, %v1075_v9 }
 0x1df   : > { %v1098_v60 = vrot.slane %v1090_v10, %v1067_v4 }
 0x1e9   : > { %v950_v19 = vpop.f32.mrb[4].mxu1  ;;  %v991_v21 = vpop.f32.mrb[8].mxu0 }
 0x1ea   : > { %v951_v22 = vadd.f32 %v950_v19, %v493_v15  ;;  %v992_v24 = vadd.f32 %v991_v21, %v501_v16  ;;  %v952_v25 = vpop.f32.mrb[5].mxu1  ;;  %v993_v26 = vpop.f32.mrb[9].mxu0 }
 0x1eb   : > { %v953_v27 = vadd.f32 %v952_v25, %v497_v17  ;;  %v994_v28 = vadd.f32 %v993_v26, %v505_v18  ;;  %v954_v29 = vpop.f32.mrb[6].mxu1  ;;  %v995_v30 = vpop.f32.mrb[10].mxu0 }
 0x1ec   : > { %v1022_v31 = vrot.slane %v951_v22, 4  ;;  %v1034_v32 = vrot.slane %v992_v24, 4  ;;  %v955_v33 = vpop.f32.mrb[7].mxu1  ;;  %v996_v34 = vpop.f32.mrb[11].mxu0 }
 0x1ed   : > { %v1028_v35 = vrot.slane %v953_v27, 4  ;;  %v1040_v20 = vrot.slane %v994_v28, 4 }
 0x1ee   : > { %v1023_v36 = vmax.f32 %v951_v22, %v1022_v31  ;;  %v1035_v37 = vmax.f32 %v992_v24, %v1034_v32 }
 0x1ef   : > { %v1029_v38 = vmax.f32 %v953_v27, %v1028_v35  ;;  %v1041_v23 = vmax.f32 %v994_v28, %v1040_v20 }
 0x1f0   : > { %v1024_v39 = vrot.slane %v1023_v36, 2  ;;  %v1036_v40 = vrot.slane %v1035_v37, 2 }
 0x1f1   : > { %v1030_v41 = vrot.slane %v1029_v38, 2  ;;  %v1042_v42 = vrot.slane %v1041_v23, 2 }
 0x1f2   : > { %v1025_v43 = vmax.f32 %v1023_v36, %v1024_v39  ;;  %v1037_v44 = vmax.f32 %v1035_v37, %v1036_v40 }
 0x1f3   : > { %v1031_v45 = vmax.f32 %v1029_v38, %v1030_v41  ;;  %v1043_v46 = vmax.f32 %v1041_v23, %v1042_v42 }
 0x1f4   : > { %v1026_v47 = vrot.slane %v1025_v43, 1  ;;  %v1038_v48 = vrot.slane %v1037_v44, 1 }
 0x1f5   : > { %v1032_v49 = vrot.slane %v1031_v45, 1  ;;  %v1044_v50 = vrot.slane %v1043_v46, 1 }
 0x1f6   : > { %v1027_v51 = vmax.f32 %v1025_v43, %v1026_v47  ;;  %v1039_v52 = vmax.f32 %v1037_v44, %v1038_v48 }
 0x1f7   : > { %v1033_v53 = vmax.f32 %v1031_v45, %v1032_v49  ;;  %v1045_v54 = vmax.f32 %v1043_v46, %v1044_v50 }
 0x1f9   : > { %v1060_v55 = vcombine.low %v1027_v51, %v1033_v53  ;;  %v1061_v56 = vcombine.low %v1039_v52, %v1045_v54 }
 0x1fb   : > { %v1082_v57 = vrot.slane %v1060_v55, %v1067_v4  ;;  %v1089_v58 = vrot.slane %v1061_v56, %v1067_v4 }
 0x1fd   : > { %v1091_v59 = vcombine.low %v1082_v57, %v1089_v58 }
 0x1ff   : > { %v1105_v61 = vrot.slane %v1091_v59, %v1067_v4 }
 0x201   : > { %v1106_v62 = vcombine.low %v1098_v60, %v1105_v61 }
 0x203   : > { %1108 = vst [vmem:[%s310_s14] sm:$0xff] %v1106_v62 }
 0x204 PF: > { %s16_s25 = sadd.s32 1, %s1457_s25   ;;  %s1789_s21 = smov %s1449_s23 }
 0x205   : > { %p13_p7 = scmp.ge.s32.totalorder %s16_s25, 18   ;;  %s1790_s22 = smov %s1453_s24 }
 0x206   : > { %s1791_s23 = smov %s1794_s26  ;;  %s1792_s24 = smov %s1798_s27 }
 0x207   :  { %15 = sbr.rel (!%p13_p7) target bundleno = 3 (0x3), region = 85 }

// kernel: pointnet_cls_forward.8
= control target key start
LH: loop header
LB: loop body
LE: loop exit
PB: predicated region body
PF: predicated region fallthrough
CT: control target
= control target key end

     0   :  { %12 = vsyncpa [#allocation3], 0  ;;  %s3570_s24 = smov [#allocation2]   ;;  %s3956_s0 = inlined_call_operand.vmem [shape: f32[2,1024], index: 0, kind: input, shape index: {}]   ;;  %s3957_s1 = inlined_call_operand.hbm [shape: bf16[1024,512], index: 1, kind: input, shape index: {}]   ;;  %s3958_s2 = inlined_call_operand.vmem [shape: f32[1,512], index: 2, kind: input, shape index: {}]   ;;  %s3959_s3 = inlined_call_operand.vmem [shape: bf16[512,256], index: 3, kind: input, shape index: {}]   ;;  %s3960_s4 = inlined_call_operand.vmem [shape: f32[1,256], index: 4, kind: input, shape index: {}]   ;;  %s3961_s5 = inlined_call_operand.vmem [shape: bf16[256,9], index: 5, kind: input, shape index: {}]   ;;  %s3962_s6 = inlined_call_operand.vmem [shape: f32[1,9], index: 6, kind: input, shape index: {}]   ;;  %s3963_s7 = inlined_call_operand.vmem [shape: f32[2,9], index: 7, kind: output, shape index: {}]  }
   0x1   :  { %s20_s25 = sshll.u32 %s3570_s24, 4  ;;  %s3546_s28 = scalar_lea.hbm %s3957_s1, 32768  ;;  %s21_s25 = int_to_ptr.vmem [resolvable:$true] %s20_s25 }
   0x2   :  { %p3547_p0 = scmp.ne.s32.totalorder %s3957_s1, %s3546_s28  ;;  %p3550_p1 = scmp.lt.u32.totalorder %s3546_s28, %s3957_s1 }
   0x4   :  { %p3552_p2 = pnand %p3550_p1, %p3547_p0 }
   0x6   :  { %3555 = shalt.err (!%p3552_p2)
}
   0x7   :  { %s3556_s10 = scalar_lea.vmem %s21_s25, 32768  ;;  %p3561_p4 = scmp.lt.s32.totalorder %s21_s25, %s21_s25 }
   0x8   :  { %p3557_p3 = scmp.ne.s32.totalorder %s21_s25, %s3556_s10  ;;  %p3562_p5 = scmp.lt.s32.totalorder %s3556_s10, %s3556_s10 }
   0xa   :  { %p3563_p6 = por %p3562_p5, %p3561_p4 }
   0xc   :  { %p3564_p7 = pnand %p3563_p6, %p3557_p3 }
   0xe   :  { %3567 = shalt.err (!%p3564_p7)
}
   0xf   :  { %s3571_s11 = smov 256   ;;  %s3572_s12 = smov 16  }
  0x10   :  { %26 = dma.hbm_to_vmem [thread:$0]  %s3957_s1, 32768, %s21_s25, [#allocation3], %s3571_s11, %s3571_s11, %s3572_s12  }
  0x11   :  { %3568 = dma.done.wait [#allocation3], 32768  }
  0x12   :  { %3569 = vsyncadd [#allocation3], 4294934528  ;;  %v3048_v0 = vld [vmem:[#allocation2 + $0x4] ss:$16 sps:$4 sm:$0xff]   ;;  %v3052_v2 = vld [vmem:[#allocation2] ss:$16 sps:$4 sm:$0xff]   ;;  %v49_v38 = vlaneseq }
  0x13   :  { %v3050_v1 = vld [vmem:[#allocation2 + $0x204] ss:$16 sps:$4 sm:$0xff]   ;;  %1653 = vmatprep.subr.bf16.mxu1 %v3048_v0  ;;  %v3053_v3 = vld [vmem:[#allocation2 + $0x200] ss:$16 sps:$4 sm:$0xff]   ;;  %v3573_v36 = vmov 1983009808  }
  0x14   :  { %1694 = vmatprep.subr.bf16.mxu0 %v3050_v1  ;;  %v3054_v4 = vld [vmem:[#allocation2 + $0x24] ss:$16 sps:$4 sm:$0xff]   ;;  %1654 = vmatpush1.bf16.msra.mxu1 %v3052_v2  ;;  %v3058_v6 = vld [vmem:[#allocation2 + $0x20] ss:$16 sps:$4 sm:$0xff]   ;;  %v47_v37 = vunpack.c.l.s4 %v3573_v36  ;;  %v3626_v43 = vshrl.u32 %v49_v38, 7  ;;  %vm2646_vm0 = vcmask 66560  }
  0x15   :  { %1695 = vmatpush1.bf16.msra.mxu0 %v3053_v3  ;;  %v3056_v5 = vld [vmem:[#allocation2 + $0x224] ss:$16 sps:$4 sm:$0xff]   ;;  %1655 = vmatprep.subr.bf16.mxu1 %v3054_v4  ;;  %v3059_v7 = vld [vmem:[#allocation2 + $0x220] ss:$16 sps:$4 sm:$0xff]  }
  0x16   :  { %1696 = vmatprep.subr.bf16.mxu0 %v3056_v5  ;;  %v3060_v8 = vld [vmem:[#allocation2 + $0x44] ss:$16 sps:$4 sm:$0xff]   ;;  %v3064_v10 = vld [vmem:[#allocation2 + $0x40] ss:$16 sps:$4 sm:$0xff]   ;;  %v48_v42 = vunpack.c.0.s8 %v47_v37  ;;  %v3180_v37 = vld [vmem:[#allocation2 + $0xac] ss:$16 sps:$4 sm:$0xff]  }
  0x17   :  { %v3062_v9 = vld [vmem:[#allocation2 + $0x244] ss:$16 sps:$4 sm:$0xff]   ;;  %v3065_v11 = vld [vmem:[#allocation2 + $0x240] ss:$16 sps:$4 sm:$0xff]  }
  0x18   :  { %1656 = vmatpush1.bf16.msra.mxu1 %v3058_v6  ;;  %v3066_v12 = vld [vmem:[#allocation2 + $0x64] ss:$16 sps:$4 sm:$0xff]   ;;  %v3070_v14 = vld [vmem:[#allocation2 + $0x60] ss:$16 sps:$4 sm:$0xff]   ;;  %v3629_v49 = vsub.s32 %v48_v42, %v3626_v43  ;;  %v3648_v42 = vld [vmem:[%s3956_s0 + $0x8] sm:$0xff] }
  0x19   :  { %1697 = vmatpush1.bf16.msra.mxu0 %v3059_v7  ;;  %1657 = vmatprep.subr.bf16.mxu1 %v3060_v8  ;;  %v3068_v13 = vld [vmem:[#allocation2 + $0x264] ss:$16 sps:$4 sm:$0xff]   ;;  %v3071_v15 = vld [vmem:[#allocation2 + $0x260] ss:$16 sps:$4 sm:$0xff]  }
  0x1a   :  { %1698 = vmatprep.subr.bf16.mxu0 %v3062_v9  ;;  %v3072_v16 = vld [vmem:[#allocation2 + $0x84] ss:$16 sps:$4 sm:$0xff]   ;;  %v3076_v18 = vld [vmem:[#allocation2 + $0x80] ss:$16 sps:$4 sm:$0xff]  }
  0x1b   :  { %v3074_v17 = vld [vmem:[#allocation2 + $0x284] ss:$16 sps:$4 sm:$0xff]   ;;  %v3077_v19 = vld [vmem:[#allocation2 + $0x280] ss:$16 sps:$4 sm:$0xff]  }
  0x1c   :  { %1658 = vmatpush1.bf16.msra.mxu1 %v3064_v10  ;;  %v3078_v20 = vld [vmem:[#allocation2 + $0xa4] ss:$16 sps:$4 sm:$0xff]   ;;  %v3082_v22 = vld [vmem:[#allocation2 + $0xa0] ss:$16 sps:$4 sm:$0xff]  }
  0x1d   :  { %1699 = vmatpush1.bf16.msra.mxu0 %v3065_v11  ;;  %1659 = vmatprep.subr.bf16.mxu1 %v3066_v12  ;;  %v3080_v21 = vld [vmem:[#allocation2 + $0x2a4] ss:$16 sps:$4 sm:$0xff]   ;;  %v3083_v23 = vld [vmem:[#allocation2 + $0x2a0] ss:$16 sps:$4 sm:$0xff]  }
  0x1e   :  { %1700 = vmatprep.subr.bf16.mxu0 %v3068_v13  ;;  %v3084_v24 = vld [vmem:[#allocation2 + $0xc4] ss:$16 sps:$4 sm:$0xff]   ;;  %v3088_v26 = vld [vmem:[#allocation2 + $0xc0] ss:$16 sps:$4 sm:$0xff]  }
  0x1f   :  { %v3086_v25 = vld [vmem:[#allocation2 + $0x2c4] ss:$16 sps:$4 sm:$0xff]   ;;  %v3089_v27 = vld [vmem:[#allocation2 + $0x2c0] ss:$16 sps:$4 sm:$0xff]  }
  0x20   :  { %1660 = vmatpush1.bf16.msra.mxu1 %v3070_v14  ;;  %v3090_v28 = vld [vmem:[#allocation2 + $0xe4] ss:$16 sps:$4 sm:$0xff]   ;;  %v3094_v30 = vld [vmem:[#allocation2 + $0xe0] ss:$16 sps:$4 sm:$0xff]  }
  0x21   :  { %1701 = vmatpush1.bf16.msra.mxu0 %v3071_v15  ;;  %1661 = vmatprep.subr.bf16.mxu1 %v3072_v16  ;;  %v3092_v29 = vld [vmem:[#allocation2 + $0x2e4] ss:$16 sps:$4 sm:$0xff]   ;;  %v3095_v31 = vld [vmem:[#allocation2 + $0x2e0] ss:$16 sps:$4 sm:$0xff]   ;;  %v3150_v15 = vld [vmem:[#allocation2 + $0xc] ss:$16 sps:$4 sm:$0xff]  }
  0x22   :  { %1702 = vmatprep.subr.bf16.mxu0 %v3074_v17  ;;  %v3096_v32 = vld [vmem:[#allocation2 + $0x104] ss:$16 sps:$4 sm:$0xff]   ;;  %v3100_v34 = vld [vmem:[#allocation2 + $0x100] ss:$16 sps:$4 sm:$0xff]  }
  0x23   :  { %v3098_v33 = vld [vmem:[#allocation2 + $0x304] ss:$16 sps:$4 sm:$0xff]   ;;  %v3101_v35 = vld [vmem:[#allocation2 + $0x300] ss:$16 sps:$4 sm:$0xff]  }
  0x24   :  { %1662 = vmatpush1.bf16.msra.mxu1 %v3076_v18  ;;  %v3102_v39 = vld [vmem:[#allocation2 + $0x124] ss:$16 sps:$4 sm:$0xff]   ;;  %v3106_v41 = vld [vmem:[#allocation2 + $0x120] ss:$16 sps:$4 sm:$0xff]  }
  0x25   :  { %1703 = vmatpush1.bf16.msra.mxu0 %v3077_v19  ;;  %1663 = vmatprep.subr.bf16.mxu1 %v3078_v20  ;;  %v3104_v40 = vld [vmem:[#allocation2 + $0x324] ss:$16 sps:$4 sm:$0xff]   ;;  %v3107_v44 = vld [vmem:[#allocation2 + $0x320] ss:$16 sps:$4 sm:$0xff]   ;;  %v3148_v19 = vld [vmem:[#allocation2 + $0x8] ss:$16 sps:$4 sm:$0xff]  }
  0x26   :  { %1704 = vmatprep.subr.bf16.mxu0 %v3080_v21  ;;  %v3108_v45 = vld [vmem:[#allocation2 + $0x144] ss:$16 sps:$4 sm:$0xff]   ;;  %v3112_v47 = vld [vmem:[#allocation2 + $0x140] ss:$16 sps:$4 sm:$0xff]   ;;  %v3156_v21 = vld [vmem:[#allocation2 + $0x2c] ss:$16 sps:$4 sm:$0xff]  }
  0x27   :  { %v3110_v46 = vld [vmem:[#allocation2 + $0x344] ss:$16 sps:$4 sm:$0xff]   ;;  %v3113_v48 = vld [vmem:[#allocation2 + $0x340] ss:$16 sps:$4 sm:$0xff]  }
  0x28   :  { %1664 = vmatpush1.bf16.msra.mxu1 %v3082_v22  ;;  %v3114_v50 = vld [vmem:[#allocation2 + $0x164] ss:$16 sps:$4 sm:$0xff]   ;;  %v3118_v53 = vld [vmem:[#allocation2 + $0x160] ss:$16 sps:$4 sm:$0xff]  }
  0x29   :  { %1705 = vmatpush1.bf16.msra.mxu0 %v3083_v23  ;;  %1665 = vmatprep.subr.bf16.mxu1 %v3084_v24  ;;  %v3116_v51 = vld [vmem:[#allocation2 + $0x364] ss:$16 sps:$4 sm:$0xff]   ;;  %v3119_v56 = vld [vmem:[#allocation2 + $0x360] ss:$16 sps:$4 sm:$0xff]   ;;  %v3154_v23 = vld [vmem:[#allocation2 + $0x28] ss:$16 sps:$4 sm:$0xff]  }
  0x2a   :  { %1706 = vmatprep.subr.bf16.mxu0 %v3086_v25  ;;  %v41_v52 = vld [vmem:[%s3956_s0] sm:$0xff]  ;;  %v3162_v25 = vld [vmem:[#allocation2 + $0x4c] ss:$16 sps:$4 sm:$0xff]  }
  0x2b   :  { %v52_v54 = vrot.slane %v41_v52, %v3629_v49  ;;  %v45_v55 = vcombine.high %v41_v52, %v41_v52  ;;  %v3120_v57 = vld [vmem:[#allocation2 + $0x184] ss:$16 sps:$4 sm:$0xff]   ;;  %v3124_v61 = vld [vmem:[#allocation2 + $0x180] ss:$16 sps:$4 sm:$0xff]  }
  0x2c   :  { %1666 = vmatpush1.bf16.msra.mxu1 %v3088_v26  ;;  %v3122_v58 = vld [vmem:[#allocation2 + $0x384] ss:$16 sps:$4 sm:$0xff]   ;;  %v3125_v0 = vld [vmem:[#allocation2 + $0x380] ss:$16 sps:$4 sm:$0xff]  }
  0x2d   :  { %1707 = vmatpush1.bf16.msra.mxu0 %v3089_v27  ;;  %1667 = vmatprep.subr.bf16.mxu1 %v3090_v28  ;;  %v60_v59 = vcombine.high %v52_v54, %v52_v54  ;;  %v59_v60 = vrot.slane %v45_v55, %v3629_v49  ;;  %v3126_v1 = vld [vmem:[#allocation2 + $0x1a4] ss:$16 sps:$4 sm:$0xff]   ;;  %v3130_v4 = vld [vmem:[#allocation2 + $0x1a0] ss:$16 sps:$4 sm:$0xff]   ;;  %v3639_v16 = vpack.c.bf16 %v52_v54, %v52_v54  ;;  %v3160_v27 = vld [vmem:[#allocation2 + $0x48] ss:$16 sps:$4 sm:$0xff]  }
  0x2e   :  { %1708 = vmatprep.subr.bf16.mxu0 %v3092_v29  ;;  %v3128_v2 = vld [vmem:[#allocation2 + $0x3a4] ss:$16 sps:$4 sm:$0xff]   ;;  %v3131_v5 = vld [vmem:[#allocation2 + $0x3a0] ss:$16 sps:$4 sm:$0xff]   ;;  %v3168_v29 = vld [vmem:[#allocation2 + $0x6c] ss:$16 sps:$4 sm:$0xff]  }
  0x2f   :  { %v88_v62 = vpack.c.bf16 %v60_v59, %v60_v59  ;;  %v61_v63 = vcombine.high %v59_v60, %v59_v60  ;;  %v3132_v6 = vld [vmem:[#allocation2 + $0x1c4] ss:$16 sps:$4 sm:$0xff]   ;;  %v3136_v8 = vld [vmem:[#allocation2 + $0x1c0] ss:$16 sps:$4 sm:$0xff]   ;;  %v3641_v18 = vpack.c.bf16 %v59_v60, %v59_v60  ;;  %v3198_v55 = vld [vmem:[#allocation2 + $0x10c] ss:$16 sps:$4 sm:$0xff]  }
  0x30   :  { %1668 = vmatpush1.bf16.msra.mxu1 %v3094_v30  ;;  %v3134_v7 = vld [vmem:[#allocation2 + $0x3c4] ss:$16 sps:$4 sm:$0xff]   ;;  %v3137_v9 = vld [vmem:[#allocation2 + $0x3c0] ss:$16 sps:$4 sm:$0xff]   ;;  %v3204_v59 = vld [vmem:[#allocation2 + $0x12c] ss:$16 sps:$4 sm:$0xff]  }
  0x31   :  { %1709 = vmatpush1.bf16.msra.mxu0 %v3095_v31  ;;  %1669 = vmatprep.subr.bf16.mxu1 %v3096_v32  ;;  %v3636_v3 = vpack.c.bf16 %v61_v63, %v61_v63  ;;  %v3138_v10 = vld [vmem:[#allocation2 + $0x1e4] ss:$16 sps:$4 sm:$0xff]   ;;  %v3142_v12 = vld [vmem:[#allocation2 + $0x1e0] ss:$16 sps:$4 sm:$0xff]   ;;  %v3166_v31 = vld [vmem:[#allocation2 + $0x68] ss:$16 sps:$4 sm:$0xff]  }
  0x32   :  { %1710 = vmatprep.subr.bf16.mxu0 %v3098_v33  ;;  %1685 = vmatprep.mubr.bf16.mxu1 %v88_v62  ;;  %v3140_v11 = vld [vmem:[#allocation2 + $0x3e4] ss:$16 sps:$4 sm:$0xff]   ;;  %v3143_v13 = vld [vmem:[#allocation2 + $0x3e0] ss:$16 sps:$4 sm:$0xff]   ;;  %v3174_v33 = vld [vmem:[#allocation2 + $0x8c] ss:$16 sps:$4 sm:$0xff]  }
  0x33   :  { %1726 = vmatprep.mubr.bf16.mxu0 %v3636_v3  ;;  %v3147_v14 = vld [vmem:[#allocation2 + $0x404] ss:$16 sps:$4 sm:$0xff]   ;;  %v3145_v17 = vld [vmem:[#allocation2 + $0x400] ss:$16 sps:$4 sm:$0xff]   ;;  %v3210_v63 = vld [vmem:[#allocation2 + $0x14c] ss:$16 sps:$4 sm:$0xff]  }
  0x34   :  { %1670 = vmatpush1.bf16.msra.mxu1 %v3100_v34  ;;  %v3153_v20 = vld [vmem:[#allocation2 + $0x424] ss:$16 sps:$4 sm:$0xff]   ;;  %v3151_v22 = vld [vmem:[#allocation2 + $0x420] ss:$16 sps:$4 sm:$0xff]  }
  0x35   :  { %1711 = vmatpush1.bf16.msra.mxu0 %v3101_v35  ;;  %1671 = vmatprep.subr.bf16.mxu1 %v3102_v39  ;;  %v3159_v24 = vld [vmem:[#allocation2 + $0x444] ss:$16 sps:$4 sm:$0xff]   ;;  %v3157_v26 = vld [vmem:[#allocation2 + $0x440] ss:$16 sps:$4 sm:$0xff]   ;;  %v3172_v35 = vld [vmem:[#allocation2 + $0x88] ss:$16 sps:$4 sm:$0xff]  }
  0x36   :  { %1712 = vmatprep.subr.bf16.mxu0 %v3104_v40  ;;  %v3165_v28 = vld [vmem:[#allocation2 + $0x464] ss:$16 sps:$4 sm:$0xff]   ;;  %v3163_v30 = vld [vmem:[#allocation2 + $0x460] ss:$16 sps:$4 sm:$0xff]   ;;  %v3178_v39 = vld [vmem:[#allocation2 + $0xa8] ss:$16 sps:$4 sm:$0xff]  }
  0x37   :  { %v3171_v32 = vld [vmem:[#allocation2 + $0x484] ss:$16 sps:$4 sm:$0xff]   ;;  %v3169_v34 = vld [vmem:[#allocation2 + $0x480] ss:$16 sps:$4 sm:$0xff]  }
  0x38   :  { %1672 = vmatpush1.bf16.msra.mxu1 %v3106_v41  ;;  %v3177_v36 = vld [vmem:[#allocation2 + $0x4a4] ss:$16 sps:$4 sm:$0xff]   ;;  %v3175_v38 = vld [vmem:[#allocation2 + $0x4a0] ss:$16 sps:$4 sm:$0xff]   ;;  %v3186_v41 = vld [vmem:[#allocation2 + $0xcc] ss:$16 sps:$4 sm:$0xff]  }
  0x39   :  { %1713 = vmatpush1.bf16.msra.mxu0 %v3107_v44  ;;  %1673 = vmatprep.subr.bf16.mxu1 %v3108_v45  ;;  %v3183_v40 = vld [vmem:[#allocation2 + $0x4c4] ss:$16 sps:$4 sm:$0xff]   ;;  %v3652_v44 = vrot.slane %v3648_v42, %v3629_v49  ;;  %v3181_v45 = vld [vmem:[#allocation2 + $0x4c0] ss:$16 sps:$4 sm:$0xff]  }
  0x3a   :  { %1714 = vmatprep.subr.bf16.mxu0 %v3110_v46  ;;  %v3184_v46 = vld [vmem:[#allocation2 + $0xc8] ss:$16 sps:$4 sm:$0xff]   ;;  %v3187_v52 = vld [vmem:[#allocation2 + $0x4e0] ss:$16 sps:$4 sm:$0xff]   ;;  %v3195_v54 = vld [vmem:[#allocation2 + $0x504] ss:$16 sps:$4 sm:$0xff]  }
  0x3b   :  { %v3199_v60 = vld [vmem:[#allocation2 + $0x520] ss:$16 sps:$4 sm:$0xff]  }
  0x3c   :  { %1674 = vmatpush1.bf16.msra.mxu1 %v3112_v47  ;;  %v77_v47 = vcombine.high %v3652_v44, %v3652_v44 }
  0x3d   :  { %1715 = vmatpush1.bf16.msra.mxu0 %v3113_v48  ;;  %1675 = vmatprep.subr.bf16.mxu1 %v3114_v50  ;;  %v3189_v48 = vld [vmem:[#allocation2 + $0x4e4] ss:$16 sps:$4 sm:$0xff]   ;;  %v3192_v50 = vld [vmem:[#allocation2 + $0xec] ss:$16 sps:$4 sm:$0xff]  }
  0x3e   :  { %1716 = vmatprep.subr.bf16.mxu0 %v3116_v51  ;;  %v3656_v51 = vpack.c.bf16 %v77_v47, %v77_v47  ;;  %v3265_v47 = vld [vmem:[#allocation2 + $0x680] ss:$16 sps:$4 sm:$0xff]  }
  0x40   :  { %1676 = vmatpush1.bf16.msra.mxu1 %v3118_v53  ;;  %v3190_v53 = vld [vmem:[#allocation2 + $0xe8] ss:$16 sps:$4 sm:$0xff]  }
  0x41   :  { %1717 = vmatpush1.bf16.msra.mxu0 %v3119_v56  ;;  %1677 = vmatprep.subr.bf16.mxu1 %v3120_v57  ;;  %v3193_v56 = vld [vmem:[#allocation2 + $0x500] ss:$16 sps:$4 sm:$0xff]   ;;  %v3196_v57 = vld [vmem:[#allocation2 + $0x108] ss:$16 sps:$4 sm:$0xff]  }
  0x42   :  { %1718 = vmatprep.subr.bf16.mxu0 %v3122_v58  ;;  %v3201_v58 = vld [vmem:[#allocation2 + $0x524] ss:$16 sps:$4 sm:$0xff]  }
  0x44   :  { %1678 = vmatpush1.bf16.msra.mxu1 %v3124_v61  ;;  %v3202_v61 = vld [vmem:[#allocation2 + $0x128] ss:$16 sps:$4 sm:$0xff]  }
  0x45   :  { %1719 = vmatpush1.bf16.msra.mxu0 %v3125_v0  ;;  %1679 = vmatprep.subr.bf16.mxu1 %v3126_v1  ;;  %v3205_v0 = vld [vmem:[#allocation2 + $0x540] ss:$16 sps:$4 sm:$0xff]   ;;  %v3208_v1 = vld [vmem:[#allocation2 + $0x148] ss:$16 sps:$4 sm:$0xff]  }
  0x46   :  { %1720 = vmatprep.subr.bf16.mxu0 %v3128_v2  ;;  %v3213_v2 = vld [vmem:[#allocation2 + $0x564] ss:$16 sps:$4 sm:$0xff]  }
  0x48   :  { %1680 = vmatpush1.bf16.msra.mxu1 %v3130_v4  ;;  %v3216_v4 = vld [vmem:[#allocation2 + $0x16c] ss:$16 sps:$4 sm:$0xff]  }
  0x49   :  { %1721 = vmatpush1.bf16.msra.mxu0 %v3131_v5  ;;  %1681 = vmatprep.subr.bf16.mxu1 %v3132_v6  ;;  %v3211_v5 = vld [vmem:[#allocation2 + $0x560] ss:$16 sps:$4 sm:$0xff]   ;;  %v3214_v6 = vld [vmem:[#allocation2 + $0x168] ss:$16 sps:$4 sm:$0xff]  }
  0x4a   :  { %1722 = vmatprep.subr.bf16.mxu0 %v3134_v7  ;;  %v3219_v7 = vld [vmem:[#allocation2 + $0x584] ss:$16 sps:$4 sm:$0xff]  }
  0x4c   :  { %1682 = vmatpush1.bf16.msra.mxu1 %v3136_v8  ;;  %v3222_v8 = vld [vmem:[#allocation2 + $0x18c] ss:$16 sps:$4 sm:$0xff]  }
  0x4d   :  { %1723 = vmatpush1.bf16.msra.mxu0 %v3137_v9  ;;  %1683 = vmatprep.subr.bf16.mxu1 %v3138_v10  ;;  %v3217_v9 = vld [vmem:[#allocation2 + $0x580] ss:$16 sps:$4 sm:$0xff]   ;;  %v3220_v10 = vld [vmem:[#allocation2 + $0x188] ss:$16 sps:$4 sm:$0xff]  }
  0x4e   :  { %1724 = vmatprep.subr.bf16.mxu0 %v3140_v11  ;;  %v3225_v11 = vld [vmem:[#allocation2 + $0x5a4] ss:$16 sps:$4 sm:$0xff]  }
  0x50   :  { %1684 = vmatpush1.bf16.msra.mxu1 %v3142_v12  ;;  %v3228_v12 = vld [vmem:[#allocation2 + $0x1ac] ss:$16 sps:$4 sm:$0xff]  }
  0x51   :  { %1725 = vmatpush1.bf16.msra.mxu0 %v3143_v13  ;;  %1817 = vmatprep.subr.bf16.mxu1 %v3150_v15  ;;  %v3223_v13 = vld [vmem:[#allocation2 + $0x5a0] ss:$16 sps:$4 sm:$0xff]   ;;  %v3231_v15 = vld [vmem:[#allocation2 + $0x5c4] ss:$16 sps:$4 sm:$0xff]  }
  0x52   :  { %1735 = vmatprep.subr.bf16.mxu0 %v3147_v14  ;;  %v3226_v14 = vld [vmem:[#allocation2 + $0x1a8] ss:$16 sps:$4 sm:$0xff]  }
  0x53   :  { %1686 = vmatmul.mubr.bf16.vlgmr.msra.gmra.mrb[0].mxu1 %v3639_v16 }
  0x54   :  { %1727 = vmatmul.mubr.bf16.vlgmr.msra.gmra.mrb[0].mxu0 %v3641_v18  ;;  %1818 = vmatpush1.bf16.msra.mxu1 %v3148_v19  ;;  %v62_v19 = vcombine.high %v3648_v42, %v3648_v42  ;;  %v3259_v42 = vld [vmem:[#allocation2 + $0x660] ss:$16 sps:$4 sm:$0xff]  }
  0x55   :  { %1736 = vmatpush1.bf16.msra.mxu0 %v3145_v17  ;;  %1819 = vmatprep.subr.bf16.mxu1 %v3156_v21  ;;  %v3234_v17 = vld [vmem:[#allocation2 + $0x1cc] ss:$16 sps:$4 sm:$0xff]   ;;  %v3232_v21 = vld [vmem:[#allocation2 + $0x1c8] ss:$16 sps:$4 sm:$0xff]  }
  0x56   :  { %1737 = vmatprep.subr.bf16.mxu0 %v3153_v20  ;;  %1849 = vmatprep.mubr.bf16.mxu1 %v88_v62  ;;  %v3207_v62 = vld [vmem:[#allocation2 + $0x544] ss:$16 sps:$4 sm:$0xff]   ;;  %v3229_v20 = vld [vmem:[#allocation2 + $0x5c0] ss:$16 sps:$4 sm:$0xff]  }
  0x57   :  { %1767 = vmatprep.mubr.bf16.mxu0 %v3656_v51 }
  0x58   :  { %1820 = vmatpush1.bf16.msra.mxu1 %v3154_v23  ;;  %v3240_v23 = vld [vmem:[#allocation2 + $0x1ec] ss:$16 sps:$4 sm:$0xff]  }
  0x59   :  { %1738 = vmatpush1.bf16.msra.mxu0 %v3151_v22  ;;  %1821 = vmatprep.subr.bf16.mxu1 %v3162_v25  ;;  %v3237_v22 = vld [vmem:[#allocation2 + $0x5e4] ss:$16 sps:$4 sm:$0xff]   ;;  %v3235_v25 = vld [vmem:[#allocation2 + $0x5e0] ss:$16 sps:$4 sm:$0xff]  }
  0x5a   :  { %1739 = vmatprep.subr.bf16.mxu0 %v3159_v24  ;;  %v3662_v24 = vrot.slane %v62_v19, %v3629_v49  ;;  %v3244_v49 = vld [vmem:[#allocation2 + $0x208] ss:$16 sps:$4 sm:$0xff]   ;;  %v3313_v19 = vld [vmem:[#allocation2 + $0x780] ss:$16 sps:$4 sm:$0xff]  }
  0x5c   :  { %1822 = vmatpush1.bf16.msra.mxu1 %v3160_v27  ;;  %v3243_v27 = vld [vmem:[#allocation2 + $0x604] ss:$16 sps:$4 sm:$0xff]  }
  0x5d   :  { %1740 = vmatpush1.bf16.msra.mxu0 %v3157_v26  ;;  %1823 = vmatprep.subr.bf16.mxu1 %v3168_v29  ;;  %v3238_v26 = vld [vmem:[#allocation2 + $0x1e8] ss:$16 sps:$4 sm:$0xff]   ;;  %v78_v29 = vcombine.high %v3662_v24, %v3662_v24 }
  0x5e   :  { %1741 = vmatprep.subr.bf16.mxu0 %v3165_v28  ;;  %v3246_v28 = vld [vmem:[#allocation2 + $0x20c] ss:$16 sps:$4 sm:$0xff]  }
  0x60   :  { %1824 = vmatpush1.bf16.msra.mxu1 %v3166_v31  ;;  %v3241_v31 = vld [vmem:[#allocation2 + $0x600] ss:$16 sps:$4 sm:$0xff]  }
  0x61   :  { %1742 = vmatpush1.bf16.msra.mxu0 %v3163_v30  ;;  %1825 = vmatprep.subr.bf16.mxu1 %v3174_v33  ;;  %v3668_v30 = vpack.c.bf16 %v3652_v44, %v3652_v44  ;;  %v3252_v33 = vld [vmem:[#allocation2 + $0x22c] ss:$16 sps:$4 sm:$0xff]   ;;  %v3262_v44 = vld [vmem:[#allocation2 + $0x268] ss:$16 sps:$4 sm:$0xff]  }
  0x62   :  { %1743 = vmatprep.subr.bf16.mxu0 %v3171_v32  ;;  %v3249_v32 = vld [vmem:[#allocation2 + $0x624] ss:$16 sps:$4 sm:$0xff]  }
  0x64   :  { %1826 = vmatpush1.bf16.msra.mxu1 %v3172_v35  ;;  %v3247_v35 = vld [vmem:[#allocation2 + $0x620] ss:$16 sps:$4 sm:$0xff]  }
  0x65   :  { %1744 = vmatpush1.bf16.msra.mxu0 %v3169_v34  ;;  %1827 = vmatprep.subr.bf16.mxu1 %v3180_v37  ;;  %v3670_v34 = vpack.c.bf16 %v78_v29, %v78_v29  ;;  %v3255_v37 = vld [vmem:[#allocation2 + $0x644] ss:$16 sps:$4 sm:$0xff]   ;;  %v3328_v29 = vld [vmem:[#allocation2 + $0x3c8] ss:$16 sps:$4 sm:$0xff]  }
  0x66   :  { %1745 = vmatprep.subr.bf16.mxu0 %v3177_v36  ;;  %v3250_v36 = vld [vmem:[#allocation2 + $0x228] ss:$16 sps:$4 sm:$0xff]  }
  0x68   :  { %1828 = vmatpush1.bf16.msra.mxu1 %v3178_v39  ;;  %v3253_v39 = vld [vmem:[#allocation2 + $0x640] ss:$16 sps:$4 sm:$0xff]  }
  0x69   :  { %1746 = vmatpush1.bf16.msra.mxu0 %v3175_v38  ;;  %1829 = vmatprep.subr.bf16.mxu1 %v3186_v41  ;;  %v3258_v38 = vld [vmem:[#allocation2 + $0x24c] ss:$16 sps:$4 sm:$0xff]   ;;  %v3261_v41 = vld [vmem:[#allocation2 + $0x664] ss:$16 sps:$4 sm:$0xff]  }
  0x6a   :  { %1747 = vmatprep.subr.bf16.mxu0 %v3183_v40  ;;  %v3256_v40 = vld [vmem:[#allocation2 + $0x248] ss:$16 sps:$4 sm:$0xff]  }
  0x6c   :  { %1830 = vmatpush1.bf16.msra.mxu1 %v3184_v46  ;;  %v3270_v46 = vld [vmem:[#allocation2 + $0x28c] ss:$16 sps:$4 sm:$0xff]  }
  0x6d   :  { %1748 = vmatpush1.bf16.msra.mxu0 %v3181_v45  ;;  %1831 = vmatprep.subr.bf16.mxu1 %v3192_v50  ;;  %v3267_v45 = vld [vmem:[#allocation2 + $0x684] ss:$16 sps:$4 sm:$0xff]   ;;  %v3276_v50 = vld [vmem:[#allocation2 + $0x2ac] ss:$16 sps:$4 sm:$0xff]  }
  0x6e   :  { %1749 = vmatprep.subr.bf16.mxu0 %v3189_v48  ;;  %v3273_v48 = vld [vmem:[#allocation2 + $0x6a4] ss:$16 sps:$4 sm:$0xff]  }
  0x70   :  { %1832 = vmatpush1.bf16.msra.mxu1 %v3190_v53  ;;  %v3274_v53 = vld [vmem:[#allocation2 + $0x2a8] ss:$16 sps:$4 sm:$0xff]  }
  0x71   :  { %1750 = vmatpush1.bf16.msra.mxu0 %v3187_v52  ;;  %1833 = vmatprep.subr.bf16.mxu1 %v3198_v55  ;;  %v3271_v52 = vld [vmem:[#allocation2 + $0x6a0] ss:$16 sps:$4 sm:$0xff]   ;;  %v3282_v55 = vld [vmem:[#allocation2 + $0x2cc] ss:$16 sps:$4 sm:$0xff]  }
  0x72   :  { %1751 = vmatprep.subr.bf16.mxu0 %v3195_v54  ;;  %v3279_v54 = vld [vmem:[#allocation2 + $0x6c4] ss:$16 sps:$4 sm:$0xff]  }
  0x74   :  { %1834 = vmatpush1.bf16.msra.mxu1 %v3196_v57  ;;  %v3280_v57 = vld [vmem:[#allocation2 + $0x2c8] ss:$16 sps:$4 sm:$0xff]  }
  0x75   :  { %1752 = vmatpush1.bf16.msra.mxu0 %v3193_v56  ;;  %1835 = vmatprep.subr.bf16.mxu1 %v3204_v59  ;;  %v3277_v56 = vld [vmem:[#allocation2 + $0x6c0] ss:$16 sps:$4 sm:$0xff]   ;;  %v3288_v59 = vld [vmem:[#allocation2 + $0x2ec] ss:$16 sps:$4 sm:$0xff]  }
  0x76   :  { %1753 = vmatprep.subr.bf16.mxu0 %v3201_v58  ;;  %v3285_v58 = vld [vmem:[#allocation2 + $0x6e4] ss:$16 sps:$4 sm:$0xff]  }
  0x78   :  { %1836 = vmatpush1.bf16.msra.mxu1 %v3202_v61  ;;  %v3286_v61 = vld [vmem:[#allocation2 + $0x2e8] ss:$16 sps:$4 sm:$0xff]  }
  0x79   :  { %1754 = vmatpush1.bf16.msra.mxu0 %v3199_v60  ;;  %1837 = vmatprep.subr.bf16.mxu1 %v3210_v63  ;;  %v3283_v60 = vld [vmem:[#allocation2 + $0x6e0] ss:$16 sps:$4 sm:$0xff]   ;;  %v3294_v63 = vld [vmem:[#allocation2 + $0x30c] ss:$16 sps:$4 sm:$0xff]  }
  0x7a   :  { %1755 = vmatprep.subr.bf16.mxu0 %v3207_v62  ;;  %v3291_v62 = vld [vmem:[#allocation2 + $0x704] ss:$16 sps:$4 sm:$0xff]  }
  0x7c   :  { %1838 = vmatpush1.bf16.msra.mxu1 %v3208_v1  ;;  %v3292_v1 = vld [vmem:[#allocation2 + $0x308] ss:$16 sps:$4 sm:$0xff]  }
  0x7d   :  { %1756 = vmatpush1.bf16.msra.mxu0 %v3205_v0  ;;  %1839 = vmatprep.subr.bf16.mxu1 %v3216_v4  ;;  %v3289_v0 = vld [vmem:[#allocation2 + $0x700] ss:$16 sps:$4 sm:$0xff]   ;;  %v3300_v4 = vld [vmem:[#allocation2 + $0x32c] ss:$16 sps:$4 sm:$0xff]  }
  0x7e   :  { %1757 = vmatprep.subr.bf16.mxu0 %v3213_v2  ;;  %v3297_v2 = vld [vmem:[#allocation2 + $0x724] ss:$16 sps:$4 sm:$0xff]  }
  0x80   :  { %1840 = vmatpush1.bf16.msra.mxu1 %v3214_v6  ;;  %v3298_v6 = vld [vmem:[#allocation2 + $0x328] ss:$16 sps:$4 sm:$0xff]  }
  0x81   :  { %1758 = vmatpush1.bf16.msra.mxu0 %v3211_v5  ;;  %1841 = vmatprep.subr.bf16.mxu1 %v3222_v8  ;;  %v3295_v5 = vld [vmem:[#allocation2 + $0x720] ss:$16 sps:$4 sm:$0xff]   ;;  %v3306_v8 = vld [vmem:[#allocation2 + $0x34c] ss:$16 sps:$4 sm:$0xff]  }
  0x82   :  { %1759 = vmatprep.subr.bf16.mxu0 %v3219_v7  ;;  %v3303_v7 = vld [vmem:[#allocation2 + $0x744] ss:$16 sps:$4 sm:$0xff]  }
  0x84   :  { %1842 = vmatpush1.bf16.msra.mxu1 %v3220_v10  ;;  %v3304_v10 = vld [vmem:[#allocation2 + $0x348] ss:$16 sps:$4 sm:$0xff]  }
  0x85   :  { %1760 = vmatpush1.bf16.msra.mxu0 %v3217_v9  ;;  %1843 = vmatprep.subr.bf16.mxu1 %v3228_v12  ;;  %v3301_v9 = vld [vmem:[#allocation2 + $0x740] ss:$16 sps:$4 sm:$0xff]   ;;  %v3312_v12 = vld [vmem:[#allocation2 + $0x36c] ss:$16 sps:$4 sm:$0xff]  }
  0x86   :  { %1761 = vmatprep.subr.bf16.mxu0 %v3225_v11  ;;  %v3309_v11 = vld [vmem:[#allocation2 + $0x764] ss:$16 sps:$4 sm:$0xff]  }
  0x88   :  { %1844 = vmatpush1.bf16.msra.mxu1 %v3226_v14  ;;  %v3310_v14 = vld [vmem:[#allocation2 + $0x368] ss:$16 sps:$4 sm:$0xff]  }
  0x89   :  { %1762 = vmatpush1.bf16.msra.mxu0 %v3223_v13  ;;  %1845 = vmatprep.subr.bf16.mxu1 %v3234_v17  ;;  %v3307_v13 = vld [vmem:[#allocation2 + $0x760] ss:$16 sps:$4 sm:$0xff]   ;;  %v3318_v17 = vld [vmem:[#allocation2 + $0x38c] ss:$16 sps:$4 sm:$0xff]  }
  0x8a   :  { %1763 = vmatprep.subr.bf16.mxu0 %v3231_v15  ;;  %v3315_v15 = vld [vmem:[#allocation2 + $0x784] ss:$16 sps:$4 sm:$0xff]  }
  0x8c   :  { %1846 = vmatpush1.bf16.msra.mxu1 %v3232_v21  ;;  %v3321_v21 = vld [vmem:[#allocation2 + $0x7a4] ss:$16 sps:$4 sm:$0xff]  }
  0x8d   :  { %1764 = vmatpush1.bf16.msra.mxu0 %v3229_v20  ;;  %1847 = vmatprep.subr.bf16.mxu1 %v3240_v23  ;;  %v3316_v20 = vld [vmem:[#allocation2 + $0x388] ss:$16 sps:$4 sm:$0xff]   ;;  %v3319_v23 = vld [vmem:[#allocation2 + $0x7a0] ss:$16 sps:$4 sm:$0xff]  }
  0x8e   :  { %1765 = vmatprep.subr.bf16.mxu0 %v3237_v22  ;;  %v3324_v22 = vld [vmem:[#allocation2 + $0x3ac] ss:$16 sps:$4 sm:$0xff]  }
  0x90   :  { %1848 = vmatpush1.bf16.msra.mxu1 %v3238_v26  ;;  %v3327_v26 = vld [vmem:[#allocation2 + $0x7c4] ss:$16 sps:$4 sm:$0xff]  }
  0x91   :  { %1766 = vmatpush1.bf16.msra.mxu0 %v3235_v25  ;;  %1858 = vmatprep.subr.bf16.mxu1 %v3246_v28  ;;  %v3322_v25 = vld [vmem:[#allocation2 + $0x3a8] ss:$16 sps:$4 sm:$0xff]   ;;  %v3325_v28 = vld [vmem:[#allocation2 + $0x7c0] ss:$16 sps:$4 sm:$0xff]  }
  0x92   :  { %1776 = vmatprep.subr.bf16.mxu0 %v3243_v27  ;;  %v3330_v27 = vld [vmem:[#allocation2 + $0x3cc] ss:$16 sps:$4 sm:$0xff]  }
  0x93   :  { %1850 = vmatmul.mubr.bf16.vlgmr.msra.gmra.mrb[4].mxu1 %v3639_v16  ;;  %v3264_v16 = vld [vmem:[#allocation2 + $0x26c] ss:$16 sps:$4 sm:$0xff]  }
  0x94   :  { %1768 = vmatmul.mubr.bf16.vlgmr.msra.gmra.mrb[0].mxu0 %v3668_v30  ;;  %1859 = vmatpush1.bf16.msra.mxu1 %v3244_v49  ;;  %v3336_v49 = vld [vmem:[#allocation2 + $0x3ec] ss:$16 sps:$4 sm:$0xff]  }
  0x95   :  { %1777 = vmatpush1.bf16.msra.mxu0 %v3241_v31  ;;  %1860 = vmatprep.subr.bf16.mxu1 %v3252_v33  ;;  %v3333_v31 = vld [vmem:[#allocation2 + $0x7e4] ss:$16 sps:$4 sm:$0xff]   ;;  %v3334_v33 = vld [vmem:[#allocation2 + $0x3e8] ss:$16 sps:$4 sm:$0xff]  }
  0x96   :  { %1778 = vmatprep.subr.bf16.mxu0 %v3249_v32  ;;  %1808 = vmatprep.mubr.bf16.mxu0 %v3670_v34  ;;  %v3331_v32 = vld [vmem:[#allocation2 + $0x7e0] ss:$16 sps:$4 sm:$0xff]  }
  0x97   :  { %1890 = vmatprep.mubr.bf16.mxu1 %v3636_v3  ;;  %v3268_v3 = vld [vmem:[#allocation2 + $0x288] ss:$16 sps:$4 sm:$0xff]  }
  0x98   :  { %1861 = vmatpush1.bf16.msra.mxu1 %v3250_v36  ;;  %v3338_v36 = vld [vmem:[#allocation2 + $0x408] ss:$16 sps:$4 sm:$0xff]  }
  0x99   :  { %1779 = vmatpush1.bf16.msra.mxu0 %v3247_v35  ;;  %1862 = vmatprep.subr.bf16.mxu1 %v3258_v38  ;;  %v3340_v35 = vld [vmem:[#allocation2 + $0x40c] ss:$16 sps:$4 sm:$0xff]  }
  0x9a   :  { %1780 = vmatprep.subr.bf16.mxu0 %v3255_v37  ;;  %v3678_v37 = vpack.c.bf16 %v3662_v24, %v3662_v24  ;;  %v3343_v38 = vld [vmem:[#allocation2 + $0x42c] ss:$16 sps:$4 sm:$0xff]  }
  0x9b   :  { %v3439_v24 = vld [vmem:[%s3959_s3 + $0x14] ss:$8 sps:$4 sm:$0xff]  }
  0x9c   :  { %1863 = vmatpush1.bf16.msra.mxu1 %v3256_v40  ;;  %v3436_v40 = vld [vmem:[%s3959_s3 + $0x4] ss:$8 sps:$4 sm:$0xff]  }
  0x9d   :  { %1781 = vmatpush1.bf16.msra.mxu0 %v3253_v39  ;;  %1864 = vmatprep.subr.bf16.mxu1 %v3264_v16  ;;  %v3434_v39 = vld [vmem:[%s3959_s3] ss:$8 sps:$4 sm:$0xff]   ;;  %v3346_v16 = vld [vmem:[#allocation2 + $0x44c] ss:$16 sps:$4 sm:$0xff]  }
  0x9e   :  { %1782 = vmatprep.subr.bf16.mxu0 %v3261_v41  ;;  %v3341_v41 = vld [vmem:[#allocation2 + $0x428] ss:$16 sps:$4 sm:$0xff]  }
  0xa0   :  { %1865 = vmatpush1.bf16.msra.mxu1 %v3262_v44  ;;  %v3344_v44 = vld [vmem:[#allocation2 + $0x448] ss:$16 sps:$4 sm:$0xff]  }
  0xa1   :  { %1783 = vmatpush1.bf16.msra.mxu0 %v3259_v42  ;;  %1866 = vmatprep.subr.bf16.mxu1 %v3270_v46  ;;  %v3442_v42 = vld [vmem:[%s3959_s3 + $0x24] ss:$8 sps:$4 sm:$0xff]   ;;  %v3347_v46 = vld [vmem:[#allocation2 + $0x468] ss:$16 sps:$4 sm:$0xff]  }
  0xa2   :  { %1784 = vmatprep.subr.bf16.mxu0 %v3267_v45  ;;  %v3440_v45 = vld [vmem:[%s3959_s3 + $0x20] ss:$8 sps:$4 sm:$0xff]  }
  0xa4   :  { %1867 = vmatpush1.bf16.msra.mxu1 %v3268_v3  ;;  %v3445_v3 = vld [vmem:[%s3959_s3 + $0x34] ss:$8 sps:$4 sm:$0xff]  }
  0xa5   :  { %1785 = vmatpush1.bf16.msra.mxu0 %v3265_v47  ;;  %1868 = vmatprep.subr.bf16.mxu1 %v3276_v50  ;;  %v3352_v47 = vld [vmem:[#allocation2 + $0x48c] ss:$16 sps:$4 sm:$0xff]  }
  0xa6   :  { %1786 = vmatprep.subr.bf16.mxu0 %v3273_v48  ;;  %v3443_v48 = vld [vmem:[%s3959_s3 + $0x30] ss:$8 sps:$4 sm:$0xff]   ;;  %v3448_v50 = vld [vmem:[%s3959_s3 + $0x44] ss:$8 sps:$4 sm:$0xff]  }
  0xa8   :  { %1869 = vmatpush1.bf16.msra.mxu1 %v3274_v53  ;;  %v3355_v53 = vld [vmem:[#allocation2 + $0x4ac] ss:$16 sps:$4 sm:$0xff]  }
  0xa9   :  { %1787 = vmatpush1.bf16.msra.mxu0 %v3271_v52  ;;  %1870 = vmatprep.subr.bf16.mxu1 %v3282_v55  ;;  %v3350_v52 = vld [vmem:[#allocation2 + $0x488] ss:$16 sps:$4 sm:$0xff]   ;;  %v3451_v55 = vld [vmem:[%s3959_s3 + $0x54] ss:$8 sps:$4 sm:$0xff]  }
  0xaa   :  { %1788 = vmatprep.subr.bf16.mxu0 %v3279_v54  ;;  %v3446_v54 = vld [vmem:[%s3959_s3 + $0x40] ss:$8 sps:$4 sm:$0xff]  }
  0xac   :  { %1871 = vmatpush1.bf16.msra.mxu1 %v3280_v57  ;;  %v3358_v57 = vld [vmem:[#allocation2 + $0x4cc] ss:$16 sps:$4 sm:$0xff]  }
  0xad   :  { %1789 = vmatpush1.bf16.msra.mxu0 %v3277_v56  ;;  %1872 = vmatprep.subr.bf16.mxu1 %v3288_v59  ;;  %v3353_v56 = vld [vmem:[#allocation2 + $0x4a8] ss:$16 sps:$4 sm:$0xff]   ;;  %v3454_v59 = vld [vmem:[%s3959_s3 + $0x64] ss:$8 sps:$4 sm:$0xff]  }
  0xae   :  { %1790 = vmatprep.subr.bf16.mxu0 %v3285_v58  ;;  %v3449_v58 = vld [vmem:[%s3959_s3 + $0x50] ss:$8 sps:$4 sm:$0xff]  }
  0xb0   :  { %1873 = vmatpush1.bf16.msra.mxu1 %v3286_v61  ;;  %v3361_v61 = vld [vmem:[#allocation2 + $0x4ec] ss:$16 sps:$4 sm:$0xff]  }
  0xb1   :  { %1791 = vmatpush1.bf16.msra.mxu0 %v3283_v60  ;;  %1874 = vmatprep.subr.bf16.mxu1 %v3294_v63  ;;  %v3356_v60 = vld [vmem:[#allocation2 + $0x4c8] ss:$16 sps:$4 sm:$0xff]   ;;  %v3457_v63 = vld [vmem:[%s3959_s3 + $0x74] ss:$8 sps:$4 sm:$0xff]  }
  0xb2   :  { %1792 = vmatprep.subr.bf16.mxu0 %v3291_v62  ;;  %v3452_v62 = vld [vmem:[%s3959_s3 + $0x60] ss:$8 sps:$4 sm:$0xff]  }
  0xb4   :  { %1875 = vmatpush1.bf16.msra.mxu1 %v3292_v1  ;;  %v3364_v1 = vld [vmem:[#allocation2 + $0x50c] ss:$16 sps:$4 sm:$0xff]  }
  0xb5   :  { %1793 = vmatpush1.bf16.msra.mxu0 %v3289_v0  ;;  %1876 = vmatprep.subr.bf16.mxu1 %v3300_v4  ;;  %v3359_v0 = vld [vmem:[#allocation2 + $0x4e8] ss:$16 sps:$4 sm:$0xff]   ;;  %v3460_v4 = vld [vmem:[%s3959_s3 + $0x84] ss:$8 sps:$4 sm:$0xff]  }
  0xb6   :  { %1794 = vmatprep.subr.bf16.mxu0 %v3297_v2  ;;  %v3455_v2 = vld [vmem:[%s3959_s3 + $0x70] ss:$8 sps:$4 sm:$0xff]  }
  0xb8   :  { %1877 = vmatpush1.bf16.msra.mxu1 %v3298_v6  ;;  %v3367_v6 = vld [vmem:[#allocation2 + $0x52c] ss:$16 sps:$4 sm:$0xff]  }
  0xb9   :  { %1795 = vmatpush1.bf16.msra.mxu0 %v3295_v5  ;;  %1878 = vmatprep.subr.bf16.mxu1 %v3306_v8  ;;  %v3362_v5 = vld [vmem:[#allocation2 + $0x508] ss:$16 sps:$4 sm:$0xff]   ;;  %v3463_v8 = vld [vmem:[%s3959_s3 + $0x94] ss:$8 sps:$4 sm:$0xff]  }
  0xba   :  { %1796 = vmatprep.subr.bf16.mxu0 %v3303_v7  ;;  %v3458_v7 = vld [vmem:[%s3959_s3 + $0x80] ss:$8 sps:$4 sm:$0xff]  }
  0xbc   :  { %1879 = vmatpush1.bf16.msra.mxu1 %v3304_v10  ;;  %v3370_v10 = vld [vmem:[#allocation2 + $0x54c] ss:$16 sps:$4 sm:$0xff]  }
  0xbd   :  { %1797 = vmatpush1.bf16.msra.mxu0 %v3301_v9  ;;  %1880 = vmatprep.subr.bf16.mxu1 %v3312_v12  ;;  %v3365_v9 = vld [vmem:[#allocation2 + $0x528] ss:$16 sps:$4 sm:$0xff]   ;;  %v3466_v12 = vld [vmem:[%s3959_s3 + $0xa4] ss:$8 sps:$4 sm:$0xff]  }
  0xbe   :  { %1798 = vmatprep.subr.bf16.mxu0 %v3309_v11  ;;  %v3461_v11 = vld [vmem:[%s3959_s3 + $0x90] ss:$8 sps:$4 sm:$0xff]  }
  0xc0   :  { %1881 = vmatpush1.bf16.msra.mxu1 %v3310_v14  ;;  %v3373_v14 = vld [vmem:[#allocation2 + $0x56c] ss:$16 sps:$4 sm:$0xff]  }
  0xc1   :  { %1799 = vmatpush1.bf16.msra.mxu0 %v3307_v13  ;;  %1882 = vmatprep.subr.bf16.mxu1 %v3318_v17  ;;  %v3368_v13 = vld [vmem:[#allocation2 + $0x548] ss:$16 sps:$4 sm:$0xff]   ;;  %v3469_v17 = vld [vmem:[%s3959_s3 + $0xb4] ss:$8 sps:$4 sm:$0xff]  }
  0xc2   :  { %1800 = vmatprep.subr.bf16.mxu0 %v3315_v15  ;;  %v3464_v15 = vld [vmem:[%s3959_s3 + $0xa0] ss:$8 sps:$4 sm:$0xff]  }
  0xc4   :  { %1883 = vmatpush1.bf16.msra.mxu1 %v3316_v20  ;;  %v3376_v20 = vld [vmem:[#allocation2 + $0x58c] ss:$16 sps:$4 sm:$0xff]  }
  0xc5   :  { %1801 = vmatpush1.bf16.msra.mxu0 %v3313_v19  ;;  %1884 = vmatprep.subr.bf16.mxu1 %v3324_v22  ;;  %v3371_v19 = vld [vmem:[#allocation2 + $0x568] ss:$16 sps:$4 sm:$0xff]   ;;  %v3472_v22 = vld [vmem:[%s3959_s3 + $0xc4] ss:$8 sps:$4 sm:$0xff]  }
  0xc6   :  { %1802 = vmatprep.subr.bf16.mxu0 %v3321_v21  ;;  %v3467_v21 = vld [vmem:[%s3959_s3 + $0xb0] ss:$8 sps:$4 sm:$0xff]  }
  0xc8   :  { %1885 = vmatpush1.bf16.msra.mxu1 %v3322_v25  ;;  %v3379_v25 = vld [vmem:[#allocation2 + $0x5ac] ss:$16 sps:$4 sm:$0xff]  }
  0xc9   :  { %1803 = vmatpush1.bf16.msra.mxu0 %v3319_v23  ;;  %1886 = vmatprep.subr.bf16.mxu1 %v3330_v27  ;;  %v3374_v23 = vld [vmem:[#allocation2 + $0x588] ss:$16 sps:$4 sm:$0xff]   ;;  %v3475_v27 = vld [vmem:[%s3959_s3 + $0xd4] ss:$8 sps:$4 sm:$0xff]  }
  0xca   :  { %1804 = vmatprep.subr.bf16.mxu0 %v3327_v26  ;;  %v3470_v26 = vld [vmem:[%s3959_s3 + $0xc0] ss:$8 sps:$4 sm:$0xff]  }
  0xcc   :  { %1887 = vmatpush1.bf16.msra.mxu1 %v3328_v29  ;;  %v3382_v29 = vld [vmem:[#allocation2 + $0x5cc] ss:$16 sps:$4 sm:$0xff]  }
  0xcd   :  { %1805 = vmatpush1.bf16.msra.mxu0 %v3325_v28  ;;  %1888 = vmatprep.subr.bf16.mxu1 %v3336_v49  ;;  %v3377_v28 = vld [vmem:[#allocation2 + $0x5a8] ss:$16 sps:$4 sm:$0xff]  }
  0xce   :  { %1806 = vmatprep.subr.bf16.mxu0 %v3333_v31  ;;  %v3473_v31 = vld [vmem:[%s3959_s3 + $0xd0] ss:$8 sps:$4 sm:$0xff]  }
  0xcf   :  { %v3380_v49 = vld [vmem:[#allocation2 + $0x5c8] ss:$16 sps:$4 sm:$0xff]  }
  0xd0   :  { %1889 = vmatpush1.bf16.msra.mxu1 %v3334_v33  ;;  %v3383_v33 = vld [vmem:[#allocation2 + $0x5e8] ss:$16 sps:$4 sm:$0xff]  }
  0xd1   :  { %1807 = vmatpush1.bf16.msra.mxu0 %v3331_v32  ;;  %1899 = vmatprep.subr.bf16.mxu1 %v3340_v35  ;;  %v3385_v32 = vld [vmem:[#allocation2 + $0x5ec] ss:$16 sps:$4 sm:$0xff]  }
  0xd2   :  { %2385 = vmatprep.subr.bf16.mxu0 %v3436_v40  ;;  %v3388_v35 = vld [vmem:[#allocation2 + $0x60c] ss:$16 sps:$4 sm:$0xff]  }
  0xd3   :  { %1891 = vmatmul.mubr.bf16.vlgmr.msra.gmra.mrb[4].mxu1 %v3641_v18  ;;  %v3437_v18 = vld [vmem:[%s3959_s3 + $0x10] ss:$8 sps:$4 sm:$0xff]   ;;  %v3394_v40 = vld [vmem:[#allocation2 + $0x64c] ss:$16 sps:$4 sm:$0xff]  }
  0xd4   :  { %1809 = vmatmul.mubr.bf16.vlgmr.msra.gmra.mrb[0].mxu0 %v3678_v37  ;;  %1900 = vmatpush1.bf16.msra.mxu1 %v3338_v36  ;;  %v3386_v36 = vld [vmem:[#allocation2 + $0x608] ss:$16 sps:$4 sm:$0xff]  }
  0xd5   :  { %1931 = vmatprep.mubr.bf16.mxu1 %v3656_v51  ;;  %1901 = vmatprep.subr.bf16.mxu1 %v3343_v38  ;;  %v3349_v51 = vld [vmem:[#allocation2 + $0x46c] ss:$16 sps:$4 sm:$0xff]  }
  0xd6   :  { %2386 = vmatpush1.bf16.msra.mxu0 %v3434_v39  ;;  %v3391_v38 = vld [vmem:[#allocation2 + $0x62c] ss:$16 sps:$4 sm:$0xff]   ;;  %v3389_v39 = vld [vmem:[#allocation2 + $0x628] ss:$16 sps:$4 sm:$0xff]  }
  0xd7   :  { %2387 = vmatprep.subr.bf16.mxu0 %v3439_v24  ;;  %v3397_v24 = vld [vmem:[#allocation2 + $0x66c] ss:$16 sps:$4 sm:$0xff]  }
  0xd8   :  { %1902 = vmatpush1.bf16.msra.mxu1 %v3341_v41  ;;  %v3392_v41 = vld [vmem:[#allocation2 + $0x648] ss:$16 sps:$4 sm:$0xff]  }
  0xd9   :  { %1903 = vmatprep.subr.bf16.mxu1 %v3346_v16  ;;  %v3395_v16 = vld [vmem:[#allocation2 + $0x668] ss:$16 sps:$4 sm:$0xff]  }
  0xda   :  { %2388 = vmatpush1.bf16.msra.mxu0 %v3437_v18  ;;  %v3400_v18 = vld [vmem:[#allocation2 + $0x68c] ss:$16 sps:$4 sm:$0xff]  }
  0xdb   :  { %2389 = vmatprep.subr.bf16.mxu0 %v3442_v42  ;;  %v3398_v42 = vld [vmem:[#allocation2 + $0x688] ss:$16 sps:$4 sm:$0xff]  }
  0xdc   :  { %1904 = vmatpush1.bf16.msra.mxu1 %v3344_v44  ;;  %v3403_v44 = vld [vmem:[#allocation2 + $0x6ac] ss:$16 sps:$4 sm:$0xff]  }
  0xdd   :  { %1905 = vmatprep.subr.bf16.mxu1 %v3349_v51  ;;  %v3406_v51 = vld [vmem:[#allocation2 + $0x6cc] ss:$16 sps:$4 sm:$0xff]  }
  0xde   :  { %2390 = vmatpush1.bf16.msra.mxu0 %v3440_v45 }
  0xdf   :  { %2391 = vmatprep.subr.bf16.mxu0 %v3445_v3 }
  0xe0   :  { %1906 = vmatpush1.bf16.msra.mxu1 %v3347_v46  ;;  %v3476_v46 = vld [vmem:[%s3959_s3 + $0xe0] ss:$8 sps:$4 sm:$0xff]  }
  0xe1   :  { %1907 = vmatprep.subr.bf16.mxu1 %v3352_v47 }
  0xe2   :  { %2392 = vmatpush1.bf16.msra.mxu0 %v3443_v48  ;;  %v3404_v48 = vld [vmem:[#allocation2 + $0x6c8] ss:$16 sps:$4 sm:$0xff]  }
  0xe3   :  { %2393 = vmatprep.subr.bf16.mxu0 %v3448_v50 }
  0xe4   :  { %1908 = vmatpush1.bf16.msra.mxu1 %v3350_v52  ;;  %v3409_v52 = vld [vmem:[#allocation2 + $0x6ec] ss:$16 sps:$4 sm:$0xff]  }
  0xe5   :  { %1909 = vmatprep.subr.bf16.mxu1 %v3355_v53  ;;  %v3481_v53 = vld [vmem:[%s3959_s3 + $0xf4] ss:$8 sps:$4 sm:$0xff]  }
  0xe6   :  { %2394 = vmatpush1.bf16.msra.mxu0 %v3446_v54  ;;  %v3479_v54 = vld [vmem:[%s3959_s3 + $0xf0] ss:$8 sps:$4 sm:$0xff]  }
  0xe7   :  { %2395 = vmatprep.subr.bf16.mxu0 %v3451_v55  ;;  %v3407_v55 = vld [vmem:[#allocation2 + $0x6e8] ss:$16 sps:$4 sm:$0xff]  }
  0xe8   :  { %1910 = vmatpush1.bf16.msra.mxu1 %v3353_v56  ;;  %v3412_v56 = vld [vmem:[#allocation2 + $0x70c] ss:$16 sps:$4 sm:$0xff]  }
  0xe9   :  { %1911 = vmatprep.subr.bf16.mxu1 %v3358_v57  ;;  %v3484_v57 = vld [vmem:[%s3959_s3 + $0x104] ss:$8 sps:$4 sm:$0xff]  }
  0xea   :  { %2396 = vmatpush1.bf16.msra.mxu0 %v3449_v58  ;;  %v3410_v58 = vld [vmem:[#allocation2 + $0x708] ss:$16 sps:$4 sm:$0xff]  }
  0xeb   :  { %2397 = vmatprep.subr.bf16.mxu0 %v3454_v59  ;;  %v3415_v59 = vld [vmem:[#allocation2 + $0x72c] ss:$16 sps:$4 sm:$0xff]  }
  0xec   :  { %1912 = vmatpush1.bf16.msra.mxu1 %v3356_v60  ;;  %v3413_v60 = vld [vmem:[#allocation2 + $0x728] ss:$16 sps:$4 sm:$0xff]  }
  0xed   :  { %1913 = vmatprep.subr.bf16.mxu1 %v3361_v61  ;;  %v3418_v61 = vld [vmem:[#allocation2 + $0x74c] ss:$16 sps:$4 sm:$0xff]  }
  0xee   :  { %2398 = vmatpush1.bf16.msra.mxu0 %v3452_v62  ;;  %v3416_v62 = vld [vmem:[#allocation2 + $0x748] ss:$16 sps:$4 sm:$0xff]  }
  0xef   :  { %2399 = vmatprep.subr.bf16.mxu0 %v3457_v63  ;;  %v3421_v63 = vld [vmem:[#allocation2 + $0x76c] ss:$16 sps:$4 sm:$0xff]  }
  0xf0   :  { %1914 = vmatpush1.bf16.msra.mxu1 %v3359_v0  ;;  %v3419_v0 = vld [vmem:[#allocation2 + $0x768] ss:$16 sps:$4 sm:$0xff]  }
  0xf1   :  { %1915 = vmatprep.subr.bf16.mxu1 %v3364_v1  ;;  %v3424_v1 = vld [vmem:[#allocation2 + $0x78c] ss:$16 sps:$4 sm:$0xff]  }
  0xf2   :  { %2400 = vmatpush1.bf16.msra.mxu0 %v3455_v2  ;;  %v3422_v2 = vld [vmem:[#allocation2 + $0x788] ss:$16 sps:$4 sm:$0xff]  }
  0xf3   :  { %2401 = vmatprep.subr.bf16.mxu0 %v3460_v4  ;;  %v3427_v4 = vld [vmem:[#allocation2 + $0x7ac] ss:$16 sps:$4 sm:$0xff]  }
  0xf4   :  { %1916 = vmatpush1.bf16.msra.mxu1 %v3362_v5  ;;  %v3425_v5 = vld [vmem:[#allocation2 + $0x7a8] ss:$16 sps:$4 sm:$0xff]  }
  0xf5   :  { %1917 = vmatprep.subr.bf16.mxu1 %v3367_v6  ;;  %v3430_v6 = vld [vmem:[#allocation2 + $0x7cc] ss:$16 sps:$4 sm:$0xff]  }
  0xf6   :  { %2402 = vmatpush1.bf16.msra.mxu0 %v3458_v7  ;;  %v3428_v7 = vld [vmem:[#allocation2 + $0x7c8] ss:$16 sps:$4 sm:$0xff]  }
  0xf7   :  { %2403 = vmatprep.subr.bf16.mxu0 %v3463_v8  ;;  %v3433_v8 = vld [vmem:[#allocation2 + $0x7ec] ss:$16 sps:$4 sm:$0xff]  }
  0xf8   :  { %1918 = vmatpush1.bf16.msra.mxu1 %v3365_v9  ;;  %v3431_v9 = vld [vmem:[#allocation2 + $0x7e8] ss:$16 sps:$4 sm:$0xff]  }
  0xf9   :  { %1919 = vmatprep.subr.bf16.mxu1 %v3370_v10  ;;  %v355_v10 = vsub.s32 0, %v3626_v43 }
  0xfa   :  { %2404 = vmatpush1.bf16.msra.mxu0 %v3461_v11  ;;  %v3789_v11 = vld [vmem:[%s3958_s2] sm:$0xf] }
  0xfb   :  { %2405 = vmatprep.subr.bf16.mxu0 %v3466_v12  ;;  %v359_v12 = vsub.s32 1, %v3626_v43 }
  0xfc   :  { %1920 = vmatpush1.bf16.msra.mxu1 %v3368_v13  ;;  %v356_v13 = vrot.slane %v3789_v11, %v355_v10 }
  0xfd   :  { %1921 = vmatprep.subr.bf16.mxu1 %v3373_v14  ;;  %v360_v14 = vrot.slane %v3789_v11, %v359_v12 }
  0xfe   :  { %2406 = vmatpush1.bf16.msra.mxu0 %v3464_v15 }
  0xff   :  { %2407 = vmatprep.subr.bf16.mxu0 %v3469_v17 }
 0x100   :  { %1922 = vmatpush1.bf16.msra.mxu1 %v3371_v19 }
 0x101   :  { %1923 = vmatprep.subr.bf16.mxu1 %v3376_v20 }
 0x102   :  { %2408 = vmatpush1.bf16.msra.mxu0 %v3467_v21 }
 0x103   :  { %2409 = vmatprep.subr.bf16.mxu0 %v3472_v22 }
 0x104   :  { %1924 = vmatpush1.bf16.msra.mxu1 %v3374_v23 }
 0x105   :  { %1925 = vmatprep.subr.bf16.mxu1 %v3379_v25 }
 0x106   :  { %2410 = vmatpush1.bf16.msra.mxu0 %v3470_v26 }
 0x107   :  { %2411 = vmatprep.subr.bf16.mxu0 %v3475_v27 }
 0x108   :  { %1926 = vmatpush1.bf16.msra.mxu1 %v3377_v28  ;;  %v3482_v28 = vld [vmem:[%s3959_s3 + $0x100] ss:$8 sps:$4 sm:$0xff]  }
 0x109   :  { %1927 = vmatprep.subr.bf16.mxu1 %v3382_v29 }
 0x10a   :  { %2412 = vmatpush1.bf16.msra.mxu0 %v3473_v31  ;;  %v3487_v31 = vld [vmem:[%s3959_s3 + $0x114] ss:$8 sps:$4 sm:$0xff]  }
 0x10c   :  { %1928 = vmatpush1.bf16.msra.mxu1 %v3380_v49  ;;  %v3530_v49 = vld [vmem:[%s3961_s5 + $0x40] sm:$0xff]  }
 0x10d   :  { %1929 = vmatprep.subr.bf16.mxu1 %v3385_v32  ;;  %v3531_v32 = vld [vmem:[%s3961_s5] sm:$0xff]  }
 0x110   :  { %1930 = vmatpush1.bf16.msra.mxu1 %v3383_v33  ;;  %v3532_v33 = vld [vmem:[%s3961_s5 + $0x48] sm:$0xff]  }
 0x111   :  { %1940 = vmatprep.subr.bf16.mxu1 %v3388_v35  ;;  %v3485_v35 = vld [vmem:[%s3959_s3 + $0x110] ss:$8 sps:$4 sm:$0xff]  }
 0x113   :  { %1932 = vmatmul.mubr.bf16.vlgmr.msra.gmra.mrb[4].mxu1 %v3668_v30  ;;  %v3401_v30 = vld [vmem:[#allocation2 + $0x6a8] ss:$16 sps:$4 sm:$0xff]  }
 0x114   :  { %1941 = vmatpush1.bf16.msra.mxu1 %v3386_v36  ;;  %1972 = vmatprep.mubr.bf16.mxu1 %v3670_v34  ;;  %v3478_v34 = vld [vmem:[%s3959_s3 + $0xe4] ss:$8 sps:$4 sm:$0xff]  }
 0x115   :  { %1942 = vmatprep.subr.bf16.mxu1 %v3391_v38  ;;  %2413 = vmatprep.subr.bf16.mxu0 %v3478_v34  ;;  %v3490_v36 = vld [vmem:[%s3959_s3 + $0x124] ss:$8 sps:$4 sm:$0xff]   ;;  %v3499_v34 = vld [vmem:[%s3959_s3 + $0x154] ss:$8 sps:$4 sm:$0xff]  }
 0x116   :  { %2414 = vmatpush1.bf16.msra.mxu0 %v3476_v46  ;;  %v3533_v38 = vld [vmem:[%s3961_s5 + $0x8] sm:$0xff]  }
 0x117   :  { %2415 = vmatprep.subr.bf16.mxu0 %v3481_v53  ;;  %v3540_v46 = vld [vmem:[%s3961_s5 + $0x68] sm:$0xff]   ;;  %v3503_v53 = vld [vmem:[%s3959_s3 + $0x170] ss:$8 sps:$4 sm:$0xff]  }
 0x118   :  { %1943 = vmatpush1.bf16.msra.mxu1 %v3389_v39  ;;  %v3534_v39 = vld [vmem:[%s3961_s5 + $0x50] sm:$0xff]  }
 0x119   :  { %1944 = vmatprep.subr.bf16.mxu1 %v3394_v40  ;;  %v3488_v40 = vld [vmem:[%s3959_s3 + $0x120] ss:$8 sps:$4 sm:$0xff]  }
 0x11a   :  { %2416 = vmatpush1.bf16.msra.mxu0 %v3479_v54  ;;  %v3508_v54 = vld [vmem:[%s3959_s3 + $0x184] ss:$8 sps:$4 sm:$0xff]  }
 0x11b   :  { %2426 = vmatprep.subr.bf16.mxu0 %v3484_v57  ;;  %v3509_v57 = vld [vmem:[%s3959_s3 + $0x190] ss:$8 sps:$4 sm:$0xff]  }
 0x11c   :  { %1945 = vmatpush1.bf16.msra.mxu1 %v3392_v41  ;;  %v3493_v41 = vld [vmem:[%s3959_s3 + $0x134] ss:$8 sps:$4 sm:$0xff]  }
 0x11d   :  { %1946 = vmatprep.subr.bf16.mxu1 %v3397_v24  ;;  %v3535_v24 = vld [vmem:[%s3961_s5 + $0x10] sm:$0xff]  }
 0x120   :  { %1947 = vmatpush1.bf16.msra.mxu1 %v3395_v16  ;;  %v3536_v16 = vld [vmem:[%s3961_s5 + $0x58] sm:$0xff]  }
 0x121   :  { %1948 = vmatprep.subr.bf16.mxu1 %v3400_v18  ;;  %v3491_v18 = vld [vmem:[%s3959_s3 + $0x130] ss:$8 sps:$4 sm:$0xff]  }
 0x124   :  { %1949 = vmatpush1.bf16.msra.mxu1 %v3398_v42  ;;  %v3496_v42 = vld [vmem:[%s3959_s3 + $0x144] ss:$8 sps:$4 sm:$0xff]  }
 0x125   :  { %1950 = vmatprep.subr.bf16.mxu1 %v3403_v44  ;;  %v3537_v44 = vld [vmem:[%s3961_s5 + $0x18] sm:$0xff]  }
 0x126   :  { %v1687_v45 = vpop.f32.mrb[0].mxu1 }
 0x127   :  { %v1689_v47 = vpop.f32.mrb[1].mxu1  ;;  %v1688_v15 = vadd.f32 %v1687_v45, %v356_v13  ;;  %v3539_v45 = vld [vmem:[%s3961_s5 + $0x20] sm:$0xff]  }
 0x128   :  { %v1691_v3 = vpop.f32.mrb[2].mxu1  ;;  %1951 = vmatpush1.bf16.msra.mxu1 %v3401_v30  ;;  %v1690_v17 = vadd.f32 %v1689_v47, %v360_v14  ;;  %v3538_v30 = vld [vmem:[%s3961_s5 + $0x60] sm:$0xff]   ;;  %v3497_v47 = vld [vmem:[%s3959_s3 + $0x150] ss:$8 sps:$4 sm:$0xff]  }
 0x129   :  { %v1692_v50 = vpop.f32.mrb[3].mxu1  ;;  %1952 = vmatprep.subr.bf16.mxu1 %v3406_v51  ;;  %v3494_v51 = vld [vmem:[%s3959_s3 + $0x140] ss:$8 sps:$4 sm:$0xff]   ;;  %v3502_v3 = vld [vmem:[%s3959_s3 + $0x164] ss:$8 sps:$4 sm:$0xff]  }
 0x12a   :  { %v3500_v50 = vld [vmem:[%s3959_s3 + $0x160] ss:$8 sps:$4 sm:$0xff]  }
 0x12c   :  { %1953 = vmatpush1.bf16.msra.mxu1 %v3404_v48  ;;  %v3541_v48 = vld [vmem:[%s3961_s5 + $0x28] sm:$0xff]  }
 0x12d   :  { %1954 = vmatprep.subr.bf16.mxu1 %v3409_v52  ;;  %v3505_v52 = vld [vmem:[%s3959_s3 + $0x174] ss:$8 sps:$4 sm:$0xff]  }
 0x130   :  { %1955 = vmatpush1.bf16.msra.mxu1 %v3407_v55  ;;  %v3506_v55 = vld [vmem:[%s3959_s3 + $0x180] ss:$8 sps:$4 sm:$0xff]  }
 0x131   :  { %1956 = vmatprep.subr.bf16.mxu1 %v3412_v56  ;;  %v3511_v56 = vld [vmem:[%s3959_s3 + $0x194] ss:$8 sps:$4 sm:$0xff]  }
 0x134   :  { %1957 = vmatpush1.bf16.msra.mxu1 %v3410_v58  ;;  %v3514_v58 = vld [vmem:[%s3959_s3 + $0x1a4] ss:$8 sps:$4 sm:$0xff]  }
 0x135   :  { %1958 = vmatprep.subr.bf16.mxu1 %v3415_v59  ;;  %v3512_v59 = vld [vmem:[%s3959_s3 + $0x1a0] ss:$8 sps:$4 sm:$0xff]  }
 0x138   :  { %1959 = vmatpush1.bf16.msra.mxu1 %v3413_v60  ;;  %v3517_v60 = vld [vmem:[%s3959_s3 + $0x1b4] ss:$8 sps:$4 sm:$0xff]  }
 0x139   :  { %1960 = vmatprep.subr.bf16.mxu1 %v3418_v61  ;;  %v3515_v61 = vld [vmem:[%s3959_s3 + $0x1b0] ss:$8 sps:$4 sm:$0xff]  }
 0x13c   :  { %1961 = vmatpush1.bf16.msra.mxu1 %v3416_v62  ;;  %v3520_v62 = vld [vmem:[%s3959_s3 + $0x1c4] ss:$8 sps:$4 sm:$0xff]  }
 0x13d   :  { %1962 = vmatprep.subr.bf16.mxu1 %v3421_v63  ;;  %v3518_v63 = vld [vmem:[%s3959_s3 + $0x1c0] ss:$8 sps:$4 sm:$0xff]  }
 0x140   :  { %1963 = vmatpush1.bf16.msra.mxu1 %v3419_v0  ;;  %v3523_v0 = vld [vmem:[%s3959_s3 + $0x1d4] ss:$8 sps:$4 sm:$0xff]  }
 0x141   :  { %1964 = vmatprep.subr.bf16.mxu1 %v3424_v1  ;;  %v3521_v1 = vld [vmem:[%s3959_s3 + $0x1d0] ss:$8 sps:$4 sm:$0xff]  }
 0x144   :  { %1965 = vmatpush1.bf16.msra.mxu1 %v3422_v2  ;;  %v3526_v2 = vld [vmem:[%s3959_s3 + $0x1e4] ss:$8 sps:$4 sm:$0xff]  }
 0x145   :  { %1966 = vmatprep.subr.bf16.mxu1 %v3427_v4  ;;  %v3524_v4 = vld [vmem:[%s3959_s3 + $0x1e0] ss:$8 sps:$4 sm:$0xff]  }
 0x148   :  { %1967 = vmatpush1.bf16.msra.mxu1 %v3425_v5  ;;  %v3529_v5 = vld [vmem:[%s3959_s3 + $0x1f4] ss:$8 sps:$4 sm:$0xff]  }
 0x149   :  { %1968 = vmatprep.subr.bf16.mxu1 %v3430_v6  ;;  %v3527_v6 = vld [vmem:[%s3959_s3 + $0x1f0] ss:$8 sps:$4 sm:$0xff]  }
 0x14c   :  { %1969 = vmatpush1.bf16.msra.mxu1 %v3428_v7  ;;  %v363_v7 = vsub.s32 2, %v3626_v43 }
 0x14d   :  { %1970 = vmatprep.subr.bf16.mxu1 %v3433_v8  ;;  %v367_v8 = vsub.s32 3, %v3626_v43 }
 0x14f   :  { %v368_v13 = vrot.slane %v3789_v11, %v367_v8 }
 0x150   :  { %1971 = vmatpush1.bf16.msra.mxu1 %v3431_v9  ;;  %v364_v9 = vrot.slane %v3789_v11, %v363_v7  ;;  %v3543_v11 = vld [vmem:[%s3961_s5 + $0x30] sm:$0xff]  }
 0x151   :  { %2990 = vmatprep.subr.bf16.mxu1 %v3530_v49 }
 0x153   :  { %1973 = vmatmul.mubr.bf16.vlgmr.msra.gmra.mrb[4].mxu1 %v3678_v37 }
 0x154   :  { %2991 = vmatpush3.bf16.msra.mxu1 %v3531_v32 }
 0x155   :  { %2992 = vmatprep.subr.bf16.mxu1 %v3532_v33 }
 0x158   :  { %2993 = vmatpush3.bf16.msra.mxu1 %v3533_v38 }
 0x159   :  { %2994 = vmatprep.subr.bf16.mxu1 %v3534_v39 }
 0x15c   :  { %2995 = vmatpush3.bf16.msra.mxu1 %v3535_v24 }
 0x15d   :  { %2996 = vmatprep.subr.bf16.mxu1 %v3536_v16 }
 0x160   :  { %2997 = vmatpush3.bf16.msra.mxu1 %v3537_v44 }
 0x161   :  { %2998 = vmatprep.subr.bf16.mxu1 %v3538_v30 }
 0x164   :  { %2999 = vmatpush3.bf16.msra.mxu1 %v3539_v45 }
 0x165   :  { %3000 = vmatprep.subr.bf16.mxu1 %v3540_v46 }
 0x168   :  { %3001 = vmatpush3.bf16.msra.mxu1 %v3541_v48 }
 0x1a7   :  { %v1810_v37 = vpop.f32.mrb[0].mxu0 }
 0x1a8   :  { %v3013_v19 = vadd.f32 %v1810_v37, %v1688_v15  ;;  %v1812_v20 = vpop.f32.mrb[1].mxu0 }
 0x1a9   :  { %v3015_v21 = vadd.f32 %v1812_v20, %v1690_v17  ;;  %v1814_v22 = vpop.f32.mrb[2].mxu0 }
 0x1aa   :  { %v1981_v23 = vmax.f32 %v3013_v19, 0.0  ;;  %v1815_v25 = vpop.f32.mrb[3].mxu0 }
 0x1ab   :  { %v1982_v26 = vmax.f32 %v3015_v21, 0.0 }
 0x1ac   :  { %v1985_v29 = vpack.c.bf16 %v1981_v23, %v1981_v23 }
 0x1ad   :  { %v1986_v27 = vpack.c.bf16 %v1982_v26, %v1982_v26  ;;  %v3542_v26 = vld [vmem:[%s3961_s5 + $0x70] sm:$0xff]  }
 0x1ae   :  { %3002 = vmatprep.subr.bf16.mxu1 %v3542_v26 }
 0x1af   :  { %2417 = vmatprep.mubr.bf16.mxu0 %v1986_v27  ;;  %3003 = vmatpush3.bf16.msra.mxu1 %v3543_v11  ;;  %v3544_v27 = vld [vmem:[%s3961_s5 + $0x78] sm:$0xff]  }
 0x1b0   :  { %2418 = vmatmul.mubr.bf16.vlgmr.msra.gmra.mrb[4].mxu0 %v1985_v29  ;;  %3004 = vmatprep.subr.bf16.mxu1 %v3544_v27  ;;  %v2053_v29 = vld [vmem:[%s3960_s4] sm:$0x3] }
 0x1b1   :  { %2427 = vmatpush1.bf16.msra.mxu0 %v3482_v28  ;;  %v3545_v28 = vld [vmem:[%s3961_s5 + $0x38] sm:$0xff]   ;;  %v2062_v49 = vrot.slane %v2053_v29, %v359_v12 }
 0x1b2   :  { %2428 = vmatprep.subr.bf16.mxu0 %v3487_v31  ;;  %v2058_v31 = vrot.slane %v2053_v29, %v355_v10  ;;  %v2973_v10 = vld [vmem:[%s3962_s6] ss:$0 sm:$0xff] }
 0x1b3   :  { %3005 = vmatpush3.bf16.msra.mxu1 %v3545_v28 }
 0x1b5   :  { %2429 = vmatpush1.bf16.msra.mxu0 %v3485_v35 }
 0x1b6   :  { %2430 = vmatprep.subr.bf16.mxu0 %v3490_v36 }
 0x1b9   :  { %2431 = vmatpush1.bf16.msra.mxu0 %v3488_v40 }
 0x1ba   :  { %2432 = vmatprep.subr.bf16.mxu0 %v3493_v41 }
 0x1bd   :  { %2433 = vmatpush1.bf16.msra.mxu0 %v3491_v18 }
 0x1be   :  { %2434 = vmatprep.subr.bf16.mxu0 %v3496_v42 }
 0x1c1   :  { %2435 = vmatpush1.bf16.msra.mxu0 %v3494_v51 }
 0x1c2   :  { %2436 = vmatprep.subr.bf16.mxu0 %v3499_v34 }
 0x1c5   :  { %2437 = vmatpush1.bf16.msra.mxu0 %v3497_v47 }
 0x1c6   :  { %2438 = vmatprep.subr.bf16.mxu0 %v3502_v3 }
 0x1c9   :  { %2439 = vmatpush1.bf16.msra.mxu0 %v3500_v50 }
 0x1ca   :  { %2440 = vmatprep.subr.bf16.mxu0 %v3505_v52 }
 0x1cd   :  { %2441 = vmatpush1.bf16.msra.mxu0 %v3503_v53 }
 0x1ce   :  { %2442 = vmatprep.subr.bf16.mxu0 %v3508_v54 }
 0x1d1   :  { %2443 = vmatpush1.bf16.msra.mxu0 %v3506_v55 }
 0x1d2   :  { %2444 = vmatprep.subr.bf16.mxu0 %v3511_v56 }
 0x1d5   :  { %2445 = vmatpush1.bf16.msra.mxu0 %v3509_v57 }
 0x1d6   :  { %2446 = vmatprep.subr.bf16.mxu0 %v3514_v58 }
 0x1d9   :  { %2447 = vmatpush1.bf16.msra.mxu0 %v3512_v59 }
 0x1da   :  { %2448 = vmatprep.subr.bf16.mxu0 %v3517_v60 }
 0x1dd   :  { %2449 = vmatpush1.bf16.msra.mxu0 %v3515_v61 }
 0x1de   :  { %2450 = vmatprep.subr.bf16.mxu0 %v3520_v62 }
 0x1e1   :  { %2451 = vmatpush1.bf16.msra.mxu0 %v3518_v63 }
 0x1e2   :  { %2452 = vmatprep.subr.bf16.mxu0 %v3523_v0 }
 0x1e5   :  { %2453 = vmatpush1.bf16.msra.mxu0 %v3521_v1 }
 0x1e6   :  { %2454 = vmatprep.subr.bf16.mxu0 %v3526_v2 }
 0x1e9   :  { %2455 = vmatpush1.bf16.msra.mxu0 %v3524_v4 }
 0x1ea   :  { %2456 = vmatprep.subr.bf16.mxu0 %v3529_v5 }
 0x1ed   :  { %2457 = vmatpush1.bf16.msra.mxu0 %v3527_v6 }
 0x226   :  { %v1974_v14 = vpop.f32.mrb[4].mxu1 }
 0x227   :  { %v3016_v15 = vadd.f32 %v1974_v14, %v364_v9  ;;  %v1976_v17 = vpop.f32.mrb[5].mxu1 }
 0x228   :  { %v3017_v37 = vadd.f32 %v1976_v17, %v368_v13  ;;  %v1978_v19 = vpop.f32.mrb[6].mxu1 }
 0x229   :  { %v1983_v20 = vmax.f32 %v3016_v15, 0.0  ;;  %v1979_v21 = vpop.f32.mrb[7].mxu1 }
 0x22a   :  { %v1984_v22 = vmax.f32 %v3017_v37, 0.0 }
 0x22b   :  { %v1987_v25 = vpack.c.bf16 %v1983_v20, %v1983_v20 }
 0x22c   :  { %v1988_v23 = vpack.c.bf16 %v1984_v22, %v1984_v22 }
 0x22e   :  { %2458 = vmatprep.mubr.bf16.mxu0 %v1988_v23 }
 0x22f   :  { %2459 = vmatmul.mubr.bf16.vlgmr.msra.gmra.mrb[4].mxu0 %v1987_v25 }
 0x302   :  { %v2460_v32 = vpop.f32.mrb[4].mxu0 }
 0x303   :  { %v3018_v33 = vadd.f32 %v2460_v32, %v2058_v31  ;;  %v2462_v35 = vpop.f32.mrb[5].mxu0 }
 0x304   :  { %v3019_v36 = vadd.f32 %v2462_v35, %v2062_v49  ;;  %v2464_v38 = vpop.f32.mrb[6].mxu0 }
 0x305   :  { %v2467_v39 = vmax.f32 %v3018_v33, 0.0  ;;  %v2465_v40 = vpop.f32.mrb[7].mxu0 }
 0x306   :  { %v2468_v41 = vmax.f32 %v3019_v36, 0.0 }
 0x307   :  { %v2469_v16 = vpack.c.bf16 %v2467_v39, %v2467_v39 }
 0x308   :  { %v2470_v24 = vpack.c.bf16 %v2468_v41, %v2468_v41 }
 0x30a   :  { %2638 = vmatprep.mubr.bf16.mxu1 %v2470_v24 }
 0x30b   :  { %2639 = vmatmul.mubr.bf16.vlgmr.msra.gmra.mrb[8].mxu1 %v2469_v16 }
 0x3de   :  { %v3006_v18 = vpop.f32.mrb[8].mxu1 }
 0x3df   :  { %v3007_v42 = vpop.f32.mrb[9].mxu1 }
 0x3e0   :  { %v3008_v43 = vadd.f32 %v3007_v42, %v3006_v18  ;;  %v3009_v12 = vpop.f32.mrb[10].mxu1 }
 0x3e1   :  { %v3010_v44 = vpop.f32.mrb[11].mxu1 }
 0x3e2   :  { %v2641_v30 = vadd.f32 %v3008_v43, %v2973_v10 }
 0x3e4   :  { %2647 = vst.msk [vmem:[%s3963_s7] sm:$0x3] %vm2646_vm0, %v2641_v30 }
 0x3e5   :  { %2652 = vsyncpa [#allocation3], 1 }

// kernel: pointnet_cls_forward.12
= control target key start
LH: loop header
LB: loop body
LE: loop exit
PB: predicated region body
PF: predicated region fallthrough
CT: control target
= control target key end

     0   :  { %s5770_s12 = smov 0   ;;  %s5772_s13 = smov 0   ;;  %s8291_s0 = inlined_call_operand.vmem [shape: f32[2,8,1024], index: 0, kind: input, shape index: {}]   ;;  %s8292_s1 = inlined_call_operand.vmem [shape: f32[2048,15], index: 1, kind: input, shape index: {}]   ;;  %s8293_s2 = inlined_call_operand.vmem [shape: f32[2048,1], index: 2, kind: input, shape index: {}]   ;;  %s8294_s3 = inlined_call_operand.vmem [shape: f32[2,1,1024], index: 3, kind: output, shape index: {}]  }
   0x1   :  { %s5774_s14 = smov 0   ;;  %s5776_s15 = smov 0  }
   0x2   :  { %s5778_s16 = smov 0  }
   0x3 LB: > { %s22_s17 = sadd.s32 1, %s5738_s14  ;;  %s25_s18 = sadd.s32 1, %s5742_s15  ;;  %s5746_s16 = sphi %s5778_s16, %s13_s16   ;;  %s5742_s15 = sphi %s5776_s15, %s8397_s15   ;;  %s5738_s14 = sphi %s5774_s14, %s8396_s14   ;;  %s5734_s13 = sphi %s5772_s13, %s8395_s13   ;;  %s5730_s12 = sphi %s5770_s12, %s8394_s12  }
   0x4   : > { %p23_p0 = scmp.ge.s32.totalorder %s22_s17, 8  ;;  %p4710_p1 = scmp.ge.s32.totalorder %s5746_s16, 1 }
   0x5   : > { %p156_p2 = scmp.lt.s32.totalorder %s5746_s16, 17 }
   0x6   : > { %s8399_s17 = smov (%p23_p0, %s22_s17), 0  ;;  %s8401_s18 = smov (!%p23_p0, %s25_s18), %s5742_s15 }
   0x7   : > { %p157_p3 = pnand %p4710_p1, %p156_p2  ;;  %p27_p4 = scmp.ge.s32.totalorder %s8401_s18, 2 }
   0x9   : > { %s8403_s18 = smov (%p27_p4, %s8401_s18), 0  ;;  %160 = sbr.rel (%p157_p3) target bundleno = 678 (0x2a6), region = 32 }
  0x10   : > { %v308_v0 = vld [vmem:[%s8293_s2 + $0x10] sm:$0xff]  ;;  %v306_v1 = vld [vmem:[%s8293_s2] sm:$0xff]  ;;  %p185_p5 = scmp.lt.s32.totalorder %s5734_s13, 1  ;;  %p187_p6 = scmp.lt.s32.totalorder %s5730_s12, 7  ;;  %v5748_v2 = vmov 0   ;;  %v309_v3 = vld [vmem:[%s8293_s2 + $0x18] sm:$0xff] }
  0x11   : > { %5707 = vset.pattern.permute.xlu1 %v5748_v2  ;;  %5706 = vset.pattern.permute.xlu0 %v5748_v2  ;;  %v307_v4 = vld [vmem:[%s8293_s2 + $0x8] sm:$0xff]  ;;  %vm690_vm0 = vcmask 121856   ;;  %v242_v5 = vld [vmem:[%s8292_s1] sm:$0xff]  ;;  %v313_v11 = vld [vmem:[%s8293_s2 + $0x38] sm:$0xff]  ;;  %vm223_vm1 = vcmask 1040384   ;;  %vm225_vm2 = vcmask 1041408  }
  0x12   : > { %382 = vperm.xlu1 %5707, %v308_v0   ;;  %372 = vperm.xlu0 %5706, %v306_v1   ;;  %s8405_s13 = smov (!%p185_p5, %s5734_s13), 1  ;;  %s8407_s12 = smov (!%p187_p6, %s5730_s12), 7  ;;  %v311_v6 = vld [vmem:[%s8293_s2 + $0x28] sm:$0xff]  ;;  %v310_v7 = vld [vmem:[%s8293_s2 + $0x20] sm:$0xff]  ;;  %v312_v12 = vld [vmem:[%s8293_s2 + $0x30] sm:$0xff]  ;;  %vm227_vm3 = vcmask 1042432  }
  0x13   : > { %s4711_s27 = sshll.u32 %s8405_s13, 3  ;;  %5244 = vmatprep.mubr.msk.f32.mxu0 %vm690_vm0, %v242_v5  ;;  %v1340_v10 = vld [vmem:[%s8292_s1 + $0x200] sm:$0xff]  ;;  %v315_v15 = vld [vmem:[%s8293_s2 + $0x48] sm:$0xff]  ;;  %v317_v21 = vld [vmem:[%s8293_s2 + $0x58] sm:$0xff]  ;;  %vm229_vm4 = vcmask 1043456   ;;  %vm231_vm5 = vcmask 1044480  }
  0x14   : > { %s5812_s28 = sadd.s32 %s4711_s27, %s8407_s12  ;;  %5344 = vmatprep.mubr.msk.f32.mxu1 %vm690_vm0, %v1340_v10  ;;  %v314_v16 = vld [vmem:[%s8293_s2 + $0x40] sm:$0xff]  ;;  %v316_v22 = vld [vmem:[%s8293_s2 + $0x50] sm:$0xff]  ;;  %v319_v29 = vld [vmem:[%s8293_s2 + $0x68] sm:$0xff]  ;;  %vm233_vm6 = vcmask 1045504   ;;  %vm235_vm7 = vcmask 1046528   ;;  %vm5749_vm8 = vmmov 1  }
  0x15   : > { %s4712_s4 = sshll.u32 %s5812_s28, 3  ;;  %v318_v30 = vld [vmem:[%s8293_s2 + $0x60] sm:$0xff]  ;;  %v321_v35 = vld [vmem:[%s8293_s2 + $0x78] sm:$0xff]  ;;  %v320_v36 = vld [vmem:[%s8293_s2 + $0x70] sm:$0xff]  ;;  %s199_s21 = scalar_lea.vmem %s8294_s3, %s5812_s28 }
  0x16   : > { %387 = vperm.xlu1 %5707, %v309_v3   ;;  %377 = vperm.xlu0 %5706, %v307_v4   ;;  %s192_s11 = scalar_lea.vmem %s8291_s0, %s4712_s4  ;;  %vm5862_vm9 = vmpackc.low %vm235_vm7, %vm5749_vm8  ;;  %v323_v40 = vld [vmem:[%s8293_s2 + $0x88] sm:$0xff]  ;;  %v322_v41 = vld [vmem:[%s8293_s2 + $0x80] sm:$0xff] }
  0x17   : > { %v200_v8 = vld [vmem:[%s192_s11] sm:$0xff]  ;;  %v243_v42 = vld [vmem:[%s8292_s1 + $0x8] sm:$0xff]  ;;  %v244_v44 = vld [vmem:[%s8292_s1 + $0x10] sm:$0xff] }
  0x18   : > { %v202_v9 = vrot.slane %v200_v8, 1  ;;  %v1341_v43 = vld [vmem:[%s8292_s1 + $0x208] sm:$0xff]  ;;  %v1342_v45 = vld [vmem:[%s8292_s1 + $0x210] sm:$0xff]  ;;  %v325_v46 = vld [vmem:[%s8293_s2 + $0x98] sm:$0xff] }
  0x19   : > { %v324_v47 = vld [vmem:[%s8293_s2 + $0x90] sm:$0xff]  ;;  %v245_v48 = vld [vmem:[%s8292_s1 + $0x18] sm:$0xff]  ;;  %v246_v50 = vld [vmem:[%s8292_s1 + $0x20] sm:$0xff] }
  0x1a   : > { %397 = vperm.xlu1 %5707, %v311_v6   ;;  %392 = vperm.xlu0 %5706, %v310_v7   ;;  %v204_v13 = vmax.f32 %v200_v8, %v202_v9  ;;  %v1343_v49 = vld [vmem:[%s8292_s1 + $0x218] sm:$0xff]  ;;  %v1344_v51 = vld [vmem:[%s8292_s1 + $0x220] sm:$0xff]  ;;  %v327_v52 = vld [vmem:[%s8293_s2 + $0xa8] sm:$0xff] }
  0x1b   : > { %v326_v53 = vld [vmem:[%s8293_s2 + $0xa0] sm:$0xff]  ;;  %v247_v54 = vld [vmem:[%s8292_s1 + $0x28] sm:$0xff]  ;;  %v248_v56 = vld [vmem:[%s8292_s1 + $0x30] sm:$0xff] }
  0x1c   : > { %v206_v14 = vrot.slane %v204_v13, 2  ;;  %v217_v24 = vrot.slane %v204_v13, 5  ;;  %v219_v25 = vrot.slane %v204_v13, 6  ;;  %v221_v26 = vrot.slane %v204_v13, 7  ;;  %v1345_v55 = vld [vmem:[%s8292_s1 + $0x228] sm:$0xff]  ;;  %v1346_v57 = vld [vmem:[%s8292_s1 + $0x230] sm:$0xff] }
  0x1d   : > { %v329_v58 = vld [vmem:[%s8293_s2 + $0xb8] sm:$0xff]  ;;  %v328_v59 = vld [vmem:[%s8293_s2 + $0xb0] sm:$0xff]  ;;  %v250_v62 = vld [vmem:[%s8292_s1 + $0x40] sm:$0xff] }
  0x1e   : > { %407 = vperm.xlu1 %5707, %v313_v11   ;;  %402 = vperm.xlu0 %5706, %v312_v12   ;;  %v208_v17 = vmax.f32 %v204_v13, %v206_v14  ;;  %v249_v60 = vld [vmem:[%s8292_s1 + $0x38] sm:$0xff]  ;;  %v1348_v63 = vld [vmem:[%s8292_s1 + $0x240] sm:$0xff]  ;;  %v331_v0 = vld [vmem:[%s8293_s2 + $0xc8] sm:$0xff] }
  0x1f   : > { %v1347_v61 = vld [vmem:[%s8292_s1 + $0x238] sm:$0xff]  ;;  %v330_v1 = vld [vmem:[%s8293_s2 + $0xc0] sm:$0xff]  ;;  %v251_v2 = vld [vmem:[%s8292_s1 + $0x48] sm:$0xff] }
  0x20   : > { %v210_v18 = vrot.slane %v208_v17, 4  ;;  %v213_v19 = vrot.slane %v208_v17, 7  ;;  %v215_v20 = vrot.slane %v208_v17, 2  ;;  %v1349_v3 = vld [vmem:[%s8292_s1 + $0x248] sm:$0xff]  ;;  %v252_v4 = vld [vmem:[%s8292_s1 + $0x50] sm:$0xff]  ;;  %v333_v6 = vld [vmem:[%s8293_s2 + $0xd8] sm:$0xff] }
  0x21   : > { %v1350_v5 = vld [vmem:[%s8292_s1 + $0x250] sm:$0xff]  ;;  %v253_v8 = vld [vmem:[%s8292_s1 + $0x58] sm:$0xff]  ;;  %v254_v10 = vld [vmem:[%s8292_s1 + $0x60] sm:$0xff] }
  0x22   : > { %417 = vperm.xlu1 %5707, %v315_v15   ;;  %412 = vperm.xlu0 %5706, %v314_v16   ;;  %v212_v23 = vmax.f32 %v208_v17, %v210_v18  ;;  %v332_v7 = vld [vmem:[%s8293_s2 + $0xd0] sm:$0xff]  ;;  %v1352_v11 = vld [vmem:[%s8292_s1 + $0x260] sm:$0xff]  ;;  %v335_v12 = vld [vmem:[%s8293_s2 + $0xe8] sm:$0xff] }
  0x23   : > { %v255_v14 = vld [vmem:[%s8292_s1 + $0x68] sm:$0xff]  ;;  %v256_v16 = vld [vmem:[%s8292_s1 + $0x70] sm:$0xff]  ;;  %v337_v18 = vld [vmem:[%s8293_s2 + $0xf8] sm:$0xff] }
  0x24   : > { %v224_v27 = vsel %vm223_vm1, %v212_v23, %v213_v19  ;;  %v1353_v15 = vld [vmem:[%s8292_s1 + $0x268] sm:$0xff]  ;;  %v1354_v17 = vld [vmem:[%s8292_s1 + $0x270] sm:$0xff]  ;;  %v1356_v23 = vld [vmem:[%s8292_s1 + $0x280] sm:$0xff] }
  0x25   : > { %v226_v28 = vsel %vm225_vm2, %v224_v27, %v215_v20  ;;  %v336_v19 = vld [vmem:[%s8293_s2 + $0xf0] sm:$0xff]  ;;  %v257_v20 = vld [vmem:[%s8292_s1 + $0x78] sm:$0xff]  ;;  %v1357_v27 = vld [vmem:[%s8292_s1 + $0x288] sm:$0xff] }
  0x26   : > { %427 = vperm.xlu1 %5707, %v317_v21   ;;  %422 = vperm.xlu0 %5706, %v316_v22   ;;  %v228_v31 = vsel %vm227_vm3, %v226_v28, %v217_v24  ;;  %v1355_v21 = vld [vmem:[%s8292_s1 + $0x278] sm:$0xff]  ;;  %v258_v22 = vld [vmem:[%s8292_s1 + $0x80] sm:$0xff]  ;;  %v339_v24 = vld [vmem:[%s8293_s2 + $0x108] sm:$0xff] }
  0x27   : > { %v230_v32 = vsel %vm229_vm4, %v228_v31, %v219_v25  ;;  %v338_v25 = vld [vmem:[%s8293_s2 + $0x100] sm:$0xff]  ;;  %v260_v28 = vld [vmem:[%s8292_s1 + $0x90] sm:$0xff]  ;;  %v1361_v39 = vld [vmem:[%s8292_s1 + $0x2a8] sm:$0xff] }
  0x28   : > { %v232_v33 = vsel %vm231_vm5, %v230_v32, %v221_v26  ;;  %v259_v26 = vld [vmem:[%s8292_s1 + $0x88] sm:$0xff]  ;;  %v340_v31 = vld [vmem:[%s8293_s2 + $0x110] sm:$0xff]  ;;  %v261_v32 = vld [vmem:[%s8292_s1 + $0x98] sm:$0xff] }
  0x29   : > { %v234_v34 = vsel %vm233_vm6, %v232_v33, %v204_v13  ;;  %v334_v13 = vld [vmem:[%s8293_s2 + $0xe0] sm:$0xff]  ;;  %v1359_v33 = vld [vmem:[%s8292_s1 + $0x298] sm:$0xff] }
  0x2a   : > { %437 = vperm.xlu1 %5707, %v319_v29   ;;  %432 = vperm.xlu0 %5706, %v318_v30   ;;  %v236_v37 = vsel %vm235_vm7, %v234_v34, %v202_v9  ;;  %v1358_v29 = vld [vmem:[%s8292_s1 + $0x290] sm:$0xff]  ;;  %v341_v30 = vld [vmem:[%s8293_s2 + $0x118] sm:$0xff]  ;;  %v262_v34 = vld [vmem:[%s8292_s1 + $0xa0] sm:$0xff] }
  0x2b   : > { %v5640_v38 = vpack.c.bf16 %v202_v9, %v236_v37  ;;  %v1351_v9 = vld [vmem:[%s8292_s1 + $0x258] sm:$0xff]  ;;  %v342_v37 = vld [vmem:[%s8293_s2 + $0x120] sm:$0xff] }
  0x2d   : > { %5642 = vmatprep.subr.msk.bf16.mxu0 %vm5862_vm9, %v5640_v38  ;;  %5648 = vmatprep.subr.msk.bf16.mxu1 %vm5862_vm9, %v5640_v38 }
  0x2e   : > { %447 = vperm.xlu1 %5707, %v321_v35   ;;  %442 = vperm.xlu0 %5706, %v320_v36   ;;  %v1360_v35 = vld [vmem:[%s8292_s1 + $0x2a0] sm:$0xff]  ;;  %v343_v36 = vld [vmem:[%s8293_s2 + $0x128] sm:$0xff] }
  0x2f   : > { %5645 = vmatpush3.bf16.msk.msra.mxu0 %vm5862_vm9, %v5640_v38  ;;  %5651 = vmatpush3.bf16.msk.msra.mxu1 %vm5862_vm9, %v5640_v38 }
  0x30   : > { %5654 = vmatprep.subr.msk.bf16.mxu0 %vm5862_vm9, %v5640_v38  ;;  %5660 = vmatprep.subr.msk.bf16.mxu1 %vm5862_vm9, %v5640_v38 }
  0x32   : > { %457 = vperm.xlu1 %5707, %v323_v40   ;;  %452 = vperm.xlu0 %5706, %v322_v41   ;;  %v264_v40 = vld [vmem:[%s8292_s1 + $0xb0] sm:$0xff] }
  0x33   : > { %5245 = vmatmul.mubr.msk.f32.vlgmr.msra.gmra.mrb[0].mxu0 %vm690_vm0, %v243_v42  ;;  %5345 = vmatmul.mubr.msk.f32.vlgmr.msra.gmra.mrb[0].mxu1 %vm690_vm0, %v1341_v43  ;;  %v1362_v41 = vld [vmem:[%s8292_s1 + $0x2b0] sm:$0xff]  ;;  %v345_v42 = vld [vmem:[%s8293_s2 + $0x138] sm:$0xff] }
  0x34   : > { %5247 = vmatprep.mubr.msk.f32.mxu0 %vm690_vm0, %v244_v44  ;;  %5347 = vmatprep.mubr.msk.f32.mxu1 %vm690_vm0, %v1342_v45  ;;  %v344_v43 = vld [vmem:[%s8293_s2 + $0x130] sm:$0xff]  ;;  %v265_v44 = vld [vmem:[%s8292_s1 + $0xb8] sm:$0xff] }
  0x35   : > { %5657 = vmatpush3.bf16.msk.msra.mxu0 %vm5862_vm9, %v5640_v38  ;;  %5663 = vmatpush3.bf16.msk.msra.mxu1 %vm5862_vm9, %v5640_v38  ;;  %v263_v38 = vld [vmem:[%s8292_s1 + $0xa8] sm:$0xff]  ;;  %v1363_v45 = vld [vmem:[%s8292_s1 + $0x2b8] sm:$0xff] }
  0x36   : > { %467 = vperm.xlu1 %5707, %v325_v46   ;;  %462 = vperm.xlu0 %5706, %v324_v47   ;;  %v266_v46 = vld [vmem:[%s8292_s1 + $0xc0] sm:$0xff] }
  0x37   : > { %5248 = vmatmul.mubr.msk.f32.gmra.mrb[2].mxu0 %vm690_vm0, %v245_v48  ;;  %5348 = vmatmul.mubr.msk.f32.gmra.mrb[2].mxu1 %vm690_vm0, %v1343_v49  ;;  %v1364_v47 = vld [vmem:[%s8292_s1 + $0x2c0] sm:$0xff]  ;;  %v347_v48 = vld [vmem:[%s8293_s2 + $0x148] sm:$0xff] }
  0x38   : > { %5250 = vmatprep.mubr.msk.f32.mxu0 %vm690_vm0, %v246_v50  ;;  %5350 = vmatprep.mubr.msk.f32.mxu1 %vm690_vm0, %v1344_v51  ;;  %v346_v49 = vld [vmem:[%s8293_s2 + $0x140] sm:$0xff]  ;;  %v267_v50 = vld [vmem:[%s8292_s1 + $0xc8] sm:$0xff] }
  0x39   : > { %v1365_v51 = vld [vmem:[%s8292_s1 + $0x2c8] sm:$0xff] }
  0x3a   : > { %477 = vperm.xlu1 %5707, %v327_v52   ;;  %472 = vperm.xlu0 %5706, %v326_v53   ;;  %v268_v52 = vld [vmem:[%s8292_s1 + $0xd0] sm:$0xff] }
  0x3b   : > { %5251 = vmatmul.mubr.msk.f32.gmra.mrb[4].mxu0 %vm690_vm0, %v247_v54  ;;  %5351 = vmatmul.mubr.msk.f32.gmra.mrb[4].mxu1 %vm690_vm0, %v1345_v55  ;;  %v1366_v53 = vld [vmem:[%s8292_s1 + $0x2d0] sm:$0xff]  ;;  %v349_v54 = vld [vmem:[%s8293_s2 + $0x158] sm:$0xff] }
  0x3c   : > { %5253 = vmatprep.mubr.msk.f32.mxu0 %vm690_vm0, %v248_v56  ;;  %5353 = vmatprep.mubr.msk.f32.mxu1 %vm690_vm0, %v1346_v57  ;;  %v348_v55 = vld [vmem:[%s8293_s2 + $0x150] sm:$0xff]  ;;  %v269_v56 = vld [vmem:[%s8292_s1 + $0xd8] sm:$0xff] }
  0x3d   : > { %v1367_v57 = vld [vmem:[%s8292_s1 + $0x2d8] sm:$0xff] }
  0x3e   : > { %487 = vperm.xlu1 %5707, %v329_v58   ;;  %482 = vperm.xlu0 %5706, %v328_v59   ;;  %v270_v58 = vld [vmem:[%s8292_s1 + $0xe0] sm:$0xff] }
  0x3f   : > { %5254 = vmatmul.mubr.msk.f32.gmra.mrb[6].mxu0 %vm690_vm0, %v249_v60  ;;  %5354 = vmatmul.mubr.msk.f32.gmra.mrb[6].mxu1 %vm690_vm0, %v1347_v61  ;;  %v1368_v59 = vld [vmem:[%s8292_s1 + $0x2e0] sm:$0xff]  ;;  %v351_v60 = vld [vmem:[%s8293_s2 + $0x168] sm:$0xff] }
  0x40   : > { %5256 = vmatprep.mubr.msk.f32.mxu0 %vm690_vm0, %v250_v62  ;;  %5356 = vmatprep.mubr.msk.f32.mxu1 %vm690_vm0, %v1348_v63  ;;  %v350_v61 = vld [vmem:[%s8293_s2 + $0x160] sm:$0xff]  ;;  %v271_v62 = vld [vmem:[%s8292_s1 + $0xe8] sm:$0xff] }
  0x41   : > { %v1369_v63 = vld [vmem:[%s8292_s1 + $0x2e8] sm:$0xff] }
  0x42   : > { %497 = vperm.xlu1 %5707, %v331_v0   ;;  %492 = vperm.xlu0 %5706, %v330_v1   ;;  %v272_v0 = vld [vmem:[%s8292_s1 + $0xf0] sm:$0xff] }
  0x43   : > { %5257 = vmatmul.mubr.msk.f32.gmra.mrb[8].mxu0 %vm690_vm0, %v251_v2  ;;  %5357 = vmatmul.mubr.msk.f32.gmra.mrb[8].mxu1 %vm690_vm0, %v1349_v3  ;;  %v1370_v1 = vld [vmem:[%s8292_s1 + $0x2f0] sm:$0xff]  ;;  %v353_v2 = vld [vmem:[%s8293_s2 + $0x178] sm:$0xff] }
  0x44   : > { %5259 = vmatprep.mubr.msk.f32.mxu0 %vm690_vm0, %v252_v4  ;;  %5359 = vmatprep.mubr.msk.f32.mxu1 %vm690_vm0, %v1350_v5  ;;  %v352_v3 = vld [vmem:[%s8293_s2 + $0x170] sm:$0xff]  ;;  %v273_v4 = vld [vmem:[%s8292_s1 + $0xf8] sm:$0xff] }
  0x45   : > { %v1371_v5 = vld [vmem:[%s8292_s1 + $0x2f8] sm:$0xff] }
  0x46   : > { %507 = vperm.xlu1 %5707, %v333_v6   ;;  %502 = vperm.xlu0 %5706, %v332_v7   ;;  %v274_v6 = vld [vmem:[%s8292_s1 + $0x100] sm:$0xff] }
  0x47   : > { %5260 = vmatmul.mubr.msk.f32.gmra.mrb[10].mxu0 %vm690_vm0, %v253_v8  ;;  %5360 = vmatmul.mubr.msk.f32.gmra.mrb[10].mxu1 %vm690_vm0, %v1351_v9  ;;  %v1372_v7 = vld [vmem:[%s8292_s1 + $0x300] sm:$0xff]  ;;  %v355_v8 = vld [vmem:[%s8293_s2 + $0x188] sm:$0xff] }
  0x48   : > { %5262 = vmatprep.mubr.msk.f32.mxu0 %vm690_vm0, %v254_v10  ;;  %5362 = vmatprep.mubr.msk.f32.mxu1 %vm690_vm0, %v1352_v11  ;;  %v354_v9 = vld [vmem:[%s8293_s2 + $0x180] sm:$0xff]  ;;  %v275_v10 = vld [vmem:[%s8292_s1 + $0x108] sm:$0xff] }
  0x49   : > { %v1373_v11 = vld [vmem:[%s8292_s1 + $0x308] sm:$0xff] }
  0x4a   : > { %517 = vperm.xlu1 %5707, %v335_v12   ;;  %512 = vperm.xlu0 %5706, %v334_v13   ;;  %v276_v12 = vld [vmem:[%s8292_s1 + $0x110] sm:$0xff] }
  0x4b   : > { %5263 = vmatmul.mubr.msk.f32.gmra.mrb[12].mxu0 %vm690_vm0, %v255_v14  ;;  %5363 = vmatmul.mubr.msk.f32.gmra.mrb[12].mxu1 %vm690_vm0, %v1353_v15  ;;  %v1374_v13 = vld [vmem:[%s8292_s1 + $0x310] sm:$0xff]  ;;  %v357_v14 = vld [vmem:[%s8293_s2 + $0x198] sm:$0xff] }
  0x4c   : > { %5265 = vmatprep.mubr.msk.f32.mxu0 %vm690_vm0, %v256_v16  ;;  %5365 = vmatprep.mubr.msk.f32.mxu1 %vm690_vm0, %v1354_v17  ;;  %v356_v15 = vld [vmem:[%s8293_s2 + $0x190] sm:$0xff]  ;;  %v277_v16 = vld [vmem:[%s8292_s1 + $0x118] sm:$0xff] }
  0x4d   : > { %v1375_v17 = vld [vmem:[%s8292_s1 + $0x318] sm:$0xff] }
  0x4e   : > { %527 = vperm.xlu1 %5707, %v337_v18   ;;  %522 = vperm.xlu0 %5706, %v336_v19   ;;  %v278_v18 = vld [vmem:[%s8292_s1 + $0x120] sm:$0xff] }
  0x4f   : > { %5266 = vmatmul.mubr.msk.f32.gmra.mrb[14].mxu0 %vm690_vm0, %v257_v20  ;;  %5366 = vmatmul.mubr.msk.f32.gmra.mrb[14].mxu1 %vm690_vm0, %v1355_v21  ;;  %v1376_v19 = vld [vmem:[%s8292_s1 + $0x320] sm:$0xff]  ;;  %v359_v20 = vld [vmem:[%s8293_s2 + $0x1a8] sm:$0xff] }
  0x50   : > { %5268 = vmatprep.mubr.msk.f32.mxu0 %vm690_vm0, %v258_v22  ;;  %5368 = vmatprep.mubr.msk.f32.mxu1 %vm690_vm0, %v1356_v23  ;;  %v358_v21 = vld [vmem:[%s8293_s2 + $0x1a0] sm:$0xff]  ;;  %v279_v22 = vld [vmem:[%s8292_s1 + $0x128] sm:$0xff] }
  0x51   : > { %v1377_v23 = vld [vmem:[%s8292_s1 + $0x328] sm:$0xff] }
  0x52   : > { %537 = vperm.xlu1 %5707, %v339_v24   ;;  %532 = vperm.xlu0 %5706, %v338_v25   ;;  %v280_v24 = vld [vmem:[%s8292_s1 + $0x130] sm:$0xff] }
  0x53   : > { %5269 = vmatmul.mubr.msk.f32.gmra.mrb[16].mxu0 %vm690_vm0, %v259_v26  ;;  %5369 = vmatmul.mubr.msk.f32.gmra.mrb[16].mxu1 %vm690_vm0, %v1357_v27  ;;  %v1378_v25 = vld [vmem:[%s8292_s1 + $0x330] sm:$0xff]  ;;  %v361_v26 = vld [vmem:[%s8293_s2 + $0x1b8] sm:$0xff] }
  0x54   : > { %5271 = vmatprep.mubr.msk.f32.mxu0 %vm690_vm0, %v260_v28  ;;  %5371 = vmatprep.mubr.msk.f32.mxu1 %vm690_vm0, %v1358_v29  ;;  %v360_v27 = vld [vmem:[%s8293_s2 + $0x1b0] sm:$0xff]  ;;  %v281_v28 = vld [vmem:[%s8292_s1 + $0x138] sm:$0xff] }
  0x55   : > { %v1379_v29 = vld [vmem:[%s8292_s1 + $0x338] sm:$0xff] }
  0x56   : > { %547 = vperm.xlu1 %5707, %v341_v30   ;;  %542 = vperm.xlu0 %5706, %v340_v31   ;;  %v282_v30 = vld [vmem:[%s8292_s1 + $0x140] sm:$0xff] }
  0x57   : > { %5272 = vmatmul.mubr.msk.f32.gmra.mrb[18].mxu0 %vm690_vm0, %v261_v32  ;;  %5372 = vmatmul.mubr.msk.f32.gmra.mrb[18].mxu1 %vm690_vm0, %v1359_v33  ;;  %v1380_v31 = vld [vmem:[%s8292_s1 + $0x340] sm:$0xff]  ;;  %v363_v32 = vld [vmem:[%s8293_s2 + $0x1c8] sm:$0xff] }
  0x58   : > { %5274 = vmatprep.mubr.msk.f32.mxu0 %vm690_vm0, %v262_v34  ;;  %5374 = vmatprep.mubr.msk.f32.mxu1 %vm690_vm0, %v1360_v35  ;;  %v362_v33 = vld [vmem:[%s8293_s2 + $0x1c0] sm:$0xff]  ;;  %v283_v34 = vld [vmem:[%s8292_s1 + $0x148] sm:$0xff] }
  0x59   : > { %v1381_v35 = vld [vmem:[%s8292_s1 + $0x348] sm:$0xff] }
  0x5a   : > { %557 = vperm.xlu1 %5707, %v343_v36   ;;  %552 = vperm.xlu0 %5706, %v342_v37   ;;  %v284_v36 = vld [vmem:[%s8292_s1 + $0x150] sm:$0xff] }
  0x5b   : > { %5275 = vmatmul.mubr.msk.f32.gmra.mrb[20].mxu0 %vm690_vm0, %v263_v38  ;;  %5375 = vmatmul.mubr.msk.f32.gmra.mrb[20].mxu1 %vm690_vm0, %v1361_v39  ;;  %v1382_v37 = vld [vmem:[%s8292_s1 + $0x350] sm:$0xff]  ;;  %v365_v38 = vld [vmem:[%s8293_s2 + $0x1d8] sm:$0xff] }
  0x5c   : > { %5277 = vmatprep.mubr.msk.f32.mxu0 %vm690_vm0, %v264_v40  ;;  %5377 = vmatprep.mubr.msk.f32.mxu1 %vm690_vm0, %v1362_v41  ;;  %v364_v39 = vld [vmem:[%s8293_s2 + $0x1d0] sm:$0xff]  ;;  %v285_v40 = vld [vmem:[%s8292_s1 + $0x158] sm:$0xff] }
  0x5d   : > { %v1383_v41 = vld [vmem:[%s8292_s1 + $0x358] sm:$0xff] }
  0x5e   : > { %567 = vperm.xlu1 %5707, %v345_v42   ;;  %562 = vperm.xlu0 %5706, %v344_v43   ;;  %v286_v42 = vld [vmem:[%s8292_s1 + $0x160] sm:$0xff] }
  0x5f   : > { %5278 = vmatmul.mubr.msk.f32.gmra.mrb[22].mxu0 %vm690_vm0, %v265_v44  ;;  %5378 = vmatmul.mubr.msk.f32.gmra.mrb[22].mxu1 %vm690_vm0, %v1363_v45  ;;  %v1384_v43 = vld [vmem:[%s8292_s1 + $0x360] sm:$0xff]  ;;  %v367_v44 = vld [vmem:[%s8293_s2 + $0x1e8] sm:$0xff] }
  0x60   : > { %5280 = vmatprep.mubr.msk.f32.mxu0 %vm690_vm0, %v266_v46  ;;  %5380 = vmatprep.mubr.msk.f32.mxu1 %vm690_vm0, %v1364_v47  ;;  %v366_v45 = vld [vmem:[%s8293_s2 + $0x1e0] sm:$0xff]  ;;  %v287_v46 = vld [vmem:[%s8292_s1 + $0x168] sm:$0xff] }
  0x61   : > { %v1385_v47 = vld [vmem:[%s8292_s1 + $0x368] sm:$0xff] }
  0x62   : > { %577 = vperm.xlu1 %5707, %v347_v48   ;;  %572 = vperm.xlu0 %5706, %v346_v49   ;;  %v288_v48 = vld [vmem:[%s8292_s1 + $0x170] sm:$0xff] }
  0x63   : > { %5281 = vmatmul.mubr.msk.f32.gmra.mrb[24].mxu0 %vm690_vm0, %v267_v50  ;;  %5381 = vmatmul.mubr.msk.f32.gmra.mrb[24].mxu1 %vm690_vm0, %v1365_v51  ;;  %v1386_v49 = vld [vmem:[%s8292_s1 + $0x370] sm:$0xff]  ;;  %v369_v50 = vld [vmem:[%s8293_s2 + $0x1f8] sm:$0xff] }
  0x64   : > { %5283 = vmatprep.mubr.msk.f32.mxu0 %vm690_vm0, %v268_v52  ;;  %5383 = vmatprep.mubr.msk.f32.mxu1 %vm690_vm0, %v1366_v53  ;;  %v368_v51 = vld [vmem:[%s8293_s2 + $0x1f0] sm:$0xff]  ;;  %v289_v52 = vld [vmem:[%s8292_s1 + $0x178] sm:$0xff] }
  0x65   : > { %v1387_v53 = vld [vmem:[%s8292_s1 + $0x378] sm:$0xff] }
  0x66   : > { %587 = vperm.xlu1 %5707, %v349_v54   ;;  %582 = vperm.xlu0 %5706, %v348_v55   ;;  %v290_v54 = vld [vmem:[%s8292_s1 + $0x180] sm:$0xff] }
  0x67   : > { %5284 = vmatmul.mubr.msk.f32.gmra.mrb[26].mxu0 %vm690_vm0, %v269_v56  ;;  %5384 = vmatmul.mubr.msk.f32.gmra.mrb[26].mxu1 %vm690_vm0, %v1367_v57  ;;  %v1388_v55 = vld [vmem:[%s8292_s1 + $0x380] sm:$0xff]  ;;  %v1405_v56 = vld [vmem:[%s8293_s2 + $0x208] sm:$0xff] }
  0x68   : > { %5286 = vmatprep.mubr.msk.f32.mxu0 %vm690_vm0, %v270_v58  ;;  %5386 = vmatprep.mubr.msk.f32.mxu1 %vm690_vm0, %v1368_v59  ;;  %v1404_v57 = vld [vmem:[%s8293_s2 + $0x200] sm:$0xff]  ;;  %v291_v58 = vld [vmem:[%s8292_s1 + $0x188] sm:$0xff] }
  0x69   : > { %v1389_v59 = vld [vmem:[%s8292_s1 + $0x388] sm:$0xff] }
  0x6a   : > { %597 = vperm.xlu1 %5707, %v351_v60   ;;  %592 = vperm.xlu0 %5706, %v350_v61  }
  0x6b   : > { %5287 = vmatmul.mubr.msk.f32.gmra.mrb[28].mxu0 %vm690_vm0, %v271_v62  ;;  %5387 = vmatmul.mubr.msk.f32.gmra.mrb[28].mxu1 %vm690_vm0, %v1369_v63  ;;  %v292_v62 = vld [vmem:[%s8292_s1 + $0x190] sm:$0xff] }
  0x6c   : > { %5289 = vmatprep.mubr.msk.f32.mxu0 %vm690_vm0, %v272_v0  ;;  %5389 = vmatprep.mubr.msk.f32.mxu1 %vm690_vm0, %v1370_v1  ;;  %v1390_v63 = vld [vmem:[%s8292_s1 + $0x390] sm:$0xff]  ;;  %v1407_v0 = vld [vmem:[%s8293_s2 + $0x218] sm:$0xff] }
  0x6d   : > { %v1406_v1 = vld [vmem:[%s8293_s2 + $0x210] sm:$0xff] }
  0x6e   : > { %607 = vperm.xlu1 %5707, %v353_v2   ;;  %602 = vperm.xlu0 %5706, %v352_v3   ;;  %v293_v2 = vld [vmem:[%s8292_s1 + $0x198] sm:$0xff] }
  0x6f   : > { %5290 = vmatmul.mubr.msk.f32.gmra.mrb[30].mxu0 %vm690_vm0, %v273_v4  ;;  %5390 = vmatmul.mubr.msk.f32.gmra.mrb[30].mxu1 %vm690_vm0, %v1371_v5  ;;  %v1391_v3 = vld [vmem:[%s8292_s1 + $0x398] sm:$0xff] }
  0x70   : > { %5292 = vmatprep.mubr.msk.f32.mxu0 %vm690_vm0, %v274_v6  ;;  %5392 = vmatprep.mubr.msk.f32.mxu1 %vm690_vm0, %v1372_v7  ;;  %v294_v6 = vld [vmem:[%s8292_s1 + $0x1a0] sm:$0xff] }
  0x71   : > { %v1392_v7 = vld [vmem:[%s8292_s1 + $0x3a0] sm:$0xff] }
  0x72   : > { %617 = vperm.xlu1 %5707, %v355_v8   ;;  %612 = vperm.xlu0 %5706, %v354_v9   ;;  %v1409_v8 = vld [vmem:[%s8293_s2 + $0x228] sm:$0xff]  ;;  %v1408_v9 = vld [vmem:[%s8293_s2 + $0x220] sm:$0xff] }
  0x73   : > { %5293 = vmatmul.mubr.msk.f32.gmra.mrb[32].mxu0 %vm690_vm0, %v275_v10  ;;  %5393 = vmatmul.mubr.msk.f32.gmra.mrb[32].mxu1 %vm690_vm0, %v1373_v11  ;;  %v295_v10 = vld [vmem:[%s8292_s1 + $0x1a8] sm:$0xff] }
  0x74   : > { %5295 = vmatprep.mubr.msk.f32.mxu0 %vm690_vm0, %v276_v12  ;;  %5395 = vmatprep.mubr.msk.f32.mxu1 %vm690_vm0, %v1374_v13  ;;  %v1393_v11 = vld [vmem:[%s8292_s1 + $0x3a8] sm:$0xff] }
  0x76   : > { %627 = vperm.xlu1 %5707, %v357_v14   ;;  %622 = vperm.xlu0 %5706, %v356_v15   ;;  %v296_v14 = vld [vmem:[%s8292_s1 + $0x1b0] sm:$0xff] }
  0x77   : > { %5296 = vmatmul.mubr.msk.f32.gmra.mrb[34].mxu0 %vm690_vm0, %v277_v16  ;;  %5396 = vmatmul.mubr.msk.f32.gmra.mrb[34].mxu1 %vm690_vm0, %v1375_v17  ;;  %v1394_v15 = vld [vmem:[%s8292_s1 + $0x3b0] sm:$0xff]  ;;  %v1411_v16 = vld [vmem:[%s8293_s2 + $0x238] sm:$0xff] }
  0x78   : > { %5298 = vmatprep.mubr.msk.f32.mxu0 %vm690_vm0, %v278_v18  ;;  %5398 = vmatprep.mubr.msk.f32.mxu1 %vm690_vm0, %v1376_v19  ;;  %v1410_v17 = vld [vmem:[%s8293_s2 + $0x230] sm:$0xff]  ;;  %v297_v18 = vld [vmem:[%s8292_s1 + $0x1b8] sm:$0xff] }
  0x79   : > { %v1395_v19 = vld [vmem:[%s8292_s1 + $0x3b8] sm:$0xff] }
  0x7a   : > { %637 = vperm.xlu1 %5707, %v359_v20   ;;  %632 = vperm.xlu0 %5706, %v358_v21  }
  0x7b   : > { %5299 = vmatmul.mubr.msk.f32.gmra.mrb[36].mxu0 %vm690_vm0, %v279_v22  ;;  %5399 = vmatmul.mubr.msk.f32.gmra.mrb[36].mxu1 %vm690_vm0, %v1377_v23  ;;  %v298_v22 = vld [vmem:[%s8292_s1 + $0x1c0] sm:$0xff] }
  0x7c   : > { %5301 = vmatprep.mubr.msk.f32.mxu0 %vm690_vm0, %v280_v24  ;;  %5401 = vmatprep.mubr.msk.f32.mxu1 %vm690_vm0, %v1378_v25  ;;  %v1396_v23 = vld [vmem:[%s8292_s1 + $0x3c0] sm:$0xff]  ;;  %v1413_v24 = vld [vmem:[%s8293_s2 + $0x248] sm:$0xff] }
  0x7d   : > { %v1412_v25 = vld [vmem:[%s8293_s2 + $0x240] sm:$0xff] }
  0x7e   : > { %647 = vperm.xlu1 %5707, %v361_v26   ;;  %642 = vperm.xlu0 %5706, %v360_v27   ;;  %v299_v26 = vld [vmem:[%s8292_s1 + $0x1c8] sm:$0xff] }
  0x7f   : > { %5302 = vmatmul.mubr.msk.f32.gmra.mrb[38].mxu0 %vm690_vm0, %v281_v28  ;;  %5402 = vmatmul.mubr.msk.f32.gmra.mrb[38].mxu1 %vm690_vm0, %v1379_v29  ;;  %v1397_v27 = vld [vmem:[%s8292_s1 + $0x3c8] sm:$0xff] }
  0x80   : > { %5304 = vmatprep.mubr.msk.f32.mxu0 %vm690_vm0, %v282_v30  ;;  %5404 = vmatprep.mubr.msk.f32.mxu1 %vm690_vm0, %v1380_v31  ;;  %v300_v30 = vld [vmem:[%s8292_s1 + $0x1d0] sm:$0xff] }
  0x81   : > { %v1398_v31 = vld [vmem:[%s8292_s1 + $0x3d0] sm:$0xff] }
  0x82   : > { %657 = vperm.xlu1 %5707, %v363_v32   ;;  %652 = vperm.xlu0 %5706, %v362_v33   ;;  %v1415_v32 = vld [vmem:[%s8293_s2 + $0x258] sm:$0xff]  ;;  %v1414_v33 = vld [vmem:[%s8293_s2 + $0x250] sm:$0xff] }
  0x83   : > { %5305 = vmatmul.mubr.msk.f32.gmra.mrb[40].mxu0 %vm690_vm0, %v283_v34  ;;  %5405 = vmatmul.mubr.msk.f32.gmra.mrb[40].mxu1 %vm690_vm0, %v1381_v35  ;;  %v301_v34 = vld [vmem:[%s8292_s1 + $0x1d8] sm:$0xff] }
  0x84   : > { %5307 = vmatprep.mubr.msk.f32.mxu0 %vm690_vm0, %v284_v36  ;;  %5407 = vmatprep.mubr.msk.f32.mxu1 %vm690_vm0, %v1382_v37  ;;  %v1399_v35 = vld [vmem:[%s8292_s1 + $0x3d8] sm:$0xff] }
  0x86   : > { %667 = vperm.xlu1 %5707, %v365_v38   ;;  %662 = vperm.xlu0 %5706, %v364_v39   ;;  %v302_v38 = vld [vmem:[%s8292_s1 + $0x1e0] sm:$0xff] }
  0x87   : > { %5308 = vmatmul.mubr.msk.f32.gmra.mrb[42].mxu0 %vm690_vm0, %v285_v40  ;;  %5408 = vmatmul.mubr.msk.f32.gmra.mrb[42].mxu1 %vm690_vm0, %v1383_v41  ;;  %v1400_v39 = vld [vmem:[%s8292_s1 + $0x3e0] sm:$0xff]  ;;  %v1417_v40 = vld [vmem:[%s8293_s2 + $0x268] sm:$0xff] }
  0x88   : > { %5310 = vmatprep.mubr.msk.f32.mxu0 %vm690_vm0, %v286_v42  ;;  %5410 = vmatprep.mubr.msk.f32.mxu1 %vm690_vm0, %v1384_v43  ;;  %v1416_v41 = vld [vmem:[%s8293_s2 + $0x260] sm:$0xff]  ;;  %v303_v42 = vld [vmem:[%s8292_s1 + $0x1e8] sm:$0xff] }
  0x89   : > { %v1401_v43 = vld [vmem:[%s8292_s1 + $0x3e8] sm:$0xff] }
  0x8a   : > { %677 = vperm.xlu1 %5707, %v367_v44   ;;  %672 = vperm.xlu0 %5706, %v366_v45  }
  0x8b   : > { %5311 = vmatmul.mubr.msk.f32.gmra.mrb[44].mxu0 %vm690_vm0, %v287_v46  ;;  %5411 = vmatmul.mubr.msk.f32.gmra.mrb[44].mxu1 %vm690_vm0, %v1385_v47  ;;  %v304_v46 = vld [vmem:[%s8292_s1 + $0x1f0] sm:$0xff] }
  0x8c   : > { %5313 = vmatprep.mubr.msk.f32.mxu0 %vm690_vm0, %v288_v48  ;;  %5413 = vmatprep.mubr.msk.f32.mxu1 %vm690_vm0, %v1386_v49  ;;  %v1402_v47 = vld [vmem:[%s8292_s1 + $0x3f0] sm:$0xff]  ;;  %v1419_v48 = vld [vmem:[%s8293_s2 + $0x278] sm:$0xff] }
  0x8d   : > { %v1418_v49 = vld [vmem:[%s8293_s2 + $0x270] sm:$0xff] }
  0x8e   : > { %687 = vperm.xlu1 %5707, %v369_v50   ;;  %682 = vperm.xlu0 %5706, %v368_v51   ;;  %v305_v50 = vld [vmem:[%s8292_s1 + $0x1f8] sm:$0xff] }
  0x8f   : > { %5314 = vmatmul.mubr.msk.f32.gmra.mrb[46].mxu0 %vm690_vm0, %v289_v52  ;;  %5414 = vmatmul.mubr.msk.f32.gmra.mrb[46].mxu1 %vm690_vm0, %v1387_v53  ;;  %v1403_v51 = vld [vmem:[%s8292_s1 + $0x3f8] sm:$0xff] }
  0x90   : > { %5316 = vmatprep.mubr.msk.f32.mxu0 %vm690_vm0, %v290_v54  ;;  %5416 = vmatprep.mubr.msk.f32.mxu1 %vm690_vm0, %v1388_v55  ;;  %v2435_v54 = vld [vmem:[%s8292_s1 + $0x400] sm:$0xff]  ;;  %v1421_v55 = vld [vmem:[%s8293_s2 + $0x288] sm:$0xff] }
  0x91   : > { %v6422_v60 = vpop.permute.xlu1 %382  ;;  %v6424_v61 = vpop.permute.xlu0 %372 }
  0x92   : > { %1475 = vperm.xlu1 %5707, %v1405_v56   ;;  %1470 = vperm.xlu0 %5706, %v1404_v57   ;;  %v1420_v56 = vld [vmem:[%s8293_s2 + $0x280] sm:$0xff]  ;;  %v2436_v57 = vld [vmem:[%s8292_s1 + $0x408] sm:$0xff] }
  0x93   : > { %5317 = vmatmul.mubr.msk.f32.gmra.mrb[48].mxu0 %vm690_vm0, %v291_v58  ;;  %5417 = vmatmul.mubr.msk.f32.gmra.mrb[48].mxu1 %vm690_vm0, %v1389_v59 }
  0x94   : > { %5319 = vmatprep.mubr.msk.f32.mxu0 %vm690_vm0, %v292_v62  ;;  %5419 = vmatprep.mubr.msk.f32.mxu1 %vm690_vm0, %v1390_v63  ;;  %v2437_v62 = vld [vmem:[%s8292_s1 + $0x410] sm:$0xff]  ;;  %v1423_v63 = vld [vmem:[%s8293_s2 + $0x298] sm:$0xff] }
  0x95   : > { %v6448_v4 = vpop.permute.xlu1 %387  ;;  %v6450_v5 = vpop.permute.xlu0 %377 }
  0x96   : > { %1485 = vperm.xlu1 %5707, %v1407_v0   ;;  %1480 = vperm.xlu0 %5706, %v1406_v1   ;;  %v1422_v0 = vld [vmem:[%s8293_s2 + $0x290] sm:$0xff]  ;;  %v2438_v1 = vld [vmem:[%s8292_s1 + $0x418] sm:$0xff] }
  0x97   : > { %5320 = vmatmul.mubr.msk.f32.gmra.mrb[50].mxu0 %vm690_vm0, %v293_v2  ;;  %5420 = vmatmul.mubr.msk.f32.gmra.mrb[50].mxu1 %vm690_vm0, %v1391_v3 }
  0x98   : > { %5322 = vmatprep.mubr.msk.f32.mxu0 %vm690_vm0, %v294_v6  ;;  %5422 = vmatprep.mubr.msk.f32.mxu1 %vm690_vm0, %v1392_v7  ;;  %v2439_v6 = vld [vmem:[%s8292_s1 + $0x420] sm:$0xff]  ;;  %v1425_v7 = vld [vmem:[%s8293_s2 + $0x2a8] sm:$0xff] }
  0x99   : > { %v6474_v12 = vpop.permute.xlu1 %397  ;;  %v6476_v13 = vpop.permute.xlu0 %392 }
  0x9a   : > { %1495 = vperm.xlu1 %5707, %v1409_v8   ;;  %1490 = vperm.xlu0 %5706, %v1408_v9   ;;  %v1424_v8 = vld [vmem:[%s8293_s2 + $0x2a0] sm:$0xff]  ;;  %v2440_v9 = vld [vmem:[%s8292_s1 + $0x428] sm:$0xff] }
  0x9b   : > { %5323 = vmatmul.mubr.msk.f32.gmra.mrb[52].mxu0 %vm690_vm0, %v295_v10  ;;  %5423 = vmatmul.mubr.msk.f32.gmra.mrb[52].mxu1 %vm690_vm0, %v1393_v11 }
  0x9c   : > { %5325 = vmatprep.mubr.msk.f32.mxu0 %vm690_vm0, %v296_v14  ;;  %5425 = vmatprep.mubr.msk.f32.mxu1 %vm690_vm0, %v1394_v15  ;;  %v2441_v14 = vld [vmem:[%s8292_s1 + $0x430] sm:$0xff]  ;;  %v1427_v15 = vld [vmem:[%s8293_s2 + $0x2b8] sm:$0xff] }
  0x9d   : > { %v6500_v20 = vpop.permute.xlu1 %407  ;;  %v6502_v21 = vpop.permute.xlu0 %402 }
  0x9e   : > { %1505 = vperm.xlu1 %5707, %v1411_v16   ;;  %1500 = vperm.xlu0 %5706, %v1410_v17   ;;  %v1426_v16 = vld [vmem:[%s8293_s2 + $0x2b0] sm:$0xff]  ;;  %v3530_v17 = vld [vmem:[%s8292_s1 + $0x600] sm:$0xff] }
  0x9f   : > { %5326 = vmatmul.mubr.msk.f32.gmra.mrb[54].mxu0 %vm690_vm0, %v297_v18  ;;  %5426 = vmatmul.mubr.msk.f32.gmra.mrb[54].mxu1 %vm690_vm0, %v1395_v19  ;;  %v2442_v18 = vld [vmem:[%s8292_s1 + $0x438] sm:$0xff]  ;;  %v3531_v19 = vld [vmem:[%s8292_s1 + $0x608] sm:$0xff] }
  0xa0   : > { %5328 = vmatprep.mubr.msk.f32.mxu0 %vm690_vm0, %v298_v22  ;;  %5428 = vmatprep.mubr.msk.f32.mxu1 %vm690_vm0, %v1396_v23 }
  0xa1   : > { %v6526_v28 = vpop.permute.xlu1 %417  ;;  %v6528_v29 = vpop.permute.xlu0 %412 }
  0xa2   : > { %1515 = vperm.xlu1 %5707, %v1413_v24   ;;  %1510 = vperm.xlu0 %5706, %v1412_v25   ;;  %v2443_v24 = vld [vmem:[%s8292_s1 + $0x440] sm:$0xff]  ;;  %v1429_v25 = vld [vmem:[%s8293_s2 + $0x2c8] sm:$0xff] }
  0xa3   : > { %5329 = vmatmul.mubr.msk.f32.gmra.mrb[56].mxu0 %vm690_vm0, %v299_v26  ;;  %5429 = vmatmul.mubr.msk.f32.gmra.mrb[56].mxu1 %vm690_vm0, %v1397_v27  ;;  %v1428_v26 = vld [vmem:[%s8293_s2 + $0x2c0] sm:$0xff]  ;;  %v3532_v27 = vld [vmem:[%s8292_s1 + $0x610] sm:$0xff] }
  0xa4   : > { %5331 = vmatprep.mubr.msk.f32.mxu0 %vm690_vm0, %v300_v30  ;;  %5431 = vmatprep.mubr.msk.f32.mxu1 %vm690_vm0, %v1398_v31  ;;  %v2444_v30 = vld [vmem:[%s8292_s1 + $0x448] sm:$0xff]  ;;  %v3533_v31 = vld [vmem:[%s8292_s1 + $0x618] sm:$0xff] }
  0xa5   : > { %v6552_v36 = vpop.permute.xlu1 %427  ;;  %v6554_v37 = vpop.permute.xlu0 %422 }
  0xa6   : > { %1525 = vperm.xlu1 %5707, %v1415_v32   ;;  %1520 = vperm.xlu0 %5706, %v1414_v33  }
  0xa7   : > { %5332 = vmatmul.mubr.msk.f32.gmra.mrb[58].mxu0 %vm690_vm0, %v301_v34  ;;  %5432 = vmatmul.mubr.msk.f32.gmra.mrb[58].mxu1 %vm690_vm0, %v1399_v35  ;;  %v2445_v34 = vld [vmem:[%s8292_s1 + $0x450] sm:$0xff]  ;;  %v1431_v35 = vld [vmem:[%s8293_s2 + $0x2d8] sm:$0xff] }
  0xa8   : > { %5334 = vmatprep.mubr.msk.f32.mxu0 %vm690_vm0, %v302_v38  ;;  %5434 = vmatprep.mubr.msk.f32.mxu1 %vm690_vm0, %v1400_v39  ;;  %v1430_v38 = vld [vmem:[%s8293_s2 + $0x2d0] sm:$0xff]  ;;  %v3534_v39 = vld [vmem:[%s8292_s1 + $0x620] sm:$0xff] }
  0xa9   : > { %v6578_v44 = vpop.permute.xlu1 %437  ;;  %v6580_v45 = vpop.permute.xlu0 %432 }
  0xaa   : > { %1535 = vperm.xlu1 %5707, %v1417_v40   ;;  %1530 = vperm.xlu0 %5706, %v1416_v41   ;;  %v2446_v40 = vld [vmem:[%s8292_s1 + $0x458] sm:$0xff]  ;;  %v3535_v41 = vld [vmem:[%s8292_s1 + $0x628] sm:$0xff] }
  0xab   : > { %5335 = vmatmul.mubr.msk.f32.gmra.mrb[60].mxu0 %vm690_vm0, %v303_v42  ;;  %5435 = vmatmul.mubr.msk.f32.gmra.mrb[60].mxu1 %vm690_vm0, %v1401_v43 }
  0xac   : > { %5337 = vmatprep.mubr.msk.f32.mxu0 %vm690_vm0, %v304_v46  ;;  %5437 = vmatprep.mubr.msk.f32.mxu1 %vm690_vm0, %v1402_v47  ;;  %v2447_v46 = vld [vmem:[%s8292_s1 + $0x460] sm:$0xff]  ;;  %v1433_v47 = vld [vmem:[%s8293_s2 + $0x2e8] sm:$0xff] }
  0xad   : > { %v6604_v52 = vpop.permute.xlu1 %447  ;;  %v6606_v53 = vpop.permute.xlu0 %442 }
  0xae   : > { %1545 = vperm.xlu1 %5707, %v1419_v48   ;;  %1540 = vperm.xlu0 %5706, %v1418_v49   ;;  %v1432_v48 = vld [vmem:[%s8293_s2 + $0x2e0] sm:$0xff]  ;;  %v3536_v49 = vld [vmem:[%s8292_s1 + $0x630] sm:$0xff] }
  0xaf   : > { %5338 = vmatmul.mubr.msk.f32.gmra.mrb[62].mxu0 %vm690_vm0, %v305_v50  ;;  %5438 = vmatmul.mubr.msk.f32.gmra.mrb[62].mxu1 %vm690_vm0, %v1403_v51  ;;  %v2448_v50 = vld [vmem:[%s8292_s1 + $0x468] sm:$0xff]  ;;  %v3537_v51 = vld [vmem:[%s8292_s1 + $0x638] sm:$0xff] }
  0xb0   : > { %5444 = vmatprep.mubr.msk.f32.mxu0 %vm690_vm0, %v2435_v54  ;;  %5544 = vmatprep.mubr.msk.f32.mxu1 %vm690_vm0, %v3530_v17  ;;  %v3541_v17 = vld [vmem:[%s8292_s1 + $0x658] sm:$0xff] }
  0xb1   : > { %v6623_v58 = vpop.permute.xlu1 %457  ;;  %v6625_v59 = vpop.permute.xlu0 %452 }
  0xb2   : > { %1555 = vperm.xlu1 %5707, %v1421_v55   ;;  %1550 = vperm.xlu0 %5706, %v1420_v56   ;;  %v2449_v56 = vld [vmem:[%s8292_s1 + $0x470] sm:$0xff] }
  0xb3   : > { %5445 = vmatmul.mubr.msk.f32.vlgmr.msra.gmra.mrb[64].mxu0 %vm690_vm0, %v2436_v57  ;;  %5545 = vmatmul.mubr.msk.f32.vlgmr.msra.gmra.mrb[64].mxu1 %vm690_vm0, %v3531_v19  ;;  %v1435_v57 = vld [vmem:[%s8293_s2 + $0x2f8] sm:$0xff] }
  0xb4   : > { %5447 = vmatprep.mubr.msk.f32.mxu0 %vm690_vm0, %v2437_v62  ;;  %5547 = vmatprep.mubr.msk.f32.mxu1 %vm690_vm0, %v3532_v27  ;;  %v1434_v62 = vld [vmem:[%s8293_s2 + $0x2f0] sm:$0xff]  ;;  %v3542_v27 = vld [vmem:[%s8292_s1 + $0x660] sm:$0xff] }
  0xb5   : > { %v6641_v2 = vpop.permute.xlu1 %467  ;;  %v6643_v3 = vpop.permute.xlu0 %462 }
  0xb6   : > { %1565 = vperm.xlu1 %5707, %v1423_v63   ;;  %1560 = vperm.xlu0 %5706, %v1422_v0   ;;  %v3538_v63 = vld [vmem:[%s8292_s1 + $0x640] sm:$0xff]  ;;  %v2450_v0 = vld [vmem:[%s8292_s1 + $0x478] sm:$0xff] }
  0xb7   : > { %5448 = vmatmul.mubr.msk.f32.gmra.mrb[66].mxu0 %vm690_vm0, %v2438_v1  ;;  %5548 = vmatmul.mubr.msk.f32.gmra.mrb[66].mxu1 %vm690_vm0, %v3533_v31  ;;  %v3539_v1 = vld [vmem:[%s8292_s1 + $0x648] sm:$0xff] }
  0xb8   : > { %5450 = vmatprep.mubr.msk.f32.mxu0 %vm690_vm0, %v2439_v6  ;;  %5550 = vmatprep.mubr.msk.f32.mxu1 %vm690_vm0, %v3534_v39  ;;  %v3543_v31 = vld [vmem:[%s8292_s1 + $0x668] sm:$0xff] }
  0xb9   : > { %v6659_v10 = vpop.permute.xlu1 %477  ;;  %v6661_v11 = vpop.permute.xlu0 %472  ;;  %v1441_v39 = vld [vmem:[%s8293_s2 + $0x328] sm:$0xff] }
  0xba   : > { %1575 = vperm.xlu1 %5707, %v1425_v7   ;;  %1570 = vperm.xlu0 %5706, %v1424_v8   ;;  %v2451_v8 = vld [vmem:[%s8292_s1 + $0x480] sm:$0xff] }
  0xbb   : > { %5451 = vmatmul.mubr.msk.f32.gmra.mrb[68].mxu0 %vm690_vm0, %v2440_v9  ;;  %5551 = vmatmul.mubr.msk.f32.gmra.mrb[68].mxu1 %vm690_vm0, %v3535_v41  ;;  %v1437_v9 = vld [vmem:[%s8293_s2 + $0x308] sm:$0xff]  ;;  %v3544_v41 = vld [vmem:[%s8292_s1 + $0x670] sm:$0xff] }
  0xbc   : > { %5453 = vmatprep.mubr.msk.f32.mxu0 %vm690_vm0, %v2441_v14  ;;  %5553 = vmatprep.mubr.msk.f32.mxu1 %vm690_vm0, %v3536_v49  ;;  %v1436_v14 = vld [vmem:[%s8293_s2 + $0x300] sm:$0xff] }
  0xbd   : > { %v6684_v22 = vpop.permute.xlu1 %487  ;;  %v6686_v23 = vpop.permute.xlu0 %482 }
  0xbe   : > { %1585 = vperm.xlu1 %5707, %v1427_v15   ;;  %1580 = vperm.xlu0 %5706, %v1426_v16   ;;  %v3540_v15 = vld [vmem:[%s8292_s1 + $0x650] sm:$0xff]  ;;  %v2452_v16 = vld [vmem:[%s8292_s1 + $0x488] sm:$0xff] }
  0xbf   : > { %5454 = vmatmul.mubr.msk.f32.gmra.mrb[70].mxu0 %vm690_vm0, %v2442_v18  ;;  %5554 = vmatmul.mubr.msk.f32.gmra.mrb[70].mxu1 %vm690_vm0, %v3537_v51  ;;  %v1443_v51 = vld [vmem:[%s8293_s2 + $0x338] sm:$0xff] }
  0xc0   : > { %5456 = vmatprep.mubr.msk.f32.mxu0 %vm690_vm0, %v2443_v24  ;;  %5556 = vmatprep.mubr.msk.f32.mxu1 %vm690_vm0, %v3538_v63  ;;  %v2453_v24 = vld [vmem:[%s8292_s1 + $0x490] sm:$0xff]  ;;  %v3547_v63 = vld [vmem:[%s8292_s1 + $0x688] sm:$0xff] }
  0xc1   : > { %v6710_v32 = vpop.permute.xlu1 %497  ;;  %v6712_v33 = vpop.permute.xlu0 %492 }
  0xc2   : > { %1595 = vperm.xlu1 %5707, %v1429_v25   ;;  %1590 = vperm.xlu0 %5706, %v1428_v26   ;;  %v1439_v25 = vld [vmem:[%s8293_s2 + $0x318] sm:$0xff]  ;;  %v1438_v26 = vld [vmem:[%s8293_s2 + $0x310] sm:$0xff] }
  0xc3   : > { %5457 = vmatmul.mubr.msk.f32.gmra.mrb[72].mxu0 %vm690_vm0, %v2444_v30  ;;  %5557 = vmatmul.mubr.msk.f32.gmra.mrb[72].mxu1 %vm690_vm0, %v3539_v1  ;;  %v2454_v30 = vld [vmem:[%s8292_s1 + $0x498] sm:$0xff] }
  0xc4   : > { %5459 = vmatprep.mubr.msk.f32.mxu0 %vm690_vm0, %v2445_v34  ;;  %5559 = vmatprep.mubr.msk.f32.mxu1 %vm690_vm0, %v3540_v15  ;;  %v3548_v15 = vld [vmem:[%s8292_s1 + $0x690] sm:$0xff] }
  0xc5   : > { %v6736_v42 = vpop.permute.xlu1 %507  ;;  %v6738_v43 = vpop.permute.xlu0 %502 }
  0xc6   : > { %1605 = vperm.xlu1 %5707, %v1431_v35   ;;  %1600 = vperm.xlu0 %5706, %v1430_v38   ;;  %v2455_v38 = vld [vmem:[%s8292_s1 + $0x4a0] sm:$0xff] }
  0xc7   : > { %5460 = vmatmul.mubr.msk.f32.gmra.mrb[74].mxu0 %vm690_vm0, %v2446_v40  ;;  %5560 = vmatmul.mubr.msk.f32.gmra.mrb[74].mxu1 %vm690_vm0, %v3541_v17  ;;  %v1440_v40 = vld [vmem:[%s8293_s2 + $0x320] sm:$0xff]  ;;  %v3549_v17 = vld [vmem:[%s8292_s1 + $0x698] sm:$0xff] }
  0xc8   : > { %5462 = vmatprep.mubr.msk.f32.mxu0 %vm690_vm0, %v2447_v46  ;;  %5562 = vmatprep.mubr.msk.f32.mxu1 %vm690_vm0, %v3542_v27  ;;  %v2456_v46 = vld [vmem:[%s8292_s1 + $0x4a8] sm:$0xff]  ;;  %v1447_v27 = vld [vmem:[%s8293_s2 + $0x358] sm:$0xff] }
  0xc9   : > { %v6762_v54 = vpop.permute.xlu1 %517  ;;  %v6764_v55 = vpop.permute.xlu0 %512 }
  0xca   : > { %1615 = vperm.xlu1 %5707, %v1433_v47   ;;  %1610 = vperm.xlu0 %5706, %v1432_v48   ;;  %v3545_v47 = vld [vmem:[%s8292_s1 + $0x678] sm:$0xff] }
  0xcb   : > { %5463 = vmatmul.mubr.msk.f32.gmra.mrb[76].mxu0 %vm690_vm0, %v2448_v50  ;;  %5563 = vmatmul.mubr.msk.f32.gmra.mrb[76].mxu1 %vm690_vm0, %v3543_v31  ;;  %v2457_v50 = vld [vmem:[%s8292_s1 + $0x4b0] sm:$0xff]  ;;  %v3550_v31 = vld [vmem:[%s8292_s1 + $0x6a0] sm:$0xff] }
  0xcc   : > { %5465 = vmatprep.mubr.msk.f32.mxu0 %vm690_vm0, %v2449_v56  ;;  %5565 = vmatprep.mubr.msk.f32.mxu1 %vm690_vm0, %v3544_v41  ;;  %v1442_v56 = vld [vmem:[%s8293_s2 + $0x330] sm:$0xff] }
  0xcd   : > { %v6788_v6 = vpop.permute.xlu1 %527  ;;  %v6790_v7 = vpop.permute.xlu0 %522 }
  0xce   : > { %1625 = vperm.xlu1 %5707, %v1435_v57   ;;  %1620 = vperm.xlu0 %5706, %v1434_v62   ;;  %v3546_v57 = vld [vmem:[%s8292_s1 + $0x680] sm:$0xff]  ;;  %v2458_v62 = vld [vmem:[%s8292_s1 + $0x4b8] sm:$0xff] }
  0xcf   : > { %5466 = vmatmul.mubr.msk.f32.gmra.mrb[78].mxu0 %vm690_vm0, %v2450_v0  ;;  %5566 = vmatmul.mubr.msk.f32.gmra.mrb[78].mxu1 %vm690_vm0, %v3545_v47  ;;  %v1449_v47 = vld [vmem:[%s8293_s2 + $0x368] sm:$0xff] }
  0xd0   : > { %5468 = vmatprep.mubr.msk.f32.mxu0 %vm690_vm0, %v2451_v8  ;;  %5568 = vmatprep.mubr.msk.f32.mxu1 %vm690_vm0, %v3546_v57  ;;  %v2459_v8 = vld [vmem:[%s8292_s1 + $0x4c0] sm:$0xff]  ;;  %v3553_v57 = vld [vmem:[%s8292_s1 + $0x6b8] sm:$0xff] }
  0xd1   : > { %v6814_v18 = vpop.permute.xlu1 %537  ;;  %v6816_v19 = vpop.permute.xlu0 %532 }
  0xd2   : > { %1635 = vperm.xlu1 %5707, %v1437_v9   ;;  %1630 = vperm.xlu0 %5706, %v1436_v14   ;;  %v1445_v9 = vld [vmem:[%s8293_s2 + $0x348] sm:$0xff]  ;;  %v1444_v14 = vld [vmem:[%s8293_s2 + $0x340] sm:$0xff] }
  0xd3   : > { %5469 = vmatmul.mubr.msk.f32.gmra.mrb[80].mxu0 %vm690_vm0, %v2452_v16  ;;  %5569 = vmatmul.mubr.msk.f32.gmra.mrb[80].mxu1 %vm690_vm0, %v3547_v63  ;;  %v2460_v16 = vld [vmem:[%s8292_s1 + $0x4c8] sm:$0xff] }
  0xd4   : > { %5471 = vmatprep.mubr.msk.f32.mxu0 %vm690_vm0, %v2453_v24  ;;  %5571 = vmatprep.mubr.msk.f32.mxu1 %vm690_vm0, %v3548_v15  ;;  %v3554_v15 = vld [vmem:[%s8292_s1 + $0x6c0] sm:$0xff] }
  0xd5   : > { %v6840_v34 = vpop.permute.xlu1 %547  ;;  %v6842_v35 = vpop.permute.xlu0 %542 }
  0xd6   : > { %1645 = vperm.xlu1 %5707, %v1439_v25   ;;  %1640 = vperm.xlu0 %5706, %v1438_v26   ;;  %v2461_v26 = vld [vmem:[%s8292_s1 + $0x4d0] sm:$0xff] }
  0xd7   : > { %5472 = vmatmul.mubr.msk.f32.gmra.mrb[82].mxu0 %vm690_vm0, %v2454_v30  ;;  %5572 = vmatmul.mubr.msk.f32.gmra.mrb[82].mxu1 %vm690_vm0, %v3549_v17  ;;  %v1446_v30 = vld [vmem:[%s8293_s2 + $0x350] sm:$0xff]  ;;  %v3555_v17 = vld [vmem:[%s8292_s1 + $0x6c8] sm:$0xff] }
  0xd8   : > { %5474 = vmatprep.mubr.msk.f32.mxu0 %vm690_vm0, %v2455_v38  ;;  %v2462_v38 = vld [vmem:[%s8292_s1 + $0x4d8] sm:$0xff]  ;;  %5574 = vmatprep.mubr.msk.f32.mxu1 %vm690_vm0, %v3550_v31  ;;  %v1453_v31 = vld [vmem:[%s8293_s2 + $0x388] sm:$0xff] }
  0xd9   : > { %v6866_v48 = vpop.permute.xlu1 %557  ;;  %v6868_v49 = vpop.permute.xlu0 %552 }
  0xda   : > { %1655 = vperm.xlu1 %5707, %v1441_v39   ;;  %1650 = vperm.xlu0 %5706, %v1440_v40   ;;  %v3551_v39 = vld [vmem:[%s8292_s1 + $0x6a8] sm:$0xff] }
  0xdb   : > { %5475 = vmatmul.mubr.msk.f32.gmra.mrb[84].mxu0 %vm690_vm0, %v2456_v46  ;;  %v2463_v46 = vld [vmem:[%s8292_s1 + $0x4e0] sm:$0xff]  ;;  %5575 = vmatmul.mubr.msk.f32.gmra.mrb[84].mxu1 %vm690_vm0, %v3551_v39  ;;  %v3556_v39 = vld [vmem:[%s8292_s1 + $0x6d0] sm:$0xff] }
  0xdc   : > { %5477 = vmatprep.mubr.msk.f32.mxu0 %vm690_vm0, %v2457_v50  ;;  %v1448_v50 = vld [vmem:[%s8293_s2 + $0x360] sm:$0xff] }
  0xdd   : > { %v6892_v0 = vpop.permute.xlu1 %567  ;;  %v6894_v1 = vpop.permute.xlu0 %562 }
  0xde   : > { %1665 = vperm.xlu1 %5707, %v1443_v51   ;;  %1660 = vperm.xlu0 %5706, %v1442_v56   ;;  %v3552_v51 = vld [vmem:[%s8292_s1 + $0x6b0] sm:$0xff]  ;;  %v2464_v56 = vld [vmem:[%s8292_s1 + $0x4e8] sm:$0xff] }
  0xdf   : > { %5478 = vmatmul.mubr.msk.f32.gmra.mrb[86].mxu0 %vm690_vm0, %v2458_v62  ;;  %5577 = vmatprep.mubr.msk.f32.mxu1 %vm690_vm0, %v3552_v51 }
  0xe0   : > { %5480 = vmatprep.mubr.msk.f32.mxu0 %vm690_vm0, %v2459_v8  ;;  %v2465_v8 = vld [vmem:[%s8292_s1 + $0x4f0] sm:$0xff]  ;;  %5578 = vmatmul.mubr.msk.f32.gmra.mrb[86].mxu1 %vm690_vm0, %v3553_v57  ;;  %v1455_v57 = vld [vmem:[%s8293_s2 + $0x398] sm:$0xff] }
  0xe1   : > { %v6918_v24 = vpop.permute.xlu1 %577  ;;  %v6920_v25 = vpop.permute.xlu0 %572  ;;  %5580 = vmatprep.mubr.msk.f32.mxu1 %vm690_vm0, %v3554_v15  ;;  %v3559_v15 = vld [vmem:[%s8292_s1 + $0x6e8] sm:$0xff] }
  0xe2   : > { %1675 = vperm.xlu1 %5707, %v1445_v9   ;;  %1670 = vperm.xlu0 %5706, %v1444_v14   ;;  %v1451_v9 = vld [vmem:[%s8293_s2 + $0x378] sm:$0xff]  ;;  %v1450_v14 = vld [vmem:[%s8293_s2 + $0x370] sm:$0xff] }
  0xe3   : > { %5481 = vmatmul.mubr.msk.f32.gmra.mrb[88].mxu0 %vm690_vm0, %v2460_v16  ;;  %v2466_v16 = vld [vmem:[%s8292_s1 + $0x4f8] sm:$0xff] }
  0xe4   : > { %5483 = vmatprep.mubr.msk.f32.mxu0 %vm690_vm0, %v2461_v26  ;;  %5581 = vmatmul.mubr.msk.f32.gmra.mrb[88].mxu1 %vm690_vm0, %v3555_v17 }
  0xe5   : > { %v6944_v40 = vpop.permute.xlu1 %587  ;;  %v6946_v41 = vpop.permute.xlu0 %582  ;;  %5583 = vmatprep.mubr.msk.f32.mxu1 %vm690_vm0, %v3556_v39  ;;  %v3560_v39 = vld [vmem:[%s8292_s1 + $0x6f0] sm:$0xff] }
  0xe6   : > { %8297 = vst [vmem:[#allocation2_spill] sm:$0xff] %v6944_v40  ;;  %8298 = vst [vmem:[#allocation3_spill] sm:$0xff] %v6946_v41  ;;  %1685 = vperm.xlu1 %5707, %v1447_v27   ;;  %1680 = vperm.xlu0 %5706, %v1446_v30   ;;  %v2467_v30 = vld [vmem:[%s8292_s1 + $0x500] sm:$0xff] }
  0xe7   : > { %5484 = vmatmul.mubr.msk.f32.gmra.mrb[90].mxu0 %vm690_vm0, %v2462_v38  ;;  %v1452_v38 = vld [vmem:[%s8293_s2 + $0x380] sm:$0xff] }
  0xe8   : > { %5486 = vmatprep.mubr.msk.f32.mxu0 %vm690_vm0, %v2463_v46  ;;  %v2468_v46 = vld [vmem:[%s8292_s1 + $0x508] sm:$0xff] }
  0xe9   : > { %v6970_v62 = vpop.permute.xlu1 %597  ;;  %v6972_v63 = vpop.permute.xlu0 %592 }
  0xea   : > { %8299 = vst [vmem:[#allocation4_spill] sm:$0xff] %v6970_v62  ;;  %8300 = vst [vmem:[#allocation5_spill] sm:$0xff] %v6972_v63  ;;  %1695 = vperm.xlu1 %5707, %v1449_v47   ;;  %1690 = vperm.xlu0 %5706, %v1448_v50   ;;  %v3557_v47 = vld [vmem:[%s8292_s1 + $0x6d8] sm:$0xff] }
  0xeb   : > { %5487 = vmatmul.mubr.msk.f32.gmra.mrb[92].mxu0 %vm690_vm0, %v2464_v56  ;;  %v2469_v56 = vld [vmem:[%s8292_s1 + $0x510] sm:$0xff]  ;;  %5584 = vmatmul.mubr.msk.f32.gmra.mrb[90].mxu1 %vm690_vm0, %v3557_v47  ;;  %v3561_v47 = vld [vmem:[%s8292_s1 + $0x6f8] sm:$0xff] }
  0xec   : > { %5489 = vmatprep.mubr.msk.f32.mxu0 %vm690_vm0, %v2465_v8  ;;  %v1454_v8 = vld [vmem:[%s8293_s2 + $0x390] sm:$0xff] }
  0xed   : > { %v6996_v26 = vpop.permute.xlu1 %607  ;;  %v6998_v27 = vpop.permute.xlu0 %602 }
  0xee   : > { %8301 = vst [vmem:[#allocation6_spill] sm:$0xff] %v6996_v26  ;;  %8302 = vst [vmem:[#allocation7_spill] sm:$0xff] %v6998_v27  ;;  %1705 = vperm.xlu1 %5707, %v1451_v9   ;;  %1700 = vperm.xlu0 %5706, %v1450_v14   ;;  %v3558_v9 = vld [vmem:[%s8292_s1 + $0x6e0] sm:$0xff]  ;;  %v2470_v14 = vld [vmem:[%s8292_s1 + $0x518] sm:$0xff] }
  0xef   : > { %5490 = vmatmul.mubr.msk.f32.gmra.mrb[94].mxu0 %vm690_vm0, %v2466_v16  ;;  %5586 = vmatprep.mubr.msk.f32.mxu1 %vm690_vm0, %v3558_v9  ;;  %v1459_v9 = vld [vmem:[%s8293_s2 + $0x3b8] sm:$0xff] }
  0xf0   : > { %5492 = vmatprep.mubr.msk.f32.mxu0 %vm690_vm0, %v2467_v30  ;;  %v2471_v30 = vld [vmem:[%s8292_s1 + $0x520] sm:$0xff]  ;;  %5587 = vmatmul.mubr.msk.f32.gmra.mrb[92].mxu1 %vm690_vm0, %v3559_v15 }
  0xf1   : > { %v7022_v50 = vpop.permute.xlu1 %617  ;;  %v7024_v51 = vpop.permute.xlu0 %612  ;;  %5589 = vmatprep.mubr.msk.f32.mxu1 %vm690_vm0, %v3560_v39  ;;  %v3562_v15 = vld [vmem:[%s8292_s1 + $0x700] sm:$0xff] }
  0xf2   : > { %8303 = vst [vmem:[#allocation8_spill] sm:$0xff] %v7022_v50  ;;  %8304 = vst [vmem:[#allocation9_spill] sm:$0xff] %v7024_v51  ;;  %1715 = vperm.xlu1 %5707, %v1453_v31   ;;  %1710 = vperm.xlu0 %5706, %v1452_v38   ;;  %v1457_v31 = vld [vmem:[%s8293_s2 + $0x3a8] sm:$0xff]  ;;  %v1456_v38 = vld [vmem:[%s8293_s2 + $0x3a0] sm:$0xff] }
  0xf3   : > { %5493 = vmatmul.mubr.msk.f32.gmra.mrb[96].mxu0 %vm690_vm0, %v2468_v46  ;;  %v2472_v46 = vld [vmem:[%s8292_s1 + $0x528] sm:$0xff]  ;;  %v1467_v51 = vld [vmem:[%s8293_s2 + $0x3f8] sm:$0xff] }
  0xf4   : > { %5495 = vmatprep.mubr.msk.f32.mxu0 %vm690_vm0, %v2469_v56  ;;  %5590 = vmatmul.mubr.msk.f32.gmra.mrb[94].mxu1 %vm690_vm0, %v3561_v47  ;;  %v1461_v47 = vld [vmem:[%s8293_s2 + $0x3c8] sm:$0xff] }
  0xf5   : > { %v7048_v16 = vpop.permute.xlu1 %627  ;;  %v7050_v17 = vpop.permute.xlu0 %622  ;;  %5592 = vmatprep.mubr.msk.f32.mxu1 %vm690_vm0, %v3562_v15  ;;  %v3564_v15 = vld [vmem:[%s8292_s1 + $0x710] sm:$0xff] }
  0xf6   : > { %8305 = vst [vmem:[#allocation10_spill] sm:$0xff] %v7048_v16  ;;  %8306 = vst [vmem:[#allocation11_spill] sm:$0xff] %v7050_v17  ;;  %1725 = vperm.xlu1 %5707, %v1455_v57   ;;  %1720 = vperm.xlu0 %5706, %v1454_v8   ;;  %v2473_v8 = vld [vmem:[%s8292_s1 + $0x530] sm:$0xff] }
  0xf7   : > { %5496 = vmatmul.mubr.msk.f32.gmra.mrb[98].mxu0 %vm690_vm0, %v2470_v14  ;;  %v1458_v14 = vld [vmem:[%s8293_s2 + $0x3b0] sm:$0xff] }
  0xf8   : > { %5498 = vmatprep.mubr.msk.f32.mxu0 %vm690_vm0, %v2471_v30  ;;  %v2474_v30 = vld [vmem:[%s8292_s1 + $0x538] sm:$0xff] }
  0xf9   : > { %v7074_v56 = vpop.permute.xlu1 %637  ;;  %v7076_v57 = vpop.permute.xlu0 %632 }
  0xfa   : > { %8307 = vst [vmem:[#allocation12_spill] sm:$0xff] %v7074_v56  ;;  %8308 = vst [vmem:[#allocation13_spill] sm:$0xff] %v7076_v57  ;;  %1735 = vperm.xlu1 %5707, %v1457_v31   ;;  %1730 = vperm.xlu0 %5706, %v1456_v38   ;;  %v3563_v31 = vld [vmem:[%s8292_s1 + $0x708] sm:$0xff] }
  0xfb   : > { %5499 = vmatmul.mubr.msk.f32.gmra.mrb[100].mxu0 %vm690_vm0, %v2472_v46  ;;  %v2475_v46 = vld [vmem:[%s8292_s1 + $0x540] sm:$0xff]  ;;  %5593 = vmatmul.mubr.msk.f32.gmra.mrb[96].mxu1 %vm690_vm0, %v3563_v31  ;;  %v1465_v57 = vld [vmem:[%s8293_s2 + $0x3e8] sm:$0xff] }
  0xfc   : > { %5501 = vmatprep.mubr.msk.f32.mxu0 %vm690_vm0, %v2473_v8  ;;  %v1460_v8 = vld [vmem:[%s8293_s2 + $0x3c0] sm:$0xff]  ;;  %5595 = vmatprep.mubr.msk.f32.mxu1 %vm690_vm0, %v3564_v15  ;;  %v1462_v15 = vld [vmem:[%s8293_s2 + $0x3d0] sm:$0xff] }
  0xfd   : > { %v7100_v38 = vpop.permute.xlu1 %647  ;;  %v7102_v39 = vpop.permute.xlu0 %642 }
  0xfe   : > { %8309 = vst [vmem:[#allocation14_spill] sm:$0xff] %v7100_v38  ;;  %8310 = vst [vmem:[#allocation15_spill] sm:$0xff] %v7102_v39  ;;  %1745 = vperm.xlu1 %5707, %v1459_v9   ;;  %1740 = vperm.xlu0 %5706, %v1458_v14   ;;  %v2476_v9 = vld [vmem:[%s8292_s1 + $0x548] sm:$0xff]  ;;  %v3565_v14 = vld [vmem:[%s8292_s1 + $0x718] sm:$0xff] }
  0xff   : > { %5502 = vmatmul.mubr.msk.f32.gmra.mrb[102].mxu0 %vm690_vm0, %v2474_v30  ;;  %v2477_v30 = vld [vmem:[%s8292_s1 + $0x550] sm:$0xff]  ;;  %5596 = vmatmul.mubr.msk.f32.gmra.mrb[98].mxu1 %vm690_vm0, %v3565_v14 }
 0x100   : > { %5504 = vmatprep.mubr.msk.f32.mxu0 %vm690_vm0, %v2475_v46  ;;  %v1463_v46 = vld [vmem:[%s8293_s2 + $0x3d8] sm:$0xff] }
 0x101   : > { %v7126_v31 = vpop.permute.xlu1 %657  ;;  %v7128_v39 = vpop.permute.xlu0 %652 }
 0x102   : > { %8311 = vst [vmem:[#allocation16_spill] sm:$0xff] %v7126_v31  ;;  %8312 = vst [vmem:[#allocation17_spill] sm:$0xff] %v7128_v39  ;;  %1755 = vperm.xlu1 %5707, %v1461_v47   ;;  %1750 = vperm.xlu0 %5706, %v1460_v8   ;;  %v3566_v39 = vld [vmem:[%s8292_s1 + $0x720] sm:$0xff]  ;;  %v2478_v47 = vld [vmem:[%s8292_s1 + $0x558] sm:$0xff] }
 0x103   : > { %5505 = vmatmul.mubr.msk.f32.gmra.mrb[104].mxu0 %vm690_vm0, %v2476_v9  ;;  %5598 = vmatprep.mubr.msk.f32.mxu1 %vm690_vm0, %v3566_v39  ;;  %v3567_v8 = vld [vmem:[%s8292_s1 + $0x728] sm:$0xff]  ;;  %v2479_v9 = vld [vmem:[%s8292_s1 + $0x560] sm:$0xff] }
 0x104   : > { %5507 = vmatprep.mubr.msk.f32.mxu0 %vm690_vm0, %v2477_v30  ;;  %5599 = vmatmul.mubr.msk.f32.gmra.mrb[100].mxu1 %vm690_vm0, %v3567_v8  ;;  %v3569_v8 = vld [vmem:[%s8292_s1 + $0x738] sm:$0xff] }
 0x105   : > { %v7152_v14 = vpop.permute.xlu1 %667  ;;  %v7154_v31 = vpop.permute.xlu0 %662 }
 0x106   : > { %8313 = vst [vmem:[#allocation18_spill] sm:$0xff] %v7152_v14  ;;  %8314 = vst [vmem:[#allocation19_spill] sm:$0xff] %v7154_v31  ;;  %v5246_v30 = vpop.f32.mrb[0].mxu0  ;;  %1765 = vperm.xlu1 %5707, %v1463_v46   ;;  %1760 = vperm.xlu0 %5706, %v1462_v15   ;;  %v7160_v38 = vpop.f32.mrb[0].mxu1  ;;  %v1464_v31 = vld [vmem:[%s8293_s2 + $0x3e0] sm:$0xff]  ;;  %v3568_v46 = vld [vmem:[%s8292_s1 + $0x730] sm:$0xff] }
 0x107   : > { %v952_v39 = vpop.f32.mrb[1].mxu0  ;;  %v7168_v14 = vpop.f32.mrb[1].mxu1  ;;  %5508 = vmatmul.mubr.msk.f32.gmra.mrb[106].mxu0 %vm690_vm0, %v2478_v47  ;;  %v2480_v15 = vld [vmem:[%s8292_s1 + $0x568] sm:$0xff]  ;;  %5601 = vmatprep.mubr.msk.f32.mxu1 %vm690_vm0, %v3568_v46  ;;  %v2481_v47 = vld [vmem:[%s8292_s1 + $0x570] sm:$0xff] }
 0x108   : > { %5510 = vmatprep.mubr.msk.f32.mxu0 %vm690_vm0, %v2479_v9  ;;  %5602 = vmatmul.mubr.msk.f32.gmra.mrb[102].mxu1 %vm690_vm0, %v3569_v8  ;;  %v3571_v8 = vld [vmem:[%s8292_s1 + $0x748] sm:$0xff] }
 0x109   : > { %v7182_v56 = vpop.permute.xlu1 %677  ;;  %v7184_v17 = vpop.permute.xlu0 %672 }
 0x10a   : > { %8315 = vst [vmem:[#allocation20_spill] sm:$0xff] %v7182_v56  ;;  %8316 = vst [vmem:[#allocation21_spill] sm:$0xff] %v7184_v17  ;;  %v5249_v9 = vpop.f32.mrb[2].mxu0  ;;  %1775 = vperm.xlu1 %5707, %v1465_v57   ;;  %1770 = vperm.xlu0 %5706, %v1464_v31   ;;  %v7190_v16 = vpop.f32.mrb[2].mxu1  ;;  %v1466_v17 = vld [vmem:[%s8293_s2 + $0x3f0] sm:$0xff]  ;;  %v3570_v57 = vld [vmem:[%s8292_s1 + $0x740] sm:$0xff] }
 0x10b   : > { %v962_v46 = vpop.f32.mrb[3].mxu0  ;;  %v7198_v56 = vpop.f32.mrb[3].mxu1  ;;  %5511 = vmatmul.mubr.msk.f32.gmra.mrb[108].mxu0 %vm690_vm0, %v2480_v15  ;;  %v2482_v31 = vld [vmem:[%s8292_s1 + $0x578] sm:$0xff]  ;;  %5604 = vmatprep.mubr.msk.f32.mxu1 %vm690_vm0, %v3570_v57  ;;  %v2483_v15 = vld [vmem:[%s8292_s1 + $0x580] sm:$0xff]  ;;  %v7223_v57 = vadd.f32 %v5246_v30, %v6450_v5  ;;  %v3572_v5 = vld [vmem:[%s8292_s1 + $0x750] sm:$0xff] }
 0x10c   : > { %5513 = vmatprep.mubr.msk.f32.mxu0 %vm690_vm0, %v2481_v47  ;;  %5605 = vmatmul.mubr.msk.f32.gmra.mrb[104].mxu1 %vm690_vm0, %v3571_v8  ;;  %v3573_v30 = vld [vmem:[%s8292_s1 + $0x758] sm:$0xff] }
 0x10d   : > { %v7212_v50 = vpop.permute.xlu1 %687  ;;  %v7214_v27 = vpop.permute.xlu0 %682  ;;  %5607 = vmatprep.mubr.msk.f32.mxu1 %vm690_vm0, %v3572_v5 }
 0x10e   : > { %8317 = vst [vmem:[#allocation22_spill] sm:$0xff] %v7212_v50  ;;  %8318 = vst [vmem:[#allocation23_spill] sm:$0xff] %v7214_v27  ;;  %v5252_v47 = vpop.f32.mrb[4].mxu0  ;;  %1785 = vperm.xlu1 %5707, %v1467_v51   ;;  %1780 = vperm.xlu0 %5706, %v1466_v17   ;;  %v7220_v26 = vpop.f32.mrb[4].mxu1  ;;  %v2500_v27 = vld [vmem:[%s8293_s2 + $0x408] sm:$0xff]  ;;  %v2499_v50 = vld [vmem:[%s8293_s2 + $0x400] sm:$0xff]  ;;  %v953_v51 = vadd.f32 %v952_v39, %v6424_v61 }
 0x10f   : > { %v978_v63 = vadd.f32 %v5252_v47, %v6474_v12  ;;  %v972_v62 = vpop.f32.mrb[5].mxu0  ;;  %v7232_v8 = vpop.f32.mrb[5].mxu1  ;;  %5514 = vmatmul.mubr.msk.f32.gmra.mrb[110].mxu0 %vm690_vm0, %v2482_v31  ;;  %v2484_v17 = vld [vmem:[%s8292_s1 + $0x588] sm:$0xff]  ;;  %v2485_v61 = vld [vmem:[%s8292_s1 + $0x590] sm:$0xff] }
 0x110   : > { %v973_v12 = vadd.f32 %v972_v62, %v6476_v13  ;;  %5516 = vmatprep.mubr.msk.f32.mxu0 %vm690_vm0, %v2483_v15  ;;  %5608 = vmatmul.mubr.msk.f32.gmra.mrb[106].mxu1 %vm690_vm0, %v3573_v30  ;;  %v7256_v15 = vadd.f32 %v5249_v9, %v6448_v4  ;;  %v3574_v4 = vld [vmem:[%s8292_s1 + $0x760] sm:$0xff]  ;;  %v3575_v9 = vld [vmem:[%s8292_s1 + $0x768] sm:$0xff] }
 0x111   : > { %v1272_v31 = vmax.f32 %v7223_v57, %v978_v63  ;;  %v1476_v47 = vpop.permute.xlu1 %1475  ;;  %v1471_v41 = vpop.permute.xlu0 %1470  ;;  %v2502_v57 = vld [vmem:[%s8293_s2 + $0x418] sm:$0xff]  ;;  %5610 = vmatprep.mubr.msk.f32.mxu1 %vm690_vm0, %v3574_v4 }
 0x112   : > { %v1271_v13 = vmax.f32 %v953_v51, %v973_v12  ;;  %v5255_v62 = vpop.f32.mrb[6].mxu0  ;;  %2570 = vperm.xlu1 %5707, %v2500_v27   ;;  %2565 = vperm.xlu0 %5706, %v2499_v50   ;;  %v7253_v39 = vpop.f32.mrb[6].mxu1  ;;  %v2501_v51 = vld [vmem:[%s8293_s2 + $0x410] sm:$0xff]  ;;  %v2486_v50 = vld [vmem:[%s8292_s1 + $0x598] sm:$0xff] }
 0x113   : > { %v7259_v5 = vadd.f32 %v5255_v62, %v6500_v20  ;;  %v982_v63 = vpop.f32.mrb[7].mxu0  ;;  %v7267_v12 = vpop.f32.mrb[7].mxu1  ;;  %5517 = vmatmul.mubr.msk.f32.gmra.mrb[112].mxu0 %vm690_vm0, %v2484_v17  ;;  %v7274_v20 = vadd.f32 %v962_v46, %v6422_v60 }
 0x114   : > { %v7277_v27 = vadd.f32 %v982_v63, %v6502_v21  ;;  %5519 = vmatprep.mubr.msk.f32.mxu0 %vm690_vm0, %v2485_v61  ;;  %v2487_v21 = vld [vmem:[%s8292_s1 + $0x5a0] sm:$0xff]  ;;  %5611 = vmatmul.mubr.msk.f32.gmra.mrb[108].mxu1 %vm690_vm0, %v3575_v9 }
 0x115   : > { %v1274_v17 = vmax.f32 %v7256_v15, %v7259_v5  ;;  %v1486_v60 = vpop.permute.xlu1 %1485  ;;  %v1481_v46 = vpop.permute.xlu0 %1480  ;;  %v2504_v15 = vld [vmem:[%s8293_s2 + $0x428] sm:$0xff]  ;;  %v2503_v5 = vld [vmem:[%s8293_s2 + $0x420] sm:$0xff] }
 0x116   : > { %v1273_v30 = vmax.f32 %v7274_v20, %v7277_v27  ;;  %v5258_v61 = vpop.f32.mrb[8].mxu0  ;;  %2580 = vperm.xlu1 %5707, %v2502_v57   ;;  %2575 = vperm.xlu0 %5706, %v2501_v51   ;;  %v7295_v62 = vpop.f32.mrb[8].mxu1  ;;  %v3576_v57 = vld [vmem:[%s8292_s1 + $0x770] sm:$0xff]  ;;  %v3577_v20 = vld [vmem:[%s8292_s1 + $0x778] sm:$0xff]  ;;  %v7320_v27 = vadd.f32 %v7160_v38, %v1476_v47 }
 0x117   : > { %v998_v63 = vadd.f32 %v5258_v61, %v6526_v28  ;;  %v992_v4 = vpop.f32.mrb[9].mxu0  ;;  %v7304_v9 = vpop.f32.mrb[9].mxu1  ;;  %5520 = vmatmul.mubr.msk.f32.gmra.mrb[114].mxu0 %vm690_vm0, %v2486_v50  ;;  %v2488_v28 = vld [vmem:[%s8292_s1 + $0x5a8] sm:$0xff]  ;;  %5613 = vmatprep.mubr.msk.f32.mxu1 %vm690_vm0, %v3576_v57  ;;  %v7323_v50 = vadd.f32 %v7168_v14, %v1471_v41 }
 0x118   : > { %v993_v51 = vadd.f32 %v992_v4, %v6528_v29  ;;  %5522 = vmatprep.mubr.msk.f32.mxu0 %vm690_vm0, %v2487_v21  ;;  %v2489_v4 = vld [vmem:[%s8292_s1 + $0x5b0] sm:$0xff]  ;;  %5614 = vmatmul.mubr.msk.f32.gmra.mrb[110].mxu1 %vm690_vm0, %v3577_v20  ;;  %v7368_v20 = vadd.f32 %v7190_v16, %v1486_v60 }
 0x119   : > { %v7325_v61 = vmax.f32 %v1272_v31, %v998_v63  ;;  %v1496_v29 = vpop.permute.xlu1 %1495  ;;  %v1491_v21 = vpop.permute.xlu0 %1490  ;;  %v2506_v63 = vld [vmem:[%s8293_s2 + $0x438] sm:$0xff] }
 0x11a   : > { %v7331_v57 = vmax.f32 %v1271_v13, %v993_v51  ;;  %v7334_v40 = vadd.f32 %v7220_v26, %v1496_v29  ;;  %v5261_v38 = vpop.f32.mrb[10].mxu0  ;;  %v7337_v47 = vadd.f32 %v7232_v8, %v1491_v21  ;;  %2590 = vperm.xlu1 %5707, %v2504_v15   ;;  %2585 = vperm.xlu0 %5706, %v2503_v5   ;;  %v7339_v41 = vpop.f32.mrb[10].mxu1  ;;  %v2505_v26 = vld [vmem:[%s8293_s2 + $0x430] sm:$0xff]  ;;  %v3578_v8 = vld [vmem:[%s8292_s1 + $0x780] sm:$0xff]  ;;  %v2490_v51 = vld [vmem:[%s8292_s1 + $0x5b8] sm:$0xff] }
 0x11b   : > { %v1008_v14 = vadd.f32 %v5261_v38, %v6552_v36  ;;  %v1002_v31 = vpop.f32.mrb[11].mxu0  ;;  %v7348_v13 = vpop.f32.mrb[11].mxu1  ;;  %5523 = vmatmul.mubr.msk.f32.gmra.mrb[116].mxu0 %vm690_vm0, %v2488_v28  ;;  %5616 = vmatprep.mubr.msk.f32.mxu1 %vm690_vm0, %v3578_v8  ;;  %v3579_v28 = vld [vmem:[%s8292_s1 + $0x788] sm:$0xff]  ;;  %v2491_v29 = vld [vmem:[%s8292_s1 + $0x5c0] sm:$0xff] }
 0x11c   : > { %v2366_v36 = vmax.f32 %v7320_v27, %v7334_v40  ;;  %v2365_v15 = vmax.f32 %v7323_v50, %v7337_v47  ;;  %v1003_v5 = vadd.f32 %v1002_v31, %v6554_v37  ;;  %5525 = vmatprep.mubr.msk.f32.mxu0 %vm690_vm0, %v2489_v4  ;;  %v7371_v40 = vadd.f32 %v7198_v56, %v1481_v46  ;;  %v2492_v31 = vld [vmem:[%s8292_s1 + $0x5c8] sm:$0xff] }
 0x11d   : > { %v7373_v27 = vmax.f32 %v1274_v17, %v1008_v14  ;;  %v1506_v37 = vpop.permute.xlu1 %1505  ;;  %v1501_v50 = vpop.permute.xlu0 %1500  ;;  %5617 = vmatmul.mubr.msk.f32.gmra.mrb[112].mxu1 %vm690_vm0, %v3579_v28 }
 0x11e   : > { %v7379_v21 = vmax.f32 %v1273_v30, %v1003_v5  ;;  %v7382_v4 = vadd.f32 %v7253_v39, %v1506_v37  ;;  %v5264_v16 = vpop.f32.mrb[12].mxu0  ;;  %v7385_v60 = vadd.f32 %v7267_v12, %v1501_v50  ;;  %2600 = vperm.xlu1 %5707, %v2506_v63   ;;  %2595 = vperm.xlu0 %5706, %v2505_v26   ;;  %v7387_v56 = vpop.f32.mrb[12].mxu1  ;;  %v2508_v30 = vld [vmem:[%s8293_s2 + $0x448] sm:$0xff]  ;;  %v2507_v39 = vld [vmem:[%s8293_s2 + $0x440] sm:$0xff]  ;;  %v3580_v12 = vld [vmem:[%s8292_s1 + $0x790] sm:$0xff] }
 0x11f   : > { %v7390_v17 = vadd.f32 %v5264_v16, %v6578_v44  ;;  %v1012_v46 = vpop.f32.mrb[13].mxu0  ;;  %v7398_v38 = vpop.f32.mrb[13].mxu1  ;;  %5526 = vmatmul.mubr.msk.f32.gmra.mrb[118].mxu0 %vm690_vm0, %v2490_v51  ;;  %5619 = vmatprep.mubr.msk.f32.mxu1 %vm690_vm0, %v3580_v12  ;;  %v3581_v63 = vld [vmem:[%s8292_s1 + $0x798] sm:$0xff] }
 0x120   : > { %v2368_v44 = vmax.f32 %v7368_v20, %v7382_v4  ;;  %v2367_v47 = vmax.f32 %v7371_v40, %v7385_v60  ;;  %v7409_v14 = vadd.f32 %v1012_v46, %v6580_v45  ;;  %5528 = vmatprep.mubr.msk.f32.mxu0 %vm690_vm0, %v2491_v29  ;;  %v2493_v45 = vld [vmem:[%s8292_s1 + $0x5d0] sm:$0xff]  ;;  %v2510_v29 = vld [vmem:[%s8293_s2 + $0x458] sm:$0xff] }
 0x121   : > { %v1280_v26 = vmax.f32 %v7325_v61, %v7390_v17  ;;  %v1516_v8 = vpop.permute.xlu1 %1515  ;;  %v1511_v5 = vpop.permute.xlu0 %1510  ;;  %5620 = vmatmul.mubr.msk.f32.gmra.mrb[114].mxu1 %vm690_vm0, %v3581_v63  ;;  %v2494_v60 = vld [vmem:[%s8292_s1 + $0x5d8] sm:$0xff]  ;;  %v3583_v17 = vld [vmem:[%s8292_s1 + $0x7a8] sm:$0xff] }
 0x122   : > { %v1279_v51 = vmax.f32 %v7331_v57, %v7409_v14  ;;  %v2092_v28 = vadd.f32 %v7295_v62, %v1516_v8  ;;  %v5267_v20 = vpop.f32.mrb[14].mxu0  ;;  %v2087_v40 = vadd.f32 %v7304_v9, %v1511_v5  ;;  %2610 = vperm.xlu1 %5707, %v2508_v30   ;;  %2605 = vperm.xlu0 %5706, %v2507_v39   ;;  %v7429_v37 = vpop.f32.mrb[14].mxu1  ;;  %v2509_v57 = vld [vmem:[%s8293_s2 + $0x450] sm:$0xff]  ;;  %v3582_v9 = vld [vmem:[%s8292_s1 + $0x7a0] sm:$0xff]  ;;  %v2512_v8 = vld [vmem:[%s8293_s2 + $0x468] sm:$0xff] }
 0x123   : > { %v7432_v61 = vadd.f32 %v5267_v20, %v6604_v52  ;;  %v1022_v50 = vpop.f32.mrb[15].mxu0  ;;  %v7440_v62 = vpop.f32.mrb[15].mxu1  ;;  %5529 = vmatmul.mubr.msk.f32.gmra.mrb[120].mxu0 %vm690_vm0, %v2492_v31  ;;  %5622 = vmatprep.mubr.msk.f32.mxu1 %vm690_vm0, %v3582_v9  ;;  %v3585_v20 = vld [vmem:[%s8292_s1 + $0x7b8] sm:$0xff] }
 0x124   : > { %v7446_v4 = vmax.f32 %v2366_v36, %v2092_v28  ;;  %v7448_v52 = vmax.f32 %v2365_v15, %v2087_v40  ;;  %v1023_v16 = vadd.f32 %v1022_v50, %v6606_v53  ;;  %5531 = vmatprep.mubr.msk.f32.mxu0 %vm690_vm0, %v2493_v45  ;;  %v2495_v53 = vld [vmem:[%s8292_s1 + $0x5e0] sm:$0xff]  ;;  %v2496_v28 = vld [vmem:[%s8292_s1 + $0x5e8] sm:$0xff] }
 0x125   : > { %v1282_v36 = vmax.f32 %v7373_v27, %v7432_v61  ;;  %v1526_v46 = vpop.permute.xlu1 %1525  ;;  %v1521_v15 = vpop.permute.xlu0 %1520  ;;  %5623 = vmatmul.mubr.msk.f32.gmra.mrb[116].mxu1 %vm690_vm0, %v3583_v17 }
 0x126   : > { %v1281_v30 = vmax.f32 %v7379_v21, %v1023_v16  ;;  %v2102_v39 = vadd.f32 %v7339_v41, %v1526_v46  ;;  %v5270_v12 = vpop.f32.mrb[16].mxu0  ;;  %v2097_v14 = vadd.f32 %v7348_v13, %v1521_v15  ;;  %2620 = vperm.xlu1 %5707, %v2510_v29   ;;  %2615 = vperm.xlu0 %5706, %v2509_v57   ;;  %v7468_v31 = vpop.f32.mrb[16].mxu1  ;;  %v2511_v21 = vld [vmem:[%s8293_s2 + $0x460] sm:$0xff]  ;;  %v3584_v41 = vld [vmem:[%s8292_s1 + $0x7b0] sm:$0xff]  ;;  %v2498_v15 = vld [vmem:[%s8292_s1 + $0x5f8] sm:$0xff] }
 0x127   : > { %v1038_v27 = vadd.f32 %v5270_v12, %v6623_v58  ;;  %v1032_v63 = vpop.f32.mrb[17].mxu0  ;;  %v7477_v5 = vpop.f32.mrb[17].mxu1  ;;  %5532 = vmatmul.mubr.msk.f32.gmra.mrb[122].mxu0 %vm690_vm0, %v2494_v60  ;;  %5625 = vmatprep.mubr.msk.f32.mxu1 %vm690_vm0, %v3584_v41  ;;  %v2514_v60 = vld [vmem:[%s8293_s2 + $0x478] sm:$0xff] }
 0x128   : > { %v7483_v13 = vmax.f32 %v2368_v44, %v2102_v39  ;;  %v7485_v58 = vmax.f32 %v2367_v47, %v2097_v14  ;;  %v1033_v45 = vadd.f32 %v1032_v63, %v6625_v59  ;;  %5534 = vmatprep.mubr.msk.f32.mxu0 %vm690_vm0, %v2495_v53  ;;  %v2497_v59 = vld [vmem:[%s8292_s1 + $0x5f0] sm:$0xff]  ;;  %v3587_v53 = vld [vmem:[%s8292_s1 + $0x7c8] sm:$0xff] }
 0x129   : > { %v7496_v40 = vmax.f32 %v1280_v26, %v1038_v27  ;;  %v1536_v44 = vpop.permute.xlu1 %1535  ;;  %v1531_v61 = vpop.permute.xlu0 %1530  ;;  %5626 = vmatmul.mubr.msk.f32.gmra.mrb[118].mxu1 %vm690_vm0, %v3585_v20 }
 0x12a   : > { %v7502_v47 = vmax.f32 %v1279_v51, %v1033_v45  ;;  %v2112_v50 = vadd.f32 %v7387_v56, %v1536_v44  ;;  %v5273_v29 = vpop.f32.mrb[18].mxu0  ;;  %v2107_v57 = vadd.f32 %v7398_v38, %v1531_v61  ;;  %2630 = vperm.xlu1 %5707, %v2512_v8   ;;  %2625 = vperm.xlu0 %5706, %v2511_v21   ;;  %v7506_v9 = vpop.f32.mrb[18].mxu1  ;;  %v2513_v51 = vld [vmem:[%s8293_s2 + $0x470] sm:$0xff]  ;;  %v3586_v56 = vld [vmem:[%s8292_s1 + $0x7c0] sm:$0xff] }
 0x12b   : > { %v1048_v26 = vadd.f32 %v5273_v29, %v6641_v2  ;;  %v1042_v16 = vpop.f32.mrb[19].mxu0  ;;  %v2136_v17 = vpop.f32.mrb[19].mxu1  ;;  %5535 = vmatmul.mubr.msk.f32.gmra.mrb[124].mxu0 %vm690_vm0, %v2496_v28  ;;  %5628 = vmatprep.mubr.msk.f32.mxu1 %vm690_vm0, %v3586_v56  ;;  %v3589_v28 = vld [vmem:[%s8292_s1 + $0x7d8] sm:$0xff] }
 0x12c   : > { %v2374_v38 = vmax.f32 %v7446_v4, %v2112_v50  ;;  %v2373_v2 = vmax.f32 %v7448_v52, %v2107_v57  ;;  %v1043_v46 = vadd.f32 %v1042_v16, %v6643_v3  ;;  %5537 = vmatprep.mubr.msk.f32.mxu0 %vm690_vm0, %v2497_v59 }
 0x12d   : > { %v7530_v39 = vmax.f32 %v1282_v36, %v1048_v26  ;;  %v1546_v12 = vpop.permute.xlu1 %1545  ;;  %v1541_v4 = vpop.permute.xlu0 %1540  ;;  %5629 = vmatmul.mubr.msk.f32.gmra.mrb[120].mxu1 %vm690_vm0, %v3587_v53  ;;  %v2516_v36 = vld [vmem:[%s8293_s2 + $0x488] sm:$0xff]  ;;  %v2517_v26 = vld [vmem:[%s8293_s2 + $0x490] sm:$0xff] }
 0x12e   : > { %v7533_v52 = vmax.f32 %v1281_v30, %v1043_v46  ;;  %v2122_v3 = vadd.f32 %v7429_v37, %v1546_v12  ;;  %v5276_v14 = vpop.f32.mrb[20].mxu0  ;;  %v2117_v27 = vadd.f32 %v7440_v62, %v1541_v4  ;;  %2640 = vperm.xlu1 %5707, %v2514_v60   ;;  %2635 = vperm.xlu0 %5706, %v2513_v51   ;;  %v5376_v63 = vpop.f32.mrb[20].mxu1  ;;  %v2515_v30 = vld [vmem:[%s8293_s2 + $0x480] sm:$0xff]  ;;  %v3588_v37 = vld [vmem:[%s8292_s1 + $0x7d0] sm:$0xff]  ;;  %v3591_v60 = vld [vmem:[%s8292_s1 + $0x7e8] sm:$0xff] }
 0x12f   : > { %v1058_v8 = vadd.f32 %v5276_v14, %v6659_v10  ;;  %v1052_v21 = vpop.f32.mrb[21].mxu0  ;;  %v2146_v41 = vpop.f32.mrb[21].mxu1  ;;  %5538 = vmatmul.mubr.msk.f32.gmra.mrb[126].mxu0 %vm690_vm0, %v2498_v15  ;;  %5631 = vmatprep.mubr.msk.f32.mxu1 %vm690_vm0, %v3588_v37 }
 0x130   : > { %v2376_v62 = vmax.f32 %v7483_v13, %v2122_v3  ;;  %v2375_v10 = vmax.f32 %v7485_v58, %v2117_v27  ;;  %v1053_v45 = vadd.f32 %v1052_v21, %v6661_v11  ;;  %v2519_v3 = vld [vmem:[%s8293_s2 + $0x4a0] sm:$0xff]  ;;  %v3593_v27 = vld [vmem:[%s8292_s1 + $0x7f8] sm:$0xff] }
 0x131   : > { %v1288_v20 = vmax.f32 %v7496_v40, %v1058_v8  ;;  %v1556_v44 = vpop.permute.xlu1 %1555  ;;  %v1551_v61 = vpop.permute.xlu0 %1550  ;;  %5632 = vmatmul.mubr.msk.f32.gmra.mrb[122].mxu1 %vm690_vm0, %v3589_v28  ;;  %v2518_v40 = vld [vmem:[%s8293_s2 + $0x498] sm:$0xff] }
 0x132   : > { %v1287_v59 = vmax.f32 %v7502_v47, %v1053_v45  ;;  %v2132_v13 = vadd.f32 %v7468_v31, %v1556_v44  ;;  %v5279_v50 = vpop.f32.mrb[22].mxu0  ;;  %v2127_v58 = vadd.f32 %v7477_v5, %v1551_v61  ;;  %2650 = vperm.xlu1 %5707, %v2516_v36   ;;  %2645 = vperm.xlu0 %5706, %v2515_v30   ;;  %v5379_v11 = vpop.f32.mrb[22].mxu1  ;;  %v3590_v31 = vld [vmem:[%s8292_s1 + $0x7e0] sm:$0xff]  ;;  %v2521_v44 = vld [vmem:[%s8293_s2 + $0x4b0] sm:$0xff] }
 0x133   : > { %v1068_v29 = vadd.f32 %v5279_v50, %v6684_v22  ;;  %v1062_v57 = vpop.f32.mrb[23].mxu0  ;;  %v2156_v47 = vpop.f32.mrb[23].mxu1  ;;  %5634 = vmatprep.mubr.msk.f32.mxu1 %vm690_vm0, %v3590_v31 }
 0x134   : > { %v7570_v5 = vmax.f32 %v2374_v38, %v2132_v13  ;;  %v7572_v16 = vmax.f32 %v2373_v2, %v2127_v58  ;;  %v1063_v22 = vadd.f32 %v1062_v57, %v6686_v23 }
 0x135   : > { %v1290_v51 = vmax.f32 %v7530_v39, %v1068_v29  ;;  %v1566_v56 = vpop.permute.xlu1 %1565  ;;  %v1561_v46 = vpop.permute.xlu0 %1560  ;;  %5635 = vmatmul.mubr.msk.f32.gmra.mrb[124].mxu1 %vm690_vm0, %v3591_v60  ;;  %v2520_v39 = vld [vmem:[%s8293_s2 + $0x4a8] sm:$0xff] }
 0x136   : > { %v1289_v15 = vmax.f32 %v7533_v52, %v1063_v22  ;;  %v2142_v38 = vadd.f32 %v7506_v9, %v1566_v56  ;;  %v5282_v2 = vpop.f32.mrb[24].mxu0  ;;  %v2137_v53 = vadd.f32 %v2136_v17, %v1561_v46  ;;  %2660 = vperm.xlu1 %5707, %v2518_v40   ;;  %2655 = vperm.xlu0 %5706, %v2517_v26   ;;  %v5382_v23 = vpop.f32.mrb[24].mxu1  ;;  %v3592_v9 = vld [vmem:[%s8292_s1 + $0x7f0] sm:$0xff] }
 0x137   : > { %v1078_v12 = vadd.f32 %v5282_v2, %v6710_v32  ;;  %v1072_v4 = vpop.f32.mrb[25].mxu0  ;;  %v2166_v14 = vpop.f32.mrb[25].mxu1  ;;  %5637 = vmatprep.mubr.msk.f32.mxu1 %vm690_vm0, %v3592_v9 }
 0x138   : > { %v7593_v17 = vmax.f32 %v2376_v62, %v2142_v38  ;;  %v7595_v52 = vmax.f32 %v2375_v10, %v2137_v53  ;;  %v1073_v32 = vadd.f32 %v1072_v4, %v6712_v33 }
 0x139   : > { %v7602_v8 = vmax.f32 %v1288_v20, %v1078_v12  ;;  %v1576_v21 = vpop.permute.xlu1 %1575  ;;  %v1571_v36 = vpop.permute.xlu0 %1570  ;;  %5638 = vmatmul.mubr.msk.f32.gmra.mrb[126].mxu1 %vm690_vm0, %v3593_v27  ;;  %v2522_v20 = vld [vmem:[%s8293_s2 + $0x4b8] sm:$0xff] }
 0x13a   : > { %v7605_v30 = vmax.f32 %v1287_v59, %v1073_v32  ;;  %v2152_v37 = vadd.f32 %v5376_v63, %v1576_v21  ;;  %v5285_v62 = vpop.f32.mrb[26].mxu0  ;;  %v2147_v10 = vadd.f32 %v2146_v41, %v1571_v36  ;;  %2670 = vperm.xlu1 %5707, %v2520_v39   ;;  %2665 = vperm.xlu0 %5706, %v2519_v3   ;;  %v5385_v33 = vpop.f32.mrb[26].mxu1  ;;  %v2526_v39 = vld [vmem:[%s8293_s2 + $0x4d8] sm:$0xff] }
 0x13b   : > { %v1088_v45 = vadd.f32 %v5285_v62, %v6736_v42  ;;  %v1082_v28 = vpop.f32.mrb[27].mxu0  ;;  %v2176_v61 = vpop.f32.mrb[27].mxu1  ;;  %v2528_v62 = vld [vmem:[%s8293_s2 + $0x4e8] sm:$0xff] }
 0x13c   : > { %v2382_v59 = vmax.f32 %v7570_v5, %v2152_v37  ;;  %v2381_v63 = vmax.f32 %v7572_v16, %v2147_v10  ;;  %v1083_v41 = vadd.f32 %v1082_v28, %v6738_v43  ;;  %v2524_v5 = vld [vmem:[%s8293_s2 + $0x4c8] sm:$0xff]  ;;  %v2523_v43 = vld [vmem:[%s8293_s2 + $0x4c0] sm:$0xff] }
 0x13d   : > { %v7617_v13 = vmax.f32 %v1290_v51, %v1088_v45  ;;  %v1586_v50 = vpop.permute.xlu1 %1585  ;;  %v1581_v42 = vpop.permute.xlu0 %1580 }
 0x13e   : > { %v7619_v58 = vmax.f32 %v1289_v15, %v1083_v41  ;;  %v2162_v29 = vadd.f32 %v5379_v11, %v1586_v50  ;;  %v5288_v57 = vpop.f32.mrb[28].mxu0  ;;  %v2157_v40 = vadd.f32 %v2156_v47, %v1581_v42  ;;  %2680 = vperm.xlu1 %5707, %v2522_v20   ;;  %2675 = vperm.xlu0 %5706, %v2521_v44   ;;  %v5388_v26 = vpop.f32.mrb[28].mxu1 }
 0x13f   : > { %v1098_v31 = vadd.f32 %v5288_v57, %v6762_v54  ;;  %v1092_v22 = vpop.f32.mrb[29].mxu0  ;;  %v2186_v16 = vpop.f32.mrb[29].mxu1 }
 0x140   : > { %v2384_v60 = vmax.f32 %v7593_v17, %v2162_v29  ;;  %v2383_v11 = vmax.f32 %v7595_v52, %v2157_v40  ;;  %v1093_v47 = vadd.f32 %v1092_v22, %v6764_v55  ;;  %v2525_v55 = vld [vmem:[%s8293_s2 + $0x4d0] sm:$0xff] }
 0x141   : > { %v1296_v51 = vmax.f32 %v7602_v8, %v1098_v31  ;;  %v1596_v56 = vpop.permute.xlu1 %1595  ;;  %v1591_v54 = vpop.permute.xlu0 %1590 }
 0x142   : > { %v1295_v46 = vmax.f32 %v7605_v30, %v1093_v47  ;;  %v2172_v15 = vadd.f32 %v5382_v23, %v1596_v56  ;;  %v5291_v38 = vpop.f32.mrb[30].mxu0  ;;  %v2167_v2 = vadd.f32 %v2166_v14, %v1591_v54  ;;  %2690 = vperm.xlu1 %5707, %v2524_v5   ;;  %2685 = vperm.xlu0 %5706, %v2523_v43   ;;  %v5391_v53 = vpop.f32.mrb[30].mxu1  ;;  %v2532_v56 = vld [vmem:[%s8293_s2 + $0x508] sm:$0xff] }
 0x143   : > { %v1108_v12 = vadd.f32 %v5291_v38, %v6788_v6  ;;  %v1102_v4 = vpop.f32.mrb[31].mxu0  ;;  %v2196_v3 = vpop.f32.mrb[31].mxu1 }
 0x144   : > { %v7640_v9 = vmax.f32 %v2382_v59, %v2172_v15  ;;  %v7642_v23 = vmax.f32 %v2381_v63, %v2167_v2  ;;  %v1103_v14 = vadd.f32 %v1102_v4, %v6790_v7  ;;  %v2527_v7 = vld [vmem:[%s8293_s2 + $0x4e0] sm:$0xff] }
 0x145   : > { %v1298_v17 = vmax.f32 %v7617_v13, %v1108_v12  ;;  %v1606_v52 = vpop.permute.xlu1 %1605  ;;  %v1601_v6 = vpop.permute.xlu0 %1600 }
 0x146   : > { %v1297_v32 = vmax.f32 %v7619_v58, %v1103_v14  ;;  %v2182_v27 = vadd.f32 %v5385_v33, %v1606_v52  ;;  %v5294_v8 = vpop.f32.mrb[32].mxu0  ;;  %v2177_v21 = vadd.f32 %v2176_v61, %v1601_v6  ;;  %2700 = vperm.xlu1 %5707, %v2526_v39   ;;  %2695 = vperm.xlu0 %5706, %v2525_v55   ;;  %v5394_v36 = vpop.f32.mrb[32].mxu1  ;;  %v2530_v58 = vld [vmem:[%s8293_s2 + $0x4f8] sm:$0xff] }
 0x147   : > { %v1118_v30 = vadd.f32 %v5294_v8, %v6814_v18  ;;  %v1112_v37 = vpop.f32.mrb[33].mxu0  ;;  %v2206_v10 = vpop.f32.mrb[33].mxu1  ;;  %v2534_v14 = vld [vmem:[%s8293_s2 + $0x518] sm:$0xff] }
 0x148   : > { %v7654_v45 = vmax.f32 %v2384_v60, %v2182_v27  ;;  %v7656_v33 = vmax.f32 %v2383_v11, %v2177_v21  ;;  %v1113_v28 = vadd.f32 %v1112_v37, %v6816_v19  ;;  %v2529_v19 = vld [vmem:[%s8293_s2 + $0x4f0] sm:$0xff] }
 0x149   : > { %v7659_v20 = vmax.f32 %v1296_v51, %v1118_v30  ;;  %v1616_v44 = vpop.permute.xlu1 %1615  ;;  %v1611_v18 = vpop.permute.xlu0 %1610 }
 0x14a   : > { %v7661_v61 = vmax.f32 %v1295_v46, %v1113_v28  ;;  %v2192_v59 = vadd.f32 %v5388_v26, %v1616_v44  ;;  %v5297_v63 = vpop.f32.mrb[34].mxu0  ;;  %v2187_v41 = vadd.f32 %v2186_v16, %v1611_v18  ;;  %2710 = vperm.xlu1 %5707, %v2528_v62   ;;  %2705 = vperm.xlu0 %5706, %v2527_v7   ;;  %v5397_v13 = vpop.f32.mrb[34].mxu1 }
 0x14b   : > { %v1128_v50 = vadd.f32 %v5297_v63, %v6840_v34  ;;  %v1122_v42 = vpop.f32.mrb[35].mxu0  ;;  %v2216_v29 = vpop.f32.mrb[35].mxu1 }
 0x14c   : > { %v2390_v57 = vmax.f32 %v7640_v9, %v2192_v59  ;;  %v2389_v40 = vmax.f32 %v7642_v23, %v2187_v41  ;;  %v1123_v26 = vadd.f32 %v1122_v42, %v6842_v35  ;;  %v2531_v35 = vld [vmem:[%s8293_s2 + $0x500] sm:$0xff] }
 0x14d   : > { %v7673_v31 = vmax.f32 %v1298_v17, %v1128_v50  ;;  %v1626_v22 = vpop.permute.xlu1 %1625  ;;  %v1621_v34 = vpop.permute.xlu0 %1620  ;;  %v8319_v42 = vld [vmem:[#allocation2_spill] sm:$0xff] }
 0x14e   : > { %v7675_v5 = vmax.f32 %v1297_v32, %v1123_v26  ;;  %v2202_v43 = vadd.f32 %v5391_v53, %v1626_v22  ;;  %v5300_v16 = vpop.f32.mrb[36].mxu0  ;;  %v2197_v60 = vadd.f32 %v2196_v3, %v1621_v34  ;;  %2720 = vperm.xlu1 %5707, %v2530_v58   ;;  %2715 = vperm.xlu0 %5706, %v2529_v19   ;;  %v5400_v11 = vpop.f32.mrb[36].mxu1 }
 0x14f   : > { %v1138_v47 = vadd.f32 %v5300_v16, %v6866_v48  ;;  %v1132_v51 = vpop.f32.mrb[37].mxu0  ;;  %v2226_v54 = vpop.f32.mrb[37].mxu1 }
 0x150   : > { %v2392_v46 = vmax.f32 %v7654_v45, %v2202_v43  ;;  %v2391_v15 = vmax.f32 %v7656_v33, %v2197_v60  ;;  %v1133_v38 = vadd.f32 %v1132_v51, %v6868_v49  ;;  %v2533_v49 = vld [vmem:[%s8293_s2 + $0x510] sm:$0xff]  ;;  %v2536_v45 = vld [vmem:[%s8293_s2 + $0x528] sm:$0xff] }
 0x151   : > { %v1304_v2 = vmax.f32 %v7659_v20, %v1138_v47  ;;  %v1636_v53 = vpop.permute.xlu1 %1635  ;;  %v1631_v48 = vpop.permute.xlu0 %1630 }
 0x152   : > { %v1303_v12 = vmax.f32 %v7661_v61, %v1133_v38  ;;  %v2212_v4 = vadd.f32 %v5394_v36, %v1636_v53  ;;  %v5303_v39 = vpop.f32.mrb[38].mxu0  ;;  %v2207_v55 = vadd.f32 %v2206_v10, %v1631_v48  ;;  %2730 = vperm.xlu1 %5707, %v2532_v56   ;;  %2725 = vperm.xlu0 %5706, %v2531_v35   ;;  %v5403_v3 = vpop.f32.mrb[38].mxu1  ;;  %v8321_v56 = vld [vmem:[#allocation4_spill] sm:$0xff]  ;;  %v8322_v48 = vld [vmem:[#allocation5_spill] sm:$0xff] }
 0x153   : > { %v1148_v9 = vadd.f32 %v5303_v39, %v6892_v0  ;;  %v1142_v23 = vpop.f32.mrb[39].mxu0  ;;  %v2236_v17 = vpop.f32.mrb[39].mxu1 }
 0x154   : > { %v7696_v52 = vmax.f32 %v2390_v57, %v2212_v4  ;;  %v7698_v6 = vmax.f32 %v2389_v40, %v2207_v55  ;;  %v1143_v32 = vadd.f32 %v1142_v23, %v6894_v1  ;;  %v2535_v1 = vld [vmem:[%s8293_s2 + $0x520] sm:$0xff] }
 0x155   : > { %v1306_v27 = vmax.f32 %v7673_v31, %v1148_v9  ;;  %v1646_v8 = vpop.permute.xlu1 %1645  ;;  %v1641_v0 = vpop.permute.xlu0 %1640  ;;  %v8320_v31 = vld [vmem:[#allocation3_spill] sm:$0xff] }
 0x156   : > { %v1305_v21 = vmax.f32 %v7675_v5, %v1143_v32  ;;  %v2222_v36 = vadd.f32 %v5397_v13, %v1646_v8  ;;  %v5306_v30 = vpop.f32.mrb[40].mxu0  ;;  %v2217_v37 = vadd.f32 %v2216_v29, %v1641_v0  ;;  %2740 = vperm.xlu1 %5707, %v2534_v14   ;;  %2735 = vperm.xlu0 %5706, %v2533_v49   ;;  %v5406_v62 = vpop.f32.mrb[40].mxu1  ;;  %v2538_v29 = vld [vmem:[%s8293_s2 + $0x538] sm:$0xff] }
 0x157   : > { %v1158_v7 = vadd.f32 %v5306_v30, %v6918_v24  ;;  %v1152_v10 = vpop.f32.mrb[41].mxu0  ;;  %v2246_v33 = vpop.f32.mrb[41].mxu1  ;;  %v2542_v32 = vld [vmem:[%s8293_s2 + $0x558] sm:$0xff] }
 0x158   : > { %v7710_v28 = vmax.f32 %v2392_v46, %v2222_v36  ;;  %v7712_v20 = vmax.f32 %v2391_v15, %v2217_v37  ;;  %v1153_v44 = vadd.f32 %v1152_v10, %v6920_v25  ;;  %v2537_v25 = vld [vmem:[%s8293_s2 + $0x530] sm:$0xff]  ;;  %v2540_v46 = vld [vmem:[%s8293_s2 + $0x548] sm:$0xff]  ;;  %v2539_v15 = vld [vmem:[%s8293_s2 + $0x540] sm:$0xff] }
 0x159   : > { %v7715_v18 = vmax.f32 %v1304_v2, %v1158_v7  ;;  %v1656_v61 = vpop.permute.xlu1 %1655  ;;  %v1651_v24 = vpop.permute.xlu0 %1650  ;;  %v8324_v36 = vld [vmem:[#allocation7_spill] sm:$0xff] }
 0x15a   : > { %v7717_v59 = vmax.f32 %v1303_v12, %v1153_v44  ;;  %v2232_v63 = vadd.f32 %v5400_v11, %v1656_v61  ;;  %v5309_v41 = vpop.f32.mrb[42].mxu0  ;;  %v2227_v13 = vadd.f32 %v2226_v54, %v1651_v24  ;;  %2750 = vperm.xlu1 %5707, %v2536_v45   ;;  %2745 = vperm.xlu0 %5706, %v2535_v1   ;;  %v5409_v50 = vpop.f32.mrb[42].mxu1  ;;  %v2544_v61 = vld [vmem:[%s8293_s2 + $0x568] sm:$0xff]  ;;  %v2543_v24 = vld [vmem:[%s8293_s2 + $0x560] sm:$0xff] }
 0x15b   : > { %v1168_v58 = vadd.f32 %v5309_v41, %v8319_v42  ;;  %v1162_v19 = vpop.f32.mrb[43].mxu0  ;;  %v2256_v57 = vpop.f32.mrb[43].mxu1 }
 0x15c   : > { %v2398_v40 = vmax.f32 %v7696_v52, %v2232_v63  ;;  %v2397_v26 = vmax.f32 %v7698_v6, %v2227_v13  ;;  %v1163_v22 = vadd.f32 %v1162_v19, %v8320_v31  ;;  %v8326_v13 = vld [vmem:[#allocation9_spill] sm:$0xff]  ;;  %v8327_v31 = vld [vmem:[#allocation10_spill] sm:$0xff] }
 0x15d   : > { %v7729_v34 = vmax.f32 %v1306_v27, %v1168_v58  ;;  %v1666_v5 = vpop.permute.xlu1 %1665  ;;  %v1661_v43 = vpop.permute.xlu0 %1660  ;;  %v2541_v27 = vld [vmem:[%s8293_s2 + $0x550] sm:$0xff] }
 0x15e   : > { %v7731_v16 = vmax.f32 %v1305_v21, %v1163_v22  ;;  %v2242_v60 = vadd.f32 %v5403_v3, %v1666_v5  ;;  %v5312_v11 = vpop.f32.mrb[44].mxu0  ;;  %v2237_v47 = vadd.f32 %v2236_v17, %v1661_v43  ;;  %2760 = vperm.xlu1 %5707, %v2538_v29   ;;  %2755 = vperm.xlu0 %5706, %v2537_v25   ;;  %v5412_v51 = vpop.f32.mrb[44].mxu1  ;;  %v8323_v17 = vld [vmem:[#allocation6_spill] sm:$0xff]  ;;  %v2546_v5 = vld [vmem:[%s8293_s2 + $0x578] sm:$0xff]  ;;  %v2545_v43 = vld [vmem:[%s8293_s2 + $0x570] sm:$0xff] }
 0x15f   : > { %v1178_v35 = vadd.f32 %v5312_v11, %v8321_v56  ;;  %v1172_v54 = vpop.f32.mrb[45].mxu0  ;;  %v2266_v38 = vpop.f32.mrb[45].mxu1 }
 0x160   : > { %v2400_v2 = vmax.f32 %v7710_v28, %v2242_v60  ;;  %v2399_v53 = vmax.f32 %v7712_v20, %v2237_v47  ;;  %v1173_v12 = vadd.f32 %v1172_v54, %v8322_v48  ;;  %v8325_v20 = vld [vmem:[#allocation8_spill] sm:$0xff]  ;;  %v8328_v47 = vld [vmem:[#allocation11_spill] sm:$0xff] }
 0x161   : > { %v1312_v4 = vmax.f32 %v7715_v18, %v1178_v35  ;;  %v1676_v39 = vpop.permute.xlu1 %1675  ;;  %v1671_v55 = vpop.permute.xlu0 %1670  ;;  %v8329_v48 = vld [vmem:[#allocation12_spill] sm:$0xff] }
 0x162   : > { %v1311_v3 = vmax.f32 %v7717_v59, %v1173_v12  ;;  %v2252_v9 = vadd.f32 %v5406_v62, %v1676_v39  ;;  %v5315_v23 = vpop.f32.mrb[46].mxu0  ;;  %v2247_v14 = vadd.f32 %v2246_v33, %v1671_v55  ;;  %2770 = vperm.xlu1 %5707, %v2540_v46   ;;  %2765 = vperm.xlu0 %5706, %v2539_v15   ;;  %v5415_v49 = vpop.f32.mrb[46].mxu1  ;;  %v2548_v39 = vld [vmem:[%s8293_s2 + $0x588] sm:$0xff]  ;;  %v2547_v55 = vld [vmem:[%s8293_s2 + $0x580] sm:$0xff] }
 0x163   : > { %v1188_v52 = vadd.f32 %v5315_v23, %v8323_v17  ;;  %v1182_v6 = vpop.f32.mrb[47].mxu0  ;;  %v2276_v8 = vpop.f32.mrb[47].mxu1 }
 0x164   : > { %v7752_v0 = vmax.f32 %v2398_v40, %v2252_v9  ;;  %v7754_v21 = vmax.f32 %v2397_v26, %v2247_v14  ;;  %v1183_v30 = vadd.f32 %v1182_v6, %v8324_v36  ;;  %v8330_v14 = vld [vmem:[#allocation13_spill] sm:$0xff]  ;;  %v8331_v36 = vld [vmem:[#allocation14_spill] sm:$0xff] }
 0x165   : > { %v1314_v37 = vmax.f32 %v7729_v34, %v1188_v52  ;;  %v1686_v62 = vpop.permute.xlu1 %1685  ;;  %v1681_v7 = vpop.permute.xlu0 %1680 }
 0x166   : > { %v1313_v10 = vmax.f32 %v7731_v16, %v1183_v30  ;;  %v2262_v45 = vadd.f32 %v5409_v50, %v1686_v62  ;;  %v5318_v1 = vpop.f32.mrb[48].mxu0  ;;  %v2257_v33 = vadd.f32 %v2256_v57, %v1681_v7  ;;  %2780 = vperm.xlu1 %5707, %v2542_v32   ;;  %2775 = vperm.xlu0 %5706, %v2541_v27   ;;  %v5418_v28 = vpop.f32.mrb[48].mxu1  ;;  %v2550_v62 = vld [vmem:[%s8293_s2 + $0x598] sm:$0xff]  ;;  %v2549_v7 = vld [vmem:[%s8293_s2 + $0x590] sm:$0xff] }
 0x167   : > { %v1198_v44 = vadd.f32 %v5318_v1, %v8325_v20  ;;  %v1192_v18 = vpop.f32.mrb[49].mxu0  ;;  %v2286_v59 = vpop.f32.mrb[49].mxu1 }
 0x168   : > { %v7766_v63 = vmax.f32 %v2400_v2, %v2262_v45  ;;  %v7768_v41 = vmax.f32 %v2399_v53, %v2257_v33  ;;  %v1193_v50 = vadd.f32 %v1192_v18, %v8326_v13  ;;  %v8332_v33 = vld [vmem:[#allocation15_spill] sm:$0xff]  ;;  %v8333_v13 = vld [vmem:[#allocation16_spill] sm:$0xff] }
 0x169   : > { %v7771_v42 = vmax.f32 %v1312_v4, %v1198_v44  ;;  %v1696_v58 = vpop.permute.xlu1 %1695  ;;  %v1691_v19 = vpop.permute.xlu0 %1690 }
 0x16a   : > { %v7773_v29 = vmax.f32 %v1311_v3, %v1193_v50  ;;  %v2272_v25 = vadd.f32 %v5412_v51, %v1696_v58  ;;  %v5321_v57 = vpop.f32.mrb[50].mxu0  ;;  %v2267_v40 = vadd.f32 %v2266_v38, %v1691_v19  ;;  %2790 = vperm.xlu1 %5707, %v2544_v61   ;;  %2785 = vperm.xlu0 %5706, %v2543_v24   ;;  %v5421_v26 = vpop.f32.mrb[50].mxu1  ;;  %v2552_v58 = vld [vmem:[%s8293_s2 + $0x5a8] sm:$0xff]  ;;  %v2551_v19 = vld [vmem:[%s8293_s2 + $0x5a0] sm:$0xff] }
 0x16b   : > { %v1208_v22 = vadd.f32 %v5321_v57, %v8327_v31  ;;  %v1202_v34 = vpop.f32.mrb[51].mxu0  ;;  %v2296_v16 = vpop.f32.mrb[51].mxu1 }
 0x16c   : > { %v2406_v60 = vmax.f32 %v7752_v0, %v2272_v25  ;;  %v2405_v11 = vmax.f32 %v7754_v21, %v2267_v40  ;;  %v1203_v51 = vadd.f32 %v1202_v34, %v8328_v47  ;;  %v8334_v40 = vld [vmem:[#allocation17_spill] sm:$0xff]  ;;  %v8335_v47 = vld [vmem:[#allocation18_spill] sm:$0xff] }
 0x16d   : > { %v7785_v56 = vmax.f32 %v1314_v37, %v1208_v22  ;;  %v1706_v35 = vpop.permute.xlu1 %1705  ;;  %v1701_v54 = vpop.permute.xlu0 %1700 }
 0x16e   : > { %v7787_v46 = vmax.f32 %v1313_v10, %v1203_v51  ;;  %v2282_v15 = vadd.f32 %v5415_v49, %v1706_v35  ;;  %v5324_v38 = vpop.f32.mrb[52].mxu0  ;;  %v2277_v2 = vadd.f32 %v2276_v8, %v1701_v54  ;;  %2800 = vperm.xlu1 %5707, %v2546_v5   ;;  %2795 = vperm.xlu0 %5706, %v2545_v43   ;;  %v5424_v53 = vpop.f32.mrb[52].mxu1  ;;  %v2554_v35 = vld [vmem:[%s8293_s2 + $0x5b8] sm:$0xff]  ;;  %v2553_v54 = vld [vmem:[%s8293_s2 + $0x5b0] sm:$0xff] }
 0x16f   : > { %v1218_v12 = vadd.f32 %v5324_v38, %v8329_v48  ;;  %v1212_v4 = vpop.f32.mrb[53].mxu0  ;;  %v2306_v3 = vpop.f32.mrb[53].mxu1 }
 0x170   : > { %v2408_v9 = vmax.f32 %v7766_v63, %v2282_v15  ;;  %v2407_v23 = vmax.f32 %v7768_v41, %v2277_v2  ;;  %v1213_v49 = vadd.f32 %v1212_v4, %v8330_v14  ;;  %v8336_v2 = vld [vmem:[#allocation19_spill] sm:$0xff]  ;;  %v8337_v14 = vld [vmem:[#allocation20_spill] sm:$0xff] }
 0x171   : > { %v1320_v17 = vmax.f32 %v7771_v42, %v1218_v12  ;;  %v1716_v52 = vpop.permute.xlu1 %1715  ;;  %v1711_v6 = vpop.permute.xlu0 %1710 }
 0x172   : > { %v1319_v32 = vmax.f32 %v7773_v29, %v1213_v49  ;;  %v2292_v27 = vadd.f32 %v5418_v28, %v1716_v52  ;;  %v5327_v8 = vpop.f32.mrb[54].mxu0  ;;  %v2287_v0 = vadd.f32 %v2286_v59, %v1711_v6  ;;  %2810 = vperm.xlu1 %5707, %v2548_v39   ;;  %2805 = vperm.xlu0 %5706, %v2547_v55   ;;  %v5427_v21 = vpop.f32.mrb[54].mxu1  ;;  %v2556_v52 = vld [vmem:[%s8293_s2 + $0x5c8] sm:$0xff]  ;;  %v2555_v6 = vld [vmem:[%s8293_s2 + $0x5c0] sm:$0xff] }
 0x173   : > { %v1228_v30 = vadd.f32 %v5327_v8, %v8331_v36  ;;  %v1222_v37 = vpop.f32.mrb[55].mxu0  ;;  %v2316_v10 = vpop.f32.mrb[55].mxu1 }
 0x174   : > { %v7808_v45 = vmax.f32 %v2406_v60, %v2292_v27  ;;  %v7810_v1 = vmax.f32 %v2405_v11, %v2287_v0  ;;  %v1223_v28 = vadd.f32 %v1222_v37, %v8332_v33  ;;  %v8338_v0 = vld [vmem:[#allocation21_spill] sm:$0xff]  ;;  %v8339_v33 = vld [vmem:[#allocation22_spill] sm:$0xff] }
 0x175   : > { %v1322_v20 = vmax.f32 %v7785_v56, %v1228_v30  ;;  %v1726_v44 = vpop.permute.xlu1 %1725  ;;  %v1721_v18 = vpop.permute.xlu0 %1720 }
 0x176   : > { %v1321_v61 = vmax.f32 %v7787_v46, %v1223_v28  ;;  %v2302_v24 = vadd.f32 %v5421_v26, %v1726_v44  ;;  %v5330_v59 = vpop.f32.mrb[56].mxu0  ;;  %v2297_v63 = vadd.f32 %v2296_v16, %v1721_v18  ;;  %2820 = vperm.xlu1 %5707, %v2550_v62   ;;  %2815 = vperm.xlu0 %5706, %v2549_v7   ;;  %v5430_v41 = vpop.f32.mrb[56].mxu1  ;;  %v2558_v44 = vld [vmem:[%s8293_s2 + $0x5d8] sm:$0xff]  ;;  %v2557_v18 = vld [vmem:[%s8293_s2 + $0x5d0] sm:$0xff] }
 0x177   : > { %v1238_v50 = vadd.f32 %v5330_v59, %v8333_v13  ;;  %v1232_v42 = vpop.f32.mrb[57].mxu0  ;;  %v2326_v29 = vpop.f32.mrb[57].mxu1 }
 0x178   : > { %v7822_v25 = vmax.f32 %v2408_v9, %v2302_v24  ;;  %v7824_v57 = vmax.f32 %v2407_v23, %v2297_v63  ;;  %v1233_v26 = vadd.f32 %v1232_v42, %v8334_v40  ;;  %v2560_v40 = vld [vmem:[%s8293_s2 + $0x5e8] sm:$0xff] }
 0x179   : > { %v1324_v31 = vmax.f32 %v1320_v17, %v1238_v50  ;;  %v1736_v22 = vpop.permute.xlu1 %1735  ;;  %v1731_v34 = vpop.permute.xlu0 %1730 }
 0x17a   : > { %v1323_v5 = vmax.f32 %v1319_v32, %v1233_v26  ;;  %v2312_v43 = vadd.f32 %v5424_v53, %v1736_v22  ;;  %v5333_v16 = vpop.f32.mrb[58].mxu0  ;;  %v2307_v60 = vadd.f32 %v2306_v3, %v1731_v34  ;;  %2830 = vperm.xlu1 %5707, %v2552_v58   ;;  %2825 = vperm.xlu0 %5706, %v2551_v19   ;;  %v5433_v11 = vpop.f32.mrb[58].mxu1  ;;  %v2559_v26 = vld [vmem:[%s8293_s2 + $0x5e0] sm:$0xff] }
 0x17b   : > { %v1248_v51 = vadd.f32 %v5333_v16, %v8335_v47  ;;  %v1242_v56 = vpop.f32.mrb[59].mxu0  ;;  %v2336_v46 = vpop.f32.mrb[59].mxu1 }
 0x17c   : > { %v2414_v15 = vmax.f32 %v7808_v45, %v2312_v43  ;;  %v2413_v38 = vmax.f32 %v7810_v1, %v2307_v60  ;;  %v1243_v53 = vadd.f32 %v1242_v56, %v8336_v2  ;;  %v2562_v56 = vld [vmem:[%s8293_s2 + $0x5f8] sm:$0xff] }
 0x17d   : > { %v1326_v48 = vmax.f32 %v1322_v20, %v1248_v51  ;;  %v1746_v12 = vpop.permute.xlu1 %1745  ;;  %v1741_v4 = vpop.permute.xlu0 %1740 }
 0x17e   : > { %v1325_v39 = vmax.f32 %v1321_v61, %v1243_v53  ;;  %v2322_v55 = vadd.f32 %v5427_v21, %v1746_v12  ;;  %v5336_v3 = vpop.f32.mrb[60].mxu0  ;;  %v2317_v9 = vadd.f32 %v2316_v10, %v1741_v4  ;;  %2840 = vperm.xlu1 %5707, %v2554_v35   ;;  %2835 = vperm.xlu0 %5706, %v2553_v54   ;;  %v5436_v23 = vpop.f32.mrb[60].mxu1 }
 0x17f   : > { %v1258_v49 = vadd.f32 %v5336_v3, %v8337_v14  ;;  %v1252_v17 = vpop.f32.mrb[61].mxu0  ;;  %v2346_v32 = vpop.f32.mrb[61].mxu1 }
 0x180   : > { %v2416_v27 = vmax.f32 %v7822_v25, %v2322_v55  ;;  %v2415_v8 = vmax.f32 %v7824_v57, %v2317_v9  ;;  %v1253_v21 = vadd.f32 %v1252_v17, %v8338_v0  ;;  %v3595_v55 = vld [vmem:[%s8293_s2 + $0x608] sm:$0xff]  ;;  %v3597_v0 = vld [vmem:[%s8293_s2 + $0x618] sm:$0xff] }
 0x181   : > { %v1328_v36 = vmax.f32 %v1324_v31, %v1258_v49  ;;  %v1756_v30 = vpop.permute.xlu1 %1755  ;;  %v1751_v37 = vpop.permute.xlu0 %1750  ;;  %v3594_v49 = vld [vmem:[%s8293_s2 + $0x600] sm:$0xff] }
 0x182   : > { %v1327_v62 = vmax.f32 %v1323_v5, %v1253_v21  ;;  %v2332_v7 = vadd.f32 %v5430_v41, %v1756_v30  ;;  %v5339_v10 = vpop.f32.mrb[62].mxu0  ;;  %v2327_v45 = vadd.f32 %v2326_v29, %v1751_v37  ;;  %2850 = vperm.xlu1 %5707, %v2556_v52   ;;  %2845 = vperm.xlu0 %5706, %v2555_v6   ;;  %v5439_v1 = vpop.f32.mrb[62].mxu1  ;;  %v8340_v41 = vld [vmem:[#allocation23_spill] sm:$0xff]  ;;  %v3596_v37 = vld [vmem:[%s8293_s2 + $0x610] sm:$0xff] }
 0x183   : > { %v1268_v28 = vadd.f32 %v5339_v10, %v8339_v33  ;;  %v1262_v20 = vpop.f32.mrb[63].mxu0  ;;  %v2356_v61 = vpop.f32.mrb[63].mxu1 }
 0x184   : > { %v1331_v24 = vmax.f32 %v1327_v62, %v1328_v36  ;;  %v2418_v59 = vmax.f32 %v2414_v15, %v2332_v7  ;;  %v2417_v63 = vmax.f32 %v2413_v38, %v2327_v45  ;;  %v1263_v13 = vadd.f32 %v1262_v20, %v8340_v41  ;;  %v2561_v38 = vld [vmem:[%s8293_s2 + $0x5f0] sm:$0xff] }
 0x185   : > { %v1330_v50 = vmax.f32 %v1326_v48, %v1268_v28  ;;  %v1766_v42 = vpop.permute.xlu1 %1765  ;;  %v1761_v58 = vpop.permute.xlu0 %1760  ;;  %v3599_v28 = vld [vmem:[%s8293_s2 + $0x628] sm:$0xff] }
 0x186   : > { %v1329_v19 = vmax.f32 %v1325_v39, %v1263_v13  ;;  %v2342_v29 = vadd.f32 %v5433_v11, %v1766_v42  ;;  %v2337_v25 = vadd.f32 %v2336_v46, %v1761_v58  ;;  %2860 = vperm.xlu1 %5707, %v2558_v44   ;;  %2855 = vperm.xlu0 %5706, %v2557_v18   ;;  %v5446_v57 = vpop.f32.mrb[64].mxu0  ;;  %v7879_v17 = vpop.f32.mrb[64].mxu1 }
 0x187   : > { %v7861_v31 = vpop.f32.mrb[65].mxu0 }
 0x188   : > { %v1332_v22 = vmax.f32 %v1329_v19, %v1330_v50  ;;  %v2420_v34 = vmax.f32 %v2416_v27, %v2342_v29  ;;  %v2419_v5 = vmax.f32 %v2415_v8, %v2337_v25  ;;  %v7881_v8 = vpop.f32.mrb[65].mxu1  ;;  %v3601_v25 = vld [vmem:[%s8293_s2 + $0x638] sm:$0xff] }
 0x189   : > { %v1776_v43 = vpop.permute.xlu1 %1775  ;;  %v1771_v16 = vpop.permute.xlu0 %1770 }
 0x18a   : > { %v1333_v60 = vmax.f32 %v1331_v24, %v1332_v22  ;;  %v2352_v11 = vadd.f32 %v5436_v23, %v1776_v43  ;;  %v2347_v47 = vadd.f32 %v2346_v32, %v1771_v16  ;;  %2870 = vperm.xlu1 %5707, %v2560_v40   ;;  %2865 = vperm.xlu0 %5706, %v2559_v26   ;;  %v7863_v51 = vpop.f32.mrb[66].mxu0  ;;  %v7889_v62 = vpop.f32.mrb[66].mxu1 }
 0x18b   : > { %v7868_v35 = vpop.f32.mrb[67].mxu0  ;;  %v7891_v33 = vpop.f32.mrb[67].mxu1 }
 0x18c   : > { %v1334_v54 = vrot.slane %v1333_v60, 4  ;;  %v2422_v46 = vmax.f32 %v2418_v59, %v2352_v11  ;;  %v2421_v15 = vmax.f32 %v2417_v63, %v2347_v47 }
 0x18d   : > { %v1786_v2 = vpop.permute.xlu1 %1785  ;;  %v1781_v53 = vpop.permute.xlu0 %1780 }
 0x18e   : > { %v2425_v48 = vmax.f32 %v2421_v15, %v2422_v46  ;;  %v2362_v12 = vadd.f32 %v5439_v1, %v1786_v2  ;;  %v2357_v4 = vadd.f32 %v2356_v61, %v1781_v53  ;;  %2880 = vperm.xlu1 %5707, %v2562_v56   ;;  %v5452_v39 = vpop.f32.mrb[68].mxu0  ;;  %2875 = vperm.xlu0 %5706, %v2561_v38   ;;  %v3598_v61 = vld [vmem:[%s8293_s2 + $0x620] sm:$0xff]  ;;  %v7899_v24 = vpop.f32.mrb[68].mxu1  ;;  %v3603_v38 = vld [vmem:[%s8293_s2 + $0x648] sm:$0xff] }
 0x18f   : > { %v3161_v3 = vpop.f32.mrb[69].mxu0  ;;  %v1335_v9 = vmax.f32 %v1333_v60, %v1334_v54  ;;  %v7902_v29 = vpop.f32.mrb[69].mxu1 }
 0x190   : > { %v2424_v23 = vmax.f32 %v2420_v34, %v2362_v12  ;;  %v2423_v14 = vmax.f32 %v2419_v5, %v2357_v4 }
 0x191   : > { %v2571_v52 = vpop.permute.xlu1 %2570  ;;  %v2566_v6 = vpop.permute.xlu0 %2565  ;;  %v1336_v36 = vrot.slane %v1335_v9, 2 }
 0x192   : > { %v2426_v32 = vmax.f32 %v2423_v14, %v2424_v23  ;;  %3665 = vperm.xlu1 %5707, %v3595_v55   ;;  %v5455_v27 = vpop.f32.mrb[70].mxu0  ;;  %3660 = vperm.xlu0 %5706, %v3594_v49   ;;  %v3147_v59 = vadd.f32 %v5446_v57, %v2571_v52  ;;  %v3142_v50 = vadd.f32 %v7861_v31, %v2566_v6  ;;  %v3600_v31 = vld [vmem:[%s8293_s2 + $0x630] sm:$0xff]  ;;  %v7910_v5 = vpop.f32.mrb[70].mxu1  ;;  %v3605_v52 = vld [vmem:[%s8293_s2 + $0x658] sm:$0xff] }
 0x193   : > { %v3171_v21 = vpop.f32.mrb[71].mxu0  ;;  %v1337_v44 = vmax.f32 %v1335_v9, %v1336_v36  ;;  %v7914_v15 = vpop.f32.mrb[71].mxu1 }
 0x194   : > { %v2427_v30 = vmax.f32 %v2425_v48, %v2426_v32 }
 0x195   : > { %v2581_v7 = vpop.permute.xlu1 %2580  ;;  %v2576_v10 = vpop.permute.xlu0 %2575  ;;  %v1338_v26 = vrot.slane %v1337_v44, 1 }
 0x196   : > { %v2428_v45 = vrot.slane %v2427_v30, 4  ;;  %3675 = vperm.xlu1 %5707, %v3597_v0   ;;  %v5458_v1 = vpop.f32.mrb[72].mxu0  ;;  %3670 = vperm.xlu0 %5706, %v3596_v37   ;;  %v3157_v43 = vadd.f32 %v7863_v51, %v2581_v7  ;;  %v3152_v47 = vadd.f32 %v7868_v35, %v2576_v10  ;;  %v3602_v35 = vld [vmem:[%s8293_s2 + $0x640] sm:$0xff]  ;;  %v7926_v4 = vpop.f32.mrb[72].mxu1  ;;  %v3604_v0 = vld [vmem:[%s8293_s2 + $0x650] sm:$0xff] }
 0x197   : > { %v3181_v20 = vpop.f32.mrb[73].mxu0  ;;  %v7919_v53 = vmax.f32 %v1337_v44, %v1338_v26  ;;  %v7930_v49 = vpop.f32.mrb[73].mxu1  ;;  %v3608_v26 = vld [vmem:[%s8293_s2 + $0x670] sm:$0xff] }
 0x198   : > { %v2429_v18 = vmax.f32 %v2427_v30, %v2428_v45 }
 0x199   : > { %v2591_v63 = vpop.permute.xlu1 %2590  ;;  %v2586_v41 = vpop.permute.xlu0 %2585 }
 0x19a   : > { %v2430_v13 = vrot.slane %v2429_v18, 2  ;;  %v3167_v42 = vadd.f32 %v5452_v39, %v2591_v63  ;;  %v3162_v58 = vadd.f32 %v3161_v3, %v2586_v41  ;;  %3685 = vperm.xlu1 %5707, %v3599_v28   ;;  %v5461_v19 = vpop.f32.mrb[74].mxu0  ;;  %3680 = vperm.xlu0 %5706, %v3598_v61   ;;  %v3634_v3 = vld [vmem:[%s8293_s2 + $0x740] sm:$0xff] }
 0x19b   : > { %v3191_v40 = vpop.f32.mrb[75].mxu0 }
 0x19c   : > { %v2431_v22 = vmax.f32 %v2429_v18, %v2430_v13  ;;  %v3461_v57 = vmax.f32 %v3147_v59, %v3167_v42  ;;  %v3460_v34 = vmax.f32 %v3142_v50, %v3162_v58  ;;  %v3606_v18 = vld [vmem:[%s8293_s2 + $0x660] sm:$0xff]  ;;  %v3609_v58 = vld [vmem:[%s8293_s2 + $0x678] sm:$0xff] }
 0x19d   : > { %v2601_v16 = vpop.permute.xlu1 %2600  ;;  %v2596_v60 = vpop.permute.xlu0 %2595 }
 0x19e   : > { %v2432_v11 = vrot.slane %v2431_v22, 1  ;;  %v3177_v56 = vadd.f32 %v5455_v27, %v2601_v16  ;;  %v3172_v54 = vadd.f32 %v3171_v21, %v2596_v60  ;;  %3695 = vperm.xlu1 %5707, %v3601_v25   ;;  %v5464_v46 = vpop.f32.mrb[76].mxu0  ;;  %3690 = vperm.xlu0 %5706, %v3600_v31   ;;  %v7938_v21 = vpop.f32.mrb[74].mxu1 }
 0x19f   : > { %v3201_v2 = vpop.f32.mrb[77].mxu0  ;;  %v7940_v45 = vpop.f32.mrb[75].mxu1 }
 0x1a0   : > { %v7921_v51 = vmax.f32 %v2431_v22, %v2432_v11  ;;  %v3463_v48 = vmax.f32 %v3157_v43, %v3177_v56  ;;  %v3462_v12 = vmax.f32 %v3152_v47, %v3172_v54  ;;  %v7948_v61 = vpop.f32.mrb[76].mxu1  ;;  %v3611_v11 = vld [vmem:[%s8293_s2 + $0x688] sm:$0xff] }
 0x1a1   : > { %v2611_v39 = vpop.permute.xlu1 %2610  ;;  %v2606_v55 = vpop.permute.xlu0 %2605 }
 0x1a2   : > { %v3187_v9 = vadd.f32 %v5458_v1, %v2611_v39  ;;  %v3182_v23 = vadd.f32 %v3181_v20, %v2606_v55  ;;  %3705 = vperm.xlu1 %5707, %v3603_v38   ;;  %v5467_v14 = vpop.f32.mrb[78].mxu0  ;;  %3700 = vperm.xlu0 %5706, %v3602_v35   ;;  %v3607_v1 = vld [vmem:[%s8293_s2 + $0x668] sm:$0xff]  ;;  %v7950_v42 = vpop.f32.mrb[77].mxu1 }
 0x1a3   : > { %v3211_v6 = vpop.f32.mrb[79].mxu0  ;;  %v7958_v22 = vpop.f32.mrb[78].mxu1 }
 0x1a4   : > { %v3465_v32 = vmax.f32 %v3461_v57, %v3187_v9  ;;  %v3464_v27 = vmax.f32 %v3460_v34, %v3182_v23  ;;  %v7960_v60 = vpop.f32.mrb[79].mxu1  ;;  %v3613_v9 = vld [vmem:[%s8293_s2 + $0x698] sm:$0xff] }
 0x1a5   : > { %v2621_v36 = vpop.permute.xlu1 %2620  ;;  %v2616_v30 = vpop.permute.xlu0 %2615 }
 0x1a6   : > { %v3197_v37 = vadd.f32 %v5461_v19, %v2621_v36  ;;  %v3192_v7 = vadd.f32 %v3191_v40, %v2616_v30  ;;  %3715 = vperm.xlu1 %5707, %v3605_v52   ;;  %v5470_v10 = vpop.f32.mrb[80].mxu0  ;;  %3710 = vperm.xlu0 %5706, %v3604_v0   ;;  %v7968_v38 = vpop.f32.mrb[80].mxu1 }
 0x1a7   : > { %v3221_v28 = vpop.f32.mrb[81].mxu0  ;;  %v7970_v55 = vpop.f32.mrb[81].mxu1 }
 0x1a8   : > { %v3467_v20 = vmax.f32 %v3463_v48, %v3197_v37  ;;  %v3466_v44 = vmax.f32 %v3462_v12, %v3192_v7 }
 0x1a9   : > { %v2631_v59 = vpop.permute.xlu1 %2630  ;;  %v2626_v63 = vpop.permute.xlu0 %2625 }
 0x1aa   : > { %v3207_v41 = vadd.f32 %v5464_v46, %v2631_v59  ;;  %v3202_v13 = vadd.f32 %v3201_v2, %v2626_v63  ;;  %3725 = vperm.xlu1 %5707, %v3607_v1   ;;  %v5473_v50 = vpop.f32.mrb[82].mxu0  ;;  %3720 = vperm.xlu0 %5706, %v3606_v18   ;;  %v3610_v46 = vld [vmem:[%s8293_s2 + $0x680] sm:$0xff] }
 0x1ab   : > { %v3231_v19 = vpop.f32.mrb[83].mxu0 }
 0x1ac   : > { %v3469_v25 = vmax.f32 %v3465_v32, %v3207_v41  ;;  %v3468_v40 = vmax.f32 %v3464_v27, %v3202_v13  ;;  %v7978_v32 = vpop.f32.mrb[82].mxu1 }
 0x1ad   : > { %v2641_v57 = vpop.permute.xlu1 %2640  ;;  %v2636_v34 = vpop.permute.xlu0 %2635 }
 0x1ae   : > { %v3217_v31 = vadd.f32 %v5467_v14, %v2641_v57  ;;  %v3212_v43 = vadd.f32 %v3211_v6, %v2636_v34  ;;  %3735 = vperm.xlu1 %5707, %v3609_v58   ;;  %v5476_v16 = vpop.f32.mrb[84].mxu0  ;;  %3730 = vperm.xlu0 %5706, %v3608_v26   ;;  %v3612_v6 = vld [vmem:[%s8293_s2 + $0x690] sm:$0xff]  ;;  %v7980_v7 = vpop.f32.mrb[83].mxu1 }
 0x1af   : > { %v3241_v47 = vpop.f32.mrb[85].mxu0  ;;  %v7988_v18 = vpop.f32.mrb[84].mxu1  ;;  %v3616_v57 = vld [vmem:[%s8293_s2 + $0x6b0] sm:$0xff] }
 0x1b0   : > { %v3471_v56 = vmax.f32 %v3467_v20, %v3217_v31  ;;  %v3470_v54 = vmax.f32 %v3466_v44, %v3212_v43  ;;  %v3614_v44 = vld [vmem:[%s8293_s2 + $0x6a0] sm:$0xff]  ;;  %v7990_v58 = vpop.f32.mrb[85].mxu1 }
 0x1b1   : > { %v2651_v2 = vpop.permute.xlu1 %2650  ;;  %v2646_v48 = vpop.permute.xlu0 %2645 }
 0x1b2   : > { %v3227_v12 = vadd.f32 %v5470_v10, %v2651_v2  ;;  %v3222_v35 = vadd.f32 %v3221_v28, %v2646_v48  ;;  %3745 = vperm.xlu1 %5707, %v3611_v11   ;;  %v5479_v39 = vpop.f32.mrb[86].mxu0  ;;  %3740 = vperm.xlu0 %5706, %v3610_v46   ;;  %v3615_v10 = vld [vmem:[%s8293_s2 + $0x6a8] sm:$0xff] }
 0x1b3   : > { %v3251_v23 = vpop.f32.mrb[87].mxu0  ;;  %v7998_v34 = vpop.f32.mrb[86].mxu1 }
 0x1b4   : > { %v3473_v14 = vmax.f32 %v3469_v25, %v3227_v12  ;;  %v3472_v52 = vmax.f32 %v3468_v40, %v3222_v35  ;;  %v3618_v12 = vld [vmem:[%s8293_s2 + $0x6c0] sm:$0xff] }
 0x1b5   : > { %v2661_v27 = vpop.permute.xlu1 %2660  ;;  %v2656_v0 = vpop.permute.xlu0 %2655 }
 0x1b6   : > { %v3237_v36 = vadd.f32 %v5473_v50, %v2661_v27  ;;  %v3232_v30 = vadd.f32 %v3231_v19, %v2656_v0  ;;  %3755 = vperm.xlu1 %5707, %v3613_v9   ;;  %v5482_v37 = vpop.f32.mrb[88].mxu0  ;;  %3750 = vperm.xlu0 %5706, %v3612_v6   ;;  %v3617_v19 = vld [vmem:[%s8293_s2 + $0x6b8] sm:$0xff] }
 0x1b7   : > { %v3261_v1 = vpop.f32.mrb[89].mxu0  ;;  %v3621_v27 = vld [vmem:[%s8293_s2 + $0x6d8] sm:$0xff] }
 0x1b8   : > { %v3475_v28 = vmax.f32 %v3471_v56, %v3237_v36  ;;  %v3474_v20 = vmax.f32 %v3470_v54, %v3232_v30  ;;  %v8000_v56 = vpop.f32.mrb[87].mxu1  ;;  %v3619_v54 = vld [vmem:[%s8293_s2 + $0x6c8] sm:$0xff] }
 0x1b9   : > { %v2671_v59 = vpop.permute.xlu1 %2670  ;;  %v2666_v63 = vpop.permute.xlu0 %2665 }
 0x1ba   : > { %v3247_v41 = vadd.f32 %v5476_v16, %v2671_v59  ;;  %v3242_v13 = vadd.f32 %v3241_v47, %v2666_v63  ;;  %3765 = vperm.xlu1 %5707, %v3615_v10   ;;  %v5485_v50 = vpop.f32.mrb[90].mxu0  ;;  %3760 = vperm.xlu0 %5706, %v3614_v44   ;;  %v8008_v35 = vpop.f32.mrb[88].mxu1  ;;  %v3620_v10 = vld [vmem:[%s8293_s2 + $0x6d0] sm:$0xff] }
 0x1bb   : > { %v3271_v25 = vpop.f32.mrb[91].mxu0  ;;  %v8010_v6 = vpop.f32.mrb[89].mxu1 }
 0x1bc   : > { %v3477_v40 = vmax.f32 %v3473_v14, %v3247_v41  ;;  %v3476_v26 = vmax.f32 %v3472_v52, %v3242_v13  ;;  %v3623_v41 = vld [vmem:[%s8293_s2 + $0x6e8] sm:$0xff] }
 0x1bd   : > { %v2681_v31 = vpop.permute.xlu1 %2680  ;;  %v2676_v43 = vpop.permute.xlu0 %2675 }
 0x1be   : > { %v3257_v16 = vadd.f32 %v5479_v39, %v2681_v31  ;;  %v3252_v11 = vadd.f32 %v3251_v23, %v2676_v43  ;;  %3775 = vperm.xlu1 %5707, %v3617_v19   ;;  %v5488_v47 = vpop.f32.mrb[92].mxu0  ;;  %3770 = vperm.xlu0 %5706, %v3616_v57  }
 0x1bf   : > { %v3281_v46 = vpop.f32.mrb[93].mxu0 }
 0x1c0   : > { %v3479_v2 = vmax.f32 %v3475_v28, %v3257_v16  ;;  %v3478_v48 = vmax.f32 %v3474_v20, %v3252_v11  ;;  %v8018_v28 = vpop.f32.mrb[90].mxu1 }
 0x1c1   : > { %v2691_v39 = vpop.permute.xlu1 %2690  ;;  %v2686_v9 = vpop.permute.xlu0 %2685 }
 0x1c2   : > { %v3267_v23 = vadd.f32 %v5482_v37, %v2691_v39  ;;  %v3262_v14 = vadd.f32 %v3261_v1, %v2686_v9  ;;  %3785 = vperm.xlu1 %5707, %v3619_v54   ;;  %v5491_v52 = vpop.f32.mrb[94].mxu0  ;;  %3780 = vperm.xlu0 %5706, %v3618_v12   ;;  %v8020_v63 = vpop.f32.mrb[91].mxu1  ;;  %v3625_v54 = vld [vmem:[%s8293_s2 + $0x6f8] sm:$0xff]  ;;  %v3624_v39 = vld [vmem:[%s8293_s2 + $0x6f0] sm:$0xff] }
 0x1c3   : > { %v3291_v0 = vpop.f32.mrb[95].mxu0  ;;  %v8028_v57 = vpop.f32.mrb[92].mxu1 }
 0x1c4   : > { %v3481_v36 = vmax.f32 %v3477_v40, %v3267_v23  ;;  %v3480_v30 = vmax.f32 %v3476_v26, %v3262_v14  ;;  %v3622_v26 = vld [vmem:[%s8293_s2 + $0x6e0] sm:$0xff]  ;;  %v8030_v11 = vpop.f32.mrb[93].mxu1 }
 0x1c5   : > { %v2701_v37 = vpop.permute.xlu1 %2700  ;;  %v2696_v1 = vpop.permute.xlu0 %2695 }
 0x1c6   : > { %v3277_v20 = vadd.f32 %v5485_v50, %v2701_v37  ;;  %v3272_v44 = vadd.f32 %v3271_v25, %v2696_v1  ;;  %3795 = vperm.xlu1 %5707, %v3621_v27   ;;  %v5494_v59 = vpop.f32.mrb[96].mxu0  ;;  %3790 = vperm.xlu0 %5706, %v3620_v10  }
 0x1c7   : > { %v3301_v13 = vpop.f32.mrb[97].mxu0  ;;  %v8038_v9 = vpop.f32.mrb[94].mxu1 }
 0x1c8   : > { %v3483_v19 = vmax.f32 %v3479_v2, %v3277_v20  ;;  %v3482_v40 = vmax.f32 %v3478_v48, %v3272_v44  ;;  %v8040_v10 = vpop.f32.mrb[95].mxu1  ;;  %v3626_v20 = vld [vmem:[%s8293_s2 + $0x700] sm:$0xff] }
 0x1c9   : > { %v2711_v50 = vpop.permute.xlu1 %2710  ;;  %v2706_v25 = vpop.permute.xlu0 %2705 }
 0x1ca   : > { %v3287_v31 = vadd.f32 %v5488_v47, %v2711_v50  ;;  %v3282_v43 = vadd.f32 %v3281_v46, %v2706_v25  ;;  %3805 = vperm.xlu1 %5707, %v3623_v41   ;;  %v5497_v16 = vpop.f32.mrb[98].mxu0  ;;  %3800 = vperm.xlu0 %5706, %v3622_v26  }
 0x1cb   : > { %v3311_v2 = vpop.f32.mrb[99].mxu0 }
 0x1cc   : > { %v3485_v48 = vmax.f32 %v3481_v36, %v3287_v31  ;;  %v3484_v12 = vmax.f32 %v3480_v30, %v3282_v43  ;;  %v3627_v36 = vld [vmem:[%s8293_s2 + $0x708] sm:$0xff] }
 0x1cd   : > { %v2721_v47 = vpop.permute.xlu1 %2720  ;;  %v2716_v46 = vpop.permute.xlu0 %2715 }
 0x1ce   : > { %v3297_v23 = vadd.f32 %v5491_v52, %v2721_v47  ;;  %v3292_v14 = vadd.f32 %v3291_v0, %v2716_v46  ;;  %3815 = vperm.xlu1 %5707, %v3625_v54   ;;  %v5500_v27 = vpop.f32.mrb[100].mxu0  ;;  %3810 = vperm.xlu0 %5706, %v3624_v39   ;;  %v8048_v44 = vpop.f32.mrb[96].mxu1  ;;  %v3628_v54 = vld [vmem:[%s8293_s2 + $0x710] sm:$0xff] }
 0x1cf   : > { %v3321_v30 = vpop.f32.mrb[101].mxu0  ;;  %v8050_v25 = vpop.f32.mrb[97].mxu1 }
 0x1d0   : > { %v3487_v37 = vmax.f32 %v3483_v19, %v3297_v23  ;;  %v3486_v1 = vmax.f32 %v3482_v40, %v3292_v14  ;;  %v3629_v19 = vld [vmem:[%s8293_s2 + $0x718] sm:$0xff] }
 0x1d1   : > { %v2731_v52 = vpop.permute.xlu1 %2730  ;;  %v2726_v0 = vpop.permute.xlu0 %2725 }
 0x1d2   : > { %v3307_v41 = vadd.f32 %v5494_v59, %v2731_v52  ;;  %v3302_v26 = vadd.f32 %v3301_v13, %v2726_v0  ;;  %3825 = vperm.xlu1 %5707, %v3627_v36   ;;  %v5503_v50 = vpop.f32.mrb[102].mxu0  ;;  %3820 = vperm.xlu0 %5706, %v3626_v20   ;;  %v8058_v39 = vpop.f32.mrb[98].mxu1  ;;  %v3630_v52 = vld [vmem:[%s8293_s2 + $0x720] sm:$0xff] }
 0x1d3   : > { %v3331_v40 = vpop.f32.mrb[103].mxu0  ;;  %v8060_v14 = vpop.f32.mrb[99].mxu1 }
 0x1d4   : > { %v3489_v31 = vmax.f32 %v3485_v48, %v3307_v41  ;;  %v3488_v43 = vmax.f32 %v3484_v12, %v3302_v26  ;;  %v3631_v48 = vld [vmem:[%s8293_s2 + $0x728] sm:$0xff] }
 0x1d5   : > { %v2741_v59 = vpop.permute.xlu1 %2740  ;;  %v2736_v13 = vpop.permute.xlu0 %2735 }
 0x1d6   : > { %v3317_v47 = vadd.f32 %v5497_v16, %v2741_v59  ;;  %v3312_v46 = vadd.f32 %v3311_v2, %v2736_v13  ;;  %3835 = vperm.xlu1 %5707, %v3629_v19   ;;  %v5506_v23 = vpop.f32.mrb[104].mxu0  ;;  %3830 = vperm.xlu0 %5706, %v3628_v54  }
 0x1d7   : > { %v3341_v12 = vpop.f32.mrb[105].mxu0  ;;  %v8068_v0 = vpop.f32.mrb[100].mxu1 }
 0x1d8   : > { %v3491_v36 = vmax.f32 %v3487_v37, %v3317_v47  ;;  %v3490_v20 = vmax.f32 %v3486_v1, %v3312_v46  ;;  %v8070_v54 = vpop.f32.mrb[101].mxu1  ;;  %v3633_v37 = vld [vmem:[%s8293_s2 + $0x738] sm:$0xff]  ;;  %v3632_v47 = vld [vmem:[%s8293_s2 + $0x730] sm:$0xff] }
 0x1d9   : > { %v2751_v16 = vpop.permute.xlu1 %2750  ;;  %v2746_v2 = vpop.permute.xlu0 %2745 }
 0x1da   : > { %v3327_v41 = vadd.f32 %v5500_v27, %v2751_v16  ;;  %v3322_v26 = vadd.f32 %v3321_v30, %v2746_v2  ;;  %3845 = vperm.xlu1 %5707, %v3631_v48   ;;  %v5509_v19 = vpop.f32.mrb[106].mxu0  ;;  %3840 = vperm.xlu0 %5706, %v3630_v52  }
 0x1db   : > { %v3351_v1 = vpop.f32.mrb[107].mxu0  ;;  %v8078_v46 = vpop.f32.mrb[102].mxu1 }
 0x1dc   : > { %v3493_v59 = vmax.f32 %v3489_v31, %v3327_v41  ;;  %v3492_v13 = vmax.f32 %v3488_v43, %v3322_v26  ;;  %8341 = vst [vmem:[#allocation2_spill] sm:$0xff] %v8078_v46  ;;  %v8080_v52 = vpop.f32.mrb[103].mxu1  ;;  %v3635_v31 = vld [vmem:[%s8293_s2 + $0x748] sm:$0xff] }
 0x1dd   : > { %v2761_v27 = vpop.permute.xlu1 %2760  ;;  %v2756_v30 = vpop.permute.xlu0 %2755  ;;  %8342 = vst [vmem:[#allocation3_spill] sm:$0xff] %v8080_v52 }
 0x1de   : > { %v3337_v48 = vadd.f32 %v5503_v50, %v2761_v27  ;;  %v3332_v16 = vadd.f32 %v3331_v40, %v2756_v30  ;;  %3855 = vperm.xlu1 %5707, %v3633_v37   ;;  %v5512_v2 = vpop.f32.mrb[108].mxu0  ;;  %3850 = vperm.xlu0 %5706, %v3632_v47  }
 0x1df   : > { %v3361_v43 = vpop.f32.mrb[109].mxu0  ;;  %v8088_v46 = vpop.f32.mrb[104].mxu1 }
 0x1e0   : > { %v3495_v41 = vmax.f32 %v3491_v36, %v3337_v48  ;;  %v3494_v26 = vmax.f32 %v3490_v20, %v3332_v16  ;;  %8343 = vst [vmem:[#allocation4_spill] sm:$0xff] %v8088_v46  ;;  %v8090_v47 = vpop.f32.mrb[105].mxu1  ;;  %v3637_v36 = vld [vmem:[%s8293_s2 + $0x758] sm:$0xff]  ;;  %v3636_v46 = vld [vmem:[%s8293_s2 + $0x750] sm:$0xff] }
 0x1e1   : > { %v2771_v50 = vpop.permute.xlu1 %2770  ;;  %v2766_v40 = vpop.permute.xlu0 %2765  ;;  %8344 = vst [vmem:[#allocation5_spill] sm:$0xff] %v8090_v47 }
 0x1e2   : > { %v3347_v37 = vadd.f32 %v5506_v23, %v2771_v50  ;;  %v3342_v27 = vadd.f32 %v3341_v12, %v2766_v40  ;;  %3865 = vperm.xlu1 %5707, %v3635_v31   ;;  %v5515_v30 = vpop.f32.mrb[110].mxu0  ;;  %3860 = vperm.xlu0 %5706, %v3634_v3  }
 0x1e3   : > { %v3371_v20 = vpop.f32.mrb[111].mxu0  ;;  %v8098_v52 = vpop.f32.mrb[106].mxu1 }
 0x1e4   : > { %v3497_v48 = vmax.f32 %v3493_v59, %v3347_v37  ;;  %v3496_v16 = vmax.f32 %v3492_v13, %v3342_v27  ;;  %8345 = vst [vmem:[#allocation6_spill] sm:$0xff] %v8098_v52  ;;  %v8100_v3 = vpop.f32.mrb[107].mxu1  ;;  %v3639_v59 = vld [vmem:[%s8293_s2 + $0x768] sm:$0xff]  ;;  %v3638_v52 = vld [vmem:[%s8293_s2 + $0x760] sm:$0xff] }
 0x1e5   : > { %v2781_v23 = vpop.permute.xlu1 %2780  ;;  %v2776_v12 = vpop.permute.xlu0 %2775  ;;  %8346 = vst [vmem:[#allocation7_spill] sm:$0xff] %v8100_v3 }
 0x1e6   : > { %v3357_v31 = vadd.f32 %v5509_v19, %v2781_v23  ;;  %v3352_v50 = vadd.f32 %v3351_v1, %v2776_v12  ;;  %3875 = vperm.xlu1 %5707, %v3637_v36   ;;  %v5518_v40 = vpop.f32.mrb[112].mxu0  ;;  %3870 = vperm.xlu0 %5706, %v3636_v46  }
 0x1e7   : > { %v3381_v13 = vpop.f32.mrb[113].mxu0  ;;  %v8108_v47 = vpop.f32.mrb[108].mxu1 }
 0x1e8   : > { %v3499_v37 = vmax.f32 %v3495_v41, %v3357_v31  ;;  %v3498_v27 = vmax.f32 %v3494_v26, %v3352_v50  ;;  %8347 = vst [vmem:[#allocation8_spill] sm:$0xff] %v8108_v47  ;;  %v8110_v46 = vpop.f32.mrb[109].mxu1  ;;  %v3641_v41 = vld [vmem:[%s8293_s2 + $0x778] sm:$0xff]  ;;  %v3640_v47 = vld [vmem:[%s8293_s2 + $0x770] sm:$0xff] }
 0x1e9   : > { %v2791_v19 = vpop.permute.xlu1 %2790  ;;  %v2786_v1 = vpop.permute.xlu0 %2785  ;;  %8348 = vst [vmem:[#allocation9_spill] sm:$0xff] %v8110_v46 }
 0x1ea   : > { %v3367_v36 = vadd.f32 %v5512_v2, %v2791_v19  ;;  %v3362_v23 = vadd.f32 %v3361_v43, %v2786_v1  ;;  %3885 = vperm.xlu1 %5707, %v3639_v59   ;;  %v5521_v12 = vpop.f32.mrb[114].mxu0  ;;  %3880 = vperm.xlu0 %5706, %v3638_v52  }
 0x1eb   : > { %v3391_v26 = vpop.f32.mrb[115].mxu0  ;;  %v8118_v3 = vpop.f32.mrb[110].mxu1 }
 0x1ec   : > { %v3501_v31 = vmax.f32 %v3497_v48, %v3367_v36  ;;  %v3500_v50 = vmax.f32 %v3496_v16, %v3362_v23  ;;  %8349 = vst [vmem:[#allocation10_spill] sm:$0xff] %v8118_v3  ;;  %v8120_v52 = vpop.f32.mrb[111].mxu1  ;;  %v3643_v48 = vld [vmem:[%s8293_s2 + $0x788] sm:$0xff]  ;;  %v3642_v3 = vld [vmem:[%s8293_s2 + $0x780] sm:$0xff] }
 0x1ed   : > { %v2801_v2 = vpop.permute.xlu1 %2800  ;;  %v2796_v43 = vpop.permute.xlu0 %2795  ;;  %8350 = vst [vmem:[#allocation11_spill] sm:$0xff] %v8120_v52 }
 0x1ee   : > { %v3377_v59 = vadd.f32 %v5515_v30, %v2801_v2  ;;  %v3372_v19 = vadd.f32 %v3371_v20, %v2796_v43  ;;  %3895 = vperm.xlu1 %5707, %v3641_v41   ;;  %v5524_v1 = vpop.f32.mrb[116].mxu0  ;;  %3890 = vperm.xlu0 %5706, %v3640_v47  }
 0x1ef   : > { %v3401_v16 = vpop.f32.mrb[117].mxu0 }
 0x1f0   : > { %v3503_v36 = vmax.f32 %v3499_v37, %v3377_v59  ;;  %v3502_v23 = vmax.f32 %v3498_v27, %v3372_v19  ;;  %v8128_v46 = vpop.f32.mrb[112].mxu1  ;;  %v3645_v37 = vld [vmem:[%s8293_s2 + $0x798] sm:$0xff] }
 0x1f1   : > { %8351 = vst [vmem:[#allocation12_spill] sm:$0xff] %v8128_v46  ;;  %v2811_v30 = vpop.permute.xlu1 %2810  ;;  %v2806_v20 = vpop.permute.xlu0 %2805  ;;  %v3644_v46 = vld [vmem:[%s8293_s2 + $0x790] sm:$0xff] }
 0x1f2   : > { %v3387_v41 = vadd.f32 %v5518_v40, %v2811_v30  ;;  %v3382_v2 = vadd.f32 %v3381_v13, %v2806_v20  ;;  %3905 = vperm.xlu1 %5707, %v3643_v48   ;;  %v5527_v43 = vpop.f32.mrb[118].mxu0  ;;  %v8130_v47 = vpop.f32.mrb[113].mxu1  ;;  %3900 = vperm.xlu0 %5706, %v3642_v3  }
 0x1f3   : > { %8352 = vst [vmem:[#allocation13_spill] sm:$0xff] %v8130_v47  ;;  %v3411_v27 = vpop.f32.mrb[119].mxu0 }
 0x1f4   : > { %v3505_v59 = vmax.f32 %v3501_v31, %v3387_v41  ;;  %v3504_v19 = vmax.f32 %v3500_v50, %v3382_v2  ;;  %v8138_v52 = vpop.f32.mrb[114].mxu1  ;;  %v3647_v31 = vld [vmem:[%s8293_s2 + $0x7a8] sm:$0xff] }
 0x1f5   : > { %8353 = vst [vmem:[#allocation14_spill] sm:$0xff] %v8138_v52  ;;  %v2821_v40 = vpop.permute.xlu1 %2820  ;;  %v2816_v13 = vpop.permute.xlu0 %2815  ;;  %v3646_v52 = vld [vmem:[%s8293_s2 + $0x7a0] sm:$0xff] }
 0x1f6   : > { %v3397_v48 = vadd.f32 %v5521_v12, %v2821_v40  ;;  %v3392_v30 = vadd.f32 %v3391_v26, %v2816_v13  ;;  %3915 = vperm.xlu1 %5707, %v3645_v37   ;;  %v5530_v20 = vpop.f32.mrb[120].mxu0  ;;  %v8140_v3 = vpop.f32.mrb[115].mxu1  ;;  %3910 = vperm.xlu0 %5706, %v3644_v46  }
 0x1f7   : > { %8354 = vst [vmem:[#allocation15_spill] sm:$0xff] %v8140_v3  ;;  %v3421_v50 = vpop.f32.mrb[121].mxu0 }
 0x1f8   : > { %v3507_v41 = vmax.f32 %v3503_v36, %v3397_v48  ;;  %v3506_v2 = vmax.f32 %v3502_v23, %v3392_v30  ;;  %v8148_v47 = vpop.f32.mrb[116].mxu1  ;;  %v3649_v36 = vld [vmem:[%s8293_s2 + $0x7b8] sm:$0xff] }
 0x1f9   : > { %8355 = vst [vmem:[#allocation16_spill] sm:$0xff] %v8148_v47  ;;  %v2831_v12 = vpop.permute.xlu1 %2830  ;;  %v2826_v26 = vpop.permute.xlu0 %2825  ;;  %v3648_v47 = vld [vmem:[%s8293_s2 + $0x7b0] sm:$0xff] }
 0x1fa   : > { %v3407_v37 = vadd.f32 %v5524_v1, %v2831_v12  ;;  %v3402_v40 = vadd.f32 %v3401_v16, %v2826_v26  ;;  %3925 = vperm.xlu1 %5707, %v3647_v31   ;;  %v5533_v13 = vpop.f32.mrb[122].mxu0  ;;  %v8150_v46 = vpop.f32.mrb[117].mxu1  ;;  %3920 = vperm.xlu0 %5706, %v3646_v52  }
 0x1fb   : > { %8356 = vst [vmem:[#allocation17_spill] sm:$0xff] %v8150_v46  ;;  %v3431_v23 = vpop.f32.mrb[123].mxu0 }
 0x1fc   : > { %v3509_v48 = vmax.f32 %v3505_v59, %v3407_v37  ;;  %v3508_v30 = vmax.f32 %v3504_v19, %v3402_v40  ;;  %v8158_v3 = vpop.f32.mrb[118].mxu1  ;;  %v3651_v59 = vld [vmem:[%s8293_s2 + $0x7c8] sm:$0xff] }
 0x1fd   : > { %8357 = vst [vmem:[#allocation18_spill] sm:$0xff] %v8158_v3  ;;  %v2841_v1 = vpop.permute.xlu1 %2840  ;;  %v2836_v16 = vpop.permute.xlu0 %2835  ;;  %v3650_v3 = vld [vmem:[%s8293_s2 + $0x7c0] sm:$0xff] }
 0x1fe   : > { %v3417_v31 = vadd.f32 %v5527_v43, %v2841_v1  ;;  %v3412_v12 = vadd.f32 %v3411_v27, %v2836_v16  ;;  %3935 = vperm.xlu1 %5707, %v3649_v36   ;;  %v5536_v26 = vpop.f32.mrb[124].mxu0  ;;  %v8160_v52 = vpop.f32.mrb[119].mxu1  ;;  %3930 = vperm.xlu0 %5706, %v3648_v47  }
 0x1ff   : > { %8358 = vst [vmem:[#allocation19_spill] sm:$0xff] %v8160_v52  ;;  %v3441_v19 = vpop.f32.mrb[125].mxu0 }
 0x200   : > { %v3511_v37 = vmax.f32 %v3507_v41, %v3417_v31  ;;  %v3510_v40 = vmax.f32 %v3506_v2, %v3412_v12  ;;  %v8168_v46 = vpop.f32.mrb[120].mxu1  ;;  %v3653_v41 = vld [vmem:[%s8293_s2 + $0x7d8] sm:$0xff] }
 0x201   : > { %8359 = vst [vmem:[#allocation20_spill] sm:$0xff] %v8168_v46  ;;  %v2851_v43 = vpop.permute.xlu1 %2850  ;;  %v2846_v27 = vpop.permute.xlu0 %2845  ;;  %v3652_v46 = vld [vmem:[%s8293_s2 + $0x7d0] sm:$0xff] }
 0x202   : > { %v3427_v36 = vadd.f32 %v5530_v20, %v2851_v43  ;;  %v3422_v1 = vadd.f32 %v3421_v50, %v2846_v27  ;;  %3945 = vperm.xlu1 %5707, %v3651_v59   ;;  %v5539_v16 = vpop.f32.mrb[126].mxu0  ;;  %v8170_v47 = vpop.f32.mrb[121].mxu1  ;;  %3940 = vperm.xlu0 %5706, %v3650_v3   ;;  %v3655_v3 = vld [vmem:[%s8293_s2 + $0x7e8] sm:$0xff] }
 0x203   : > { %8360 = vst [vmem:[#allocation21_spill] sm:$0xff] %v8170_v47  ;;  %v3451_v2 = vpop.f32.mrb[127].mxu0 }
 0x204   : > { %v3513_v31 = vmax.f32 %v3509_v48, %v3427_v36  ;;  %v3512_v12 = vmax.f32 %v3508_v30, %v3422_v1  ;;  %v8178_v52 = vpop.f32.mrb[122].mxu1  ;;  %v3654_v36 = vld [vmem:[%s8293_s2 + $0x7e0] sm:$0xff] }
 0x205   : > { %8361 = vst [vmem:[#allocation22_spill] sm:$0xff] %v8178_v52  ;;  %v2861_v20 = vpop.permute.xlu1 %2860  ;;  %v2856_v50 = vpop.permute.xlu0 %2855 }
 0x206   : > { %v3437_v59 = vadd.f32 %v5533_v13, %v2861_v20  ;;  %v3432_v43 = vadd.f32 %v3431_v23, %v2856_v50  ;;  %3955 = vperm.xlu1 %5707, %v3653_v41   ;;  %v8180_v27 = vpop.f32.mrb[123].mxu1  ;;  %3950 = vperm.xlu0 %5706, %v3652_v46   ;;  %v3657_v46 = vld [vmem:[%s8293_s2 + $0x7f8] sm:$0xff]  ;;  %v3656_v20 = vld [vmem:[%s8293_s2 + $0x7f0] sm:$0xff] }
 0x207   : > { %8362 = vst [vmem:[#allocation23_spill] sm:$0xff] %v8180_v27 }
 0x208   : > { %v3515_v48 = vmax.f32 %v3511_v37, %v3437_v59  ;;  %v3514_v30 = vmax.f32 %v3510_v40, %v3432_v43  ;;  %v8188_v1 = vpop.f32.mrb[124].mxu1 }
 0x209   : > { %8363 = vst [vmem:[#allocation24_spill] sm:$0xff] %v8188_v1  ;;  %v2871_v52 = vpop.permute.xlu1 %2870  ;;  %v2866_v47 = vpop.permute.xlu0 %2865 }
 0x20a   : > { %v3447_v13 = vadd.f32 %v5536_v26, %v2871_v52  ;;  %v3442_v23 = vadd.f32 %v3441_v19, %v2866_v47  ;;  %3965 = vperm.xlu1 %5707, %v3655_v3   ;;  %v8190_v41 = vpop.f32.mrb[125].mxu1  ;;  %3960 = vperm.xlu0 %5706, %v3654_v36  }
 0x20b   : > { %8364 = vst [vmem:[#allocation25_spill] sm:$0xff] %v8190_v41 }
 0x20c   : > { %v3517_v37 = vmax.f32 %v3513_v31, %v3447_v13  ;;  %v3516_v40 = vmax.f32 %v3512_v12, %v3442_v23  ;;  %v8198_v50 = vpop.f32.mrb[126].mxu1 }
 0x20d   : > { %8365 = vst [vmem:[#allocation26_spill] sm:$0xff] %v8198_v50  ;;  %v2881_v59 = vpop.permute.xlu1 %2880  ;;  %v8200_v43 = vpop.f32.mrb[127].mxu1 }
 0x20e   : > { %8366 = vst [vmem:[#allocation27_spill] sm:$0xff] %v8200_v43  ;;  %v3520_v26 = vmax.f32 %v3516_v40, %v3517_v37  ;;  %v3457_v52 = vadd.f32 %v5539_v16, %v2881_v59  ;;  %v2876_v19 = vpop.permute.xlu0 %2875  ;;  %3975 = vperm.xlu1 %5707, %v3657_v46   ;;  %3970 = vperm.xlu0 %5706, %v3656_v20  }
 0x20f   : > { %v3452_v47 = vadd.f32 %v3451_v2, %v2876_v19 }
 0x210   : > { %v3519_v3 = vmax.f32 %v3515_v48, %v3457_v52 }
 0x211   : > { %v3518_v36 = vmax.f32 %v3514_v30, %v3452_v47  ;;  %v3666_v41 = vpop.permute.xlu1 %3665 }
 0x212   : > { %v4242_v31 = vadd.f32 %v7879_v17, %v3666_v41  ;;  %v3661_v12 = vpop.permute.xlu0 %3660 }
 0x213   : > { %v3521_v13 = vmax.f32 %v3518_v36, %v3519_v3  ;;  %v4237_v23 = vadd.f32 %v7881_v8, %v3661_v12 }
 0x215   : > { %v3522_v1 = vmax.f32 %v3520_v26, %v3521_v13  ;;  %v3676_v50 = vpop.permute.xlu1 %3675 }
 0x216   : > { %v4252_v27 = vadd.f32 %v7889_v62, %v3676_v50  ;;  %v3671_v43 = vpop.permute.xlu0 %3670 }
 0x217   : > { %v3523_v37 = vrot.slane %v3522_v1, 4  ;;  %v4247_v16 = vadd.f32 %v7891_v33, %v3671_v43 }
 0x219   : > { %v3524_v46 = vmax.f32 %v3522_v1, %v3523_v37  ;;  %v3686_v2 = vpop.permute.xlu1 %3685 }
 0x21a   : > { %v4262_v48 = vadd.f32 %v7899_v24, %v3686_v2  ;;  %v3681_v30 = vpop.permute.xlu0 %3680 }
 0x21b   : > { %v3525_v40 = vrot.slane %v3524_v46, 2  ;;  %v4257_v17 = vadd.f32 %v7902_v29, %v3681_v30  ;;  %v8367_v29 = vmax.f32 %v7919_v53, %v7921_v51 }
 0x21c   : > { %v4556_v41 = vmax.f32 %v4242_v31, %v4262_v48 }
 0x21d   : > { %v3526_v20 = vmax.f32 %v3524_v46, %v3525_v40  ;;  %v4555_v59 = vmax.f32 %v4237_v23, %v4257_v17  ;;  %v3696_v8 = vpop.permute.xlu1 %3695 }
 0x21e   : > { %v4272_v26 = vadd.f32 %v7910_v5, %v3696_v8  ;;  %v3691_v52 = vpop.permute.xlu0 %3690 }
 0x21f   : > { %v3527_v62 = vrot.slane %v3526_v20, 1  ;;  %v4267_v50 = vadd.f32 %v7914_v15, %v3691_v52 }
 0x220   : > { %v4558_v19 = vmax.f32 %v4252_v27, %v4272_v26 }
 0x221   : > { %v3528_v33 = vmax.f32 %v3526_v20, %v3527_v62  ;;  %v4557_v1 = vmax.f32 %v4247_v16, %v4267_v50  ;;  %v3706_v43 = vpop.permute.xlu1 %3705 }
 0x222   : > { %v4282_v24 = vadd.f32 %v7926_v4, %v3706_v43  ;;  %v3701_v47 = vpop.permute.xlu0 %3700 }
 0x223   : > { %v8214_v3 = vmax.f32 %v8367_v29, %v3528_v33  ;;  %v4277_v36 = vadd.f32 %v7930_v49, %v3701_v47 }
 0x224   : > { %v4560_v31 = vmax.f32 %v4556_v41, %v4282_v24 }
 0x225   : > { %v4559_v5 = vmax.f32 %v4555_v59, %v4277_v36  ;;  %v3716_v12 = vpop.permute.xlu1 %3715 }
 0x226   : > { %v4292_v13 = vadd.f32 %v7938_v21, %v3716_v12  ;;  %v3711_v15 = vpop.permute.xlu0 %3710 }
 0x227   : > { %v4287_v27 = vadd.f32 %v7940_v45, %v3711_v15 }
 0x228   : > { %v4562_v23 = vmax.f32 %v4558_v19, %v4292_v13 }
 0x229   : > { %v4561_v37 = vmax.f32 %v4557_v1, %v4287_v27  ;;  %v3726_v16 = vpop.permute.xlu1 %3725 }
 0x22a   : > { %v4302_v4 = vadd.f32 %v7948_v61, %v3726_v16  ;;  %v3721_v46 = vpop.permute.xlu0 %3720 }
 0x22b   : > { %v4297_v53 = vadd.f32 %v7950_v42, %v3721_v46 }
 0x22c   : > { %v4564_v51 = vmax.f32 %v4560_v31, %v4302_v4 }
 0x22d   : > { %v4563_v2 = vmax.f32 %v4559_v5, %v4297_v53  ;;  %v3736_v48 = vpop.permute.xlu1 %3735 }
 0x22e   : > { %v4312_v49 = vadd.f32 %v7958_v22, %v3736_v48  ;;  %v3731_v30 = vpop.permute.xlu0 %3730 }
 0x22f   : > { %v4307_v40 = vadd.f32 %v7960_v60, %v3731_v30 }
 0x230   : > { %v4566_v21 = vmax.f32 %v4562_v23, %v4312_v49 }
 0x231   : > { %v4565_v17 = vmax.f32 %v4561_v37, %v4307_v40  ;;  %v3746_v41 = vpop.permute.xlu1 %3745 }
 0x232   : > { %v4322_v45 = vadd.f32 %v7968_v38, %v3746_v41  ;;  %v3741_v20 = vpop.permute.xlu0 %3740 }
 0x233   : > { %v4317_v59 = vadd.f32 %v7970_v55, %v3741_v20 }
 0x234   : > { %v4568_v61 = vmax.f32 %v4564_v51, %v4322_v45 }
 0x235   : > { %v4567_v8 = vmax.f32 %v4563_v2, %v4317_v59  ;;  %v3756_v26 = vpop.permute.xlu1 %3755 }
 0x236   : > { %v4332_v42 = vadd.f32 %v7978_v32, %v3756_v26  ;;  %v3751_v52 = vpop.permute.xlu0 %3750 }
 0x237   : > { %v4327_v62 = vadd.f32 %v7980_v7, %v3751_v52 }
 0x238   : > { %v4570_v22 = vmax.f32 %v4566_v21, %v4332_v42 }
 0x239   : > { %v4569_v50 = vmax.f32 %v4565_v17, %v4327_v62  ;;  %v3766_v19 = vpop.permute.xlu1 %3765 }
 0x23a   : > { %v4342_v60 = vadd.f32 %v7988_v18, %v3766_v19  ;;  %v3761_v33 = vpop.permute.xlu0 %3760 }
 0x23b   : > { %v4337_v1 = vadd.f32 %v7990_v58, %v3761_v33 }
 0x23c   : > { %v4572_v38 = vmax.f32 %v4568_v61, %v4342_v60 }
 0x23d   : > { %v4571_v43 = vmax.f32 %v4567_v8, %v4337_v1  ;;  %v3776_v24 = vpop.permute.xlu1 %3775 }
 0x23e   : > { %v4352_v55 = vadd.f32 %v7998_v34, %v3776_v24  ;;  %v3771_v47 = vpop.permute.xlu0 %3770 }
 0x23f   : > { %v4347_v29 = vadd.f32 %v8000_v56, %v3771_v47 }
 0x240   : > { %v4574_v32 = vmax.f32 %v4570_v22, %v4352_v55 }
 0x241   : > { %v4573_v36 = vmax.f32 %v4569_v50, %v4347_v29  ;;  %v3786_v31 = vpop.permute.xlu1 %3785  ;;  %v8369_v50 = vld [vmem:[#allocation3_spill] sm:$0xff] }
 0x242   : > { %v4362_v7 = vadd.f32 %v8008_v35, %v3786_v31  ;;  %v3781_v5 = vpop.permute.xlu0 %3780 }
 0x243   : > { %v4357_v12 = vadd.f32 %v8010_v6, %v3781_v5 }
 0x244   : > { %v4576_v18 = vmax.f32 %v4572_v38, %v4362_v7 }
 0x245   : > { %v4575_v13 = vmax.f32 %v4571_v43, %v4357_v12  ;;  %v3796_v15 = vpop.permute.xlu1 %3795  ;;  %v8371_v43 = vld [vmem:[#allocation5_spill] sm:$0xff] }
 0x246   : > { %v4372_v58 = vadd.f32 %v8018_v28, %v3796_v15  ;;  %v3791_v27 = vpop.permute.xlu0 %3790 }
 0x247   : > { %v4367_v23 = vadd.f32 %v8020_v63, %v3791_v27 }
 0x248   : > { %v4578_v34 = vmax.f32 %v4574_v32, %v4372_v58  ;;  %v8375_v58 = vld [vmem:[#allocation9_spill] sm:$0xff] }
 0x249   : > { %v4577_v37 = vmax.f32 %v4573_v36, %v4367_v23  ;;  %v3806_v16 = vpop.permute.xlu1 %3805  ;;  %v8373_v36 = vld [vmem:[#allocation7_spill] sm:$0xff] }
 0x24a   : > { %v4382_v56 = vadd.f32 %v8028_v57, %v3806_v16  ;;  %v3801_v4 = vpop.permute.xlu0 %3800  ;;  %v8376_v16 = vld [vmem:[#allocation10_spill] sm:$0xff] }
 0x24b   : > { %v4377_v46 = vadd.f32 %v8030_v11, %v3801_v4 }
 0x24c   : > { %v4580_v35 = vmax.f32 %v4576_v18, %v4382_v56  ;;  %v8374_v18 = vld [vmem:[#allocation8_spill] sm:$0xff] }
 0x24d   : > { %v4579_v53 = vmax.f32 %v4575_v13, %v4377_v46  ;;  %v3816_v51 = vpop.permute.xlu1 %3815  ;;  %v8377_v46 = vld [vmem:[#allocation11_spill] sm:$0xff] }
 0x24e   : > { %v4392_v6 = vadd.f32 %v8038_v9, %v3816_v51  ;;  %v3811_v2 = vpop.permute.xlu0 %3810 }
 0x24f   : > { %v4387_v48 = vadd.f32 %v8040_v10, %v3811_v2  ;;  %v8378_v2 = vld [vmem:[#allocation12_spill] sm:$0xff] }
 0x250   : > { %v4582_v28 = vmax.f32 %v4578_v34, %v4392_v6 }
 0x251   : > { %v4581_v49 = vmax.f32 %v4577_v37, %v4387_v48  ;;  %v3826_v30 = vpop.permute.xlu1 %3825 }
 0x252   : > { %v4402_v63 = vadd.f32 %v8048_v44, %v3826_v30  ;;  %v3821_v40 = vpop.permute.xlu0 %3820 }
 0x253   : > { %v4397_v21 = vadd.f32 %v8050_v25, %v3821_v40  ;;  %v8368_v25 = vld [vmem:[#allocation2_spill] sm:$0xff] }
 0x254   : > { %v4584_v57 = vmax.f32 %v4580_v35, %v4402_v63 }
 0x255   : > { %v4583_v17 = vmax.f32 %v4579_v53, %v4397_v21  ;;  %v3836_v41 = vpop.permute.xlu1 %3835 }
 0x256   : > { %v4412_v11 = vadd.f32 %v8058_v39, %v3836_v41  ;;  %v3831_v45 = vpop.permute.xlu0 %3830 }
 0x257   : > { %v4407_v20 = vadd.f32 %v8060_v14, %v3831_v45  ;;  %v8370_v14 = vld [vmem:[#allocation4_spill] sm:$0xff] }
 0x258   : > { %v4586_v9 = vmax.f32 %v4582_v28, %v4412_v11  ;;  %v8381_v11 = vld [vmem:[#allocation15_spill] sm:$0xff] }
 0x259   : > { %v4585_v59 = vmax.f32 %v4581_v49, %v4407_v20  ;;  %v3846_v61 = vpop.permute.xlu1 %3845  ;;  %v8379_v49 = vld [vmem:[#allocation13_spill] sm:$0xff] }
 0x25a   : > { %v4422_v10 = vadd.f32 %v8068_v0, %v3846_v61  ;;  %v3841_v8 = vpop.permute.xlu0 %3840  ;;  %v8382_v61 = vld [vmem:[#allocation16_spill] sm:$0xff] }
 0x25b   : > { %v4417_v26 = vadd.f32 %v8070_v54, %v3841_v8  ;;  %v8372_v54 = vld [vmem:[#allocation6_spill] sm:$0xff] }
 0x25c   : > { %v4588_v44 = vmax.f32 %v4584_v57, %v4422_v10  ;;  %v8380_v57 = vld [vmem:[#allocation14_spill] sm:$0xff] }
 0x25d   : > { %v4587_v42 = vmax.f32 %v4583_v17, %v4417_v26  ;;  %v3856_v52 = vpop.permute.xlu1 %3855  ;;  %v8383_v26 = vld [vmem:[#allocation17_spill] sm:$0xff] }
 0x25e   : > { %v4432_v62 = vadd.f32 %v8368_v25, %v3856_v52  ;;  %v3851_v22 = vpop.permute.xlu0 %3850 }
 0x25f   : > { %v4427_v19 = vadd.f32 %v8369_v50, %v3851_v22 }
 0x260   : > { %v4590_v39 = vmax.f32 %v4586_v9, %v4432_v62  ;;  %v8384_v62 = vld [vmem:[#allocation18_spill] sm:$0xff] }
 0x261   : > { %v4589_v60 = vmax.f32 %v4585_v59, %v4427_v19  ;;  %v3866_v33 = vpop.permute.xlu1 %3865  ;;  %v8385_v19 = vld [vmem:[#allocation19_spill] sm:$0xff] }
 0x262   : > { %v4442_v1 = vadd.f32 %v8370_v14, %v3866_v33  ;;  %v3861_v38 = vpop.permute.xlu0 %3860 }
 0x263   : > { %v4437_v24 = vadd.f32 %v8371_v43, %v3861_v38 }
 0x264   : > { %v4592_v0 = vmax.f32 %v4588_v44, %v4442_v1  ;;  %v8386_v1 = vld [vmem:[#allocation20_spill] sm:$0xff] }
 0x265   : > { %v4591_v55 = vmax.f32 %v4587_v42, %v4437_v24  ;;  %v3876_v47 = vpop.permute.xlu1 %3875  ;;  %v8387_v24 = vld [vmem:[#allocation21_spill] sm:$0xff] }
 0x266   : > { %v4452_v29 = vadd.f32 %v8372_v54, %v3876_v47  ;;  %v3871_v32 = vpop.permute.xlu0 %3870 }
 0x267   : > { %v4447_v31 = vadd.f32 %v8373_v36, %v3871_v32 }
 0x268   : > { %v4594_v7 = vmax.f32 %v4590_v39, %v4452_v29  ;;  %v8388_v29 = vld [vmem:[#allocation22_spill] sm:$0xff] }
 0x269   : > { %v4593_v5 = vmax.f32 %v4589_v60, %v4447_v31  ;;  %v3886_v12 = vpop.permute.xlu1 %3885  ;;  %v8389_v31 = vld [vmem:[#allocation23_spill] sm:$0xff] }
 0x26a   : > { %v4462_v13 = vadd.f32 %v8374_v18, %v3886_v12  ;;  %v3881_v15 = vpop.permute.xlu0 %3880 }
 0x26b   : > { %v4457_v27 = vadd.f32 %v8375_v58, %v3881_v15 }
 0x26c   : > { %v4596_v23 = vmax.f32 %v4592_v0, %v4462_v13  ;;  %v8390_v13 = vld [vmem:[#allocation24_spill] sm:$0xff] }
 0x26d   : > { %v4595_v34 = vmax.f32 %v4591_v55, %v4457_v27  ;;  %v3896_v37 = vpop.permute.xlu1 %3895  ;;  %v8391_v27 = vld [vmem:[#allocation25_spill] sm:$0xff] }
 0x26e   : > { %v4472_v56 = vadd.f32 %v8376_v16, %v3896_v37  ;;  %v3891_v4 = vpop.permute.xlu0 %3890 }
 0x26f   : > { %v4467_v35 = vadd.f32 %v8377_v46, %v3891_v4 }
 0x270   : > { %v4598_v53 = vmax.f32 %v4594_v7, %v4472_v56  ;;  %v8392_v56 = vld [vmem:[#allocation26_spill] sm:$0xff] }
 0x271   : > { %v4597_v51 = vmax.f32 %v4593_v5, %v4467_v35  ;;  %v3906_v6 = vpop.permute.xlu1 %3905 }
 0x272   : > { %v4482_v48 = vadd.f32 %v8378_v2, %v3906_v6  ;;  %v3901_v28 = vpop.permute.xlu0 %3900 }
 0x273   : > { %v4477_v30 = vadd.f32 %v8379_v49, %v3901_v28 }
 0x274   : > { %v4600_v63 = vmax.f32 %v4596_v23, %v4482_v48 }
 0x275   : > { %v4599_v40 = vmax.f32 %v4595_v34, %v4477_v30  ;;  %v3916_v21 = vpop.permute.xlu1 %3915 }
 0x276   : > { %v4492_v17 = vadd.f32 %v8380_v57, %v3916_v21  ;;  %v3911_v41 = vpop.permute.xlu0 %3910 }
 0x277   : > { %v4487_v45 = vadd.f32 %v8381_v11, %v3911_v41 }
 0x278   : > { %v4602_v20 = vmax.f32 %v4598_v53, %v4492_v17  ;;  %v8393_v53 = vld [vmem:[#allocation27_spill] sm:$0xff] }
 0x279   : > { %v4601_v9 = vmax.f32 %v4597_v51, %v4487_v45  ;;  %v3926_v59 = vpop.permute.xlu1 %3925 }
 0x27a   : > { %v4502_v10 = vadd.f32 %v8382_v61, %v3926_v59  ;;  %v3921_v8 = vpop.permute.xlu0 %3920 }
 0x27b   : > { %v4497_v44 = vadd.f32 %v8383_v26, %v3921_v8 }
 0x27c   : > { %v4604_v42 = vmax.f32 %v4600_v63, %v4502_v10 }
 0x27d   : > { %v4603_v52 = vmax.f32 %v4599_v40, %v4497_v44  ;;  %v3936_v25 = vpop.permute.xlu1 %3935 }
 0x27e   : > { %v4512_v22 = vadd.f32 %v8384_v62, %v3936_v25  ;;  %v3931_v50 = vpop.permute.xlu0 %3930 }
 0x27f   : > { %v4507_v39 = vadd.f32 %v8385_v19, %v3931_v50 }
 0x280   : > { %v4606_v60 = vmax.f32 %v4602_v20, %v4512_v22 }
 0x281   : > { %v4605_v33 = vmax.f32 %v4601_v9, %v4507_v39  ;;  %v3946_v14 = vpop.permute.xlu1 %3945 }
 0x282   : > { %v4522_v38 = vadd.f32 %v8386_v1, %v3946_v14  ;;  %v3941_v43 = vpop.permute.xlu0 %3940 }
 0x283   : > { %v4517_v0 = vadd.f32 %v8387_v24, %v3941_v43 }
 0x284   : > { %v4608_v55 = vmax.f32 %v4604_v42, %v4522_v38 }
 0x285   : > { %v4607_v47 = vmax.f32 %v4603_v52, %v4517_v0  ;;  %v3956_v54 = vpop.permute.xlu1 %3955 }
 0x286   : > { %v4532_v32 = vadd.f32 %v8388_v29, %v3956_v54  ;;  %v3951_v36 = vpop.permute.xlu0 %3950 }
 0x287   : > { %v4527_v7 = vadd.f32 %v8389_v31, %v3951_v36 }
 0x288   : > { %v4610_v5 = vmax.f32 %v4606_v60, %v4532_v32 }
 0x289   : > { %v4609_v12 = vmax.f32 %v4605_v33, %v4527_v7  ;;  %v3966_v18 = vpop.permute.xlu1 %3965 }
 0x28a   : > { %v4542_v15 = vadd.f32 %v8390_v13, %v3966_v18  ;;  %v3961_v58 = vpop.permute.xlu0 %3960 }
 0x28b   : > { %v4537_v23 = vadd.f32 %v8391_v27, %v3961_v58 }
 0x28c   : > { %v4612_v34 = vmax.f32 %v4608_v55, %v4542_v15 }
 0x28d   : > { %v4611_v37 = vmax.f32 %v4607_v47, %v4537_v23  ;;  %v3976_v16 = vpop.permute.xlu1 %3975 }
 0x28e   : > { %v4552_v4 = vadd.f32 %v8392_v56, %v3976_v16  ;;  %v3971_v46 = vpop.permute.xlu0 %3970 }
 0x28f   : > { %v4615_v35 = vmax.f32 %v4611_v37, %v4612_v34  ;;  %v4547_v51 = vadd.f32 %v8393_v53, %v3971_v46 }
 0x290   : > { %v4614_v6 = vmax.f32 %v4610_v5, %v4552_v4 }
 0x291   : > { %v4613_v2 = vmax.f32 %v4609_v12, %v4547_v51 }
 0x293   : > { %v4616_v48 = vmax.f32 %v4613_v2, %v4614_v6 }
 0x295   : > { %v4617_v28 = vmax.f32 %v4615_v35, %v4616_v48 }
 0x297   : > { %v4618_v49 = vrot.slane %v4617_v28, 4 }
 0x299   : > { %v4619_v30 = vmax.f32 %v4617_v28, %v4618_v49 }
 0x29b   : > { %v4620_v63 = vrot.slane %v4619_v30, 2 }
 0x29d   : > { %v4621_v40 = vmax.f32 %v4619_v30, %v4620_v63 }
 0x29f   : > { %v4622_v21 = vrot.slane %v4621_v40, 1 }
 0x2a1   : > { %v4623_v57 = vmax.f32 %v4621_v40, %v4622_v21 }
 0x2a3   : > { %v4624_v17 = vmax.f32 %v8214_v3, %v4623_v57 }
 0x2a5   : > { %4625 = vst [vmem:[%s199_s21] sm:$0x1] %v4624_v17 }
 0x2a6 PF: > { %s13_s16 = sadd.s32 1, %s5746_s16   ;;  %s8394_s12 = smov %s5738_s14 }
 0x2a7   : > { %p10_p7 = scmp.ge.s32.totalorder %s13_s16, 18   ;;  %s8395_s13 = smov %s5742_s15 }
 0x2a8   : > { %s8396_s14 = smov %s8399_s17  ;;  %s8397_s15 = smov %s8403_s18 }
 0x2a9   :  { %12 = sbr.rel (!%p10_p7) target bundleno = 3 (0x3), region = 62 }

// kernel: pointnet_cls_forward.13
= control target key start
LH: loop header
LB: loop body
LE: loop exit
PB: predicated region body
PF: predicated region fallthrough
CT: control target
= control target key end

     0   :  { %v3581_v36 = vmov 1983009808   ;;  %v36_v38 = vlaneseq  ;;  %s4733_s0 = inlined_call_operand.vmem [shape: f32[2,1024], index: 0, kind: input, shape index: {}]   ;;  %s4734_s1 = inlined_call_operand.vmem [shape: bf16[1024,512], index: 1, kind: input, shape index: {}]   ;;  %s4735_s2 = inlined_call_operand.vmem [shape: f32[1,512], index: 2, kind: input, shape index: {}]   ;;  %s4736_s3 = inlined_call_operand.vmem [shape: bf16[512,256], index: 3, kind: input, shape index: {}]   ;;  %s4737_s4 = inlined_call_operand.vmem [shape: f32[1,256], index: 4, kind: input, shape index: {}]   ;;  %s4738_s5 = inlined_call_operand.vmem [shape: bf16[256,2], index: 5, kind: input, shape index: {}]   ;;  %s4739_s6 = inlined_call_operand.vmem [shape: f32[1,2], index: 6, kind: input, shape index: {}]   ;;  %s4740_s7 = inlined_call_operand.hbm [shape: f32[2,2], index: 7, kind: output, shape index: {}]  }
   0x1   :  { %v3055_v0 = vld [vmem:[%s4734_s1 + $0x4] ss:$16 sps:$4 sm:$0xff]   ;;  %v3059_v2 = vld [vmem:[%s4734_s1] ss:$16 sps:$4 sm:$0xff]   ;;  %v34_v37 = vunpack.c.l.s4 %v3581_v36 }
   0x2   :  { %v3057_v1 = vld [vmem:[%s4734_s1 + $0x204] ss:$16 sps:$4 sm:$0xff]   ;;  %1640 = vmatprep.subr.bf16.mxu1 %v3055_v0  ;;  %v3060_v3 = vld [vmem:[%s4734_s1 + $0x200] ss:$16 sps:$4 sm:$0xff]   ;;  %v3740_v43 = vshrl.u32 %v36_v38, 7 }
   0x3   :  { %1681 = vmatprep.subr.bf16.mxu0 %v3057_v1  ;;  %v3061_v4 = vld [vmem:[%s4734_s1 + $0x24] ss:$16 sps:$4 sm:$0xff]   ;;  %1641 = vmatpush1.bf16.msra.mxu1 %v3059_v2  ;;  %v3065_v6 = vld [vmem:[%s4734_s1 + $0x20] ss:$16 sps:$4 sm:$0xff]   ;;  %v35_v42 = vunpack.c.0.s8 %v34_v37  ;;  %v3187_v37 = vld [vmem:[%s4734_s1 + $0xac] ss:$16 sps:$4 sm:$0xff]  }
   0x4   :  { %1682 = vmatpush1.bf16.msra.mxu0 %v3060_v3  ;;  %v3063_v5 = vld [vmem:[%s4734_s1 + $0x224] ss:$16 sps:$4 sm:$0xff]   ;;  %1642 = vmatprep.subr.bf16.mxu1 %v3061_v4  ;;  %v3066_v7 = vld [vmem:[%s4734_s1 + $0x220] ss:$16 sps:$4 sm:$0xff]  }
   0x5   :  { %1683 = vmatprep.subr.bf16.mxu0 %v3063_v5  ;;  %v3067_v8 = vld [vmem:[%s4734_s1 + $0x44] ss:$16 sps:$4 sm:$0xff]   ;;  %v3071_v10 = vld [vmem:[%s4734_s1 + $0x40] ss:$16 sps:$4 sm:$0xff]   ;;  %v3758_v49 = vsub.s32 %v35_v42, %v3740_v43  ;;  %v3915_v42 = vld [vmem:[%s4733_s0 + $0x8] sm:$0xff] }
   0x6   :  { %v3069_v9 = vld [vmem:[%s4734_s1 + $0x244] ss:$16 sps:$4 sm:$0xff]   ;;  %v3072_v11 = vld [vmem:[%s4734_s1 + $0x240] ss:$16 sps:$4 sm:$0xff]  }
   0x7   :  { %1643 = vmatpush1.bf16.msra.mxu1 %v3065_v6  ;;  %v3073_v12 = vld [vmem:[%s4734_s1 + $0x64] ss:$16 sps:$4 sm:$0xff]   ;;  %v3077_v14 = vld [vmem:[%s4734_s1 + $0x60] ss:$16 sps:$4 sm:$0xff]  }
   0x8   :  { %1684 = vmatpush1.bf16.msra.mxu0 %v3066_v7  ;;  %1644 = vmatprep.subr.bf16.mxu1 %v3067_v8  ;;  %v3075_v13 = vld [vmem:[%s4734_s1 + $0x264] ss:$16 sps:$4 sm:$0xff]   ;;  %v3078_v15 = vld [vmem:[%s4734_s1 + $0x260] ss:$16 sps:$4 sm:$0xff]  }
   0x9   :  { %1685 = vmatprep.subr.bf16.mxu0 %v3069_v9  ;;  %v3079_v16 = vld [vmem:[%s4734_s1 + $0x84] ss:$16 sps:$4 sm:$0xff]   ;;  %v3083_v18 = vld [vmem:[%s4734_s1 + $0x80] ss:$16 sps:$4 sm:$0xff]  }
   0xa   :  { %v3081_v17 = vld [vmem:[%s4734_s1 + $0x284] ss:$16 sps:$4 sm:$0xff]   ;;  %v3084_v19 = vld [vmem:[%s4734_s1 + $0x280] ss:$16 sps:$4 sm:$0xff]  }
   0xb   :  { %1645 = vmatpush1.bf16.msra.mxu1 %v3071_v10  ;;  %v3085_v20 = vld [vmem:[%s4734_s1 + $0xa4] ss:$16 sps:$4 sm:$0xff]   ;;  %v3089_v22 = vld [vmem:[%s4734_s1 + $0xa0] ss:$16 sps:$4 sm:$0xff]  }
   0xc   :  { %1686 = vmatpush1.bf16.msra.mxu0 %v3072_v11  ;;  %1646 = vmatprep.subr.bf16.mxu1 %v3073_v12  ;;  %v3087_v21 = vld [vmem:[%s4734_s1 + $0x2a4] ss:$16 sps:$4 sm:$0xff]   ;;  %v3090_v23 = vld [vmem:[%s4734_s1 + $0x2a0] ss:$16 sps:$4 sm:$0xff]  }
   0xd   :  { %1687 = vmatprep.subr.bf16.mxu0 %v3075_v13  ;;  %v3091_v24 = vld [vmem:[%s4734_s1 + $0xc4] ss:$16 sps:$4 sm:$0xff]   ;;  %v3095_v26 = vld [vmem:[%s4734_s1 + $0xc0] ss:$16 sps:$4 sm:$0xff]  }
   0xe   :  { %v3093_v25 = vld [vmem:[%s4734_s1 + $0x2c4] ss:$16 sps:$4 sm:$0xff]   ;;  %v3096_v27 = vld [vmem:[%s4734_s1 + $0x2c0] ss:$16 sps:$4 sm:$0xff]  }
   0xf   :  { %1647 = vmatpush1.bf16.msra.mxu1 %v3077_v14  ;;  %v3097_v28 = vld [vmem:[%s4734_s1 + $0xe4] ss:$16 sps:$4 sm:$0xff]   ;;  %v3101_v30 = vld [vmem:[%s4734_s1 + $0xe0] ss:$16 sps:$4 sm:$0xff]  }
  0x10   :  { %1688 = vmatpush1.bf16.msra.mxu0 %v3078_v15  ;;  %1648 = vmatprep.subr.bf16.mxu1 %v3079_v16  ;;  %v3099_v29 = vld [vmem:[%s4734_s1 + $0x2e4] ss:$16 sps:$4 sm:$0xff]   ;;  %v3102_v31 = vld [vmem:[%s4734_s1 + $0x2e0] ss:$16 sps:$4 sm:$0xff]   ;;  %v3157_v15 = vld [vmem:[%s4734_s1 + $0xc] ss:$16 sps:$4 sm:$0xff]  }
  0x11   :  { %1689 = vmatprep.subr.bf16.mxu0 %v3081_v17  ;;  %v3103_v32 = vld [vmem:[%s4734_s1 + $0x104] ss:$16 sps:$4 sm:$0xff]   ;;  %v3107_v34 = vld [vmem:[%s4734_s1 + $0x100] ss:$16 sps:$4 sm:$0xff]  }
  0x12   :  { %v3105_v33 = vld [vmem:[%s4734_s1 + $0x304] ss:$16 sps:$4 sm:$0xff]   ;;  %v3108_v35 = vld [vmem:[%s4734_s1 + $0x300] ss:$16 sps:$4 sm:$0xff]  }
  0x13   :  { %1649 = vmatpush1.bf16.msra.mxu1 %v3083_v18  ;;  %v3109_v39 = vld [vmem:[%s4734_s1 + $0x124] ss:$16 sps:$4 sm:$0xff]   ;;  %v3113_v41 = vld [vmem:[%s4734_s1 + $0x120] ss:$16 sps:$4 sm:$0xff]  }
  0x14   :  { %1690 = vmatpush1.bf16.msra.mxu0 %v3084_v19  ;;  %1650 = vmatprep.subr.bf16.mxu1 %v3085_v20  ;;  %v3111_v40 = vld [vmem:[%s4734_s1 + $0x324] ss:$16 sps:$4 sm:$0xff]   ;;  %v3114_v44 = vld [vmem:[%s4734_s1 + $0x320] ss:$16 sps:$4 sm:$0xff]   ;;  %v3155_v19 = vld [vmem:[%s4734_s1 + $0x8] ss:$16 sps:$4 sm:$0xff]  }
  0x15   :  { %1691 = vmatprep.subr.bf16.mxu0 %v3087_v21  ;;  %v3115_v45 = vld [vmem:[%s4734_s1 + $0x144] ss:$16 sps:$4 sm:$0xff]   ;;  %v3119_v47 = vld [vmem:[%s4734_s1 + $0x140] ss:$16 sps:$4 sm:$0xff]   ;;  %v3163_v21 = vld [vmem:[%s4734_s1 + $0x2c] ss:$16 sps:$4 sm:$0xff]  }
  0x16   :  { %v3117_v46 = vld [vmem:[%s4734_s1 + $0x344] ss:$16 sps:$4 sm:$0xff]   ;;  %v3120_v48 = vld [vmem:[%s4734_s1 + $0x340] ss:$16 sps:$4 sm:$0xff]  }
  0x17   :  { %1651 = vmatpush1.bf16.msra.mxu1 %v3089_v22  ;;  %v3121_v50 = vld [vmem:[%s4734_s1 + $0x164] ss:$16 sps:$4 sm:$0xff]   ;;  %v3125_v53 = vld [vmem:[%s4734_s1 + $0x160] ss:$16 sps:$4 sm:$0xff]  }
  0x18   :  { %1692 = vmatpush1.bf16.msra.mxu0 %v3090_v23  ;;  %1652 = vmatprep.subr.bf16.mxu1 %v3091_v24  ;;  %v3123_v51 = vld [vmem:[%s4734_s1 + $0x364] ss:$16 sps:$4 sm:$0xff]   ;;  %v3126_v56 = vld [vmem:[%s4734_s1 + $0x360] ss:$16 sps:$4 sm:$0xff]   ;;  %v3161_v23 = vld [vmem:[%s4734_s1 + $0x28] ss:$16 sps:$4 sm:$0xff]  }
  0x19   :  { %1693 = vmatprep.subr.bf16.mxu0 %v3093_v25  ;;  %v28_v52 = vld [vmem:[%s4733_s0] sm:$0xff]  ;;  %v3169_v25 = vld [vmem:[%s4734_s1 + $0x4c] ss:$16 sps:$4 sm:$0xff]  }
  0x1a   :  { %v39_v54 = vrot.slane %v28_v52, %v3758_v49  ;;  %v32_v55 = vcombine.high %v28_v52, %v28_v52  ;;  %v3127_v57 = vld [vmem:[%s4734_s1 + $0x184] ss:$16 sps:$4 sm:$0xff]   ;;  %v3131_v61 = vld [vmem:[%s4734_s1 + $0x180] ss:$16 sps:$4 sm:$0xff]  }
  0x1b   :  { %1653 = vmatpush1.bf16.msra.mxu1 %v3095_v26  ;;  %v3129_v58 = vld [vmem:[%s4734_s1 + $0x384] ss:$16 sps:$4 sm:$0xff]   ;;  %v3132_v0 = vld [vmem:[%s4734_s1 + $0x380] ss:$16 sps:$4 sm:$0xff]  }
  0x1c   :  { %1694 = vmatpush1.bf16.msra.mxu0 %v3096_v27  ;;  %1654 = vmatprep.subr.bf16.mxu1 %v3097_v28  ;;  %v47_v59 = vcombine.high %v39_v54, %v39_v54  ;;  %v46_v60 = vrot.slane %v32_v55, %v3758_v49  ;;  %v3133_v1 = vld [vmem:[%s4734_s1 + $0x1a4] ss:$16 sps:$4 sm:$0xff]   ;;  %v3137_v4 = vld [vmem:[%s4734_s1 + $0x1a0] ss:$16 sps:$4 sm:$0xff]   ;;  %v3834_v16 = vpack.c.bf16 %v39_v54, %v39_v54  ;;  %v3167_v27 = vld [vmem:[%s4734_s1 + $0x48] ss:$16 sps:$4 sm:$0xff]  }
  0x1d   :  { %1695 = vmatprep.subr.bf16.mxu0 %v3099_v29  ;;  %v3135_v2 = vld [vmem:[%s4734_s1 + $0x3a4] ss:$16 sps:$4 sm:$0xff]   ;;  %v3138_v5 = vld [vmem:[%s4734_s1 + $0x3a0] ss:$16 sps:$4 sm:$0xff]   ;;  %v3175_v29 = vld [vmem:[%s4734_s1 + $0x6c] ss:$16 sps:$4 sm:$0xff]  }
  0x1e   :  { %v75_v62 = vpack.c.bf16 %v47_v59, %v47_v59  ;;  %v48_v63 = vcombine.high %v46_v60, %v46_v60  ;;  %v3139_v6 = vld [vmem:[%s4734_s1 + $0x1c4] ss:$16 sps:$4 sm:$0xff]   ;;  %v3143_v8 = vld [vmem:[%s4734_s1 + $0x1c0] ss:$16 sps:$4 sm:$0xff]   ;;  %v3839_v18 = vpack.c.bf16 %v46_v60, %v46_v60  ;;  %v3205_v55 = vld [vmem:[%s4734_s1 + $0x10c] ss:$16 sps:$4 sm:$0xff]  }
  0x1f   :  { %1655 = vmatpush1.bf16.msra.mxu1 %v3101_v30  ;;  %v3141_v7 = vld [vmem:[%s4734_s1 + $0x3c4] ss:$16 sps:$4 sm:$0xff]   ;;  %v3144_v9 = vld [vmem:[%s4734_s1 + $0x3c0] ss:$16 sps:$4 sm:$0xff]   ;;  %v3211_v59 = vld [vmem:[%s4734_s1 + $0x12c] ss:$16 sps:$4 sm:$0xff]  }
  0x20   :  { %1696 = vmatpush1.bf16.msra.mxu0 %v3102_v31  ;;  %1656 = vmatprep.subr.bf16.mxu1 %v3103_v32  ;;  %v3795_v3 = vpack.c.bf16 %v48_v63, %v48_v63  ;;  %v3145_v10 = vld [vmem:[%s4734_s1 + $0x1e4] ss:$16 sps:$4 sm:$0xff]   ;;  %v3149_v12 = vld [vmem:[%s4734_s1 + $0x1e0] ss:$16 sps:$4 sm:$0xff]   ;;  %v3173_v31 = vld [vmem:[%s4734_s1 + $0x68] ss:$16 sps:$4 sm:$0xff]  }
  0x21   :  { %1697 = vmatprep.subr.bf16.mxu0 %v3105_v33  ;;  %1672 = vmatprep.mubr.bf16.mxu1 %v75_v62  ;;  %v3147_v11 = vld [vmem:[%s4734_s1 + $0x3e4] ss:$16 sps:$4 sm:$0xff]   ;;  %v3150_v13 = vld [vmem:[%s4734_s1 + $0x3e0] ss:$16 sps:$4 sm:$0xff]   ;;  %v3181_v33 = vld [vmem:[%s4734_s1 + $0x8c] ss:$16 sps:$4 sm:$0xff]  }
  0x22   :  { %1713 = vmatprep.mubr.bf16.mxu0 %v3795_v3  ;;  %v3154_v14 = vld [vmem:[%s4734_s1 + $0x404] ss:$16 sps:$4 sm:$0xff]   ;;  %v3152_v17 = vld [vmem:[%s4734_s1 + $0x400] ss:$16 sps:$4 sm:$0xff]   ;;  %v3217_v63 = vld [vmem:[%s4734_s1 + $0x14c] ss:$16 sps:$4 sm:$0xff]  }
  0x23   :  { %1657 = vmatpush1.bf16.msra.mxu1 %v3107_v34  ;;  %v3160_v20 = vld [vmem:[%s4734_s1 + $0x424] ss:$16 sps:$4 sm:$0xff]   ;;  %v3158_v22 = vld [vmem:[%s4734_s1 + $0x420] ss:$16 sps:$4 sm:$0xff]  }
  0x24   :  { %1698 = vmatpush1.bf16.msra.mxu0 %v3108_v35  ;;  %1658 = vmatprep.subr.bf16.mxu1 %v3109_v39  ;;  %v3166_v24 = vld [vmem:[%s4734_s1 + $0x444] ss:$16 sps:$4 sm:$0xff]   ;;  %v3164_v26 = vld [vmem:[%s4734_s1 + $0x440] ss:$16 sps:$4 sm:$0xff]   ;;  %v3179_v35 = vld [vmem:[%s4734_s1 + $0x88] ss:$16 sps:$4 sm:$0xff]  }
  0x25   :  { %1699 = vmatprep.subr.bf16.mxu0 %v3111_v40  ;;  %v3172_v28 = vld [vmem:[%s4734_s1 + $0x464] ss:$16 sps:$4 sm:$0xff]   ;;  %v3170_v30 = vld [vmem:[%s4734_s1 + $0x460] ss:$16 sps:$4 sm:$0xff]   ;;  %v3185_v39 = vld [vmem:[%s4734_s1 + $0xa8] ss:$16 sps:$4 sm:$0xff]  }
  0x26   :  { %v3178_v32 = vld [vmem:[%s4734_s1 + $0x484] ss:$16 sps:$4 sm:$0xff]   ;;  %v3176_v34 = vld [vmem:[%s4734_s1 + $0x480] ss:$16 sps:$4 sm:$0xff]  }
  0x27   :  { %1659 = vmatpush1.bf16.msra.mxu1 %v3113_v41  ;;  %v3184_v36 = vld [vmem:[%s4734_s1 + $0x4a4] ss:$16 sps:$4 sm:$0xff]   ;;  %v3182_v38 = vld [vmem:[%s4734_s1 + $0x4a0] ss:$16 sps:$4 sm:$0xff]   ;;  %v3193_v41 = vld [vmem:[%s4734_s1 + $0xcc] ss:$16 sps:$4 sm:$0xff]  }
  0x28   :  { %1700 = vmatpush1.bf16.msra.mxu0 %v3114_v44  ;;  %1660 = vmatprep.subr.bf16.mxu1 %v3115_v45  ;;  %v3190_v40 = vld [vmem:[%s4734_s1 + $0x4c4] ss:$16 sps:$4 sm:$0xff]   ;;  %v3919_v44 = vrot.slane %v3915_v42, %v3758_v49  ;;  %v3188_v45 = vld [vmem:[%s4734_s1 + $0x4c0] ss:$16 sps:$4 sm:$0xff]  }
  0x29   :  { %1701 = vmatprep.subr.bf16.mxu0 %v3117_v46  ;;  %v3191_v46 = vld [vmem:[%s4734_s1 + $0xc8] ss:$16 sps:$4 sm:$0xff]   ;;  %v3194_v52 = vld [vmem:[%s4734_s1 + $0x4e0] ss:$16 sps:$4 sm:$0xff]   ;;  %v3202_v54 = vld [vmem:[%s4734_s1 + $0x504] ss:$16 sps:$4 sm:$0xff]  }
  0x2a   :  { %v3206_v60 = vld [vmem:[%s4734_s1 + $0x520] ss:$16 sps:$4 sm:$0xff]  }
  0x2b   :  { %1661 = vmatpush1.bf16.msra.mxu1 %v3119_v47  ;;  %v64_v47 = vcombine.high %v3919_v44, %v3919_v44 }
  0x2c   :  { %1702 = vmatpush1.bf16.msra.mxu0 %v3120_v48  ;;  %1662 = vmatprep.subr.bf16.mxu1 %v3121_v50  ;;  %v3196_v48 = vld [vmem:[%s4734_s1 + $0x4e4] ss:$16 sps:$4 sm:$0xff]   ;;  %v3199_v50 = vld [vmem:[%s4734_s1 + $0xec] ss:$16 sps:$4 sm:$0xff]  }
  0x2d   :  { %1703 = vmatprep.subr.bf16.mxu0 %v3123_v51  ;;  %v3935_v51 = vpack.c.bf16 %v64_v47, %v64_v47  ;;  %v3275_v47 = vld [vmem:[%s4734_s1 + $0x288] ss:$16 sps:$4 sm:$0xff]  }
  0x2f   :  { %1663 = vmatpush1.bf16.msra.mxu1 %v3125_v53  ;;  %v3197_v53 = vld [vmem:[%s4734_s1 + $0xe8] ss:$16 sps:$4 sm:$0xff]  }
  0x30   :  { %1704 = vmatpush1.bf16.msra.mxu0 %v3126_v56  ;;  %1664 = vmatprep.subr.bf16.mxu1 %v3127_v57  ;;  %v3200_v56 = vld [vmem:[%s4734_s1 + $0x500] ss:$16 sps:$4 sm:$0xff]   ;;  %v3203_v57 = vld [vmem:[%s4734_s1 + $0x108] ss:$16 sps:$4 sm:$0xff]  }
  0x31   :  { %1705 = vmatprep.subr.bf16.mxu0 %v3129_v58  ;;  %v3208_v58 = vld [vmem:[%s4734_s1 + $0x524] ss:$16 sps:$4 sm:$0xff]  }
  0x33   :  { %1665 = vmatpush1.bf16.msra.mxu1 %v3131_v61  ;;  %v3209_v61 = vld [vmem:[%s4734_s1 + $0x128] ss:$16 sps:$4 sm:$0xff]  }
  0x34   :  { %1706 = vmatpush1.bf16.msra.mxu0 %v3132_v0  ;;  %1666 = vmatprep.subr.bf16.mxu1 %v3133_v1  ;;  %v3212_v0 = vld [vmem:[%s4734_s1 + $0x540] ss:$16 sps:$4 sm:$0xff]   ;;  %v3215_v1 = vld [vmem:[%s4734_s1 + $0x148] ss:$16 sps:$4 sm:$0xff]  }
  0x35   :  { %1707 = vmatprep.subr.bf16.mxu0 %v3135_v2  ;;  %v3220_v2 = vld [vmem:[%s4734_s1 + $0x564] ss:$16 sps:$4 sm:$0xff]  }
  0x37   :  { %1667 = vmatpush1.bf16.msra.mxu1 %v3137_v4  ;;  %v3223_v4 = vld [vmem:[%s4734_s1 + $0x16c] ss:$16 sps:$4 sm:$0xff]  }
  0x38   :  { %1708 = vmatpush1.bf16.msra.mxu0 %v3138_v5  ;;  %1668 = vmatprep.subr.bf16.mxu1 %v3139_v6  ;;  %v3218_v5 = vld [vmem:[%s4734_s1 + $0x560] ss:$16 sps:$4 sm:$0xff]   ;;  %v3221_v6 = vld [vmem:[%s4734_s1 + $0x168] ss:$16 sps:$4 sm:$0xff]  }
  0x39   :  { %1709 = vmatprep.subr.bf16.mxu0 %v3141_v7  ;;  %v3226_v7 = vld [vmem:[%s4734_s1 + $0x584] ss:$16 sps:$4 sm:$0xff]  }
  0x3b   :  { %1669 = vmatpush1.bf16.msra.mxu1 %v3143_v8  ;;  %v3229_v8 = vld [vmem:[%s4734_s1 + $0x18c] ss:$16 sps:$4 sm:$0xff]  }
  0x3c   :  { %1710 = vmatpush1.bf16.msra.mxu0 %v3144_v9  ;;  %1670 = vmatprep.subr.bf16.mxu1 %v3145_v10  ;;  %v3224_v9 = vld [vmem:[%s4734_s1 + $0x580] ss:$16 sps:$4 sm:$0xff]   ;;  %v3227_v10 = vld [vmem:[%s4734_s1 + $0x188] ss:$16 sps:$4 sm:$0xff]  }
  0x3d   :  { %1711 = vmatprep.subr.bf16.mxu0 %v3147_v11  ;;  %v3232_v11 = vld [vmem:[%s4734_s1 + $0x5a4] ss:$16 sps:$4 sm:$0xff]  }
  0x3f   :  { %1671 = vmatpush1.bf16.msra.mxu1 %v3149_v12  ;;  %v3235_v12 = vld [vmem:[%s4734_s1 + $0x1ac] ss:$16 sps:$4 sm:$0xff]  }
  0x40   :  { %1712 = vmatpush1.bf16.msra.mxu0 %v3150_v13  ;;  %1804 = vmatprep.subr.bf16.mxu1 %v3157_v15  ;;  %v3230_v13 = vld [vmem:[%s4734_s1 + $0x5a0] ss:$16 sps:$4 sm:$0xff]   ;;  %v3238_v15 = vld [vmem:[%s4734_s1 + $0x5c4] ss:$16 sps:$4 sm:$0xff]  }
  0x41   :  { %1722 = vmatprep.subr.bf16.mxu0 %v3154_v14  ;;  %v3233_v14 = vld [vmem:[%s4734_s1 + $0x1a8] ss:$16 sps:$4 sm:$0xff]  }
  0x42   :  { %1673 = vmatmul.mubr.bf16.vlgmr.msra.gmra.mrb[0].mxu1 %v3834_v16 }
  0x43   :  { %1714 = vmatmul.mubr.bf16.vlgmr.msra.gmra.mrb[0].mxu0 %v3839_v18  ;;  %1805 = vmatpush1.bf16.msra.mxu1 %v3155_v19  ;;  %v49_v19 = vcombine.high %v3915_v42, %v3915_v42  ;;  %v3269_v42 = vld [vmem:[%s4734_s1 + $0x268] ss:$16 sps:$4 sm:$0xff]  }
  0x44   :  { %1723 = vmatpush1.bf16.msra.mxu0 %v3152_v17  ;;  %1806 = vmatprep.subr.bf16.mxu1 %v3163_v21  ;;  %v3241_v17 = vld [vmem:[%s4734_s1 + $0x1cc] ss:$16 sps:$4 sm:$0xff]   ;;  %v3239_v21 = vld [vmem:[%s4734_s1 + $0x1c8] ss:$16 sps:$4 sm:$0xff]  }
  0x45   :  { %1724 = vmatprep.subr.bf16.mxu0 %v3160_v20  ;;  %1836 = vmatprep.mubr.bf16.mxu1 %v75_v62  ;;  %v3214_v62 = vld [vmem:[%s4734_s1 + $0x544] ss:$16 sps:$4 sm:$0xff]   ;;  %v3236_v20 = vld [vmem:[%s4734_s1 + $0x5c0] ss:$16 sps:$4 sm:$0xff]  }
  0x46   :  { %1754 = vmatprep.mubr.bf16.mxu0 %v3935_v51 }
  0x47   :  { %1807 = vmatpush1.bf16.msra.mxu1 %v3161_v23  ;;  %v3247_v23 = vld [vmem:[%s4734_s1 + $0x1ec] ss:$16 sps:$4 sm:$0xff]  }
  0x48   :  { %1725 = vmatpush1.bf16.msra.mxu0 %v3158_v22  ;;  %1808 = vmatprep.subr.bf16.mxu1 %v3169_v25  ;;  %v3244_v22 = vld [vmem:[%s4734_s1 + $0x5e4] ss:$16 sps:$4 sm:$0xff]   ;;  %v3242_v25 = vld [vmem:[%s4734_s1 + $0x5e0] ss:$16 sps:$4 sm:$0xff]  }
  0x49   :  { %1726 = vmatprep.subr.bf16.mxu0 %v3166_v24  ;;  %v4037_v24 = vrot.slane %v49_v19, %v3758_v49  ;;  %v3253_v49 = vld [vmem:[%s4734_s1 + $0x20c] ss:$16 sps:$4 sm:$0xff]   ;;  %v3320_v19 = vld [vmem:[%s4734_s1 + $0x780] ss:$16 sps:$4 sm:$0xff]  }
  0x4b   :  { %1809 = vmatpush1.bf16.msra.mxu1 %v3167_v27  ;;  %v3250_v27 = vld [vmem:[%s4734_s1 + $0x604] ss:$16 sps:$4 sm:$0xff]  }
  0x4c   :  { %1727 = vmatpush1.bf16.msra.mxu0 %v3164_v26  ;;  %1810 = vmatprep.subr.bf16.mxu1 %v3175_v29  ;;  %v3245_v26 = vld [vmem:[%s4734_s1 + $0x1e8] ss:$16 sps:$4 sm:$0xff]   ;;  %v4055_v29 = vpack.c.bf16 %v3919_v44, %v3919_v44  ;;  %v3274_v44 = vld [vmem:[%s4734_s1 + $0x684] ss:$16 sps:$4 sm:$0xff]  }
  0x4d   :  { %1728 = vmatprep.subr.bf16.mxu0 %v3172_v28  ;;  %v65_v28 = vcombine.high %v4037_v24, %v4037_v24 }
  0x4f   :  { %1811 = vmatpush1.bf16.msra.mxu1 %v3173_v31  ;;  %v3251_v31 = vld [vmem:[%s4734_s1 + $0x208] ss:$16 sps:$4 sm:$0xff]  }
  0x50   :  { %1729 = vmatpush1.bf16.msra.mxu0 %v3170_v30  ;;  %1812 = vmatprep.subr.bf16.mxu1 %v3181_v33  ;;  %v3248_v30 = vld [vmem:[%s4734_s1 + $0x600] ss:$16 sps:$4 sm:$0xff]   ;;  %v3259_v33 = vld [vmem:[%s4734_s1 + $0x22c] ss:$16 sps:$4 sm:$0xff]  }
  0x51   :  { %1730 = vmatprep.subr.bf16.mxu0 %v3178_v32  ;;  %v3256_v32 = vld [vmem:[%s4734_s1 + $0x624] ss:$16 sps:$4 sm:$0xff]  }
  0x53   :  { %1813 = vmatpush1.bf16.msra.mxu1 %v3179_v35  ;;  %v3254_v35 = vld [vmem:[%s4734_s1 + $0x620] ss:$16 sps:$4 sm:$0xff]  }
  0x54   :  { %1731 = vmatpush1.bf16.msra.mxu0 %v3176_v34  ;;  %1814 = vmatprep.subr.bf16.mxu1 %v3187_v37  ;;  %v4069_v34 = vpack.c.bf16 %v65_v28, %v65_v28  ;;  %v3262_v37 = vld [vmem:[%s4734_s1 + $0x644] ss:$16 sps:$4 sm:$0xff]   ;;  %v3335_v28 = vld [vmem:[%s4734_s1 + $0x3c8] ss:$16 sps:$4 sm:$0xff]  }
  0x55   :  { %1732 = vmatprep.subr.bf16.mxu0 %v3184_v36  ;;  %v3257_v36 = vld [vmem:[%s4734_s1 + $0x228] ss:$16 sps:$4 sm:$0xff]  }
  0x57   :  { %1815 = vmatpush1.bf16.msra.mxu1 %v3185_v39  ;;  %v3263_v39 = vld [vmem:[%s4734_s1 + $0x248] ss:$16 sps:$4 sm:$0xff]  }
  0x58   :  { %1733 = vmatpush1.bf16.msra.mxu0 %v3182_v38  ;;  %1816 = vmatprep.subr.bf16.mxu1 %v3193_v41  ;;  %v3260_v38 = vld [vmem:[%s4734_s1 + $0x640] ss:$16 sps:$4 sm:$0xff]  }
  0x59   :  { %1734 = vmatprep.subr.bf16.mxu0 %v3190_v40  ;;  %v3268_v40 = vld [vmem:[%s4734_s1 + $0x664] ss:$16 sps:$4 sm:$0xff]   ;;  %v3266_v41 = vld [vmem:[%s4734_s1 + $0x660] ss:$16 sps:$4 sm:$0xff]  }
  0x5b   :  { %1817 = vmatpush1.bf16.msra.mxu1 %v3191_v46  ;;  %v3272_v46 = vld [vmem:[%s4734_s1 + $0x680] ss:$16 sps:$4 sm:$0xff]  }
  0x5c   :  { %1735 = vmatpush1.bf16.msra.mxu0 %v3188_v45  ;;  %1818 = vmatprep.subr.bf16.mxu1 %v3199_v50  ;;  %v3277_v45 = vld [vmem:[%s4734_s1 + $0x28c] ss:$16 sps:$4 sm:$0xff]  }
  0x5d   :  { %1736 = vmatprep.subr.bf16.mxu0 %v3196_v48  ;;  %v3280_v48 = vld [vmem:[%s4734_s1 + $0x6a4] ss:$16 sps:$4 sm:$0xff]   ;;  %v3283_v50 = vld [vmem:[%s4734_s1 + $0x2ac] ss:$16 sps:$4 sm:$0xff]  }
  0x5f   :  { %1819 = vmatpush1.bf16.msra.mxu1 %v3197_v53  ;;  %v3281_v53 = vld [vmem:[%s4734_s1 + $0x2a8] ss:$16 sps:$4 sm:$0xff]  }
  0x60   :  { %1737 = vmatpush1.bf16.msra.mxu0 %v3194_v52  ;;  %1820 = vmatprep.subr.bf16.mxu1 %v3205_v55  ;;  %v3278_v52 = vld [vmem:[%s4734_s1 + $0x6a0] ss:$16 sps:$4 sm:$0xff]   ;;  %v3289_v55 = vld [vmem:[%s4734_s1 + $0x2cc] ss:$16 sps:$4 sm:$0xff]  }
  0x61   :  { %1738 = vmatprep.subr.bf16.mxu0 %v3202_v54  ;;  %v3286_v54 = vld [vmem:[%s4734_s1 + $0x6c4] ss:$16 sps:$4 sm:$0xff]  }
  0x63   :  { %1821 = vmatpush1.bf16.msra.mxu1 %v3203_v57  ;;  %v3287_v57 = vld [vmem:[%s4734_s1 + $0x2c8] ss:$16 sps:$4 sm:$0xff]  }
  0x64   :  { %1739 = vmatpush1.bf16.msra.mxu0 %v3200_v56  ;;  %1822 = vmatprep.subr.bf16.mxu1 %v3211_v59  ;;  %v3284_v56 = vld [vmem:[%s4734_s1 + $0x6c0] ss:$16 sps:$4 sm:$0xff]   ;;  %v3295_v59 = vld [vmem:[%s4734_s1 + $0x2ec] ss:$16 sps:$4 sm:$0xff]  }
  0x65   :  { %1740 = vmatprep.subr.bf16.mxu0 %v3208_v58  ;;  %v3292_v58 = vld [vmem:[%s4734_s1 + $0x6e4] ss:$16 sps:$4 sm:$0xff]  }
  0x67   :  { %1823 = vmatpush1.bf16.msra.mxu1 %v3209_v61  ;;  %v3293_v61 = vld [vmem:[%s4734_s1 + $0x2e8] ss:$16 sps:$4 sm:$0xff]  }
  0x68   :  { %1741 = vmatpush1.bf16.msra.mxu0 %v3206_v60  ;;  %1824 = vmatprep.subr.bf16.mxu1 %v3217_v63  ;;  %v3290_v60 = vld [vmem:[%s4734_s1 + $0x6e0] ss:$16 sps:$4 sm:$0xff]   ;;  %v3301_v63 = vld [vmem:[%s4734_s1 + $0x30c] ss:$16 sps:$4 sm:$0xff]  }
  0x69   :  { %1742 = vmatprep.subr.bf16.mxu0 %v3214_v62  ;;  %v3298_v62 = vld [vmem:[%s4734_s1 + $0x704] ss:$16 sps:$4 sm:$0xff]  }
  0x6b   :  { %1825 = vmatpush1.bf16.msra.mxu1 %v3215_v1  ;;  %v3299_v1 = vld [vmem:[%s4734_s1 + $0x308] ss:$16 sps:$4 sm:$0xff]  }
  0x6c   :  { %1743 = vmatpush1.bf16.msra.mxu0 %v3212_v0  ;;  %1826 = vmatprep.subr.bf16.mxu1 %v3223_v4  ;;  %v3296_v0 = vld [vmem:[%s4734_s1 + $0x700] ss:$16 sps:$4 sm:$0xff]   ;;  %v3307_v4 = vld [vmem:[%s4734_s1 + $0x32c] ss:$16 sps:$4 sm:$0xff]  }
  0x6d   :  { %1744 = vmatprep.subr.bf16.mxu0 %v3220_v2  ;;  %v3304_v2 = vld [vmem:[%s4734_s1 + $0x724] ss:$16 sps:$4 sm:$0xff]  }
  0x6f   :  { %1827 = vmatpush1.bf16.msra.mxu1 %v3221_v6  ;;  %v3305_v6 = vld [vmem:[%s4734_s1 + $0x328] ss:$16 sps:$4 sm:$0xff]  }
  0x70   :  { %1745 = vmatpush1.bf16.msra.mxu0 %v3218_v5  ;;  %1828 = vmatprep.subr.bf16.mxu1 %v3229_v8  ;;  %v3302_v5 = vld [vmem:[%s4734_s1 + $0x720] ss:$16 sps:$4 sm:$0xff]   ;;  %v3313_v8 = vld [vmem:[%s4734_s1 + $0x34c] ss:$16 sps:$4 sm:$0xff]  }
  0x71   :  { %1746 = vmatprep.subr.bf16.mxu0 %v3226_v7  ;;  %v3310_v7 = vld [vmem:[%s4734_s1 + $0x744] ss:$16 sps:$4 sm:$0xff]  }
  0x73   :  { %1829 = vmatpush1.bf16.msra.mxu1 %v3227_v10  ;;  %v3311_v10 = vld [vmem:[%s4734_s1 + $0x348] ss:$16 sps:$4 sm:$0xff]  }
  0x74   :  { %1747 = vmatpush1.bf16.msra.mxu0 %v3224_v9  ;;  %1830 = vmatprep.subr.bf16.mxu1 %v3235_v12  ;;  %v3308_v9 = vld [vmem:[%s4734_s1 + $0x740] ss:$16 sps:$4 sm:$0xff]   ;;  %v3319_v12 = vld [vmem:[%s4734_s1 + $0x36c] ss:$16 sps:$4 sm:$0xff]  }
  0x75   :  { %1748 = vmatprep.subr.bf16.mxu0 %v3232_v11  ;;  %v3316_v11 = vld [vmem:[%s4734_s1 + $0x764] ss:$16 sps:$4 sm:$0xff]  }
  0x77   :  { %1831 = vmatpush1.bf16.msra.mxu1 %v3233_v14  ;;  %v3317_v14 = vld [vmem:[%s4734_s1 + $0x368] ss:$16 sps:$4 sm:$0xff]  }
  0x78   :  { %1749 = vmatpush1.bf16.msra.mxu0 %v3230_v13  ;;  %1832 = vmatprep.subr.bf16.mxu1 %v3241_v17  ;;  %v3314_v13 = vld [vmem:[%s4734_s1 + $0x760] ss:$16 sps:$4 sm:$0xff]   ;;  %v3325_v17 = vld [vmem:[%s4734_s1 + $0x38c] ss:$16 sps:$4 sm:$0xff]  }
  0x79   :  { %1750 = vmatprep.subr.bf16.mxu0 %v3238_v15  ;;  %v3322_v15 = vld [vmem:[%s4734_s1 + $0x784] ss:$16 sps:$4 sm:$0xff]  }
  0x7b   :  { %1833 = vmatpush1.bf16.msra.mxu1 %v3239_v21  ;;  %v3328_v21 = vld [vmem:[%s4734_s1 + $0x7a4] ss:$16 sps:$4 sm:$0xff]  }
  0x7c   :  { %1751 = vmatpush1.bf16.msra.mxu0 %v3236_v20  ;;  %1834 = vmatprep.subr.bf16.mxu1 %v3247_v23  ;;  %v3323_v20 = vld [vmem:[%s4734_s1 + $0x388] ss:$16 sps:$4 sm:$0xff]   ;;  %v3326_v23 = vld [vmem:[%s4734_s1 + $0x7a0] ss:$16 sps:$4 sm:$0xff]  }
  0x7d   :  { %1752 = vmatprep.subr.bf16.mxu0 %v3244_v22  ;;  %v3331_v22 = vld [vmem:[%s4734_s1 + $0x3ac] ss:$16 sps:$4 sm:$0xff]  }
  0x7f   :  { %1835 = vmatpush1.bf16.msra.mxu1 %v3245_v26  ;;  %v3334_v26 = vld [vmem:[%s4734_s1 + $0x7c4] ss:$16 sps:$4 sm:$0xff]  }
  0x80   :  { %1753 = vmatpush1.bf16.msra.mxu0 %v3242_v25  ;;  %1845 = vmatprep.subr.bf16.mxu1 %v3253_v49  ;;  %v3329_v25 = vld [vmem:[%s4734_s1 + $0x3a8] ss:$16 sps:$4 sm:$0xff]   ;;  %v3332_v49 = vld [vmem:[%s4734_s1 + $0x7c0] ss:$16 sps:$4 sm:$0xff]  }
  0x81   :  { %1763 = vmatprep.subr.bf16.mxu0 %v3250_v27  ;;  %v3337_v27 = vld [vmem:[%s4734_s1 + $0x3cc] ss:$16 sps:$4 sm:$0xff]  }
  0x82   :  { %1837 = vmatmul.mubr.bf16.vlgmr.msra.gmra.mrb[4].mxu1 %v3834_v16  ;;  %v3265_v16 = vld [vmem:[%s4734_s1 + $0x24c] ss:$16 sps:$4 sm:$0xff]  }
  0x83   :  { %1755 = vmatmul.mubr.bf16.vlgmr.msra.gmra.mrb[0].mxu0 %v4055_v29  ;;  %1846 = vmatpush1.bf16.msra.mxu1 %v3251_v31  ;;  %v3343_v31 = vld [vmem:[%s4734_s1 + $0x3ec] ss:$16 sps:$4 sm:$0xff]  }
  0x84   :  { %1764 = vmatpush1.bf16.msra.mxu0 %v3248_v30  ;;  %1847 = vmatprep.subr.bf16.mxu1 %v3259_v33  ;;  %v3340_v30 = vld [vmem:[%s4734_s1 + $0x7e4] ss:$16 sps:$4 sm:$0xff]   ;;  %v3341_v33 = vld [vmem:[%s4734_s1 + $0x3e8] ss:$16 sps:$4 sm:$0xff]  }
  0x85   :  { %1765 = vmatprep.subr.bf16.mxu0 %v3256_v32  ;;  %1795 = vmatprep.mubr.bf16.mxu0 %v4069_v34  ;;  %v3338_v32 = vld [vmem:[%s4734_s1 + $0x7e0] ss:$16 sps:$4 sm:$0xff]  }
  0x86   :  { %1877 = vmatprep.mubr.bf16.mxu1 %v3795_v3  ;;  %v3271_v3 = vld [vmem:[%s4734_s1 + $0x26c] ss:$16 sps:$4 sm:$0xff]  }
  0x87   :  { %1848 = vmatpush1.bf16.msra.mxu1 %v3257_v36  ;;  %v3345_v36 = vld [vmem:[%s4734_s1 + $0x408] ss:$16 sps:$4 sm:$0xff]  }
  0x88   :  { %1766 = vmatpush1.bf16.msra.mxu0 %v3254_v35  ;;  %1849 = vmatprep.subr.bf16.mxu1 %v3265_v16  ;;  %v3347_v35 = vld [vmem:[%s4734_s1 + $0x40c] ss:$16 sps:$4 sm:$0xff]  }
  0x89   :  { %1767 = vmatprep.subr.bf16.mxu0 %v3262_v37  ;;  %v4257_v37 = vpack.c.bf16 %v4037_v24, %v4037_v24  ;;  %v3350_v16 = vld [vmem:[%s4734_s1 + $0x42c] ss:$16 sps:$4 sm:$0xff]  }
  0x8a   :  { %v3443_v24 = vld [vmem:[%s4736_s3 + $0x4] ss:$8 sps:$4 sm:$0xff]  }
  0x8b   :  { %1850 = vmatpush1.bf16.msra.mxu1 %v3263_v39  ;;  %v3348_v39 = vld [vmem:[%s4734_s1 + $0x428] ss:$16 sps:$4 sm:$0xff]  }
  0x8c   :  { %1768 = vmatpush1.bf16.msra.mxu0 %v3260_v38  ;;  %1851 = vmatprep.subr.bf16.mxu1 %v3271_v3  ;;  %v3441_v38 = vld [vmem:[%s4736_s3] ss:$8 sps:$4 sm:$0xff]   ;;  %v3444_v3 = vld [vmem:[%s4736_s3 + $0x10] ss:$8 sps:$4 sm:$0xff]  }
  0x8d   :  { %1769 = vmatprep.subr.bf16.mxu0 %v3268_v40  ;;  %v3446_v40 = vld [vmem:[%s4736_s3 + $0x14] ss:$8 sps:$4 sm:$0xff]  }
  0x8f   :  { %1852 = vmatpush1.bf16.msra.mxu1 %v3269_v42  ;;  %v3356_v42 = vld [vmem:[%s4734_s1 + $0x46c] ss:$16 sps:$4 sm:$0xff]  }
  0x90   :  { %1770 = vmatpush1.bf16.msra.mxu0 %v3266_v41  ;;  %1853 = vmatprep.subr.bf16.mxu1 %v3277_v45  ;;  %v3351_v41 = vld [vmem:[%s4734_s1 + $0x448] ss:$16 sps:$4 sm:$0xff]  }
  0x91   :  { %1771 = vmatprep.subr.bf16.mxu0 %v3274_v44  ;;  %v3447_v44 = vld [vmem:[%s4736_s3 + $0x20] ss:$8 sps:$4 sm:$0xff]  }
  0x92   :  { %v3354_v45 = vld [vmem:[%s4734_s1 + $0x468] ss:$16 sps:$4 sm:$0xff]  }
  0x93   :  { %1854 = vmatpush1.bf16.msra.mxu1 %v3275_v47  ;;  %v3452_v47 = vld [vmem:[%s4736_s3 + $0x34] ss:$8 sps:$4 sm:$0xff]  }
  0x94   :  { %1772 = vmatpush1.bf16.msra.mxu0 %v3272_v46  ;;  %1855 = vmatprep.subr.bf16.mxu1 %v3283_v50  ;;  %v3359_v46 = vld [vmem:[%s4734_s1 + $0x48c] ss:$16 sps:$4 sm:$0xff]  }
  0x95   :  { %1773 = vmatprep.subr.bf16.mxu0 %v3280_v48  ;;  %v3450_v48 = vld [vmem:[%s4736_s3 + $0x30] ss:$8 sps:$4 sm:$0xff]   ;;  %v3455_v50 = vld [vmem:[%s4736_s3 + $0x44] ss:$8 sps:$4 sm:$0xff]  }
  0x97   :  { %1856 = vmatpush1.bf16.msra.mxu1 %v3281_v53  ;;  %v3362_v53 = vld [vmem:[%s4734_s1 + $0x4ac] ss:$16 sps:$4 sm:$0xff]  }
  0x98   :  { %1774 = vmatpush1.bf16.msra.mxu0 %v3278_v52  ;;  %1857 = vmatprep.subr.bf16.mxu1 %v3289_v55  ;;  %v3357_v52 = vld [vmem:[%s4734_s1 + $0x488] ss:$16 sps:$4 sm:$0xff]   ;;  %v3458_v55 = vld [vmem:[%s4736_s3 + $0x54] ss:$8 sps:$4 sm:$0xff]  }
  0x99   :  { %1775 = vmatprep.subr.bf16.mxu0 %v3286_v54  ;;  %v3453_v54 = vld [vmem:[%s4736_s3 + $0x40] ss:$8 sps:$4 sm:$0xff]  }
  0x9b   :  { %1858 = vmatpush1.bf16.msra.mxu1 %v3287_v57  ;;  %v3365_v57 = vld [vmem:[%s4734_s1 + $0x4cc] ss:$16 sps:$4 sm:$0xff]  }
  0x9c   :  { %1776 = vmatpush1.bf16.msra.mxu0 %v3284_v56  ;;  %1859 = vmatprep.subr.bf16.mxu1 %v3295_v59  ;;  %v3360_v56 = vld [vmem:[%s4734_s1 + $0x4a8] ss:$16 sps:$4 sm:$0xff]  }
  0x9d   :  { %1777 = vmatprep.subr.bf16.mxu0 %v3292_v58 }
  0x9f   :  { %1860 = vmatpush1.bf16.msra.mxu1 %v3293_v61 }
  0xa0   :  { %1778 = vmatpush1.bf16.msra.mxu0 %v3290_v60  ;;  %1861 = vmatprep.subr.bf16.mxu1 %v3301_v63 }
  0xa1   :  { %1779 = vmatprep.subr.bf16.mxu0 %v3298_v62 }
  0xa3   :  { %1862 = vmatpush1.bf16.msra.mxu1 %v3299_v1 }
  0xa4   :  { %1780 = vmatpush1.bf16.msra.mxu0 %v3296_v0  ;;  %1863 = vmatprep.subr.bf16.mxu1 %v3307_v4 }
  0xa5   :  { %1781 = vmatprep.subr.bf16.mxu0 %v3304_v2 }
  0xa7   :  { %1864 = vmatpush1.bf16.msra.mxu1 %v3305_v6 }
  0xa8   :  { %1782 = vmatpush1.bf16.msra.mxu0 %v3302_v5  ;;  %1865 = vmatprep.subr.bf16.mxu1 %v3313_v8 }
  0xa9   :  { %1783 = vmatprep.subr.bf16.mxu0 %v3310_v7 }
  0xab   :  { %1866 = vmatpush1.bf16.msra.mxu1 %v3311_v10 }
  0xac   :  { %1784 = vmatpush1.bf16.msra.mxu0 %v3308_v9  ;;  %1867 = vmatprep.subr.bf16.mxu1 %v3319_v12 }
  0xad   :  { %1785 = vmatprep.subr.bf16.mxu0 %v3316_v11 }
  0xaf   :  { %1868 = vmatpush1.bf16.msra.mxu1 %v3317_v14 }
  0xb0   :  { %1786 = vmatpush1.bf16.msra.mxu0 %v3314_v13  ;;  %1869 = vmatprep.subr.bf16.mxu1 %v3325_v17 }
  0xb1   :  { %1787 = vmatprep.subr.bf16.mxu0 %v3322_v15 }
  0xb3   :  { %1870 = vmatpush1.bf16.msra.mxu1 %v3323_v20 }
  0xb4   :  { %1788 = vmatpush1.bf16.msra.mxu0 %v3320_v19  ;;  %1871 = vmatprep.subr.bf16.mxu1 %v3331_v22 }
  0xb5   :  { %1789 = vmatprep.subr.bf16.mxu0 %v3328_v21 }
  0xb7   :  { %1872 = vmatpush1.bf16.msra.mxu1 %v3329_v25 }
  0xb8   :  { %1790 = vmatpush1.bf16.msra.mxu0 %v3326_v23  ;;  %1873 = vmatprep.subr.bf16.mxu1 %v3337_v27 }
  0xb9   :  { %1791 = vmatprep.subr.bf16.mxu0 %v3334_v26 }
  0xbb   :  { %1874 = vmatpush1.bf16.msra.mxu1 %v3335_v28 }
  0xbc   :  { %1792 = vmatpush1.bf16.msra.mxu0 %v3332_v49  ;;  %1875 = vmatprep.subr.bf16.mxu1 %v3343_v31 }
  0xbd   :  { %1793 = vmatprep.subr.bf16.mxu0 %v3340_v30 }
  0xbf   :  { %1876 = vmatpush1.bf16.msra.mxu1 %v3341_v33 }
  0xc0   :  { %1794 = vmatpush1.bf16.msra.mxu0 %v3338_v32  ;;  %1886 = vmatprep.subr.bf16.mxu1 %v3347_v35 }
  0xc1   :  { %2372 = vmatprep.subr.bf16.mxu0 %v3443_v24 }
  0xc2   :  { %1878 = vmatmul.mubr.bf16.vlgmr.msra.gmra.mrb[4].mxu1 %v3839_v18  ;;  %v3353_v18 = vld [vmem:[%s4734_s1 + $0x44c] ss:$16 sps:$4 sm:$0xff]  }
  0xc3   :  { %1796 = vmatmul.mubr.bf16.vlgmr.msra.gmra.mrb[0].mxu0 %v4257_v37  ;;  %1887 = vmatpush1.bf16.msra.mxu1 %v3345_v36 }
  0xc4   :  { %1918 = vmatprep.mubr.bf16.mxu1 %v3935_v51  ;;  %1888 = vmatprep.subr.bf16.mxu1 %v3350_v16  ;;  %v3449_v51 = vld [vmem:[%s4736_s3 + $0x24] ss:$8 sps:$4 sm:$0xff]  }
  0xc5   :  { %2373 = vmatpush1.bf16.msra.mxu0 %v3441_v38 }
  0xc6   :  { %2374 = vmatprep.subr.bf16.mxu0 %v3446_v40 }
  0xc7   :  { %1889 = vmatpush1.bf16.msra.mxu1 %v3348_v39 }
  0xc8   :  { %1890 = vmatprep.subr.bf16.mxu1 %v3353_v18 }
  0xc9   :  { %2375 = vmatpush1.bf16.msra.mxu0 %v3444_v3 }
  0xca   :  { %2376 = vmatprep.subr.bf16.mxu0 %v3449_v51 }
  0xcb   :  { %1891 = vmatpush1.bf16.msra.mxu1 %v3351_v41 }
  0xcc   :  { %1892 = vmatprep.subr.bf16.mxu1 %v3356_v42 }
  0xcd   :  { %2377 = vmatpush1.bf16.msra.mxu0 %v3447_v44 }
  0xce   :  { %2378 = vmatprep.subr.bf16.mxu0 %v3452_v47 }
  0xcf   :  { %1893 = vmatpush1.bf16.msra.mxu1 %v3354_v45 }
  0xd0   :  { %1894 = vmatprep.subr.bf16.mxu1 %v3359_v46 }
  0xd1   :  { %2379 = vmatpush1.bf16.msra.mxu0 %v3450_v48 }
  0xd2   :  { %2380 = vmatprep.subr.bf16.mxu0 %v3455_v50 }
  0xd3   :  { %1895 = vmatpush1.bf16.msra.mxu1 %v3357_v52 }
  0xd4   :  { %1896 = vmatprep.subr.bf16.mxu1 %v3362_v53 }
  0xd5   :  { %12 = vsyncpa [#allocation3], 0  ;;  %2381 = vmatpush1.bf16.msra.mxu0 %v3453_v54  ;;  %v3456_v58 = vld [vmem:[%s4736_s3 + $0x50] ss:$8 sps:$4 sm:$0xff]   ;;  %v3461_v59 = vld [vmem:[%s4736_s3 + $0x64] ss:$8 sps:$4 sm:$0xff]  }
  0xd6   :  { %2382 = vmatprep.subr.bf16.mxu0 %v3458_v55  ;;  %v3363_v60 = vld [vmem:[%s4734_s1 + $0x4c8] ss:$16 sps:$4 sm:$0xff]   ;;  %v3368_v61 = vld [vmem:[%s4734_s1 + $0x4ec] ss:$16 sps:$4 sm:$0xff]   ;;  %vm2633_vm0 = vcmask 9216  }
  0xd7   :  { %1897 = vmatpush1.bf16.msra.mxu1 %v3360_v56  ;;  %v3459_v62 = vld [vmem:[%s4736_s3 + $0x60] ss:$8 sps:$4 sm:$0xff]   ;;  %v3464_v63 = vld [vmem:[%s4736_s3 + $0x74] ss:$8 sps:$4 sm:$0xff]   ;;  %v3462_v2 = vld [vmem:[%s4736_s3 + $0x70] ss:$8 sps:$4 sm:$0xff]  }
  0xd8   :  { %1898 = vmatprep.subr.bf16.mxu1 %v3365_v57  ;;  %v3366_v0 = vld [vmem:[%s4734_s1 + $0x4e8] ss:$16 sps:$4 sm:$0xff]   ;;  %v3371_v1 = vld [vmem:[%s4734_s1 + $0x50c] ss:$16 sps:$4 sm:$0xff]  }
  0xd9   :  { %2383 = vmatpush1.bf16.msra.mxu0 %v3456_v58  ;;  %v3467_v4 = vld [vmem:[%s4736_s3 + $0x84] ss:$8 sps:$4 sm:$0xff]   ;;  %v3369_v5 = vld [vmem:[%s4734_s1 + $0x508] ss:$16 sps:$4 sm:$0xff]   ;;  %v3470_v8 = vld [vmem:[%s4736_s3 + $0x94] ss:$8 sps:$4 sm:$0xff]  }
  0xda   :  { %2384 = vmatprep.subr.bf16.mxu0 %v3461_v59  ;;  %v3374_v6 = vld [vmem:[%s4734_s1 + $0x52c] ss:$16 sps:$4 sm:$0xff]   ;;  %v3465_v7 = vld [vmem:[%s4736_s3 + $0x80] ss:$8 sps:$4 sm:$0xff]   ;;  %v3468_v11 = vld [vmem:[%s4736_s3 + $0x90] ss:$8 sps:$4 sm:$0xff]  }
  0xdb   :  { %1899 = vmatpush1.bf16.msra.mxu1 %v3363_v60  ;;  %v3372_v9 = vld [vmem:[%s4734_s1 + $0x528] ss:$16 sps:$4 sm:$0xff]   ;;  %v3377_v10 = vld [vmem:[%s4734_s1 + $0x54c] ss:$16 sps:$4 sm:$0xff]  }
  0xdc   :  { %1900 = vmatprep.subr.bf16.mxu1 %v3368_v61  ;;  %v3473_v12 = vld [vmem:[%s4736_s3 + $0xa4] ss:$8 sps:$4 sm:$0xff]   ;;  %v3375_v13 = vld [vmem:[%s4734_s1 + $0x548] ss:$16 sps:$4 sm:$0xff]   ;;  %v3476_v17 = vld [vmem:[%s4736_s3 + $0xb4] ss:$8 sps:$4 sm:$0xff]  }
  0xdd   :  { %2385 = vmatpush1.bf16.msra.mxu0 %v3459_v62  ;;  %v3380_v14 = vld [vmem:[%s4734_s1 + $0x56c] ss:$16 sps:$4 sm:$0xff]   ;;  %v3471_v15 = vld [vmem:[%s4736_s3 + $0xa0] ss:$8 sps:$4 sm:$0xff]   ;;  %v3474_v21 = vld [vmem:[%s4736_s3 + $0xb0] ss:$8 sps:$4 sm:$0xff]  }
  0xde   :  { %2386 = vmatprep.subr.bf16.mxu0 %v3464_v63  ;;  %v3378_v19 = vld [vmem:[%s4734_s1 + $0x568] ss:$16 sps:$4 sm:$0xff]   ;;  %v3383_v20 = vld [vmem:[%s4734_s1 + $0x58c] ss:$16 sps:$4 sm:$0xff]  }
  0xdf   :  { %1901 = vmatpush1.bf16.msra.mxu1 %v3366_v0  ;;  %v3479_v22 = vld [vmem:[%s4736_s3 + $0xc4] ss:$8 sps:$4 sm:$0xff]   ;;  %v3381_v23 = vld [vmem:[%s4734_s1 + $0x588] ss:$16 sps:$4 sm:$0xff]   ;;  %v3482_v27 = vld [vmem:[%s4736_s3 + $0xd4] ss:$8 sps:$4 sm:$0xff]  }
  0xe0   :  { %1902 = vmatprep.subr.bf16.mxu1 %v3371_v1  ;;  %v3386_v25 = vld [vmem:[%s4734_s1 + $0x5ac] ss:$16 sps:$4 sm:$0xff]   ;;  %v3477_v26 = vld [vmem:[%s4736_s3 + $0xc0] ss:$8 sps:$4 sm:$0xff]   ;;  %v3480_v30 = vld [vmem:[%s4736_s3 + $0xd0] ss:$8 sps:$4 sm:$0xff]  }
  0xe1   :  { %2387 = vmatpush1.bf16.msra.mxu0 %v3462_v2  ;;  %v3384_v49 = vld [vmem:[%s4734_s1 + $0x5a8] ss:$16 sps:$4 sm:$0xff]   ;;  %v3389_v28 = vld [vmem:[%s4734_s1 + $0x5cc] ss:$16 sps:$4 sm:$0xff]  }
  0xe2   :  { %2388 = vmatprep.subr.bf16.mxu0 %v3467_v4  ;;  %v3387_v31 = vld [vmem:[%s4734_s1 + $0x5c8] ss:$16 sps:$4 sm:$0xff]   ;;  %v3392_v32 = vld [vmem:[%s4734_s1 + $0x5ec] ss:$16 sps:$4 sm:$0xff]  }
  0xe3   :  { %1903 = vmatpush1.bf16.msra.mxu1 %v3369_v5  ;;  %v3390_v33 = vld [vmem:[%s4734_s1 + $0x5e8] ss:$16 sps:$4 sm:$0xff]   ;;  %v3395_v35 = vld [vmem:[%s4734_s1 + $0x60c] ss:$16 sps:$4 sm:$0xff]  }
  0xe4   :  { %1904 = vmatprep.subr.bf16.mxu1 %v3374_v6  ;;  %v3393_v36 = vld [vmem:[%s4734_s1 + $0x608] ss:$16 sps:$4 sm:$0xff]   ;;  %v3398_v16 = vld [vmem:[%s4734_s1 + $0x62c] ss:$16 sps:$4 sm:$0xff]  }
  0xe5   :  { %2389 = vmatpush1.bf16.msra.mxu0 %v3465_v7  ;;  %v3396_v38 = vld [vmem:[%s4734_s1 + $0x628] ss:$16 sps:$4 sm:$0xff]   ;;  %v3401_v24 = vld [vmem:[%s4734_s1 + $0x64c] ss:$16 sps:$4 sm:$0xff]  }
  0xe6   :  { %2390 = vmatprep.subr.bf16.mxu0 %v3470_v8  ;;  %v3399_v39 = vld [vmem:[%s4734_s1 + $0x648] ss:$16 sps:$4 sm:$0xff]   ;;  %v3407_v40 = vld [vmem:[%s4734_s1 + $0x68c] ss:$16 sps:$4 sm:$0xff]  }
  0xe7   :  { %1905 = vmatpush1.bf16.msra.mxu1 %v3372_v9  ;;  %v3405_v18 = vld [vmem:[%s4734_s1 + $0x688] ss:$16 sps:$4 sm:$0xff]   ;;  %v3410_v3 = vld [vmem:[%s4734_s1 + $0x6ac] ss:$16 sps:$4 sm:$0xff]  }
  0xe8   :  { %1906 = vmatprep.subr.bf16.mxu1 %v3377_v10  ;;  %v3408_v51 = vld [vmem:[%s4734_s1 + $0x6a8] ss:$16 sps:$4 sm:$0xff]   ;;  %v3413_v41 = vld [vmem:[%s4734_s1 + $0x6cc] ss:$16 sps:$4 sm:$0xff]   ;;  %v342_v10 = vsub.s32 0, %v3740_v43 }
  0xe9   :  { %2391 = vmatpush1.bf16.msra.mxu0 %v3468_v11  ;;  %v3485_v42 = vld [vmem:[%s4736_s3 + $0xe4] ss:$8 sps:$4 sm:$0xff]   ;;  %v3483_v45 = vld [vmem:[%s4736_s3 + $0xe0] ss:$8 sps:$4 sm:$0xff]   ;;  %v3488_v53 = vld [vmem:[%s4736_s3 + $0xf4] ss:$8 sps:$4 sm:$0xff]  }
  0xea   :  { %2392 = vmatprep.subr.bf16.mxu0 %v3473_v12  ;;  %v3411_v48 = vld [vmem:[%s4734_s1 + $0x6c8] ss:$16 sps:$4 sm:$0xff]   ;;  %v3416_v52 = vld [vmem:[%s4734_s1 + $0x6ec] ss:$16 sps:$4 sm:$0xff]   ;;  %v4554_v11 = vld [vmem:[%s4735_s2] sm:$0xf] }
  0xeb   :  { %1907 = vmatpush1.bf16.msra.mxu1 %v3375_v13  ;;  %v3486_v54 = vld [vmem:[%s4736_s3 + $0xf0] ss:$8 sps:$4 sm:$0xff]   ;;  %v3419_v56 = vld [vmem:[%s4734_s1 + $0x70c] ss:$16 sps:$4 sm:$0xff]   ;;  %v346_v12 = vsub.s32 1, %v3740_v43  ;;  %v343_v13 = vrot.slane %v4554_v11, %v342_v10 }
  0xec   :  { %1908 = vmatprep.subr.bf16.mxu1 %v3380_v14  ;;  %v3414_v55 = vld [vmem:[%s4734_s1 + $0x6e8] ss:$16 sps:$4 sm:$0xff]   ;;  %v3491_v57 = vld [vmem:[%s4736_s3 + $0x104] ss:$8 sps:$4 sm:$0xff]  }
  0xed   :  { %2393 = vmatpush1.bf16.msra.mxu0 %v3471_v15  ;;  %v3417_v58 = vld [vmem:[%s4734_s1 + $0x708] ss:$16 sps:$4 sm:$0xff]   ;;  %v3422_v59 = vld [vmem:[%s4734_s1 + $0x72c] ss:$16 sps:$4 sm:$0xff]   ;;  %v347_v14 = vrot.slane %v4554_v11, %v346_v12 }
  0xee   :  { %2394 = vmatprep.subr.bf16.mxu0 %v3476_v17  ;;  %v3420_v60 = vld [vmem:[%s4734_s1 + $0x728] ss:$16 sps:$4 sm:$0xff]   ;;  %v3425_v61 = vld [vmem:[%s4734_s1 + $0x74c] ss:$16 sps:$4 sm:$0xff]  }
  0xef   :  { %1909 = vmatpush1.bf16.msra.mxu1 %v3378_v19  ;;  %v3423_v62 = vld [vmem:[%s4734_s1 + $0x748] ss:$16 sps:$4 sm:$0xff]   ;;  %v3428_v63 = vld [vmem:[%s4734_s1 + $0x76c] ss:$16 sps:$4 sm:$0xff]  }
  0xf0   :  { %1910 = vmatprep.subr.bf16.mxu1 %v3383_v20  ;;  %v3426_v0 = vld [vmem:[%s4734_s1 + $0x768] ss:$16 sps:$4 sm:$0xff]   ;;  %v3431_v1 = vld [vmem:[%s4734_s1 + $0x78c] ss:$16 sps:$4 sm:$0xff]  }
  0xf1   :  { %2395 = vmatpush1.bf16.msra.mxu0 %v3474_v21  ;;  %v3429_v2 = vld [vmem:[%s4734_s1 + $0x788] ss:$16 sps:$4 sm:$0xff]   ;;  %v3434_v4 = vld [vmem:[%s4734_s1 + $0x7ac] ss:$16 sps:$4 sm:$0xff]  }
  0xf2   :  { %2396 = vmatprep.subr.bf16.mxu0 %v3479_v22  ;;  %v3432_v5 = vld [vmem:[%s4734_s1 + $0x7a8] ss:$16 sps:$4 sm:$0xff]   ;;  %v3437_v6 = vld [vmem:[%s4734_s1 + $0x7cc] ss:$16 sps:$4 sm:$0xff]  }
  0xf3   :  { %1911 = vmatpush1.bf16.msra.mxu1 %v3381_v23  ;;  %v3435_v7 = vld [vmem:[%s4734_s1 + $0x7c8] ss:$16 sps:$4 sm:$0xff]   ;;  %v3440_v8 = vld [vmem:[%s4734_s1 + $0x7ec] ss:$16 sps:$4 sm:$0xff]  }
  0xf4   :  { %1912 = vmatprep.subr.bf16.mxu1 %v3386_v25  ;;  %v3438_v9 = vld [vmem:[%s4734_s1 + $0x7e8] ss:$16 sps:$4 sm:$0xff]  }
  0xf5   :  { %2397 = vmatpush1.bf16.msra.mxu0 %v3477_v26 }
  0xf6   :  { %2398 = vmatprep.subr.bf16.mxu0 %v3482_v27 }
  0xf7   :  { %1913 = vmatpush1.bf16.msra.mxu1 %v3384_v49  ;;  %v3489_v49 = vld [vmem:[%s4736_s3 + $0x100] ss:$8 sps:$4 sm:$0xff]  }
  0xf8   :  { %1914 = vmatprep.subr.bf16.mxu1 %v3389_v28 }
  0xf9   :  { %2399 = vmatpush1.bf16.msra.mxu0 %v3480_v30  ;;  %v3494_v30 = vld [vmem:[%s4736_s3 + $0x114] ss:$8 sps:$4 sm:$0xff]  }
  0xfa   :  { %2400 = vmatprep.subr.bf16.mxu0 %v3485_v42  ;;  %v3506_v42 = vld [vmem:[%s4736_s3 + $0x154] ss:$8 sps:$4 sm:$0xff]  }
  0xfb   :  { %1915 = vmatpush1.bf16.msra.mxu1 %v3387_v31  ;;  %v3537_v31 = vld [vmem:[%s4738_s5 + $0x40] sm:$0xff]  }
  0xfc   :  { %1916 = vmatprep.subr.bf16.mxu1 %v3392_v32  ;;  %v3538_v32 = vld [vmem:[%s4738_s5] sm:$0xff]  }
  0xfd   :  { %2401 = vmatpush1.bf16.msra.mxu0 %v3483_v45  ;;  %v3547_v45 = vld [vmem:[%s4738_s5 + $0x68] sm:$0xff]  }
  0xfe   :  { %2402 = vmatprep.subr.bf16.mxu0 %v3488_v53  ;;  %v3510_v53 = vld [vmem:[%s4736_s3 + $0x170] ss:$8 sps:$4 sm:$0xff]  }
  0xff   :  { %1917 = vmatpush1.bf16.msra.mxu1 %v3390_v33  ;;  %v3539_v33 = vld [vmem:[%s4738_s5 + $0x48] sm:$0xff]  }
 0x100   :  { %1927 = vmatprep.subr.bf16.mxu1 %v3395_v35  ;;  %v3492_v35 = vld [vmem:[%s4736_s3 + $0x110] ss:$8 sps:$4 sm:$0xff]  }
 0x101   :  { %2403 = vmatpush1.bf16.msra.mxu0 %v3486_v54  ;;  %v3515_v54 = vld [vmem:[%s4736_s3 + $0x184] ss:$8 sps:$4 sm:$0xff]  }
 0x102   :  { %1919 = vmatmul.mubr.bf16.vlgmr.msra.gmra.mrb[4].mxu1 %v4055_v29  ;;  %v3404_v29 = vld [vmem:[%s4734_s1 + $0x66c] ss:$16 sps:$4 sm:$0xff]   ;;  %2413 = vmatprep.subr.bf16.mxu0 %v3491_v57  ;;  %v3516_v57 = vld [vmem:[%s4736_s3 + $0x190] ss:$8 sps:$4 sm:$0xff]  }
 0x103   :  { %1928 = vmatpush1.bf16.msra.mxu1 %v3393_v36  ;;  %1959 = vmatprep.mubr.bf16.mxu1 %v4069_v34  ;;  %v3402_v34 = vld [vmem:[%s4734_s1 + $0x668] ss:$16 sps:$4 sm:$0xff]   ;;  %v3497_v36 = vld [vmem:[%s4736_s3 + $0x124] ss:$8 sps:$4 sm:$0xff]  }
 0x104   :  { %1929 = vmatprep.subr.bf16.mxu1 %v3398_v16  ;;  %v3540_v16 = vld [vmem:[%s4738_s5 + $0x8] sm:$0xff]  }
 0x107   :  { %1930 = vmatpush1.bf16.msra.mxu1 %v3396_v38  ;;  %v3541_v38 = vld [vmem:[%s4738_s5 + $0x50] sm:$0xff]  }
 0x108   :  { %1931 = vmatprep.subr.bf16.mxu1 %v3401_v24  ;;  %v3495_v24 = vld [vmem:[%s4736_s3 + $0x120] ss:$8 sps:$4 sm:$0xff]  }
 0x10b   :  { %1932 = vmatpush1.bf16.msra.mxu1 %v3399_v39  ;;  %v3500_v39 = vld [vmem:[%s4736_s3 + $0x134] ss:$8 sps:$4 sm:$0xff]  }
 0x10c   :  { %1933 = vmatprep.subr.bf16.mxu1 %v3404_v29  ;;  %v3542_v29 = vld [vmem:[%s4738_s5 + $0x10] sm:$0xff]  }
 0x10f   :  { %1934 = vmatpush1.bf16.msra.mxu1 %v3402_v34  ;;  %v3543_v34 = vld [vmem:[%s4738_s5 + $0x58] sm:$0xff]  }
 0x110   :  { %1935 = vmatprep.subr.bf16.mxu1 %v3407_v40  ;;  %v3498_v40 = vld [vmem:[%s4736_s3 + $0x130] ss:$8 sps:$4 sm:$0xff]  }
 0x113   :  { %1936 = vmatpush1.bf16.msra.mxu1 %v3405_v18  ;;  %v3503_v18 = vld [vmem:[%s4736_s3 + $0x144] ss:$8 sps:$4 sm:$0xff]  }
 0x114   :  { %1937 = vmatprep.subr.bf16.mxu1 %v3410_v3  ;;  %v3544_v3 = vld [vmem:[%s4738_s5 + $0x18] sm:$0xff]  }
 0x115   :  { %v1674_v44 = vpop.f32.mrb[0].mxu1 }
 0x116   :  { %v1676_v46 = vpop.f32.mrb[1].mxu1  ;;  %v1675_v15 = vadd.f32 %v1674_v44, %v343_v13  ;;  %v3546_v44 = vld [vmem:[%s4738_s5 + $0x20] sm:$0xff]  }
 0x117   :  { %v1678_v47 = vpop.f32.mrb[2].mxu1  ;;  %1938 = vmatpush1.bf16.msra.mxu1 %v3408_v51  ;;  %v1677_v17 = vadd.f32 %v1676_v46, %v347_v14  ;;  %v3545_v51 = vld [vmem:[%s4738_s5 + $0x60] sm:$0xff]   ;;  %v3504_v46 = vld [vmem:[%s4736_s3 + $0x150] ss:$8 sps:$4 sm:$0xff]  }
 0x118   :  { %v1679_v50 = vpop.f32.mrb[3].mxu1  ;;  %1939 = vmatprep.subr.bf16.mxu1 %v3413_v41  ;;  %v3501_v41 = vld [vmem:[%s4736_s3 + $0x140] ss:$8 sps:$4 sm:$0xff]   ;;  %v3509_v47 = vld [vmem:[%s4736_s3 + $0x164] ss:$8 sps:$4 sm:$0xff]  }
 0x119   :  { %v3507_v50 = vld [vmem:[%s4736_s3 + $0x160] ss:$8 sps:$4 sm:$0xff]  }
 0x11b   :  { %1940 = vmatpush1.bf16.msra.mxu1 %v3411_v48  ;;  %v3548_v48 = vld [vmem:[%s4738_s5 + $0x28] sm:$0xff]  }
 0x11c   :  { %1941 = vmatprep.subr.bf16.mxu1 %v3416_v52  ;;  %v3512_v52 = vld [vmem:[%s4736_s3 + $0x174] ss:$8 sps:$4 sm:$0xff]  }
 0x11f   :  { %1942 = vmatpush1.bf16.msra.mxu1 %v3414_v55  ;;  %v3513_v55 = vld [vmem:[%s4736_s3 + $0x180] ss:$8 sps:$4 sm:$0xff]  }
 0x120   :  { %1943 = vmatprep.subr.bf16.mxu1 %v3419_v56  ;;  %v3518_v56 = vld [vmem:[%s4736_s3 + $0x194] ss:$8 sps:$4 sm:$0xff]  }
 0x123   :  { %1944 = vmatpush1.bf16.msra.mxu1 %v3417_v58  ;;  %v3521_v58 = vld [vmem:[%s4736_s3 + $0x1a4] ss:$8 sps:$4 sm:$0xff]  }
 0x124   :  { %1945 = vmatprep.subr.bf16.mxu1 %v3422_v59  ;;  %v3519_v59 = vld [vmem:[%s4736_s3 + $0x1a0] ss:$8 sps:$4 sm:$0xff]  }
 0x127   :  { %1946 = vmatpush1.bf16.msra.mxu1 %v3420_v60  ;;  %v3524_v60 = vld [vmem:[%s4736_s3 + $0x1b4] ss:$8 sps:$4 sm:$0xff]  }
 0x128   :  { %1947 = vmatprep.subr.bf16.mxu1 %v3425_v61  ;;  %v3522_v61 = vld [vmem:[%s4736_s3 + $0x1b0] ss:$8 sps:$4 sm:$0xff]  }
 0x12b   :  { %1948 = vmatpush1.bf16.msra.mxu1 %v3423_v62  ;;  %v3527_v62 = vld [vmem:[%s4736_s3 + $0x1c4] ss:$8 sps:$4 sm:$0xff]  }
 0x12c   :  { %1949 = vmatprep.subr.bf16.mxu1 %v3428_v63  ;;  %v3525_v63 = vld [vmem:[%s4736_s3 + $0x1c0] ss:$8 sps:$4 sm:$0xff]  }
 0x12f   :  { %1950 = vmatpush1.bf16.msra.mxu1 %v3426_v0  ;;  %v3530_v0 = vld [vmem:[%s4736_s3 + $0x1d4] ss:$8 sps:$4 sm:$0xff]  }
 0x130   :  { %1951 = vmatprep.subr.bf16.mxu1 %v3431_v1  ;;  %v3528_v1 = vld [vmem:[%s4736_s3 + $0x1d0] ss:$8 sps:$4 sm:$0xff]  }
 0x133   :  { %1952 = vmatpush1.bf16.msra.mxu1 %v3429_v2  ;;  %v3533_v2 = vld [vmem:[%s4736_s3 + $0x1e4] ss:$8 sps:$4 sm:$0xff]  }
 0x134   :  { %1953 = vmatprep.subr.bf16.mxu1 %v3434_v4  ;;  %v3531_v4 = vld [vmem:[%s4736_s3 + $0x1e0] ss:$8 sps:$4 sm:$0xff]  }
 0x137   :  { %1954 = vmatpush1.bf16.msra.mxu1 %v3432_v5  ;;  %v3536_v5 = vld [vmem:[%s4736_s3 + $0x1f4] ss:$8 sps:$4 sm:$0xff]  }
 0x138   :  { %1955 = vmatprep.subr.bf16.mxu1 %v3437_v6  ;;  %v3534_v6 = vld [vmem:[%s4736_s3 + $0x1f0] ss:$8 sps:$4 sm:$0xff]  }
 0x13b   :  { %1956 = vmatpush1.bf16.msra.mxu1 %v3435_v7  ;;  %v350_v7 = vsub.s32 2, %v3740_v43 }
 0x13c   :  { %1957 = vmatprep.subr.bf16.mxu1 %v3440_v8  ;;  %v354_v8 = vsub.s32 3, %v3740_v43 }
 0x13e   :  { %v355_v13 = vrot.slane %v4554_v11, %v354_v8 }
 0x13f   :  { %1958 = vmatpush1.bf16.msra.mxu1 %v3438_v9  ;;  %v351_v9 = vrot.slane %v4554_v11, %v350_v7  ;;  %v3550_v11 = vld [vmem:[%s4738_s5 + $0x30] sm:$0xff]  }
 0x140   :  { %2999 = vmatprep.subr.bf16.mxu1 %v3537_v31 }
 0x142   :  { %1960 = vmatmul.mubr.bf16.vlgmr.msra.gmra.mrb[4].mxu1 %v4257_v37 }
 0x143   :  { %3000 = vmatpush3.bf16.msra.mxu1 %v3538_v32 }
 0x144   :  { %3001 = vmatprep.subr.bf16.mxu1 %v3539_v33 }
 0x147   :  { %3002 = vmatpush3.bf16.msra.mxu1 %v3540_v16 }
 0x148   :  { %3003 = vmatprep.subr.bf16.mxu1 %v3541_v38 }
 0x14b   :  { %3004 = vmatpush3.bf16.msra.mxu1 %v3542_v29 }
 0x14c   :  { %3005 = vmatprep.subr.bf16.mxu1 %v3543_v34 }
 0x14f   :  { %3006 = vmatpush3.bf16.msra.mxu1 %v3544_v3 }
 0x150   :  { %3007 = vmatprep.subr.bf16.mxu1 %v3545_v51 }
 0x153   :  { %3008 = vmatpush3.bf16.msra.mxu1 %v3546_v44 }
 0x154   :  { %3009 = vmatprep.subr.bf16.mxu1 %v3547_v45 }
 0x157   :  { %3010 = vmatpush3.bf16.msra.mxu1 %v3548_v48 }
 0x196   :  { %v1797_v37 = vpop.f32.mrb[0].mxu0 }
 0x197   :  { %v3022_v19 = vadd.f32 %v1797_v37, %v1675_v15  ;;  %v1799_v20 = vpop.f32.mrb[1].mxu0 }
 0x198   :  { %v3024_v21 = vadd.f32 %v1799_v20, %v1677_v17  ;;  %v1801_v22 = vpop.f32.mrb[2].mxu0 }
 0x199   :  { %v1968_v23 = vmax.f32 %v3022_v19, 0.0  ;;  %v1802_v25 = vpop.f32.mrb[3].mxu0 }
 0x19a   :  { %v1969_v26 = vmax.f32 %v3024_v21, 0.0 }
 0x19b   :  { %v1972_v28 = vpack.c.bf16 %v1968_v23, %v1968_v23 }
 0x19c   :  { %v1973_v27 = vpack.c.bf16 %v1969_v26, %v1969_v26  ;;  %v3549_v26 = vld [vmem:[%s4738_s5 + $0x70] sm:$0xff]  }
 0x19d   :  { %3011 = vmatprep.subr.bf16.mxu1 %v3549_v26 }
 0x19e   :  { %2404 = vmatprep.mubr.bf16.mxu0 %v1973_v27  ;;  %3012 = vmatpush3.bf16.msra.mxu1 %v3550_v11  ;;  %v3551_v27 = vld [vmem:[%s4738_s5 + $0x78] sm:$0xff]  }
 0x19f   :  { %2405 = vmatmul.mubr.bf16.vlgmr.msra.gmra.mrb[4].mxu0 %v1972_v28  ;;  %3013 = vmatprep.subr.bf16.mxu1 %v3551_v27  ;;  %v2040_v28 = vld [vmem:[%s4737_s4] sm:$0x3] }
 0x1a0   :  { %2414 = vmatpush1.bf16.msra.mxu0 %v3489_v49  ;;  %v3552_v49 = vld [vmem:[%s4738_s5 + $0x38] sm:$0xff]   ;;  %v2049_v31 = vrot.slane %v2040_v28, %v346_v12 }
 0x1a1   :  { %2415 = vmatprep.subr.bf16.mxu0 %v3494_v30  ;;  %v2045_v30 = vrot.slane %v2040_v28, %v342_v10  ;;  %v2982_v10 = vld [vmem:[%s4739_s6] ss:$0 sm:$0xff]  ;;  %s3582_s6 = smov [#allocation2]  }
 0x1a2   :  { %3014 = vmatpush3.bf16.msra.mxu1 %v3552_v49  ;;  %s2654_s30 = sshll.u32 %s3582_s6, 4  ;;  %s2655_s30 = int_to_ptr.vmem [resolvable:$true] %s2654_s30 }
 0x1a3   :  { %s3557_s8 = scalar_lea.vmem %s2655_s30, 32  ;;  %p3562_p1 = scmp.lt.s32.totalorder %s2655_s30, %s2655_s30 }
 0x1a4   :  { %2416 = vmatpush1.bf16.msra.mxu0 %v3492_v35  ;;  %p3558_p0 = scmp.ne.s32.totalorder %s2655_s30, %s3557_s8  ;;  %p3563_p2 = scmp.lt.s32.totalorder %s3557_s8, %s3557_s8 }
 0x1a5   :  { %2417 = vmatprep.subr.bf16.mxu0 %v3497_v36 }
 0x1a6   :  { %p3564_p3 = por %p3563_p2, %p3562_p1 }
 0x1a8   :  { %2418 = vmatpush1.bf16.msra.mxu0 %v3495_v24  ;;  %p3565_p4 = pnand %p3564_p3, %p3558_p0 }
 0x1a9   :  { %2419 = vmatprep.subr.bf16.mxu0 %v3500_v39 }
 0x1ac   :  { %2420 = vmatpush1.bf16.msra.mxu0 %v3498_v40 }
 0x1ad   :  { %2421 = vmatprep.subr.bf16.mxu0 %v3503_v18 }
 0x1b0   :  { %2422 = vmatpush1.bf16.msra.mxu0 %v3501_v41 }
 0x1b1   :  { %2423 = vmatprep.subr.bf16.mxu0 %v3506_v42 }
 0x1b4   :  { %2424 = vmatpush1.bf16.msra.mxu0 %v3504_v46 }
 0x1b5   :  { %2425 = vmatprep.subr.bf16.mxu0 %v3509_v47 }
 0x1b8   :  { %2426 = vmatpush1.bf16.msra.mxu0 %v3507_v50 }
 0x1b9   :  { %2427 = vmatprep.subr.bf16.mxu0 %v3512_v52 }
 0x1bc   :  { %2428 = vmatpush1.bf16.msra.mxu0 %v3510_v53 }
 0x1bd   :  { %2429 = vmatprep.subr.bf16.mxu0 %v3515_v54 }
 0x1c0   :  { %2430 = vmatpush1.bf16.msra.mxu0 %v3513_v55 }
 0x1c1   :  { %2431 = vmatprep.subr.bf16.mxu0 %v3518_v56 }
 0x1c4   :  { %2432 = vmatpush1.bf16.msra.mxu0 %v3516_v57 }
 0x1c5   :  { %2433 = vmatprep.subr.bf16.mxu0 %v3521_v58 }
 0x1c8   :  { %2434 = vmatpush1.bf16.msra.mxu0 %v3519_v59 }
 0x1c9   :  { %2435 = vmatprep.subr.bf16.mxu0 %v3524_v60 }
 0x1cc   :  { %2436 = vmatpush1.bf16.msra.mxu0 %v3522_v61 }
 0x1cd   :  { %2437 = vmatprep.subr.bf16.mxu0 %v3527_v62 }
 0x1d0   :  { %2438 = vmatpush1.bf16.msra.mxu0 %v3525_v63 }
 0x1d1   :  { %2439 = vmatprep.subr.bf16.mxu0 %v3530_v0 }
 0x1d4   :  { %2440 = vmatpush1.bf16.msra.mxu0 %v3528_v1 }
 0x1d5   :  { %2441 = vmatprep.subr.bf16.mxu0 %v3533_v2 }
 0x1d8   :  { %2442 = vmatpush1.bf16.msra.mxu0 %v3531_v4 }
 0x1d9   :  { %2443 = vmatprep.subr.bf16.mxu0 %v3536_v5 }
 0x1dc   :  { %2444 = vmatpush1.bf16.msra.mxu0 %v3534_v6 }
 0x215   :  { %v1961_v14 = vpop.f32.mrb[4].mxu1 }
 0x216   :  { %v3025_v15 = vadd.f32 %v1961_v14, %v351_v9  ;;  %v1963_v17 = vpop.f32.mrb[5].mxu1 }
 0x217   :  { %v3026_v37 = vadd.f32 %v1963_v17, %v355_v13  ;;  %v1965_v19 = vpop.f32.mrb[6].mxu1 }
 0x218   :  { %v1970_v20 = vmax.f32 %v3025_v15, 0.0  ;;  %v1966_v21 = vpop.f32.mrb[7].mxu1 }
 0x219   :  { %v1971_v22 = vmax.f32 %v3026_v37, 0.0 }
 0x21a   :  { %v1974_v25 = vpack.c.bf16 %v1970_v20, %v1970_v20 }
 0x21b   :  { %v1975_v23 = vpack.c.bf16 %v1971_v22, %v1971_v22 }
 0x21d   :  { %2445 = vmatprep.mubr.bf16.mxu0 %v1975_v23 }
 0x21e   :  { %2446 = vmatmul.mubr.bf16.vlgmr.msra.gmra.mrb[4].mxu0 %v1974_v25 }
 0x2f1   :  { %v2447_v32 = vpop.f32.mrb[4].mxu0 }
 0x2f2   :  { %v3027_v33 = vadd.f32 %v2447_v32, %v2045_v30  ;;  %v2449_v35 = vpop.f32.mrb[5].mxu0 }
 0x2f3   :  { %v3028_v36 = vadd.f32 %v2449_v35, %v2049_v31  ;;  %v2451_v16 = vpop.f32.mrb[6].mxu0 }
 0x2f4   :  { %v2454_v38 = vmax.f32 %v3027_v33, 0.0  ;;  %v2452_v24 = vpop.f32.mrb[7].mxu0 }
 0x2f5   :  { %v2455_v39 = vmax.f32 %v3028_v36, 0.0 }
 0x2f6   :  { %v2456_v34 = vpack.c.bf16 %v2454_v38, %v2454_v38 }
 0x2f7   :  { %v2457_v29 = vpack.c.bf16 %v2455_v39, %v2455_v39 }
 0x2f9   :  { %2625 = vmatprep.mubr.bf16.mxu1 %v2457_v29 }
 0x2fa   :  { %2626 = vmatmul.mubr.bf16.vlgmr.msra.gmra.mrb[8].mxu1 %v2456_v34 }
 0x3cd   :  { %v3015_v40 = vpop.f32.mrb[8].mxu1 }
 0x3ce   :  { %v3016_v18 = vpop.f32.mrb[9].mxu1 }
 0x3cf   :  { %v3017_v43 = vadd.f32 %v3016_v18, %v3015_v40  ;;  %v3018_v12 = vpop.f32.mrb[10].mxu1 }
 0x3d0   :  { %v3019_v3 = vpop.f32.mrb[11].mxu1 }
 0x3d1   :  { %v2628_v51 = vadd.f32 %v3017_v43, %v2982_v10 }
 0x3d3   :  { %v2634_v41 = vsel %vm2633_vm0, %v2628_v51, -inf }
 0x3d4   :  { %2635 = vmax.xlane.f32.xlu0 %v2634_v41 }
 0x461   :  { %v2636_v42 = vpop.xlane.xlu0 %2635 }
 0x462   :  { %v2637_v44 = vsub.f32 %v2628_v51, %v2636_v42 }
 0x464   :  { %v2638_v45 = vmul.f32 1.442695, %v2637_v44 }
 0x466   :  { %3553 = vpow2.f32 %v2638_v45 }
 0x470   :  { %v3554_v46 = vpop.eup %3553 }
 0x471   :  { %v2640_v47 = vsel %vm2633_vm0, %v3554_v46, 0.0 }
 0x472   :  { %2641 = vadd.xlane.f32.xlu0 %v2640_v47 }
 0x4ff   :  { %v2642_v48 = vpop.xlane.xlu0 %2641 }
 0x500   :  { %3555 = vlog2.f32 %v2642_v48 }
 0x50a   :  { %v3556_v50 = vpop.eup %3555 }
 0x50b   :  { %v2644_v52 = vmul.f32 0.6931472, %v3556_v50 }
 0x50d   :  { %v2645_v53 = vadd.f32 %v2644_v52, %v2636_v42 }
 0x50f   :  { %v2646_v54 = vsub.f32 %v2628_v51, %v2645_v53 }
 0x511   :  { %2647 = vst.msk [vmem:[#allocation2] sm:$0x3] %vm2633_vm0, %v2646_v54 }
 0x512   :  { %3568 = shalt.err (!%p3565_p4)
}
 0x513   :  { %s3569_s11 = scalar_lea.hbm %s4740_s7, 32 }
 0x514   :  { %p3570_p5 = scmp.ne.s32.totalorder %s4740_s7, %s3569_s11  ;;  %p3573_p6 = scmp.lt.u32.totalorder %s3569_s11, %s4740_s7 }
 0x516   :  { %p3575_p7 = pnand %p3573_p6, %p3570_p5 }
 0x518   :  { %3578 = shalt.err (!%p3575_p7)
}
 0x519   :  { %2657 = dma.vmem_to_hbm [thread:$0]  %s2655_s30, 32, %s4740_s7, [#allocation3]  }
 0x51a   :  { %3579 = dma.done.wait [#allocation3], 32  }
 0x51b   :  { %3580 = vsyncadd [#allocation3], 4294967264 }
 0x51c   :  { %2661 = vsyncpa [#allocation3], 1 }

</bundles_post_ra>
